<compile_context>
chip_gen: v5e
topology: v5e:2x2
jax: 0.10.0
libtpu: 0.0.40
codegen_flags: <defaults>
</compile_context>

<pallas_src>
import jax
import jax.numpy as jnp
from jax.experimental import pallas as pl
from jax.experimental.pallas import tpu as pltpu


# ----------------------------------------------------------------------------
# Pallas kernel: full forward pass (3-layer LSTM wavefront -> Linear -> L2 norm)
# ----------------------------------------------------------------------------
def dvector_kernel(x_ref,                           # (T*BPC, D_in)       f32
                   w_ih0_ref, w_hh0_ref, b0_ref,    # (D_in,4H) f32, (H,4H) bf16, (1,4H) f32
                   w_ih1_ref, w_hh1_ref, b1_ref,    # (H,4H) bf16 x2, (1,4H) f32
                   w_ih2_ref, w_hh2_ref, b2_ref,    # (H,4H) bf16 x2, (1,4H) f32
                   w_emb_ref, b_emb_ref,            # (H,E) f32, (1,E) f32
                   out_ref,                         # (BPC, E) f32
                   gates_buf):                      # VMEM scratch (T*BPC, 4H) f32
    BPC, E = out_ref.shape
    H = w_hh0_ref.shape[0]
    TB = x_ref.shape[0]
    T = TB // BPC

    # ---- Phase 1: hoisted layer-0 input projection for ALL timesteps --------
    # One tall GEMM (T*BPC, D_in) @ (D_in, 4H) + bias (added once per layer).
    gates_buf[...] = (jnp.dot(x_ref[...], w_ih0_ref[...],
                              preferred_element_type=jnp.float32)
                      + b0_ref[...])

    def cell(gates, c):
        # Gate columns reordered host-side to [i, f, o, g]:
        sig = jax.nn.sigmoid(gates[:, :3 * H])      # i, f, o with one EUP sweep
        i_g = sig[:, 0 * H:1 * H]
        f_g = sig[:, 1 * H:2 * H]
        o_g = sig[:, 2 * H:3 * H]
        g_g = jnp.tanh(gates[:, 3 * H:])
        c_new = f_g * c + i_g * g_g
        h_new = o_g * jnp.tanh(c_new)
        return h_new, c_new

    # ---- Phase 2: wavefront over the 3 layers --------------------------------
    # At wavefront step d: layer 0 handles t=d, layer 1 handles t=d-1 (using the
    # h0 carried in from step d-1), layer 2 handles t=d-2.  All per-step matmuls
    # are independent, so they overlap on the MXU.
    def step(d, carry):
        h0, c0, h1, c1, h2, c2 = carry
        h0b = h0.astype(jnp.bfloat16)
        h1b = h1.astype(jnp.bfloat16)
        h2b = h2.astype(jnp.bfloat16)

        # Layer 0 at t = d  (input projection already in gates_buf).
        t0 = jnp.minimum(d, T - 1)
        start = pl.multiple_of(t0 * BPC, BPC)
        g0 = (gates_buf[pl.ds(start, BPC), :]
              + jnp.dot(h0b, w_hh0_ref[...], preferred_element_type=jnp.float32))
        h0n, c0n = cell(g0, c0)
        a0 = d < T
        h0n = jnp.where(a0, h0n, h0)
        c0n = jnp.where(a0, c0n, c0)

        # Layer 1 at t = d - 1 (consumes h0 as carried INTO this step).
        g1 = (jnp.dot(h0b, w_ih1_ref[...], preferred_element_type=jnp.float32)
              + jnp.dot(h1b, w_hh1_ref[...], preferred_element_type=jnp.float32)
              + b1_ref[...])
        h1n, c1n = cell(g1, c1)
        a1 = jnp.logical_and(d >= 1, d <= T)
        h1n = jnp.where(a1, h1n, h1)
        c1n = jnp.where(a1, c1n, c1)

        # Layer 2 at t = d - 2 (consumes h1 as carried INTO this step).
        g2 = (jnp.dot(h1b, w_ih2_ref[...], preferred_element_type=jnp.float32)
              + jnp.dot(h2b, w_hh2_ref[...], preferred_element_type=jnp.float32)
              + b2_ref[...])
        h2n, c2n = cell(g2, c2)
        a2 = d >= 2
        h2n = jnp.where(a2, h2n, h2)
        c2n = jnp.where(a2, c2n, c2)

        return (h0n, c0n, h1n, c1n, h2n, c2n)

    zeros = jnp.zeros((BPC, H), jnp.float32)
    steps = T + 2                               # static Python int
    unroll = True if steps <= 16 else 8         # bounded unroll for long T
    carry = jax.lax.fori_loop(0, steps, step,
                              (zeros, zeros, zeros, zeros, zeros, zeros),
                              unroll=unroll)
    h_last = carry[4]                           # h of layer 2 at t = T-1

    # embedding = Linear(dim_cell -> dim_emb) on lstm_out[:, -1, :], L2-normed.
    embeds = (jnp.dot(h_last, w_emb_ref[...],
                      preferred_element_type=jnp.float32)
              + b_emb_ref[...])                 # (BPC, E)
    ss = jnp.sum(embeds * embeds, axis=-1, keepdims=True)
    out_ref[...] = embeds * jax.lax.rsqrt(ss)


# ----------------------------------------------------------------------------
# Wrapper
# ----------------------------------------------------------------------------
def _reorder_gates(w):
    """Permute the 4H gate axis from PyTorch [i, f, g, o] to [i, f, o, g]."""
    i, f, g, o = jnp.split(w, 4, axis=-1)
    return jnp.concatenate([i, f, o, g], axis=-1)


def _num_tensorcores():
    try:
        return max(1, int(getattr(jax.devices()[0], "num_cores", 1)))
    except Exception:
        return 1


def d_vector_forward(x, params):
    """x: (B, T, D_in) float32 (batch_first, like the PyTorch module)."""
    B, T, D_in = x.shape
    H = params["layers"][0][1].shape[0]
    E = params["w_emb_t"].shape[1]

    # Batch padding / per-core chunking.  Only split the batch across cores
    # when the device has >1 TensorCore (v7x) and there's enough batch for it;
    # on single-TC chips extra grid points would just serialize the recurrence.
    num_tc = _num_tensorcores()
    if num_tc > 1 and B > 8:
        step_pad = 8 * num_tc
        BP = ((B + step_pad - 1) // step_pad) * step_pad
        NC = num_tc
    else:
        BP = max(8, ((B + 7) // 8) * 8)
        NC = 1
    BPC = BP // NC

    # (B,T,D) -> (T,BP,D) -> (NC, T*BPC, D): each chunk is a contiguous slice
    # of the padded batch, pre-flattened time-major so the kernel never reshapes.
    x_t = jnp.transpose(x, (1, 0, 2))
    if BP != B:
        x_t = jnp.pad(x_t, ((0, 0), (0, BP - B), (0, 0)))
    x_chunks = (x_t.reshape(T, NC, BPC, D_in)
                   .transpose(1, 0, 2, 3)
                   .reshape(NC, T * BPC, D_in))

    # Gate reorder to [i, f, o, g]; recurrence weights in bf16 (f32 accumulate).
    bf16 = jnp.bfloat16
    (wi0, wh0, b0), (wi1, wh1, b1), (wi2, wh2, b2) = [
        (_reorder_gates(wi), _reorder_gates(wh), _reorder_gates(b))
        for (wi, wh, b) in params["layers"]]
    inputs = [x_chunks,
              wi0, wh0.astype(bf16), b0,
              wi1.astype(bf16), wh1.astype(bf16), b1,
              wi2.astype(bf16), wh2.astype(bf16), b2,
              params["w_emb_t"], params["b_emb"]]

    # VMEM budget: blocked x/out double-buffered + weights + gates scratch,
    # capped by the actual chip VMEM (v7x has only 64 MiB) with headroom.
    def nbytes(a):
        return int(a.size) * a.dtype.itemsize
    block_bytes = T * BPC * D_in * 4 + BPC * E * 4
    weight_bytes = sum(nbytes(a) for a in inputs[1:])
    scratch_bytes = T * BPC * 4 * H * 4
    need = 2 * (block_bytes + weight_bytes) + scratch_bytes + (4 << 20)
    try:
        cap = int(pltpu.get_tpu_info().vmem_capacity_bytes)
    except Exception:
        cap = 64 << 20                     # conservative fallback (v7x)
    cap = max(cap, 32 << 20)
    vmem_limit = int(min(max(need, 16 << 20), (cap * 3) // 4))

    weight_spec = lambda a: pl.BlockSpec(a.shape, lambda i: (0, 0))
    out = pl.pallas_call(
        dvector_kernel,
        out_shape=jax.ShapeDtypeStruct((NC, BPC, E), jnp.float32),
        grid=(NC,),
        in_specs=[pl.BlockSpec((None, T * BPC, D_in), lambda i: (i, 0, 0))]
                 + [weight_spec(a) for a in inputs[1:]],
        out_specs=pl.BlockSpec((None, BPC, E), lambda i: (i, 0, 0)),
        scratch_shapes=[pltpu.VMEM((T * BPC, 4 * H), jnp.float32)],
        compiler_params=pltpu.CompilerParams(
            dimension_semantics=("parallel",),
            vmem_limit_bytes=vmem_limit),
    )(*inputs)
    return out.reshape(NC * BPC, E)[:B]


# ----------------------------------------------------------------------------
# Pure-JAX reference (PyTorch LSTM semantics: gate order i, f, g, o; f32)
# ----------------------------------------------------------------------------
def d_vector_reference(x, params):
    B, T, _ = x.shape
    seq = x
    for (w_ih_t, w_hh_t, b) in params["layers"]:
        H = w_hh_t.shape[0]
        h = jnp.zeros((B, H), jnp.float32)
        c = jnp.zeros((B, H), jnp.float32)
        outs = []
        for t in range(T):
            gates = seq[:, t, :] @ w_ih_t + h @ w_hh_t + b
            i_g = jax.nn.sigmoid(gates[:, 0 * H:1 * H])
            f_g = jax.nn.sigmoid(gates[:, 1 * H:2 * H])
            g_g = jnp.tanh(gates[:, 2 * H:3 * H])
            o_g = jax.nn.sigmoid(gates[:, 3 * H:4 * H])
            c = f_g * c + i_g * g_g
            h = o_g * jnp.tanh(c)
            outs.append(h)
        seq = jnp.stack(outs, axis=1)
    embeds = seq[:, -1, :] @ params["w_emb_t"] + params["b_emb"]
    norm = jnp.linalg.norm(embeds, axis=-1, keepdims=True)
    return embeds / norm


# ----------------------------------------------------------------------------
# Deterministic parameter construction (shapes follow nn.LSTM / nn.Linear)
# ----------------------------------------------------------------------------
def make_params(key, num_layers, dim_input, dim_cell, dim_emb):
    k = 1.0 / jnp.sqrt(dim_cell)
    layers = []
    for l in range(num_layers):
        in_dim = dim_input if l == 0 else dim_cell
        key, k1, k2, k3, k4 = jax.random.split(key, 5)
        # PyTorch stores W_ih: (4H, in), W_hh: (4H, H); we pass transposes.
        w_ih_t = jax.random.uniform(k1, (in_dim, 4 * dim_cell), jnp.float32, -k, k)
        w_hh_t = jax.random.uniform(k2, (dim_cell, 4 * dim_cell), jnp.float32, -k, k)
        b_ih = jax.random.uniform(k3, (4 * dim_cell,), jnp.float32, -k, k)
        b_hh = jax.random.uniform(k4, (4 * dim_cell,), jnp.float32, -k, k)
        b = (b_ih + b_hh).reshape(1, 4 * dim_cell)
        layers.append((w_ih_t, w_hh_t, b))
    key, k1, k2 = jax.random.split(key, 3)
    ke = 1.0 / jnp.sqrt(dim_cell)
    w_emb_t = jax.random.uniform(k1, (dim_cell, dim_emb), jnp.float32, -ke, ke)
    b_emb = jax.random.uniform(k2, (1, dim_emb), jnp.float32, -ke, ke)
    return {"layers": layers, "w_emb_t": w_emb_t, "b_emb": b_emb}


if __name__ == "__main__":
    # Small shapes consistent with the module's forward
    # (dim_cell chosen lane-aligned; dim_emb matches the module default).
    B, T = 2, 8
    num_layers, dim_input, dim_cell, dim_emb = 3, 40, 128, 64

    key = jax.random.PRNGKey(0)
    key, kx = jax.random.split(key)
    x = jax.random.normal(kx, (B, T, dim_input), jnp.float32)
    params = make_params(key, num_layers, dim_input, dim_cell, dim_emb)

    out = d_vector_forward(x, params)
    out = jax.block_until_ready(out)

    ref = d_vector_reference(x, params)
    assert out.shape == (B, dim_emb)
    # bf16 recurrence weights -> loosened tolerance vs. the f32 reference.
    assert jnp.allclose(out, ref, rtol=2e-2, atol=2e-2), "mismatch vs reference"

    print("KERNEL_OK")
</pallas_src>

<mosaic_0001>
module attributes {stable_mosaic.version = 11 : i64} {
  func.func @dvector_kernel(%arg0: i32, %arg1: memref<1x64x40xf32, #tpu.memory_space<vmem>>, %arg2: memref<40x512xf32, #tpu.memory_space<vmem>>, %arg3: memref<128x512xbf16, #tpu.memory_space<vmem>>, %arg4: memref<1x512xf32, #tpu.memory_space<vmem>>, %arg5: memref<128x512xbf16, #tpu.memory_space<vmem>>, %arg6: memref<128x512xbf16, #tpu.memory_space<vmem>>, %arg7: memref<1x512xf32, #tpu.memory_space<vmem>>, %arg8: memref<128x512xbf16, #tpu.memory_space<vmem>>, %arg9: memref<128x512xbf16, #tpu.memory_space<vmem>>, %arg10: memref<1x512xf32, #tpu.memory_space<vmem>>, %arg11: memref<128x64xf32, #tpu.memory_space<vmem>>, %arg12: memref<1x64xf32, #tpu.memory_space<vmem>>, %arg13: memref<1x8x64xf32, #tpu.memory_space<vmem>>, %arg14: memref<64x512xf32, #tpu.memory_space<vmem>>) attributes {dimension_semantics = [#tpu.dimension_semantics<parallel>], iteration_bounds = array<i64: 1>, scalar_prefetch = 0 : i64, scratch_operands = 1 : i64, tpu.core_type = #tpu.core_type<tc>, window_params = [{transform_indices = @transform_0, window_bounds = array<i64: 1, 64, 40>}, {pipeline_mode = #tpu.pipeline_mode<synchronous>, transform_indices = @transform_1, window_bounds = array<i64: 40, 512>}, {pipeline_mode = #tpu.pipeline_mode<synchronous>, transform_indices = @transform_2, window_bounds = array<i64: 128, 512>}, {pipeline_mode = #tpu.pipeline_mode<synchronous>, transform_indices = @transform_3, window_bounds = array<i64: 1, 512>}, {pipeline_mode = #tpu.pipeline_mode<synchronous>, transform_indices = @transform_4, window_bounds = array<i64: 128, 512>}, {pipeline_mode = #tpu.pipeline_mode<synchronous>, transform_indices = @transform_5, window_bounds = array<i64: 128, 512>}, {pipeline_mode = #tpu.pipeline_mode<synchronous>, transform_indices = @transform_6, window_bounds = array<i64: 1, 512>}, {pipeline_mode = #tpu.pipeline_mode<synchronous>, transform_indices = @transform_7, window_bounds = array<i64: 128, 512>}, {pipeline_mode = #tpu.pipeline_mode<synchronous>, transform_indices = @transform_8, window_bounds = array<i64: 128, 512>}, {pipeline_mode = #tpu.pipeline_mode<synchronous>, transform_indices = @transform_9, window_bounds = array<i64: 1, 512>}, {pipeline_mode = #tpu.pipeline_mode<synchronous>, transform_indices = @transform_10, window_bounds = array<i64: 128, 64>}, {pipeline_mode = #tpu.pipeline_mode<synchronous>, transform_indices = @transform_11, window_bounds = array<i64: 1, 64>}, {transform_indices = @transform_12, window_bounds = array<i64: 1, 8, 64>}]} {
    %c0 = arith.constant 0 : index
    %c0_0 = arith.constant 0 : index
    %c0_1 = arith.constant 0 : index
    %0 = vector.load %arg1[%c0, %c0_0, %c0_1] : memref<1x64x40xf32, #tpu.memory_space<vmem>>, vector<1x64x40xf32>
    %1 = vector.shape_cast %0 : vector<1x64x40xf32> to vector<64x40xf32>
    %c0_2 = arith.constant 0 : index
    %c0_3 = arith.constant 0 : index
    %2 = vector.load %arg2[%c0_2, %c0_3] : memref<40x512xf32, #tpu.memory_space<vmem>>, vector<40x512xf32>
    %cst = arith.constant dense<0.000000e+00> : vector<64x512xf32>
    %3 = tpu.matmul %1, %2, %cst {dimension_numbers = #tpu.dot_dimension_numbers<[1], [0], [0], [1], [0, 0, 1, 1], [], []>} : vector<64x40xf32>, vector<40x512xf32>, vector<64x512xf32> -> vector<64x512xf32>
    %c0_4 = arith.constant 0 : index
    %c0_5 = arith.constant 0 : index
    %4 = vector.load %arg4[%c0_4, %c0_5] : memref<1x512xf32, #tpu.memory_space<vmem>>, vector<1x512xf32>
    %5 = vector.broadcast %4 : vector<1x512xf32> to vector<64x512xf32>
    %6 = arith.addf %3, %5 : vector<64x512xf32>
    %c0_6 = arith.constant 0 : index
    %c0_7 = arith.constant 0 : index
    %7 = vector.load %arg14[%c0_6, %c0_7] : memref<64x512xf32, #tpu.memory_space<vmem>>, vector<64x512xf32>
    tpu.vector_store %arg14[%c0_6, %c0_7], %6 {strides = array<i32>} : memref<64x512xf32, #tpu.memory_space<vmem>>, vector<64x512xf32>,
    %cst_8 = arith.constant 0.000000e+00 : f32
    %8 = vector.broadcast %cst_8 : f32 to vector<8x128xf32>
    %c0_i32 = arith.constant 0 : i32
    %9 = arith.truncf %8 : vector<8x128xf32> to vector<8x128xbf16>
    %10 = arith.truncf %8 : vector<8x128xf32> to vector<8x128xbf16>
    %11 = arith.truncf %8 : vector<8x128xf32> to vector<8x128xbf16>
    %c7_i32 = arith.constant 7 : i32
    %12 = arith.minsi %c0_i32, %c7_i32 : i32
    %c8_i32 = arith.constant 8 : i32
    %13 = arith.muli %12, %c8_i32 : i32
    %14 = tpu.assume_multiple %13, 8 : i32
    %15 = arith.index_cast %14 : i32 to index
    %c0_9 = arith.constant 0 : index
    %16 = vector.load %arg14[%15, %c0_9] : memref<64x512xf32, #tpu.memory_space<vmem>>, vector<8x512xf32>
    %c0_10 = arith.constant 0 : index
    %c0_11 = arith.constant 0 : index
    %17 = vector.load %arg3[%c0_10, %c0_11] : memref<128x512xbf16, #tpu.memory_space<vmem>>, vector<128x512xbf16>
    %cst_12 = arith.constant dense<0.000000e+00> : vector<8x512xf32>
    %18 = tpu.matmul %9, %17, %cst_12 {dimension_numbers = #tpu.dot_dimension_numbers<[1], [0], [0], [1], [0, 0, 1, 1], [], []>} : vector<8x128xbf16>, vector<128x512xbf16>, vector<8x512xf32> -> vector<8x512xf32>
    %19 = arith.addf %16, %18 : vector<8x512xf32>
    %20 = vector.extract_strided_slice %19 {offsets = [0, 0], sizes = [8, 384], strides = [1, 1]} : vector<8x512xf32> to vector<8x384xf32>
    %21 = arith.negf %20 : vector<8x384xf32>
    %22 = math.exp %21 : vector<8x384xf32>
    %cst_13 = arith.constant 1.000000e+00 : f32
    %23 = vector.broadcast %cst_13 : f32 to vector<8x384xf32>
    %24 = arith.addf %23, %22 : vector<8x384xf32>
    %25 = arith.divf %23, %24 : vector<8x384xf32>
    %26 = vector.extract_strided_slice %25 {offsets = [0, 0], sizes = [8, 128], strides = [1, 1]} : vector<8x384xf32> to vector<8x128xf32>
    %27 = vector.extract_strided_slice %25 {offsets = [0, 128], sizes = [8, 128], strides = [1, 1]} : vector<8x384xf32> to vector<8x128xf32>
    %28 = vector.extract_strided_slice %25 {offsets = [0, 256], sizes = [8, 128], strides = [1, 1]} : vector<8x384xf32> to vector<8x128xf32>
    %29 = vector.extract_strided_slice %19 {offsets = [0, 384], sizes = [8, 128], strides = [1, 1]} : vector<8x512xf32> to vector<8x128xf32>
    %30 = math.tanh %29 : vector<8x128xf32>
    %31 = arith.mulf %27, %8 : vector<8x128xf32>
    %32 = arith.mulf %26, %30 : vector<8x128xf32>
    %33 = arith.addf %31, %32 : vector<8x128xf32>
    %34 = math.tanh %33 : vector<8x128xf32>
    %35 = arith.mulf %28, %34 : vector<8x128xf32>
    %c8_i32_14 = arith.constant 8 : i32
    %36 = arith.cmpi slt, %c0_i32, %c8_i32_14 : i32
    %37 = arith.select %36, %35, %8 : vector<8x128xf32>
    %38 = arith.select %36, %33, %8 : vector<8x128xf32>
    %c0_15 = arith.constant 0 : index
    %c0_16 = arith.constant 0 : index
    %39 = vector.load %arg5[%c0_15, %c0_16] : memref<128x512xbf16, #tpu.memory_space<vmem>>, vector<128x512xbf16>
    %cst_17 = arith.constant dense<0.000000e+00> : vector<8x512xf32>
    %40 = tpu.matmul %9, %39, %cst_17 {dimension_numbers = #tpu.dot_dimension_numbers<[1], [0], [0], [1], [0, 0, 1, 1], [], []>} : vector<8x128xbf16>, vector<128x512xbf16>, vector<8x512xf32> -> vector<8x512xf32>
    %c0_18 = arith.constant 0 : index
    %c0_19 = arith.constant 0 : index
    %41 = vector.load %arg6[%c0_18, %c0_19] : memref<128x512xbf16, #tpu.memory_space<vmem>>, vector<128x512xbf16>
    %cst_20 = arith.constant dense<0.000000e+00> : vector<8x512xf32>
    %42 = tpu.matmul %10, %41, %cst_20 {dimension_numbers = #tpu.dot_dimension_numbers<[1], [0], [0], [1], [0, 0, 1, 1], [], []>} : vector<8x128xbf16>, vector<128x512xbf16>, vector<8x512xf32> -> vector<8x512xf32>
    %43 = arith.addf %40, %42 : vector<8x512xf32>
    %c0_21 = arith.constant 0 : index
    %c0_22 = arith.constant 0 : index
    %44 = vector.load %arg7[%c0_21, %c0_22] : memref<1x512xf32, #tpu.memory_space<vmem>>, vector<1x512xf32>
    %45 = vector.broadcast %44 : vector<1x512xf32> to vector<8x512xf32>
    %46 = arith.addf %43, %45 : vector<8x512xf32>
    %47 = vector.extract_strided_slice %46 {offsets = [0, 0], sizes = [8, 384], strides = [1, 1]} : vector<8x512xf32> to vector<8x384xf32>
    %48 = arith.negf %47 : vector<8x384xf32>
    %49 = math.exp %48 : vector<8x384xf32>
    %cst_23 = arith.constant 1.000000e+00 : f32
    %50 = vector.broadcast %cst_23 : f32 to vector<8x384xf32>
    %51 = arith.addf %50, %49 : vector<8x384xf32>
    %52 = arith.divf %50, %51 : vector<8x384xf32>
    %53 = vector.extract_strided_slice %52 {offsets = [0, 0], sizes = [8, 128], strides = [1, 1]} : vector<8x384xf32> to vector<8x128xf32>
    %54 = vector.extract_strided_slice %52 {offsets = [0, 128], sizes = [8, 128], strides = [1, 1]} : vector<8x384xf32> to vector<8x128xf32>
    %55 = vector.extract_strided_slice %52 {offsets = [0, 256], sizes = [8, 128], strides = [1, 1]} : vector<8x384xf32> to vector<8x128xf32>
    %56 = vector.extract_strided_slice %46 {offsets = [0, 384], sizes = [8, 128], strides = [1, 1]} : vector<8x512xf32> to vector<8x128xf32>
    %57 = math.tanh %56 : vector<8x128xf32>
    %58 = arith.mulf %54, %8 : vector<8x128xf32>
    %59 = arith.mulf %53, %57 : vector<8x128xf32>
    %60 = arith.addf %58, %59 : vector<8x128xf32>
    %61 = math.tanh %60 : vector<8x128xf32>
    %62 = arith.mulf %55, %61 : vector<8x128xf32>
    %c1_i32 = arith.constant 1 : i32
    %63 = arith.cmpi sge, %c0_i32, %c1_i32 : i32
    %c8_i32_24 = arith.constant 8 : i32
    %64 = arith.cmpi sle, %c0_i32, %c8_i32_24 : i32
    %65 = arith.andi %63, %64 : i1
    %66 = arith.select %65, %62, %8 : vector<8x128xf32>
    %67 = arith.select %65, %60, %8 : vector<8x128xf32>
    %c0_25 = arith.constant 0 : index
    %c0_26 = arith.constant 0 : index
    %68 = vector.load %arg8[%c0_25, %c0_26] : memref<128x512xbf16, #tpu.memory_space<vmem>>, vector<128x512xbf16>
    %cst_27 = arith.constant dense<0.000000e+00> : vector<8x512xf32>
    %69 = tpu.matmul %10, %68, %cst_27 {dimension_numbers = #tpu.dot_dimension_numbers<[1], [0], [0], [1], [0, 0, 1, 1], [], []>} : vector<8x128xbf16>, vector<128x512xbf16>, vector<8x512xf32> -> vector<8x512xf32>
    %c0_28 = arith.constant 0 : index
    %c0_29 = arith.constant 0 : index
    %70 = vector.load %arg9[%c0_28, %c0_29] : memref<128x512xbf16, #tpu.memory_space<vmem>>, vector<128x512xbf16>
    %cst_30 = arith.constant dense<0.000000e+00> : vector<8x512xf32>
    %71 = tpu.matmul %11, %70, %cst_30 {dimension_numbers = #tpu.dot_dimension_numbers<[1], [0], [0], [1], [0, 0, 1, 1], [], []>} : vector<8x128xbf16>, vector<128x512xbf16>, vector<8x512xf32> -> vector<8x512xf32>
    %72 = arith.addf %69, %71 : vector<8x512xf32>
    %c0_31 = arith.constant 0 : index
    %c0_32 = arith.constant 0 : index
    %73 = vector.load %arg10[%c0_31, %c0_32] : memref<1x512xf32, #tpu.memory_space<vmem>>, vector<1x512xf32>
    %74 = vector.broadcast %73 : vector<1x512xf32> to vector<8x512xf32>
    %75 = arith.addf %72, %74 : vector<8x512xf32>
    %76 = vector.extract_strided_slice %75 {offsets = [0, 0], sizes = [8, 384], strides = [1, 1]} : vector<8x512xf32> to vector<8x384xf32>
    %77 = arith.negf %76 : vector<8x384xf32>
    %78 = math.exp %77 : vector<8x384xf32>
    %cst_33 = arith.constant 1.000000e+00 : f32
    %79 = vector.broadcast %cst_33 : f32 to vector<8x384xf32>
    %80 = arith.addf %79, %78 : vector<8x384xf32>
    %81 = arith.divf %79, %80 : vector<8x384xf32>
    %82 = vector.extract_strided_slice %81 {offsets = [0, 0], sizes = [8, 128], strides = [1, 1]} : vector<8x384xf32> to vector<8x128xf32>
    %83 = vector.extract_strided_slice %81 {offsets = [0, 128], sizes = [8, 128], strides = [1, 1]} : vector<8x384xf32> to vector<8x128xf32>
    %84 = vector.extract_strided_slice %81 {offsets = [0, 256], sizes = [8, 128], strides = [1, 1]} : vector<8x384xf32> to vector<8x128xf32>
    %85 = vector.extract_strided_slice %75 {offsets = [0, 384], sizes = [8, 128], strides = [1, 1]} : vector<8x512xf32> to vector<8x128xf32>
    %86 = math.tanh %85 : vector<8x128xf32>
    %87 = arith.mulf %83, %8 : vector<8x128xf32>
    %88 = arith.mulf %82, %86 : vector<8x128xf32>
    %89 = arith.addf %87, %88 : vector<8x128xf32>
    %90 = math.tanh %89 : vector<8x128xf32>
    %91 = arith.mulf %84, %90 : vector<8x128xf32>
    %c2_i32 = arith.constant 2 : i32
    %92 = arith.cmpi sge, %c0_i32, %c2_i32 : i32
    %93 = arith.select %92, %91, %8 : vector<8x128xf32>
    %94 = arith.select %92, %89, %8 : vector<8x128xf32>
    %c1_i32_34 = arith.constant 1 : i32
    %95 = arith.truncf %37 : vector<8x128xf32> to vector<8x128xbf16>
    %96 = arith.truncf %66 : vector<8x128xf32> to vector<8x128xbf16>
    %97 = arith.truncf %93 : vector<8x128xf32> to vector<8x128xbf16>
    %c7_i32_35 = arith.constant 7 : i32
    %98 = arith.minsi %c1_i32_34, %c7_i32_35 : i32
    %c8_i32_36 = arith.constant 8 : i32
    %99 = arith.muli %98, %c8_i32_36 : i32
    %100 = tpu.assume_multiple %99, 8 : i32
    %101 = arith.index_cast %100 : i32 to index
    %c0_37 = arith.constant 0 : index
    %102 = vector.load %arg14[%101, %c0_37] : memref<64x512xf32, #tpu.memory_space<vmem>>, vector<8x512xf32>
    %c0_38 = arith.constant 0 : index
    %c0_39 = arith.constant 0 : index
    %103 = vector.load %arg3[%c0_38, %c0_39] : memref<128x512xbf16, #tpu.memory_space<vmem>>, vector<128x512xbf16>
    %cst_40 = arith.constant dense<0.000000e+00> : vector<8x512xf32>
    %104 = tpu.matmul %95, %103, %cst_40 {dimension_numbers = #tpu.dot_dimension_numbers<[1], [0], [0], [1], [0, 0, 1, 1], [], []>} : vector<8x128xbf16>, vector<128x512xbf16>, vector<8x512xf32> -> vector<8x512xf32>
    %105 = arith.addf %102, %104 : vector<8x512xf32>
    %106 = vector.extract_strided_slice %105 {offsets = [0, 0], sizes = [8, 384], strides = [1, 1]} : vector<8x512xf32> to vector<8x384xf32>
    %107 = arith.negf %106 : vector<8x384xf32>
    %108 = math.exp %107 : vector<8x384xf32>
    %cst_41 = arith.constant 1.000000e+00 : f32
    %109 = vector.broadcast %cst_41 : f32 to vector<8x384xf32>
    %110 = arith.addf %109, %108 : vector<8x384xf32>
    %111 = arith.divf %109, %110 : vector<8x384xf32>
    %112 = vector.extract_strided_slice %111 {offsets = [0, 0], sizes = [8, 128], strides = [1, 1]} : vector<8x384xf32> to vector<8x128xf32>
    %113 = vector.extract_strided_slice %111 {offsets = [0, 128], sizes = [8, 128], strides = [1, 1]} : vector<8x384xf32> to vector<8x128xf32>
    %114 = vector.extract_strided_slice %111 {offsets = [0, 256], sizes = [8, 128], strides = [1, 1]} : vector<8x384xf32> to vector<8x128xf32>
    %115 = vector.extract_strided_slice %105 {offsets = [0, 384], sizes = [8, 128], strides = [1, 1]} : vector<8x512xf32> to vector<8x128xf32>
    %116 = math.tanh %115 : vector<8x128xf32>
    %117 = arith.mulf %113, %38 : vector<8x128xf32>
    %118 = arith.mulf %112, %116 : vector<8x128xf32>
    %119 = arith.addf %117, %118 : vector<8x128xf32>
    %120 = math.tanh %119 : vector<8x128xf32>
    %121 = arith.mulf %114, %120 : vector<8x128xf32>
    %c8_i32_42 = arith.constant 8 : i32
    %122 = arith.cmpi slt, %c1_i32_34, %c8_i32_42 : i32
    %123 = arith.select %122, %121, %37 : vector<8x128xf32>
    %124 = arith.select %122, %119, %38 : vector<8x128xf32>
    %c0_43 = arith.constant 0 : index
    %c0_44 = arith.constant 0 : index
    %125 = vector.load %arg5[%c0_43, %c0_44] : memref<128x512xbf16, #tpu.memory_space<vmem>>, vector<128x512xbf16>
    %cst_45 = arith.constant dense<0.000000e+00> : vector<8x512xf32>
    %126 = tpu.matmul %95, %125, %cst_45 {dimension_numbers = #tpu.dot_dimension_numbers<[1], [0], [0], [1], [0, 0, 1, 1], [], []>} : vector<8x128xbf16>, vector<128x512xbf16>, vector<8x512xf32> -> vector<8x512xf32>
    %c0_46 = arith.constant 0 : index
    %c0_47 = arith.constant 0 : index
    %127 = vector.load %arg6[%c0_46, %c0_47] : memref<128x512xbf16, #tpu.memory_space<vmem>>, vector<128x512xbf16>
    %cst_48 = arith.constant dense<0.000000e+00> : vector<8x512xf32>
    %128 = tpu.matmul %96, %127, %cst_48 {dimension_numbers = #tpu.dot_dimension_numbers<[1], [0], [0], [1], [0, 0, 1, 1], [], []>} : vector<8x128xbf16>, vector<128x512xbf16>, vector<8x512xf32> -> vector<8x512xf32>
    %129 = arith.addf %126, %128 : vector<8x512xf32>
    %c0_49 = arith.constant 0 : index
    %c0_50 = arith.constant 0 : index
    %130 = vector.load %arg7[%c0_49, %c0_50] : memref<1x512xf32, #tpu.memory_space<vmem>>, vector<1x512xf32>
    %131 = vector.broadcast %130 : vector<1x512xf32> to vector<8x512xf32>
    %132 = arith.addf %129, %131 : vector<8x512xf32>
    %133 = vector.extract_strided_slice %132 {offsets = [0, 0], sizes = [8, 384], strides = [1, 1]} : vector<8x512xf32> to vector<8x384xf32>
    %134 = arith.negf %133 : vector<8x384xf32>
    %135 = math.exp %134 : vector<8x384xf32>
    %cst_51 = arith.constant 1.000000e+00 : f32
    %136 = vector.broadcast %cst_51 : f32 to vector<8x384xf32>
    %137 = arith.addf %136, %135 : vector<8x384xf32>
    %138 = arith.divf %136, %137 : vector<8x384xf32>
    %139 = vector.extract_strided_slice %138 {offsets = [0, 0], sizes = [8, 128], strides = [1, 1]} : vector<8x384xf32> to vector<8x128xf32>
    %140 = vector.extract_strided_slice %138 {offsets = [0, 128], sizes = [8, 128], strides = [1, 1]} : vector<8x384xf32> to vector<8x128xf32>
    %141 = vector.extract_strided_slice %138 {offsets = [0, 256], sizes = [8, 128], strides = [1, 1]} : vector<8x384xf32> to vector<8x128xf32>
    %142 = vector.extract_strided_slice %132 {offsets = [0, 384], sizes = [8, 128], strides = [1, 1]} : vector<8x512xf32> to vector<8x128xf32>
    %143 = math.tanh %142 : vector<8x128xf32>
    %144 = arith.mulf %140, %67 : vector<8x128xf32>
    %145 = arith.mulf %139, %143 : vector<8x128xf32>
    %146 = arith.addf %144, %145 : vector<8x128xf32>
    %147 = math.tanh %146 : vector<8x128xf32>
    %148 = arith.mulf %141, %147 : vector<8x128xf32>
    %c1_i32_52 = arith.constant 1 : i32
    %149 = arith.cmpi sge, %c1_i32_34, %c1_i32_52 : i32
    %c8_i32_53 = arith.constant 8 : i32
    %150 = arith.cmpi sle, %c1_i32_34, %c8_i32_53 : i32
    %151 = arith.andi %149, %150 : i1
    %152 = arith.select %151, %148, %66 : vector<8x128xf32>
    %153 = arith.select %151, %146, %67 : vector<8x128xf32>
    %c0_54 = arith.constant 0 : index
    %c0_55 = arith.constant 0 : index
    %154 = vector.load %arg8[%c0_54, %c0_55] : memref<128x512xbf16, #tpu.memory_space<vmem>>, vector<128x512xbf16>
    %cst_56 = arith.constant dense<0.000000e+00> : vector<8x512xf32>
    %155 = tpu.matmul %96, %154, %cst_56 {dimension_numbers = #tpu.dot_dimension_numbers<[1], [0], [0], [1], [0, 0, 1, 1], [], []>} : vector<8x128xbf16>, vector<128x512xbf16>, vector<8x512xf32> -> vector<8x512xf32>
    %c0_57 = arith.constant 0 : index
    %c0_58 = arith.constant 0 : index
    %156 = vector.load %arg9[%c0_57, %c0_58] : memref<128x512xbf16, #tpu.memory_space<vmem>>, vector<128x512xbf16>
    %cst_59 = arith.constant dense<0.000000e+00> : vector<8x512xf32>
    %157 = tpu.matmul %97, %156, %cst_59 {dimension_numbers = #tpu.dot_dimension_numbers<[1], [0], [0], [1], [0, 0, 1, 1], [], []>} : vector<8x128xbf16>, vector<128x512xbf16>, vector<8x512xf32> -> vector<8x512xf32>
    %158 = arith.addf %155, %157 : vector<8x512xf32>
    %c0_60 = arith.constant 0 : index
    %c0_61 = arith.constant 0 : index
    %159 = vector.load %arg10[%c0_60, %c0_61] : memref<1x512xf32, #tpu.memory_space<vmem>>, vector<1x512xf32>
    %160 = vector.broadcast %159 : vector<1x512xf32> to vector<8x512xf32>
    %161 = arith.addf %158, %160 : vector<8x512xf32>
    %162 = vector.extract_strided_slice %161 {offsets = [0, 0], sizes = [8, 384], strides = [1, 1]} : vector<8x512xf32> to vector<8x384xf32>
    %163 = arith.negf %162 : vector<8x384xf32>
    %164 = math.exp %163 : vector<8x384xf32>
    %cst_62 = arith.constant 1.000000e+00 : f32
    %165 = vector.broadcast %cst_62 : f32 to vector<8x384xf32>
    %166 = arith.addf %165, %164 : vector<8x384xf32>
    %167 = arith.divf %165, %166 : vector<8x384xf32>
    %168 = vector.extract_strided_slice %167 {offsets = [0, 0], sizes = [8, 128], strides = [1, 1]} : vector<8x384xf32> to vector<8x128xf32>
    %169 = vector.extract_strided_slice %167 {offsets = [0, 128], sizes = [8, 128], strides = [1, 1]} : vector<8x384xf32> to vector<8x128xf32>
    %170 = vector.extract_strided_slice %167 {offsets = [0, 256], sizes = [8, 128], strides = [1, 1]} : vector<8x384xf32> to vector<8x128xf32>
    %171 = vector.extract_strided_slice %161 {offsets = [0, 384], sizes = [8, 128], strides = [1, 1]} : vector<8x512xf32> to vector<8x128xf32>
    %172 = math.tanh %171 : vector<8x128xf32>
    %173 = arith.mulf %169, %94 : vector<8x128xf32>
    %174 = arith.mulf %168, %172 : vector<8x128xf32>
    %175 = arith.addf %173, %174 : vector<8x128xf32>
    %176 = math.tanh %175 : vector<8x128xf32>
    %177 = arith.mulf %170, %176 : vector<8x128xf32>
    %c2_i32_63 = arith.constant 2 : i32
    %178 = arith.cmpi sge, %c1_i32_34, %c2_i32_63 : i32
    %179 = arith.select %178, %177, %93 : vector<8x128xf32>
    %180 = arith.select %178, %175, %94 : vector<8x128xf32>
    %c2_i32_64 = arith.constant 2 : i32
    %181 = arith.truncf %123 : vector<8x128xf32> to vector<8x128xbf16>
    %182 = arith.truncf %152 : vector<8x128xf32> to vector<8x128xbf16>
    %183 = arith.truncf %179 : vector<8x128xf32> to vector<8x128xbf16>
    %c7_i32_65 = arith.constant 7 : i32
    %184 = arith.minsi %c2_i32_64, %c7_i32_65 : i32
    %c8_i32_66 = arith.constant 8 : i32
    %185 = arith.muli %184, %c8_i32_66 : i32
    %186 = tpu.assume_multiple %185, 8 : i32
    %187 = arith.index_cast %186 : i32 to index
    %c0_67 = arith.constant 0 : index
    %188 = vector.load %arg14[%187, %c0_67] : memref<64x512xf32, #tpu.memory_space<vmem>>, vector<8x512xf32>
    %c0_68 = arith.constant 0 : index
    %c0_69 = arith.constant 0 : index
    %189 = vector.load %arg3[%c0_68, %c0_69] : memref<128x512xbf16, #tpu.memory_space<vmem>>, vector<128x512xbf16>
    %cst_70 = arith.constant dense<0.000000e+00> : vector<8x512xf32>
    %190 = tpu.matmul %181, %189, %cst_70 {dimension_numbers = #tpu.dot_dimension_numbers<[1], [0], [0], [1], [0, 0, 1, 1], [], []>} : vector<8x128xbf16>, vector<128x512xbf16>, vector<8x512xf32> -> vector<8x512xf32>
    %191 = arith.addf %188, %190 : vector<8x512xf32>
    %192 = vector.extract_strided_slice %191 {offsets = [0, 0], sizes = [8, 384], strides = [1, 1]} : vector<8x512xf32> to vector<8x384xf32>
    %193 = arith.negf %192 : vector<8x384xf32>
    %194 = math.exp %193 : vector<8x384xf32>
    %cst_71 = arith.constant 1.000000e+00 : f32
    %195 = vector.broadcast %cst_71 : f32 to vector<8x384xf32>
    %196 = arith.addf %195, %194 : vector<8x384xf32>
    %197 = arith.divf %195, %196 : vector<8x384xf32>
    %198 = vector.extract_strided_slice %197 {offsets = [0, 0], sizes = [8, 128], strides = [1, 1]} : vector<8x384xf32> to vector<8x128xf32>
    %199 = vector.extract_strided_slice %197 {offsets = [0, 128], sizes = [8, 128], strides = [1, 1]} : vector<8x384xf32> to vector<8x128xf32>
    %200 = vector.extract_strided_slice %197 {offsets = [0, 256], sizes = [8, 128], strides = [1, 1]} : vector<8x384xf32> to vector<8x128xf32>
    %201 = vector.extract_strided_slice %191 {offsets = [0, 384], sizes = [8, 128], strides = [1, 1]} : vector<8x512xf32> to vector<8x128xf32>
    %202 = math.tanh %201 : vector<8x128xf32>
    %203 = arith.mulf %199, %124 : vector<8x128xf32>
    %204 = arith.mulf %198, %202 : vector<8x128xf32>
    %205 = arith.addf %203, %204 : vector<8x128xf32>
    %206 = math.tanh %205 : vector<8x128xf32>
    %207 = arith.mulf %200, %206 : vector<8x128xf32>
    %c8_i32_72 = arith.constant 8 : i32
    %208 = arith.cmpi slt, %c2_i32_64, %c8_i32_72 : i32
    %209 = arith.select %208, %207, %123 : vector<8x128xf32>
    %210 = arith.select %208, %205, %124 : vector<8x128xf32>
    %c0_73 = arith.constant 0 : index
    %c0_74 = arith.constant 0 : index
    %211 = vector.load %arg5[%c0_73, %c0_74] : memref<128x512xbf16, #tpu.memory_space<vmem>>, vector<128x512xbf16>
    %cst_75 = arith.constant dense<0.000000e+00> : vector<8x512xf32>
    %212 = tpu.matmul %181, %211, %cst_75 {dimension_numbers = #tpu.dot_dimension_numbers<[1], [0], [0], [1], [0, 0, 1, 1], [], []>} : vector<8x128xbf16>, vector<128x512xbf16>, vector<8x512xf32> -> vector<8x512xf32>
    %c0_76 = arith.constant 0 : index
    %c0_77 = arith.constant 0 : index
    %213 = vector.load %arg6[%c0_76, %c0_77] : memref<128x512xbf16, #tpu.memory_space<vmem>>, vector<128x512xbf16>
    %cst_78 = arith.constant dense<0.000000e+00> : vector<8x512xf32>
    %214 = tpu.matmul %182, %213, %cst_78 {dimension_numbers = #tpu.dot_dimension_numbers<[1], [0], [0], [1], [0, 0, 1, 1], [], []>} : vector<8x128xbf16>, vector<128x512xbf16>, vector<8x512xf32> -> vector<8x512xf32>
    %215 = arith.addf %212, %214 : vector<8x512xf32>
    %c0_79 = arith.constant 0 : index
    %c0_80 = arith.constant 0 : index
    %216 = vector.load %arg7[%c0_79, %c0_80] : memref<1x512xf32, #tpu.memory_space<vmem>>, vector<1x512xf32>
    %217 = vector.broadcast %216 : vector<1x512xf32> to vector<8x512xf32>
    %218 = arith.addf %215, %217 : vector<8x512xf32>
    %219 = vector.extract_strided_slice %218 {offsets = [0, 0], sizes = [8, 384], strides = [1, 1]} : vector<8x512xf32> to vector<8x384xf32>
    %220 = arith.negf %219 : vector<8x384xf32>
    %221 = math.exp %220 : vector<8x384xf32>
    %cst_81 = arith.constant 1.000000e+00 : f32
    %222 = vector.broadcast %cst_81 : f32 to vector<8x384xf32>
    %223 = arith.addf %222, %221 : vector<8x384xf32>
    %224 = arith.divf %222, %223 : vector<8x384xf32>
    %225 = vector.extract_strided_slice %224 {offsets = [0, 0], sizes = [8, 128], strides = [1, 1]} : vector<8x384xf32> to vector<8x128xf32>
    %226 = vector.extract_strided_slice %224 {offsets = [0, 128], sizes = [8, 128], strides = [1, 1]} : vector<8x384xf32> to vector<8x128xf32>
    %227 = vector.extract_strided_slice %224 {offsets = [0, 256], sizes = [8, 128], strides = [1, 1]} : vector<8x384xf32> to vector<8x128xf32>
    %228 = vector.extract_strided_slice %218 {offsets = [0, 384], sizes = [8, 128], strides = [1, 1]} : vector<8x512xf32> to vector<8x128xf32>
    %229 = math.tanh %228 : vector<8x128xf32>
    %230 = arith.mulf %226, %153 : vector<8x128xf32>
    %231 = arith.mulf %225, %229 : vector<8x128xf32>
    %232 = arith.addf %230, %231 : vector<8x128xf32>
    %233 = math.tanh %232 : vector<8x128xf32>
    %234 = arith.mulf %227, %233 : vector<8x128xf32>
    %c1_i32_82 = arith.constant 1 : i32
    %235 = arith.cmpi sge, %c2_i32_64, %c1_i32_82 : i32
    %c8_i32_83 = arith.constant 8 : i32
    %236 = arith.cmpi sle, %c2_i32_64, %c8_i32_83 : i32
    %237 = arith.andi %235, %236 : i1
    %238 = arith.select %237, %234, %152 : vector<8x128xf32>
    %239 = arith.select %237, %232, %153 : vector<8x128xf32>
    %c0_84 = arith.constant 0 : index
    %c0_85 = arith.constant 0 : index
    %240 = vector.load %arg8[%c0_84, %c0_85] : memref<128x512xbf16, #tpu.memory_space<vmem>>, vector<128x512xbf16>
    %cst_86 = arith.constant dense<0.000000e+00> : vector<8x512xf32>
    %241 = tpu.matmul %182, %240, %cst_86 {dimension_numbers = #tpu.dot_dimension_numbers<[1], [0], [0], [1], [0, 0, 1, 1], [], []>} : vector<8x128xbf16>, vector<128x512xbf16>, vector<8x512xf32> -> vector<8x512xf32>
    %c0_87 = arith.constant 0 : index
    %c0_88 = arith.constant 0 : index
    %242 = vector.load %arg9[%c0_87, %c0_88] : memref<128x512xbf16, #tpu.memory_space<vmem>>, vector<128x512xbf16>
    %cst_89 = arith.constant dense<0.000000e+00> : vector<8x512xf32>
    %243 = tpu.matmul %183, %242, %cst_89 {dimension_numbers = #tpu.dot_dimension_numbers<[1], [0], [0], [1], [0, 0, 1, 1], [], []>} : vector<8x128xbf16>, vector<128x512xbf16>, vector<8x512xf32> -> vector<8x512xf32>
    %244 = arith.addf %241, %243 : vector<8x512xf32>
    %c0_90 = arith.constant 0 : index
    %c0_91 = arith.constant 0 : index
    %245 = vector.load %arg10[%c0_90, %c0_91] : memref<1x512xf32, #tpu.memory_space<vmem>>, vector<1x512xf32>
    %246 = vector.broadcast %245 : vector<1x512xf32> to vector<8x512xf32>
    %247 = arith.addf %244, %246 : vector<8x512xf32>
    %248 = vector.extract_strided_slice %247 {offsets = [0, 0], sizes = [8, 384], strides = [1, 1]} : vector<8x512xf32> to vector<8x384xf32>
    %249 = arith.negf %248 : vector<8x384xf32>
    %250 = math.exp %249 : vector<8x384xf32>
    %cst_92 = arith.constant 1.000000e+00 : f32
    %251 = vector.broadcast %cst_92 : f32 to vector<8x384xf32>
    %252 = arith.addf %251, %250 : vector<8x384xf32>
    %253 = arith.divf %251, %252 : vector<8x384xf32>
    %254 = vector.extract_strided_slice %253 {offsets = [0, 0], sizes = [8, 128], strides = [1, 1]} : vector<8x384xf32> to vector<8x128xf32>
    %255 = vector.extract_strided_slice %253 {offsets = [0, 128], sizes = [8, 128], strides = [1, 1]} : vector<8x384xf32> to vector<8x128xf32>
    %256 = vector.extract_strided_slice %253 {offsets = [0, 256], sizes = [8, 128], strides = [1, 1]} : vector<8x384xf32> to vector<8x128xf32>
    %257 = vector.extract_strided_slice %247 {offsets = [0, 384], sizes = [8, 128], strides = [1, 1]} : vector<8x512xf32> to vector<8x128xf32>
    %258 = math.tanh %257 : vector<8x128xf32>
    %259 = arith.mulf %255, %180 : vector<8x128xf32>
    %260 = arith.mulf %254, %258 : vector<8x128xf32>
    %261 = arith.addf %259, %260 : vector<8x128xf32>
    %262 = math.tanh %261 : vector<8x128xf32>
    %263 = arith.mulf %256, %262 : vector<8x128xf32>
    %c2_i32_93 = arith.constant 2 : i32
    %264 = arith.cmpi sge, %c2_i32_64, %c2_i32_93 : i32
    %265 = arith.select %264, %263, %179 : vector<8x128xf32>
    %266 = arith.select %264, %261, %180 : vector<8x128xf32>
    %c3_i32 = arith.constant 3 : i32
    %267 = arith.truncf %209 : vector<8x128xf32> to vector<8x128xbf16>
    %268 = arith.truncf %238 : vector<8x128xf32> to vector<8x128xbf16>
    %269 = arith.truncf %265 : vector<8x128xf32> to vector<8x128xbf16>
    %c7_i32_94 = arith.constant 7 : i32
    %270 = arith.minsi %c3_i32, %c7_i32_94 : i32
    %c8_i32_95 = arith.constant 8 : i32
    %271 = arith.muli %270, %c8_i32_95 : i32
    %272 = tpu.assume_multiple %271, 8 : i32
    %273 = arith.index_cast %272 : i32 to index
    %c0_96 = arith.constant 0 : index
    %274 = vector.load %arg14[%273, %c0_96] : memref<64x512xf32, #tpu.memory_space<vmem>>, vector<8x512xf32>
    %c0_97 = arith.constant 0 : index
    %c0_98 = arith.constant 0 : index
    %275 = vector.load %arg3[%c0_97, %c0_98] : memref<128x512xbf16, #tpu.memory_space<vmem>>, vector<128x512xbf16>
    %cst_99 = arith.constant dense<0.000000e+00> : vector<8x512xf32>
    %276 = tpu.matmul %267, %275, %cst_99 {dimension_numbers = #tpu.dot_dimension_numbers<[1], [0], [0], [1], [0, 0, 1, 1], [], []>} : vector<8x128xbf16>, vector<128x512xbf16>, vector<8x512xf32> -> vector<8x512xf32>
    %277 = arith.addf %274, %276 : vector<8x512xf32>
    %278 = vector.extract_strided_slice %277 {offsets = [0, 0], sizes = [8, 384], strides = [1, 1]} : vector<8x512xf32> to vector<8x384xf32>
    %279 = arith.negf %278 : vector<8x384xf32>
    %280 = math.exp %279 : vector<8x384xf32>
    %cst_100 = arith.constant 1.000000e+00 : f32
    %281 = vector.broadcast %cst_100 : f32 to vector<8x384xf32>
    %282 = arith.addf %281, %280 : vector<8x384xf32>
    %283 = arith.divf %281, %282 : vector<8x384xf32>
    %284 = vector.extract_strided_slice %283 {offsets = [0, 0], sizes = [8, 128], strides = [1, 1]} : vector<8x384xf32> to vector<8x128xf32>
    %285 = vector.extract_strided_slice %283 {offsets = [0, 128], sizes = [8, 128], strides = [1, 1]} : vector<8x384xf32> to vector<8x128xf32>
    %286 = vector.extract_strided_slice %283 {offsets = [0, 256], sizes = [8, 128], strides = [1, 1]} : vector<8x384xf32> to vector<8x128xf32>
    %287 = vector.extract_strided_slice %277 {offsets = [0, 384], sizes = [8, 128], strides = [1, 1]} : vector<8x512xf32> to vector<8x128xf32>
    %288 = math.tanh %287 : vector<8x128xf32>
    %289 = arith.mulf %285, %210 : vector<8x128xf32>
    %290 = arith.mulf %284, %288 : vector<8x128xf32>
    %291 = arith.addf %289, %290 : vector<8x128xf32>
    %292 = math.tanh %291 : vector<8x128xf32>
    %293 = arith.mulf %286, %292 : vector<8x128xf32>
    %c8_i32_101 = arith.constant 8 : i32
    %294 = arith.cmpi slt, %c3_i32, %c8_i32_101 : i32
    %295 = arith.select %294, %293, %209 : vector<8x128xf32>
    %296 = arith.select %294, %291, %210 : vector<8x128xf32>
    %c0_102 = arith.constant 0 : index
    %c0_103 = arith.constant 0 : index
    %297 = vector.load %arg5[%c0_102, %c0_103] : memref<128x512xbf16, #tpu.memory_space<vmem>>, vector<128x512xbf16>
    %cst_104 = arith.constant dense<0.000000e+00> : vector<8x512xf32>
    %298 = tpu.matmul %267, %297, %cst_104 {dimension_numbers = #tpu.dot_dimension_numbers<[1], [0], [0], [1], [0, 0, 1, 1], [], []>} : vector<8x128xbf16>, vector<128x512xbf16>, vector<8x512xf32> -> vector<8x512xf32>
    %c0_105 = arith.constant 0 : index
    %c0_106 = arith.constant 0 : index
    %299 = vector.load %arg6[%c0_105, %c0_106] : memref<128x512xbf16, #tpu.memory_space<vmem>>, vector<128x512xbf16>
    %cst_107 = arith.constant dense<0.000000e+00> : vector<8x512xf32>
    %300 = tpu.matmul %268, %299, %cst_107 {dimension_numbers = #tpu.dot_dimension_numbers<[1], [0], [0], [1], [0, 0, 1, 1], [], []>} : vector<8x128xbf16>, vector<128x512xbf16>, vector<8x512xf32> -> vector<8x512xf32>
    %301 = arith.addf %298, %300 : vector<8x512xf32>
    %c0_108 = arith.constant 0 : index
    %c0_109 = arith.constant 0 : index
    %302 = vector.load %arg7[%c0_108, %c0_109] : memref<1x512xf32, #tpu.memory_space<vmem>>, vector<1x512xf32>
    %303 = vector.broadcast %302 : vector<1x512xf32> to vector<8x512xf32>
    %304 = arith.addf %301, %303 : vector<8x512xf32>
    %305 = vector.extract_strided_slice %304 {offsets = [0, 0], sizes = [8, 384], strides = [1, 1]} : vector<8x512xf32> to vector<8x384xf32>
    %306 = arith.negf %305 : vector<8x384xf32>
    %307 = math.exp %306 : vector<8x384xf32>
    %cst_110 = arith.constant 1.000000e+00 : f32
    %308 = vector.broadcast %cst_110 : f32 to vector<8x384xf32>
    %309 = arith.addf %308, %307 : vector<8x384xf32>
    %310 = arith.divf %308, %309 : vector<8x384xf32>
    %311 = vector.extract_strided_slice %310 {offsets = [0, 0], sizes = [8, 128], strides = [1, 1]} : vector<8x384xf32> to vector<8x128xf32>
    %312 = vector.extract_strided_slice %310 {offsets = [0, 128], sizes = [8, 128], strides = [1, 1]} : vector<8x384xf32> to vector<8x128xf32>
    %313 = vector.extract_strided_slice %310 {offsets = [0, 256], sizes = [8, 128], strides = [1, 1]} : vector<8x384xf32> to vector<8x128xf32>
    %314 = vector.extract_strided_slice %304 {offsets = [0, 384], sizes = [8, 128], strides = [1, 1]} : vector<8x512xf32> to vector<8x128xf32>
    %315 = math.tanh %314 : vector<8x128xf32>
    %316 = arith.mulf %312, %239 : vector<8x128xf32>
    %317 = arith.mulf %311, %315 : vector<8x128xf32>
    %318 = arith.addf %316, %317 : vector<8x128xf32>
    %319 = math.tanh %318 : vector<8x128xf32>
    %320 = arith.mulf %313, %319 : vector<8x128xf32>
    %c1_i32_111 = arith.constant 1 : i32
    %321 = arith.cmpi sge, %c3_i32, %c1_i32_111 : i32
    %c8_i32_112 = arith.constant 8 : i32
    %322 = arith.cmpi sle, %c3_i32, %c8_i32_112 : i32
    %323 = arith.andi %321, %322 : i1
    %324 = arith.select %323, %320, %238 : vector<8x128xf32>
    %325 = arith.select %323, %318, %239 : vector<8x128xf32>
    %c0_113 = arith.constant 0 : index
    %c0_114 = arith.constant 0 : index
    %326 = vector.load %arg8[%c0_113, %c0_114] : memref<128x512xbf16, #tpu.memory_space<vmem>>, vector<128x512xbf16>
    %cst_115 = arith.constant dense<0.000000e+00> : vector<8x512xf32>
    %327 = tpu.matmul %268, %326, %cst_115 {dimension_numbers = #tpu.dot_dimension_numbers<[1], [0], [0], [1], [0, 0, 1, 1], [], []>} : vector<8x128xbf16>, vector<128x512xbf16>, vector<8x512xf32> -> vector<8x512xf32>
    %c0_116 = arith.constant 0 : index
    %c0_117 = arith.constant 0 : index
    %328 = vector.load %arg9[%c0_116, %c0_117] : memref<128x512xbf16, #tpu.memory_space<vmem>>, vector<128x512xbf16>
    %cst_118 = arith.constant dense<0.000000e+00> : vector<8x512xf32>
    %329 = tpu.matmul %269, %328, %cst_118 {dimension_numbers = #tpu.dot_dimension_numbers<[1], [0], [0], [1], [0, 0, 1, 1], [], []>} : vector<8x128xbf16>, vector<128x512xbf16>, vector<8x512xf32> -> vector<8x512xf32>
    %330 = arith.addf %327, %329 : vector<8x512xf32>
    %c0_119 = arith.constant 0 : index
    %c0_120 = arith.constant 0 : index
    %331 = vector.load %arg10[%c0_119, %c0_120] : memref<1x512xf32, #tpu.memory_space<vmem>>, vector<1x512xf32>
    %332 = vector.broadcast %331 : vector<1x512xf32> to vector<8x512xf32>
    %333 = arith.addf %330, %332 : vector<8x512xf32>
    %334 = vector.extract_strided_slice %333 {offsets = [0, 0], sizes = [8, 384], strides = [1, 1]} : vector<8x512xf32> to vector<8x384xf32>
    %335 = arith.negf %334 : vector<8x384xf32>
    %336 = math.exp %335 : vector<8x384xf32>
    %cst_121 = arith.constant 1.000000e+00 : f32
    %337 = vector.broadcast %cst_121 : f32 to vector<8x384xf32>
    %338 = arith.addf %337, %336 : vector<8x384xf32>
    %339 = arith.divf %337, %338 : vector<8x384xf32>
    %340 = vector.extract_strided_slice %339 {offsets = [0, 0], sizes = [8, 128], strides = [1, 1]} : vector<8x384xf32> to vector<8x128xf32>
    %341 = vector.extract_strided_slice %339 {offsets = [0, 128], sizes = [8, 128], strides = [1, 1]} : vector<8x384xf32> to vector<8x128xf32>
    %342 = vector.extract_strided_slice %339 {offsets = [0, 256], sizes = [8, 128], strides = [1, 1]} : vector<8x384xf32> to vector<8x128xf32>
    %343 = vector.extract_strided_slice %333 {offsets = [0, 384], sizes = [8, 128], strides = [1, 1]} : vector<8x512xf32> to vector<8x128xf32>
    %344 = math.tanh %343 : vector<8x128xf32>
    %345 = arith.mulf %341, %266 : vector<8x128xf32>
    %346 = arith.mulf %340, %344 : vector<8x128xf32>
    %347 = arith.addf %345, %346 : vector<8x128xf32>
    %348 = math.tanh %347 : vector<8x128xf32>
    %349 = arith.mulf %342, %348 : vector<8x128xf32>
    %c2_i32_122 = arith.constant 2 : i32
    %350 = arith.cmpi sge, %c3_i32, %c2_i32_122 : i32
    %351 = arith.select %350, %349, %265 : vector<8x128xf32>
    %352 = arith.select %350, %347, %266 : vector<8x128xf32>
    %c4_i32 = arith.constant 4 : i32
    %353 = arith.truncf %295 : vector<8x128xf32> to vector<8x128xbf16>
    %354 = arith.truncf %324 : vector<8x128xf32> to vector<8x128xbf16>
    %355 = arith.truncf %351 : vector<8x128xf32> to vector<8x128xbf16>
    %c7_i32_123 = arith.constant 7 : i32
    %356 = arith.minsi %c4_i32, %c7_i32_123 : i32
    %c8_i32_124 = arith.constant 8 : i32
    %357 = arith.muli %356, %c8_i32_124 : i32
    %358 = tpu.assume_multiple %357, 8 : i32
    %359 = arith.index_cast %358 : i32 to index
    %c0_125 = arith.constant 0 : index
    %360 = vector.load %arg14[%359, %c0_125] : memref<64x512xf32, #tpu.memory_space<vmem>>, vector<8x512xf32>
    %c0_126 = arith.constant 0 : index
    %c0_127 = arith.constant 0 : index
    %361 = vector.load %arg3[%c0_126, %c0_127] : memref<128x512xbf16, #tpu.memory_space<vmem>>, vector<128x512xbf16>
    %cst_128 = arith.constant dense<0.000000e+00> : vector<8x512xf32>
    %362 = tpu.matmul %353, %361, %cst_128 {dimension_numbers = #tpu.dot_dimension_numbers<[1], [0], [0], [1], [0, 0, 1, 1], [], []>} : vector<8x128xbf16>, vector<128x512xbf16>, vector<8x512xf32> -> vector<8x512xf32>
    %363 = arith.addf %360, %362 : vector<8x512xf32>
    %364 = vector.extract_strided_slice %363 {offsets = [0, 0], sizes = [8, 384], strides = [1, 1]} : vector<8x512xf32> to vector<8x384xf32>
    %365 = arith.negf %364 : vector<8x384xf32>
    %366 = math.exp %365 : vector<8x384xf32>
    %cst_129 = arith.constant 1.000000e+00 : f32
    %367 = vector.broadcast %cst_129 : f32 to vector<8x384xf32>
    %368 = arith.addf %367, %366 : vector<8x384xf32>
    %369 = arith.divf %367, %368 : vector<8x384xf32>
    %370 = vector.extract_strided_slice %369 {offsets = [0, 0], sizes = [8, 128], strides = [1, 1]} : vector<8x384xf32> to vector<8x128xf32>
    %371 = vector.extract_strided_slice %369 {offsets = [0, 128], sizes = [8, 128], strides = [1, 1]} : vector<8x384xf32> to vector<8x128xf32>
    %372 = vector.extract_strided_slice %369 {offsets = [0, 256], sizes = [8, 128], strides = [1, 1]} : vector<8x384xf32> to vector<8x128xf32>
    %373 = vector.extract_strided_slice %363 {offsets = [0, 384], sizes = [8, 128], strides = [1, 1]} : vector<8x512xf32> to vector<8x128xf32>
    %374 = math.tanh %373 : vector<8x128xf32>
    %375 = arith.mulf %371, %296 : vector<8x128xf32>
    %376 = arith.mulf %370, %374 : vector<8x128xf32>
    %377 = arith.addf %375, %376 : vector<8x128xf32>
    %378 = math.tanh %377 : vector<8x128xf32>
    %379 = arith.mulf %372, %378 : vector<8x128xf32>
    %c8_i32_130 = arith.constant 8 : i32
    %380 = arith.cmpi slt, %c4_i32, %c8_i32_130 : i32
    %381 = arith.select %380, %379, %295 : vector<8x128xf32>
    %382 = arith.select %380, %377, %296 : vector<8x128xf32>
    %c0_131 = arith.constant 0 : index
    %c0_132 = arith.constant 0 : index
    %383 = vector.load %arg5[%c0_131, %c0_132] : memref<128x512xbf16, #tpu.memory_space<vmem>>, vector<128x512xbf16>
    %cst_133 = arith.constant dense<0.000000e+00> : vector<8x512xf32>
    %384 = tpu.matmul %353, %383, %cst_133 {dimension_numbers = #tpu.dot_dimension_numbers<[1], [0], [0], [1], [0, 0, 1, 1], [], []>} : vector<8x128xbf16>, vector<128x512xbf16>, vector<8x512xf32> -> vector<8x512xf32>
    %c0_134 = arith.constant 0 : index
    %c0_135 = arith.constant 0 : index
    %385 = vector.load %arg6[%c0_134, %c0_135] : memref<128x512xbf16, #tpu.memory_space<vmem>>, vector<128x512xbf16>
    %cst_136 = arith.constant dense<0.000000e+00> : vector<8x512xf32>
    %386 = tpu.matmul %354, %385, %cst_136 {dimension_numbers = #tpu.dot_dimension_numbers<[1], [0], [0], [1], [0, 0, 1, 1], [], []>} : vector<8x128xbf16>, vector<128x512xbf16>, vector<8x512xf32> -> vector<8x512xf32>
    %387 = arith.addf %384, %386 : vector<8x512xf32>
    %c0_137 = arith.constant 0 : index
    %c0_138 = arith.constant 0 : index
    %388 = vector.load %arg7[%c0_137, %c0_138] : memref<1x512xf32, #tpu.memory_space<vmem>>, vector<1x512xf32>
    %389 = vector.broadcast %388 : vector<1x512xf32> to vector<8x512xf32>
    %390 = arith.addf %387, %389 : vector<8x512xf32>
    %391 = vector.extract_strided_slice %390 {offsets = [0, 0], sizes = [8, 384], strides = [1, 1]} : vector<8x512xf32> to vector<8x384xf32>
    %392 = arith.negf %391 : vector<8x384xf32>
    %393 = math.exp %392 : vector<8x384xf32>
    %cst_139 = arith.constant 1.000000e+00 : f32
    %394 = vector.broadcast %cst_139 : f32 to vector<8x384xf32>
    %395 = arith.addf %394, %393 : vector<8x384xf32>
    %396 = arith.divf %394, %395 : vector<8x384xf32>
    %397 = vector.extract_strided_slice %396 {offsets = [0, 0], sizes = [8, 128], strides = [1, 1]} : vector<8x384xf32> to vector<8x128xf32>
    %398 = vector.extract_strided_slice %396 {offsets = [0, 128], sizes = [8, 128], strides = [1, 1]} : vector<8x384xf32> to vector<8x128xf32>
    %399 = vector.extract_strided_slice %396 {offsets = [0, 256], sizes = [8, 128], strides = [1, 1]} : vector<8x384xf32> to vector<8x128xf32>
    %400 = vector.extract_strided_slice %390 {offsets = [0, 384], sizes = [8, 128], strides = [1, 1]} : vector<8x512xf32> to vector<8x128xf32>
    %401 = math.tanh %400 : vector<8x128xf32>
    %402 = arith.mulf %398, %325 : vector<8x128xf32>
    %403 = arith.mulf %397, %401 : vector<8x128xf32>
    %404 = arith.addf %402, %403 : vector<8x128xf32>
    %405 = math.tanh %404 : vector<8x128xf32>
    %406 = arith.mulf %399, %405 : vector<8x128xf32>
    %c1_i32_140 = arith.constant 1 : i32
    %407 = arith.cmpi sge, %c4_i32, %c1_i32_140 : i32
    %c8_i32_141 = arith.constant 8 : i32
    %408 = arith.cmpi sle, %c4_i32, %c8_i32_141 : i32
    %409 = arith.andi %407, %408 : i1
    %410 = arith.select %409, %406, %324 : vector<8x128xf32>
    %411 = arith.select %409, %404, %325 : vector<8x128xf32>
    %c0_142 = arith.constant 0 : index
    %c0_143 = arith.constant 0 : index
    %412 = vector.load %arg8[%c0_142, %c0_143] : memref<128x512xbf16, #tpu.memory_space<vmem>>, vector<128x512xbf16>
    %cst_144 = arith.constant dense<0.000000e+00> : vector<8x512xf32>
    %413 = tpu.matmul %354, %412, %cst_144 {dimension_numbers = #tpu.dot_dimension_numbers<[1], [0], [0], [1], [0, 0, 1, 1], [], []>} : vector<8x128xbf16>, vector<128x512xbf16>, vector<8x512xf32> -> vector<8x512xf32>
    %c0_145 = arith.constant 0 : index
    %c0_146 = arith.constant 0 : index
    %414 = vector.load %arg9[%c0_145, %c0_146] : memref<128x512xbf16, #tpu.memory_space<vmem>>, vector<128x512xbf16>
    %cst_147 = arith.constant dense<0.000000e+00> : vector<8x512xf32>
    %415 = tpu.matmul %355, %414, %cst_147 {dimension_numbers = #tpu.dot_dimension_numbers<[1], [0], [0], [1], [0, 0, 1, 1], [], []>} : vector<8x128xbf16>, vector<128x512xbf16>, vector<8x512xf32> -> vector<8x512xf32>
    %416 = arith.addf %413, %415 : vector<8x512xf32>
    %c0_148 = arith.constant 0 : index
    %c0_149 = arith.constant 0 : index
    %417 = vector.load %arg10[%c0_148, %c0_149] : memref<1x512xf32, #tpu.memory_space<vmem>>, vector<1x512xf32>
    %418 = vector.broadcast %417 : vector<1x512xf32> to vector<8x512xf32>
    %419 = arith.addf %416, %418 : vector<8x512xf32>
    %420 = vector.extract_strided_slice %419 {offsets = [0, 0], sizes = [8, 384], strides = [1, 1]} : vector<8x512xf32> to vector<8x384xf32>
    %421 = arith.negf %420 : vector<8x384xf32>
    %422 = math.exp %421 : vector<8x384xf32>
    %cst_150 = arith.constant 1.000000e+00 : f32
    %423 = vector.broadcast %cst_150 : f32 to vector<8x384xf32>
    %424 = arith.addf %423, %422 : vector<8x384xf32>
    %425 = arith.divf %423, %424 : vector<8x384xf32>
    %426 = vector.extract_strided_slice %425 {offsets = [0, 0], sizes = [8, 128], strides = [1, 1]} : vector<8x384xf32> to vector<8x128xf32>
    %427 = vector.extract_strided_slice %425 {offsets = [0, 128], sizes = [8, 128], strides = [1, 1]} : vector<8x384xf32> to vector<8x128xf32>
    %428 = vector.extract_strided_slice %425 {offsets = [0, 256], sizes = [8, 128], strides = [1, 1]} : vector<8x384xf32> to vector<8x128xf32>
    %429 = vector.extract_strided_slice %419 {offsets = [0, 384], sizes = [8, 128], strides = [1, 1]} : vector<8x512xf32> to vector<8x128xf32>
    %430 = math.tanh %429 : vector<8x128xf32>
    %431 = arith.mulf %427, %352 : vector<8x128xf32>
    %432 = arith.mulf %426, %430 : vector<8x128xf32>
    %433 = arith.addf %431, %432 : vector<8x128xf32>
    %434 = math.tanh %433 : vector<8x128xf32>
    %435 = arith.mulf %428, %434 : vector<8x128xf32>
    %c2_i32_151 = arith.constant 2 : i32
    %436 = arith.cmpi sge, %c4_i32, %c2_i32_151 : i32
    %437 = arith.select %436, %435, %351 : vector<8x128xf32>
    %438 = arith.select %436, %433, %352 : vector<8x128xf32>
    %c5_i32 = arith.constant 5 : i32
    %439 = arith.truncf %381 : vector<8x128xf32> to vector<8x128xbf16>
    %440 = arith.truncf %410 : vector<8x128xf32> to vector<8x128xbf16>
    %441 = arith.truncf %437 : vector<8x128xf32> to vector<8x128xbf16>
    %c7_i32_152 = arith.constant 7 : i32
    %442 = arith.minsi %c5_i32, %c7_i32_152 : i32
    %c8_i32_153 = arith.constant 8 : i32
    %443 = arith.muli %442, %c8_i32_153 : i32
    %444 = tpu.assume_multiple %443, 8 : i32
    %445 = arith.index_cast %444 : i32 to index
    %c0_154 = arith.constant 0 : index
    %446 = vector.load %arg14[%445, %c0_154] : memref<64x512xf32, #tpu.memory_space<vmem>>, vector<8x512xf32>
    %c0_155 = arith.constant 0 : index
    %c0_156 = arith.constant 0 : index
    %447 = vector.load %arg3[%c0_155, %c0_156] : memref<128x512xbf16, #tpu.memory_space<vmem>>, vector<128x512xbf16>
    %cst_157 = arith.constant dense<0.000000e+00> : vector<8x512xf32>
    %448 = tpu.matmul %439, %447, %cst_157 {dimension_numbers = #tpu.dot_dimension_numbers<[1], [0], [0], [1], [0, 0, 1, 1], [], []>} : vector<8x128xbf16>, vector<128x512xbf16>, vector<8x512xf32> -> vector<8x512xf32>
    %449 = arith.addf %446, %448 : vector<8x512xf32>
    %450 = vector.extract_strided_slice %449 {offsets = [0, 0], sizes = [8, 384], strides = [1, 1]} : vector<8x512xf32> to vector<8x384xf32>
    %451 = arith.negf %450 : vector<8x384xf32>
    %452 = math.exp %451 : vector<8x384xf32>
    %cst_158 = arith.constant 1.000000e+00 : f32
    %453 = vector.broadcast %cst_158 : f32 to vector<8x384xf32>
    %454 = arith.addf %453, %452 : vector<8x384xf32>
    %455 = arith.divf %453, %454 : vector<8x384xf32>
    %456 = vector.extract_strided_slice %455 {offsets = [0, 0], sizes = [8, 128], strides = [1, 1]} : vector<8x384xf32> to vector<8x128xf32>
    %457 = vector.extract_strided_slice %455 {offsets = [0, 128], sizes = [8, 128], strides = [1, 1]} : vector<8x384xf32> to vector<8x128xf32>
    %458 = vector.extract_strided_slice %455 {offsets = [0, 256], sizes = [8, 128], strides = [1, 1]} : vector<8x384xf32> to vector<8x128xf32>
    %459 = vector.extract_strided_slice %449 {offsets = [0, 384], sizes = [8, 128], strides = [1, 1]} : vector<8x512xf32> to vector<8x128xf32>
    %460 = math.tanh %459 : vector<8x128xf32>
    %461 = arith.mulf %457, %382 : vector<8x128xf32>
    %462 = arith.mulf %456, %460 : vector<8x128xf32>
    %463 = arith.addf %461, %462 : vector<8x128xf32>
    %464 = math.tanh %463 : vector<8x128xf32>
    %465 = arith.mulf %458, %464 : vector<8x128xf32>
    %c8_i32_159 = arith.constant 8 : i32
    %466 = arith.cmpi slt, %c5_i32, %c8_i32_159 : i32
    %467 = arith.select %466, %465, %381 : vector<8x128xf32>
    %468 = arith.select %466, %463, %382 : vector<8x128xf32>
    %c0_160 = arith.constant 0 : index
    %c0_161 = arith.constant 0 : index
    %469 = vector.load %arg5[%c0_160, %c0_161] : memref<128x512xbf16, #tpu.memory_space<vmem>>, vector<128x512xbf16>
    %cst_162 = arith.constant dense<0.000000e+00> : vector<8x512xf32>
    %470 = tpu.matmul %439, %469, %cst_162 {dimension_numbers = #tpu.dot_dimension_numbers<[1], [0], [0], [1], [0, 0, 1, 1], [], []>} : vector<8x128xbf16>, vector<128x512xbf16>, vector<8x512xf32> -> vector<8x512xf32>
    %c0_163 = arith.constant 0 : index
    %c0_164 = arith.constant 0 : index
    %471 = vector.load %arg6[%c0_163, %c0_164] : memref<128x512xbf16, #tpu.memory_space<vmem>>, vector<128x512xbf16>
    %cst_165 = arith.constant dense<0.000000e+00> : vector<8x512xf32>
    %472 = tpu.matmul %440, %471, %cst_165 {dimension_numbers = #tpu.dot_dimension_numbers<[1], [0], [0], [1], [0, 0, 1, 1], [], []>} : vector<8x128xbf16>, vector<128x512xbf16>, vector<8x512xf32> -> vector<8x512xf32>
    %473 = arith.addf %470, %472 : vector<8x512xf32>
    %c0_166 = arith.constant 0 : index
    %c0_167 = arith.constant 0 : index
    %474 = vector.load %arg7[%c0_166, %c0_167] : memref<1x512xf32, #tpu.memory_space<vmem>>, vector<1x512xf32>
    %475 = vector.broadcast %474 : vector<1x512xf32> to vector<8x512xf32>
    %476 = arith.addf %473, %475 : vector<8x512xf32>
    %477 = vector.extract_strided_slice %476 {offsets = [0, 0], sizes = [8, 384], strides = [1, 1]} : vector<8x512xf32> to vector<8x384xf32>
    %478 = arith.negf %477 : vector<8x384xf32>
    %479 = math.exp %478 : vector<8x384xf32>
    %cst_168 = arith.constant 1.000000e+00 : f32
    %480 = vector.broadcast %cst_168 : f32 to vector<8x384xf32>
    %481 = arith.addf %480, %479 : vector<8x384xf32>
    %482 = arith.divf %480, %481 : vector<8x384xf32>
    %483 = vector.extract_strided_slice %482 {offsets = [0, 0], sizes = [8, 128], strides = [1, 1]} : vector<8x384xf32> to vector<8x128xf32>
    %484 = vector.extract_strided_slice %482 {offsets = [0, 128], sizes = [8, 128], strides = [1, 1]} : vector<8x384xf32> to vector<8x128xf32>
    %485 = vector.extract_strided_slice %482 {offsets = [0, 256], sizes = [8, 128], strides = [1, 1]} : vector<8x384xf32> to vector<8x128xf32>
    %486 = vector.extract_strided_slice %476 {offsets = [0, 384], sizes = [8, 128], strides = [1, 1]} : vector<8x512xf32> to vector<8x128xf32>
    %487 = math.tanh %486 : vector<8x128xf32>
    %488 = arith.mulf %484, %411 : vector<8x128xf32>
    %489 = arith.mulf %483, %487 : vector<8x128xf32>
    %490 = arith.addf %488, %489 : vector<8x128xf32>
    %491 = math.tanh %490 : vector<8x128xf32>
    %492 = arith.mulf %485, %491 : vector<8x128xf32>
    %c1_i32_169 = arith.constant 1 : i32
    %493 = arith.cmpi sge, %c5_i32, %c1_i32_169 : i32
    %c8_i32_170 = arith.constant 8 : i32
    %494 = arith.cmpi sle, %c5_i32, %c8_i32_170 : i32
    %495 = arith.andi %493, %494 : i1
    %496 = arith.select %495, %492, %410 : vector<8x128xf32>
    %497 = arith.select %495, %490, %411 : vector<8x128xf32>
    %c0_171 = arith.constant 0 : index
    %c0_172 = arith.constant 0 : index
    %498 = vector.load %arg8[%c0_171, %c0_172] : memref<128x512xbf16, #tpu.memory_space<vmem>>, vector<128x512xbf16>
    %cst_173 = arith.constant dense<0.000000e+00> : vector<8x512xf32>
    %499 = tpu.matmul %440, %498, %cst_173 {dimension_numbers = #tpu.dot_dimension_numbers<[1], [0], [0], [1], [0, 0, 1, 1], [], []>} : vector<8x128xbf16>, vector<128x512xbf16>, vector<8x512xf32> -> vector<8x512xf32>
    %c0_174 = arith.constant 0 : index
    %c0_175 = arith.constant 0 : index
    %500 = vector.load %arg9[%c0_174, %c0_175] : memref<128x512xbf16, #tpu.memory_space<vmem>>, vector<128x512xbf16>
    %cst_176 = arith.constant dense<0.000000e+00> : vector<8x512xf32>
    %501 = tpu.matmul %441, %500, %cst_176 {dimension_numbers = #tpu.dot_dimension_numbers<[1], [0], [0], [1], [0, 0, 1, 1], [], []>} : vector<8x128xbf16>, vector<128x512xbf16>, vector<8x512xf32> -> vector<8x512xf32>
    %502 = arith.addf %499, %501 : vector<8x512xf32>
    %c0_177 = arith.constant 0 : index
    %c0_178 = arith.constant 0 : index
    %503 = vector.load %arg10[%c0_177, %c0_178] : memref<1x512xf32, #tpu.memory_space<vmem>>, vector<1x512xf32>
    %504 = vector.broadcast %503 : vector<1x512xf32> to vector<8x512xf32>
    %505 = arith.addf %502, %504 : vector<8x512xf32>
    %506 = vector.extract_strided_slice %505 {offsets = [0, 0], sizes = [8, 384], strides = [1, 1]} : vector<8x512xf32> to vector<8x384xf32>
    %507 = arith.negf %506 : vector<8x384xf32>
    %508 = math.exp %507 : vector<8x384xf32>
    %cst_179 = arith.constant 1.000000e+00 : f32
    %509 = vector.broadcast %cst_179 : f32 to vector<8x384xf32>
    %510 = arith.addf %509, %508 : vector<8x384xf32>
    %511 = arith.divf %509, %510 : vector<8x384xf32>
    %512 = vector.extract_strided_slice %511 {offsets = [0, 0], sizes = [8, 128], strides = [1, 1]} : vector<8x384xf32> to vector<8x128xf32>
    %513 = vector.extract_strided_slice %511 {offsets = [0, 128], sizes = [8, 128], strides = [1, 1]} : vector<8x384xf32> to vector<8x128xf32>
    %514 = vector.extract_strided_slice %511 {offsets = [0, 256], sizes = [8, 128], strides = [1, 1]} : vector<8x384xf32> to vector<8x128xf32>
    %515 = vector.extract_strided_slice %505 {offsets = [0, 384], sizes = [8, 128], strides = [1, 1]} : vector<8x512xf32> to vector<8x128xf32>
    %516 = math.tanh %515 : vector<8x128xf32>
    %517 = arith.mulf %513, %438 : vector<8x128xf32>
    %518 = arith.mulf %512, %516 : vector<8x128xf32>
    %519 = arith.addf %517, %518 : vector<8x128xf32>
    %520 = math.tanh %519 : vector<8x128xf32>
    %521 = arith.mulf %514, %520 : vector<8x128xf32>
    %c2_i32_180 = arith.constant 2 : i32
    %522 = arith.cmpi sge, %c5_i32, %c2_i32_180 : i32
    %523 = arith.select %522, %521, %437 : vector<8x128xf32>
    %524 = arith.select %522, %519, %438 : vector<8x128xf32>
    %c6_i32 = arith.constant 6 : i32
    %525 = arith.truncf %467 : vector<8x128xf32> to vector<8x128xbf16>
    %526 = arith.truncf %496 : vector<8x128xf32> to vector<8x128xbf16>
    %527 = arith.truncf %523 : vector<8x128xf32> to vector<8x128xbf16>
    %c7_i32_181 = arith.constant 7 : i32
    %528 = arith.minsi %c6_i32, %c7_i32_181 : i32
    %c8_i32_182 = arith.constant 8 : i32
    %529 = arith.muli %528, %c8_i32_182 : i32
    %530 = tpu.assume_multiple %529, 8 : i32
    %531 = arith.index_cast %530 : i32 to index
    %c0_183 = arith.constant 0 : index
    %532 = vector.load %arg14[%531, %c0_183] : memref<64x512xf32, #tpu.memory_space<vmem>>, vector<8x512xf32>
    %c0_184 = arith.constant 0 : index
    %c0_185 = arith.constant 0 : index
    %533 = vector.load %arg3[%c0_184, %c0_185] : memref<128x512xbf16, #tpu.memory_space<vmem>>, vector<128x512xbf16>
    %cst_186 = arith.constant dense<0.000000e+00> : vector<8x512xf32>
    %534 = tpu.matmul %525, %533, %cst_186 {dimension_numbers = #tpu.dot_dimension_numbers<[1], [0], [0], [1], [0, 0, 1, 1], [], []>} : vector<8x128xbf16>, vector<128x512xbf16>, vector<8x512xf32> -> vector<8x512xf32>
    %535 = arith.addf %532, %534 : vector<8x512xf32>
    %536 = vector.extract_strided_slice %535 {offsets = [0, 0], sizes = [8, 384], strides = [1, 1]} : vector<8x512xf32> to vector<8x384xf32>
    %537 = arith.negf %536 : vector<8x384xf32>
    %538 = math.exp %537 : vector<8x384xf32>
    %cst_187 = arith.constant 1.000000e+00 : f32
    %539 = vector.broadcast %cst_187 : f32 to vector<8x384xf32>
    %540 = arith.addf %539, %538 : vector<8x384xf32>
    %541 = arith.divf %539, %540 : vector<8x384xf32>
    %542 = vector.extract_strided_slice %541 {offsets = [0, 0], sizes = [8, 128], strides = [1, 1]} : vector<8x384xf32> to vector<8x128xf32>
    %543 = vector.extract_strided_slice %541 {offsets = [0, 128], sizes = [8, 128], strides = [1, 1]} : vector<8x384xf32> to vector<8x128xf32>
    %544 = vector.extract_strided_slice %541 {offsets = [0, 256], sizes = [8, 128], strides = [1, 1]} : vector<8x384xf32> to vector<8x128xf32>
    %545 = vector.extract_strided_slice %535 {offsets = [0, 384], sizes = [8, 128], strides = [1, 1]} : vector<8x512xf32> to vector<8x128xf32>
    %546 = math.tanh %545 : vector<8x128xf32>
    %547 = arith.mulf %543, %468 : vector<8x128xf32>
    %548 = arith.mulf %542, %546 : vector<8x128xf32>
    %549 = arith.addf %547, %548 : vector<8x128xf32>
    %550 = math.tanh %549 : vector<8x128xf32>
    %551 = arith.mulf %544, %550 : vector<8x128xf32>
    %c8_i32_188 = arith.constant 8 : i32
    %552 = arith.cmpi slt, %c6_i32, %c8_i32_188 : i32
    %553 = arith.select %552, %551, %467 : vector<8x128xf32>
    %554 = arith.select %552, %549, %468 : vector<8x128xf32>
    %c0_189 = arith.constant 0 : index
    %c0_190 = arith.constant 0 : index
    %555 = vector.load %arg5[%c0_189, %c0_190] : memref<128x512xbf16, #tpu.memory_space<vmem>>, vector<128x512xbf16>
    %cst_191 = arith.constant dense<0.000000e+00> : vector<8x512xf32>
    %556 = tpu.matmul %525, %555, %cst_191 {dimension_numbers = #tpu.dot_dimension_numbers<[1], [0], [0], [1], [0, 0, 1, 1], [], []>} : vector<8x128xbf16>, vector<128x512xbf16>, vector<8x512xf32> -> vector<8x512xf32>
    %c0_192 = arith.constant 0 : index
    %c0_193 = arith.constant 0 : index
    %557 = vector.load %arg6[%c0_192, %c0_193] : memref<128x512xbf16, #tpu.memory_space<vmem>>, vector<128x512xbf16>
    %cst_194 = arith.constant dense<0.000000e+00> : vector<8x512xf32>
    %558 = tpu.matmul %526, %557, %cst_194 {dimension_numbers = #tpu.dot_dimension_numbers<[1], [0], [0], [1], [0, 0, 1, 1], [], []>} : vector<8x128xbf16>, vector<128x512xbf16>, vector<8x512xf32> -> vector<8x512xf32>
    %559 = arith.addf %556, %558 : vector<8x512xf32>
    %c0_195 = arith.constant 0 : index
    %c0_196 = arith.constant 0 : index
    %560 = vector.load %arg7[%c0_195, %c0_196] : memref<1x512xf32, #tpu.memory_space<vmem>>, vector<1x512xf32>
    %561 = vector.broadcast %560 : vector<1x512xf32> to vector<8x512xf32>
    %562 = arith.addf %559, %561 : vector<8x512xf32>
    %563 = vector.extract_strided_slice %562 {offsets = [0, 0], sizes = [8, 384], strides = [1, 1]} : vector<8x512xf32> to vector<8x384xf32>
    %564 = arith.negf %563 : vector<8x384xf32>
    %565 = math.exp %564 : vector<8x384xf32>
    %cst_197 = arith.constant 1.000000e+00 : f32
    %566 = vector.broadcast %cst_197 : f32 to vector<8x384xf32>
    %567 = arith.addf %566, %565 : vector<8x384xf32>
    %568 = arith.divf %566, %567 : vector<8x384xf32>
    %569 = vector.extract_strided_slice %568 {offsets = [0, 0], sizes = [8, 128], strides = [1, 1]} : vector<8x384xf32> to vector<8x128xf32>
    %570 = vector.extract_strided_slice %568 {offsets = [0, 128], sizes = [8, 128], strides = [1, 1]} : vector<8x384xf32> to vector<8x128xf32>
    %571 = vector.extract_strided_slice %568 {offsets = [0, 256], sizes = [8, 128], strides = [1, 1]} : vector<8x384xf32> to vector<8x128xf32>
    %572 = vector.extract_strided_slice %562 {offsets = [0, 384], sizes = [8, 128], strides = [1, 1]} : vector<8x512xf32> to vector<8x128xf32>
    %573 = math.tanh %572 : vector<8x128xf32>
    %574 = arith.mulf %570, %497 : vector<8x128xf32>
    %575 = arith.mulf %569, %573 : vector<8x128xf32>
    %576 = arith.addf %574, %575 : vector<8x128xf32>
    %577 = math.tanh %576 : vector<8x128xf32>
    %578 = arith.mulf %571, %577 : vector<8x128xf32>
    %c1_i32_198 = arith.constant 1 : i32
    %579 = arith.cmpi sge, %c6_i32, %c1_i32_198 : i32
    %c8_i32_199 = arith.constant 8 : i32
    %580 = arith.cmpi sle, %c6_i32, %c8_i32_199 : i32
    %581 = arith.andi %579, %580 : i1
    %582 = arith.select %581, %578, %496 : vector<8x128xf32>
    %583 = arith.select %581, %576, %497 : vector<8x128xf32>
    %c0_200 = arith.constant 0 : index
    %c0_201 = arith.constant 0 : index
    %584 = vector.load %arg8[%c0_200, %c0_201] : memref<128x512xbf16, #tpu.memory_space<vmem>>, vector<128x512xbf16>
    %cst_202 = arith.constant dense<0.000000e+00> : vector<8x512xf32>
    %585 = tpu.matmul %526, %584, %cst_202 {dimension_numbers = #tpu.dot_dimension_numbers<[1], [0], [0], [1], [0, 0, 1, 1], [], []>} : vector<8x128xbf16>, vector<128x512xbf16>, vector<8x512xf32> -> vector<8x512xf32>
    %c0_203 = arith.constant 0 : index
    %c0_204 = arith.constant 0 : index
    %586 = vector.load %arg9[%c0_203, %c0_204] : memref<128x512xbf16, #tpu.memory_space<vmem>>, vector<128x512xbf16>
    %cst_205 = arith.constant dense<0.000000e+00> : vector<8x512xf32>
    %587 = tpu.matmul %527, %586, %cst_205 {dimension_numbers = #tpu.dot_dimension_numbers<[1], [0], [0], [1], [0, 0, 1, 1], [], []>} : vector<8x128xbf16>, vector<128x512xbf16>, vector<8x512xf32> -> vector<8x512xf32>
    %588 = arith.addf %585, %587 : vector<8x512xf32>
    %c0_206 = arith.constant 0 : index
    %c0_207 = arith.constant 0 : index
    %589 = vector.load %arg10[%c0_206, %c0_207] : memref<1x512xf32, #tpu.memory_space<vmem>>, vector<1x512xf32>
    %590 = vector.broadcast %589 : vector<1x512xf32> to vector<8x512xf32>
    %591 = arith.addf %588, %590 : vector<8x512xf32>
    %592 = vector.extract_strided_slice %591 {offsets = [0, 0], sizes = [8, 384], strides = [1, 1]} : vector<8x512xf32> to vector<8x384xf32>
    %593 = arith.negf %592 : vector<8x384xf32>
    %594 = math.exp %593 : vector<8x384xf32>
    %cst_208 = arith.constant 1.000000e+00 : f32
    %595 = vector.broadcast %cst_208 : f32 to vector<8x384xf32>
    %596 = arith.addf %595, %594 : vector<8x384xf32>
    %597 = arith.divf %595, %596 : vector<8x384xf32>
    %598 = vector.extract_strided_slice %597 {offsets = [0, 0], sizes = [8, 128], strides = [1, 1]} : vector<8x384xf32> to vector<8x128xf32>
    %599 = vector.extract_strided_slice %597 {offsets = [0, 128], sizes = [8, 128], strides = [1, 1]} : vector<8x384xf32> to vector<8x128xf32>
    %600 = vector.extract_strided_slice %597 {offsets = [0, 256], sizes = [8, 128], strides = [1, 1]} : vector<8x384xf32> to vector<8x128xf32>
    %601 = vector.extract_strided_slice %591 {offsets = [0, 384], sizes = [8, 128], strides = [1, 1]} : vector<8x512xf32> to vector<8x128xf32>
    %602 = math.tanh %601 : vector<8x128xf32>
    %603 = arith.mulf %599, %524 : vector<8x128xf32>
    %604 = arith.mulf %598, %602 : vector<8x128xf32>
    %605 = arith.addf %603, %604 : vector<8x128xf32>
    %606 = math.tanh %605 : vector<8x128xf32>
    %607 = arith.mulf %600, %606 : vector<8x128xf32>
    %c2_i32_209 = arith.constant 2 : i32
    %608 = arith.cmpi sge, %c6_i32, %c2_i32_209 : i32
    %609 = arith.select %608, %607, %523 : vector<8x128xf32>
    %610 = arith.select %608, %605, %524 : vector<8x128xf32>
    %c7_i32_210 = arith.constant 7 : i32
    %611 = arith.truncf %553 : vector<8x128xf32> to vector<8x128xbf16>
    %612 = arith.truncf %582 : vector<8x128xf32> to vector<8x128xbf16>
    %613 = arith.truncf %609 : vector<8x128xf32> to vector<8x128xbf16>
    %c7_i32_211 = arith.constant 7 : i32
    %614 = arith.minsi %c7_i32_210, %c7_i32_211 : i32
    %c8_i32_212 = arith.constant 8 : i32
    %615 = arith.muli %614, %c8_i32_212 : i32
    %616 = tpu.assume_multiple %615, 8 : i32
    %617 = arith.index_cast %616 : i32 to index
    %c0_213 = arith.constant 0 : index
    %618 = vector.load %arg14[%617, %c0_213] : memref<64x512xf32, #tpu.memory_space<vmem>>, vector<8x512xf32>
    %c0_214 = arith.constant 0 : index
    %c0_215 = arith.constant 0 : index
    %619 = vector.load %arg3[%c0_214, %c0_215] : memref<128x512xbf16, #tpu.memory_space<vmem>>, vector<128x512xbf16>
    %cst_216 = arith.constant dense<0.000000e+00> : vector<8x512xf32>
    %620 = tpu.matmul %611, %619, %cst_216 {dimension_numbers = #tpu.dot_dimension_numbers<[1], [0], [0], [1], [0, 0, 1, 1], [], []>} : vector<8x128xbf16>, vector<128x512xbf16>, vector<8x512xf32> -> vector<8x512xf32>
    %621 = arith.addf %618, %620 : vector<8x512xf32>
    %622 = vector.extract_strided_slice %621 {offsets = [0, 0], sizes = [8, 384], strides = [1, 1]} : vector<8x512xf32> to vector<8x384xf32>
    %623 = arith.negf %622 : vector<8x384xf32>
    %624 = math.exp %623 : vector<8x384xf32>
    %cst_217 = arith.constant 1.000000e+00 : f32
    %625 = vector.broadcast %cst_217 : f32 to vector<8x384xf32>
    %626 = arith.addf %625, %624 : vector<8x384xf32>
    %627 = arith.divf %625, %626 : vector<8x384xf32>
    %628 = vector.extract_strided_slice %627 {offsets = [0, 0], sizes = [8, 128], strides = [1, 1]} : vector<8x384xf32> to vector<8x128xf32>
    %629 = vector.extract_strided_slice %627 {offsets = [0, 128], sizes = [8, 128], strides = [1, 1]} : vector<8x384xf32> to vector<8x128xf32>
    %630 = vector.extract_strided_slice %627 {offsets = [0, 256], sizes = [8, 128], strides = [1, 1]} : vector<8x384xf32> to vector<8x128xf32>
    %631 = vector.extract_strided_slice %621 {offsets = [0, 384], sizes = [8, 128], strides = [1, 1]} : vector<8x512xf32> to vector<8x128xf32>
    %632 = math.tanh %631 : vector<8x128xf32>
    %633 = arith.mulf %629, %554 : vector<8x128xf32>
    %634 = arith.mulf %628, %632 : vector<8x128xf32>
    %635 = arith.addf %633, %634 : vector<8x128xf32>
    %636 = math.tanh %635 : vector<8x128xf32>
    %637 = arith.mulf %630, %636 : vector<8x128xf32>
    %c8_i32_218 = arith.constant 8 : i32
    %638 = arith.cmpi slt, %c7_i32_210, %c8_i32_218 : i32
    %639 = arith.select %638, %637, %553 : vector<8x128xf32>
    %640 = arith.select %638, %635, %554 : vector<8x128xf32>
    %c0_219 = arith.constant 0 : index
    %c0_220 = arith.constant 0 : index
    %641 = vector.load %arg5[%c0_219, %c0_220] : memref<128x512xbf16, #tpu.memory_space<vmem>>, vector<128x512xbf16>
    %cst_221 = arith.constant dense<0.000000e+00> : vector<8x512xf32>
    %642 = tpu.matmul %611, %641, %cst_221 {dimension_numbers = #tpu.dot_dimension_numbers<[1], [0], [0], [1], [0, 0, 1, 1], [], []>} : vector<8x128xbf16>, vector<128x512xbf16>, vector<8x512xf32> -> vector<8x512xf32>
    %c0_222 = arith.constant 0 : index
    %c0_223 = arith.constant 0 : index
    %643 = vector.load %arg6[%c0_222, %c0_223] : memref<128x512xbf16, #tpu.memory_space<vmem>>, vector<128x512xbf16>
    %cst_224 = arith.constant dense<0.000000e+00> : vector<8x512xf32>
    %644 = tpu.matmul %612, %643, %cst_224 {dimension_numbers = #tpu.dot_dimension_numbers<[1], [0], [0], [1], [0, 0, 1, 1], [], []>} : vector<8x128xbf16>, vector<128x512xbf16>, vector<8x512xf32> -> vector<8x512xf32>
    %645 = arith.addf %642, %644 : vector<8x512xf32>
    %c0_225 = arith.constant 0 : index
    %c0_226 = arith.constant 0 : index
    %646 = vector.load %arg7[%c0_225, %c0_226] : memref<1x512xf32, #tpu.memory_space<vmem>>, vector<1x512xf32>
    %647 = vector.broadcast %646 : vector<1x512xf32> to vector<8x512xf32>
    %648 = arith.addf %645, %647 : vector<8x512xf32>
    %649 = vector.extract_strided_slice %648 {offsets = [0, 0], sizes = [8, 384], strides = [1, 1]} : vector<8x512xf32> to vector<8x384xf32>
    %650 = arith.negf %649 : vector<8x384xf32>
    %651 = math.exp %650 : vector<8x384xf32>
    %cst_227 = arith.constant 1.000000e+00 : f32
    %652 = vector.broadcast %cst_227 : f32 to vector<8x384xf32>
    %653 = arith.addf %652, %651 : vector<8x384xf32>
    %654 = arith.divf %652, %653 : vector<8x384xf32>
    %655 = vector.extract_strided_slice %654 {offsets = [0, 0], sizes = [8, 128], strides = [1, 1]} : vector<8x384xf32> to vector<8x128xf32>
    %656 = vector.extract_strided_slice %654 {offsets = [0, 128], sizes = [8, 128], strides = [1, 1]} : vector<8x384xf32> to vector<8x128xf32>
    %657 = vector.extract_strided_slice %654 {offsets = [0, 256], sizes = [8, 128], strides = [1, 1]} : vector<8x384xf32> to vector<8x128xf32>
    %658 = vector.extract_strided_slice %648 {offsets = [0, 384], sizes = [8, 128], strides = [1, 1]} : vector<8x512xf32> to vector<8x128xf32>
    %659 = math.tanh %658 : vector<8x128xf32>
    %660 = arith.mulf %656, %583 : vector<8x128xf32>
    %661 = arith.mulf %655, %659 : vector<8x128xf32>
    %662 = arith.addf %660, %661 : vector<8x128xf32>
    %663 = math.tanh %662 : vector<8x128xf32>
    %664 = arith.mulf %657, %663 : vector<8x128xf32>
    %c1_i32_228 = arith.constant 1 : i32
    %665 = arith.cmpi sge, %c7_i32_210, %c1_i32_228 : i32
    %c8_i32_229 = arith.constant 8 : i32
    %666 = arith.cmpi sle, %c7_i32_210, %c8_i32_229 : i32
    %667 = arith.andi %665, %666 : i1
    %668 = arith.select %667, %664, %582 : vector<8x128xf32>
    %669 = arith.select %667, %662, %583 : vector<8x128xf32>
    %c0_230 = arith.constant 0 : index
    %c0_231 = arith.constant 0 : index
    %670 = vector.load %arg8[%c0_230, %c0_231] : memref<128x512xbf16, #tpu.memory_space<vmem>>, vector<128x512xbf16>
    %cst_232 = arith.constant dense<0.000000e+00> : vector<8x512xf32>
    %671 = tpu.matmul %612, %670, %cst_232 {dimension_numbers = #tpu.dot_dimension_numbers<[1], [0], [0], [1], [0, 0, 1, 1], [], []>} : vector<8x128xbf16>, vector<128x512xbf16>, vector<8x512xf32> -> vector<8x512xf32>
    %c0_233 = arith.constant 0 : index
    %c0_234 = arith.constant 0 : index
    %672 = vector.load %arg9[%c0_233, %c0_234] : memref<128x512xbf16, #tpu.memory_space<vmem>>, vector<128x512xbf16>
    %cst_235 = arith.constant dense<0.000000e+00> : vector<8x512xf32>
    %673 = tpu.matmul %613, %672, %cst_235 {dimension_numbers = #tpu.dot_dimension_numbers<[1], [0], [0], [1], [0, 0, 1, 1], [], []>} : vector<8x128xbf16>, vector<128x512xbf16>, vector<8x512xf32> -> vector<8x512xf32>
    %674 = arith.addf %671, %673 : vector<8x512xf32>
    %c0_236 = arith.constant 0 : index
    %c0_237 = arith.constant 0 : index
    %675 = vector.load %arg10[%c0_236, %c0_237] : memref<1x512xf32, #tpu.memory_space<vmem>>, vector<1x512xf32>
    %676 = vector.broadcast %675 : vector<1x512xf32> to vector<8x512xf32>
    %677 = arith.addf %674, %676 : vector<8x512xf32>
    %678 = vector.extract_strided_slice %677 {offsets = [0, 0], sizes = [8, 384], strides = [1, 1]} : vector<8x512xf32> to vector<8x384xf32>
    %679 = arith.negf %678 : vector<8x384xf32>
    %680 = math.exp %679 : vector<8x384xf32>
    %cst_238 = arith.constant 1.000000e+00 : f32
    %681 = vector.broadcast %cst_238 : f32 to vector<8x384xf32>
    %682 = arith.addf %681, %680 : vector<8x384xf32>
    %683 = arith.divf %681, %682 : vector<8x384xf32>
    %684 = vector.extract_strided_slice %683 {offsets = [0, 0], sizes = [8, 128], strides = [1, 1]} : vector<8x384xf32> to vector<8x128xf32>
    %685 = vector.extract_strided_slice %683 {offsets = [0, 128], sizes = [8, 128], strides = [1, 1]} : vector<8x384xf32> to vector<8x128xf32>
    %686 = vector.extract_strided_slice %683 {offsets = [0, 256], sizes = [8, 128], strides = [1, 1]} : vector<8x384xf32> to vector<8x128xf32>
    %687 = vector.extract_strided_slice %677 {offsets = [0, 384], sizes = [8, 128], strides = [1, 1]} : vector<8x512xf32> to vector<8x128xf32>
    %688 = math.tanh %687 : vector<8x128xf32>
    %689 = arith.mulf %685, %610 : vector<8x128xf32>
    %690 = arith.mulf %684, %688 : vector<8x128xf32>
    %691 = arith.addf %689, %690 : vector<8x128xf32>
    %692 = math.tanh %691 : vector<8x128xf32>
    %693 = arith.mulf %686, %692 : vector<8x128xf32>
    %c2_i32_239 = arith.constant 2 : i32
    %694 = arith.cmpi sge, %c7_i32_210, %c2_i32_239 : i32
    %695 = arith.select %694, %693, %609 : vector<8x128xf32>
    %696 = arith.select %694, %691, %610 : vector<8x128xf32>
    %c8_i32_240 = arith.constant 8 : i32
    %697 = arith.truncf %639 : vector<8x128xf32> to vector<8x128xbf16>
    %698 = arith.truncf %668 : vector<8x128xf32> to vector<8x128xbf16>
    %699 = arith.truncf %695 : vector<8x128xf32> to vector<8x128xbf16>
    %c7_i32_241 = arith.constant 7 : i32
    %700 = arith.minsi %c8_i32_240, %c7_i32_241 : i32
    %c8_i32_242 = arith.constant 8 : i32
    %701 = arith.muli %700, %c8_i32_242 : i32
    %702 = tpu.assume_multiple %701, 8 : i32
    %703 = arith.index_cast %702 : i32 to index
    %c0_243 = arith.constant 0 : index
    %704 = vector.load %arg14[%703, %c0_243] : memref<64x512xf32, #tpu.memory_space<vmem>>, vector<8x512xf32>
    %c0_244 = arith.constant 0 : index
    %c0_245 = arith.constant 0 : index
    %705 = vector.load %arg3[%c0_244, %c0_245] : memref<128x512xbf16, #tpu.memory_space<vmem>>, vector<128x512xbf16>
    %cst_246 = arith.constant dense<0.000000e+00> : vector<8x512xf32>
    %706 = tpu.matmul %697, %705, %cst_246 {dimension_numbers = #tpu.dot_dimension_numbers<[1], [0], [0], [1], [0, 0, 1, 1], [], []>} : vector<8x128xbf16>, vector<128x512xbf16>, vector<8x512xf32> -> vector<8x512xf32>
    %707 = arith.addf %704, %706 : vector<8x512xf32>
    %708 = vector.extract_strided_slice %707 {offsets = [0, 0], sizes = [8, 384], strides = [1, 1]} : vector<8x512xf32> to vector<8x384xf32>
    %709 = arith.negf %708 : vector<8x384xf32>
    %710 = math.exp %709 : vector<8x384xf32>
    %cst_247 = arith.constant 1.000000e+00 : f32
    %711 = vector.broadcast %cst_247 : f32 to vector<8x384xf32>
    %712 = arith.addf %711, %710 : vector<8x384xf32>
    %713 = arith.divf %711, %712 : vector<8x384xf32>
    %714 = vector.extract_strided_slice %713 {offsets = [0, 0], sizes = [8, 128], strides = [1, 1]} : vector<8x384xf32> to vector<8x128xf32>
    %715 = vector.extract_strided_slice %713 {offsets = [0, 128], sizes = [8, 128], strides = [1, 1]} : vector<8x384xf32> to vector<8x128xf32>
    %716 = vector.extract_strided_slice %713 {offsets = [0, 256], sizes = [8, 128], strides = [1, 1]} : vector<8x384xf32> to vector<8x128xf32>
    %717 = vector.extract_strided_slice %707 {offsets = [0, 384], sizes = [8, 128], strides = [1, 1]} : vector<8x512xf32> to vector<8x128xf32>
    %718 = math.tanh %717 : vector<8x128xf32>
    %719 = arith.mulf %715, %640 : vector<8x128xf32>
    %720 = arith.mulf %714, %718 : vector<8x128xf32>
    %721 = arith.addf %719, %720 : vector<8x128xf32>
    %722 = math.tanh %721 : vector<8x128xf32>
    %723 = arith.mulf %716, %722 : vector<8x128xf32>
    %c8_i32_248 = arith.constant 8 : i32
    %724 = arith.cmpi slt, %c8_i32_240, %c8_i32_248 : i32
    %725 = arith.select %724, %723, %639 : vector<8x128xf32>
    %726 = arith.select %724, %721, %640 : vector<8x128xf32>
    %c0_249 = arith.constant 0 : index
    %c0_250 = arith.constant 0 : index
    %727 = vector.load %arg5[%c0_249, %c0_250] : memref<128x512xbf16, #tpu.memory_space<vmem>>, vector<128x512xbf16>
    %cst_251 = arith.constant dense<0.000000e+00> : vector<8x512xf32>
    %728 = tpu.matmul %697, %727, %cst_251 {dimension_numbers = #tpu.dot_dimension_numbers<[1], [0], [0], [1], [0, 0, 1, 1], [], []>} : vector<8x128xbf16>, vector<128x512xbf16>, vector<8x512xf32> -> vector<8x512xf32>
    %c0_252 = arith.constant 0 : index
    %c0_253 = arith.constant 0 : index
    %729 = vector.load %arg6[%c0_252, %c0_253] : memref<128x512xbf16, #tpu.memory_space<vmem>>, vector<128x512xbf16>
    %cst_254 = arith.constant dense<0.000000e+00> : vector<8x512xf32>
    %730 = tpu.matmul %698, %729, %cst_254 {dimension_numbers = #tpu.dot_dimension_numbers<[1], [0], [0], [1], [0, 0, 1, 1], [], []>} : vector<8x128xbf16>, vector<128x512xbf16>, vector<8x512xf32> -> vector<8x512xf32>
    %731 = arith.addf %728, %730 : vector<8x512xf32>
    %c0_255 = arith.constant 0 : index
    %c0_256 = arith.constant 0 : index
    %732 = vector.load %arg7[%c0_255, %c0_256] : memref<1x512xf32, #tpu.memory_space<vmem>>, vector<1x512xf32>
    %733 = vector.broadcast %732 : vector<1x512xf32> to vector<8x512xf32>
    %734 = arith.addf %731, %733 : vector<8x512xf32>
    %735 = vector.extract_strided_slice %734 {offsets = [0, 0], sizes = [8, 384], strides = [1, 1]} : vector<8x512xf32> to vector<8x384xf32>
    %736 = arith.negf %735 : vector<8x384xf32>
    %737 = math.exp %736 : vector<8x384xf32>
    %cst_257 = arith.constant 1.000000e+00 : f32
    %738 = vector.broadcast %cst_257 : f32 to vector<8x384xf32>
    %739 = arith.addf %738, %737 : vector<8x384xf32>
    %740 = arith.divf %738, %739 : vector<8x384xf32>
    %741 = vector.extract_strided_slice %740 {offsets = [0, 0], sizes = [8, 128], strides = [1, 1]} : vector<8x384xf32> to vector<8x128xf32>
    %742 = vector.extract_strided_slice %740 {offsets = [0, 128], sizes = [8, 128], strides = [1, 1]} : vector<8x384xf32> to vector<8x128xf32>
    %743 = vector.extract_strided_slice %740 {offsets = [0, 256], sizes = [8, 128], strides = [1, 1]} : vector<8x384xf32> to vector<8x128xf32>
    %744 = vector.extract_strided_slice %734 {offsets = [0, 384], sizes = [8, 128], strides = [1, 1]} : vector<8x512xf32> to vector<8x128xf32>
    %745 = math.tanh %744 : vector<8x128xf32>
    %746 = arith.mulf %742, %669 : vector<8x128xf32>
    %747 = arith.mulf %741, %745 : vector<8x128xf32>
    %748 = arith.addf %746, %747 : vector<8x128xf32>
    %749 = math.tanh %748 : vector<8x128xf32>
    %750 = arith.mulf %743, %749 : vector<8x128xf32>
    %c1_i32_258 = arith.constant 1 : i32
    %751 = arith.cmpi sge, %c8_i32_240, %c1_i32_258 : i32
    %c8_i32_259 = arith.constant 8 : i32
    %752 = arith.cmpi sle, %c8_i32_240, %c8_i32_259 : i32
    %753 = arith.andi %751, %752 : i1
    %754 = arith.select %753, %750, %668 : vector<8x128xf32>
    %755 = arith.select %753, %748, %669 : vector<8x128xf32>
    %c0_260 = arith.constant 0 : index
    %c0_261 = arith.constant 0 : index
    %756 = vector.load %arg8[%c0_260, %c0_261] : memref<128x512xbf16, #tpu.memory_space<vmem>>, vector<128x512xbf16>
    %cst_262 = arith.constant dense<0.000000e+00> : vector<8x512xf32>
    %757 = tpu.matmul %698, %756, %cst_262 {dimension_numbers = #tpu.dot_dimension_numbers<[1], [0], [0], [1], [0, 0, 1, 1], [], []>} : vector<8x128xbf16>, vector<128x512xbf16>, vector<8x512xf32> -> vector<8x512xf32>
    %c0_263 = arith.constant 0 : index
    %c0_264 = arith.constant 0 : index
    %758 = vector.load %arg9[%c0_263, %c0_264] : memref<128x512xbf16, #tpu.memory_space<vmem>>, vector<128x512xbf16>
    %cst_265 = arith.constant dense<0.000000e+00> : vector<8x512xf32>
    %759 = tpu.matmul %699, %758, %cst_265 {dimension_numbers = #tpu.dot_dimension_numbers<[1], [0], [0], [1], [0, 0, 1, 1], [], []>} : vector<8x128xbf16>, vector<128x512xbf16>, vector<8x512xf32> -> vector<8x512xf32>
    %760 = arith.addf %757, %759 : vector<8x512xf32>
    %c0_266 = arith.constant 0 : index
    %c0_267 = arith.constant 0 : index
    %761 = vector.load %arg10[%c0_266, %c0_267] : memref<1x512xf32, #tpu.memory_space<vmem>>, vector<1x512xf32>
    %762 = vector.broadcast %761 : vector<1x512xf32> to vector<8x512xf32>
    %763 = arith.addf %760, %762 : vector<8x512xf32>
    %764 = vector.extract_strided_slice %763 {offsets = [0, 0], sizes = [8, 384], strides = [1, 1]} : vector<8x512xf32> to vector<8x384xf32>
    %765 = arith.negf %764 : vector<8x384xf32>
    %766 = math.exp %765 : vector<8x384xf32>
    %cst_268 = arith.constant 1.000000e+00 : f32
    %767 = vector.broadcast %cst_268 : f32 to vector<8x384xf32>
    %768 = arith.addf %767, %766 : vector<8x384xf32>
    %769 = arith.divf %767, %768 : vector<8x384xf32>
    %770 = vector.extract_strided_slice %769 {offsets = [0, 0], sizes = [8, 128], strides = [1, 1]} : vector<8x384xf32> to vector<8x128xf32>
    %771 = vector.extract_strided_slice %769 {offsets = [0, 128], sizes = [8, 128], strides = [1, 1]} : vector<8x384xf32> to vector<8x128xf32>
    %772 = vector.extract_strided_slice %769 {offsets = [0, 256], sizes = [8, 128], strides = [1, 1]} : vector<8x384xf32> to vector<8x128xf32>
    %773 = vector.extract_strided_slice %763 {offsets = [0, 384], sizes = [8, 128], strides = [1, 1]} : vector<8x512xf32> to vector<8x128xf32>
    %774 = math.tanh %773 : vector<8x128xf32>
    %775 = arith.mulf %771, %696 : vector<8x128xf32>
    %776 = arith.mulf %770, %774 : vector<8x128xf32>
    %777 = arith.addf %775, %776 : vector<8x128xf32>
    %778 = math.tanh %777 : vector<8x128xf32>
    %779 = arith.mulf %772, %778 : vector<8x128xf32>
    %c2_i32_269 = arith.constant 2 : i32
    %780 = arith.cmpi sge, %c8_i32_240, %c2_i32_269 : i32
    %781 = arith.select %780, %779, %695 : vector<8x128xf32>
    %782 = arith.select %780, %777, %696 : vector<8x128xf32>
    %c9_i32 = arith.constant 9 : i32
    %783 = arith.truncf %725 : vector<8x128xf32> to vector<8x128xbf16>
    %784 = arith.truncf %754 : vector<8x128xf32> to vector<8x128xbf16>
    %785 = arith.truncf %781 : vector<8x128xf32> to vector<8x128xbf16>
    %c7_i32_270 = arith.constant 7 : i32
    %786 = arith.minsi %c9_i32, %c7_i32_270 : i32
    %c8_i32_271 = arith.constant 8 : i32
    %787 = arith.muli %786, %c8_i32_271 : i32
    %788 = tpu.assume_multiple %787, 8 : i32
    %789 = arith.index_cast %788 : i32 to index
    %c0_272 = arith.constant 0 : index
    %790 = vector.load %arg14[%789, %c0_272] : memref<64x512xf32, #tpu.memory_space<vmem>>, vector<8x512xf32>
    %c0_273 = arith.constant 0 : index
    %c0_274 = arith.constant 0 : index
    %791 = vector.load %arg3[%c0_273, %c0_274] : memref<128x512xbf16, #tpu.memory_space<vmem>>, vector<128x512xbf16>
    %cst_275 = arith.constant dense<0.000000e+00> : vector<8x512xf32>
    %792 = tpu.matmul %783, %791, %cst_275 {dimension_numbers = #tpu.dot_dimension_numbers<[1], [0], [0], [1], [0, 0, 1, 1], [], []>} : vector<8x128xbf16>, vector<128x512xbf16>, vector<8x512xf32> -> vector<8x512xf32>
    %793 = arith.addf %790, %792 : vector<8x512xf32>
    %794 = vector.extract_strided_slice %793 {offsets = [0, 0], sizes = [8, 384], strides = [1, 1]} : vector<8x512xf32> to vector<8x384xf32>
    %795 = arith.negf %794 : vector<8x384xf32>
    %796 = math.exp %795 : vector<8x384xf32>
    %cst_276 = arith.constant 1.000000e+00 : f32
    %797 = vector.broadcast %cst_276 : f32 to vector<8x384xf32>
    %798 = arith.addf %797, %796 : vector<8x384xf32>
    %799 = arith.divf %797, %798 : vector<8x384xf32>
    %800 = vector.extract_strided_slice %799 {offsets = [0, 0], sizes = [8, 128], strides = [1, 1]} : vector<8x384xf32> to vector<8x128xf32>
    %801 = vector.extract_strided_slice %799 {offsets = [0, 128], sizes = [8, 128], strides = [1, 1]} : vector<8x384xf32> to vector<8x128xf32>
    %802 = vector.extract_strided_slice %799 {offsets = [0, 256], sizes = [8, 128], strides = [1, 1]} : vector<8x384xf32> to vector<8x128xf32>
    %803 = vector.extract_strided_slice %793 {offsets = [0, 384], sizes = [8, 128], strides = [1, 1]} : vector<8x512xf32> to vector<8x128xf32>
    %804 = math.tanh %803 : vector<8x128xf32>
    %805 = arith.mulf %801, %726 : vector<8x128xf32>
    %806 = arith.mulf %800, %804 : vector<8x128xf32>
    %807 = arith.addf %805, %806 : vector<8x128xf32>
    %808 = math.tanh %807 : vector<8x128xf32>
    %809 = arith.mulf %802, %808 : vector<8x128xf32>
    %c8_i32_277 = arith.constant 8 : i32
    %810 = arith.cmpi slt, %c9_i32, %c8_i32_277 : i32
    %811 = arith.select %810, %809, %725 : vector<8x128xf32>
    %812 = arith.select %810, %807, %726 : vector<8x128xf32>
    %c0_278 = arith.constant 0 : index
    %c0_279 = arith.constant 0 : index
    %813 = vector.load %arg5[%c0_278, %c0_279] : memref<128x512xbf16, #tpu.memory_space<vmem>>, vector<128x512xbf16>
    %cst_280 = arith.constant dense<0.000000e+00> : vector<8x512xf32>
    %814 = tpu.matmul %783, %813, %cst_280 {dimension_numbers = #tpu.dot_dimension_numbers<[1], [0], [0], [1], [0, 0, 1, 1], [], []>} : vector<8x128xbf16>, vector<128x512xbf16>, vector<8x512xf32> -> vector<8x512xf32>
    %c0_281 = arith.constant 0 : index
    %c0_282 = arith.constant 0 : index
    %815 = vector.load %arg6[%c0_281, %c0_282] : memref<128x512xbf16, #tpu.memory_space<vmem>>, vector<128x512xbf16>
    %cst_283 = arith.constant dense<0.000000e+00> : vector<8x512xf32>
    %816 = tpu.matmul %784, %815, %cst_283 {dimension_numbers = #tpu.dot_dimension_numbers<[1], [0], [0], [1], [0, 0, 1, 1], [], []>} : vector<8x128xbf16>, vector<128x512xbf16>, vector<8x512xf32> -> vector<8x512xf32>
    %817 = arith.addf %814, %816 : vector<8x512xf32>
    %c0_284 = arith.constant 0 : index
    %c0_285 = arith.constant 0 : index
    %818 = vector.load %arg7[%c0_284, %c0_285] : memref<1x512xf32, #tpu.memory_space<vmem>>, vector<1x512xf32>
    %819 = vector.broadcast %818 : vector<1x512xf32> to vector<8x512xf32>
    %820 = arith.addf %817, %819 : vector<8x512xf32>
    %821 = vector.extract_strided_slice %820 {offsets = [0, 0], sizes = [8, 384], strides = [1, 1]} : vector<8x512xf32> to vector<8x384xf32>
    %822 = arith.negf %821 : vector<8x384xf32>
    %823 = math.exp %822 : vector<8x384xf32>
    %cst_286 = arith.constant 1.000000e+00 : f32
    %824 = vector.broadcast %cst_286 : f32 to vector<8x384xf32>
    %825 = arith.addf %824, %823 : vector<8x384xf32>
    %826 = arith.divf %824, %825 : vector<8x384xf32>
    %827 = vector.extract_strided_slice %826 {offsets = [0, 0], sizes = [8, 128], strides = [1, 1]} : vector<8x384xf32> to vector<8x128xf32>
    %828 = vector.extract_strided_slice %826 {offsets = [0, 128], sizes = [8, 128], strides = [1, 1]} : vector<8x384xf32> to vector<8x128xf32>
    %829 = vector.extract_strided_slice %826 {offsets = [0, 256], sizes = [8, 128], strides = [1, 1]} : vector<8x384xf32> to vector<8x128xf32>
    %830 = vector.extract_strided_slice %820 {offsets = [0, 384], sizes = [8, 128], strides = [1, 1]} : vector<8x512xf32> to vector<8x128xf32>
    %831 = math.tanh %830 : vector<8x128xf32>
    %832 = arith.mulf %828, %755 : vector<8x128xf32>
    %833 = arith.mulf %827, %831 : vector<8x128xf32>
    %834 = arith.addf %832, %833 : vector<8x128xf32>
    %835 = math.tanh %834 : vector<8x128xf32>
    %836 = arith.mulf %829, %835 : vector<8x128xf32>
    %c1_i32_287 = arith.constant 1 : i32
    %837 = arith.cmpi sge, %c9_i32, %c1_i32_287 : i32
    %c8_i32_288 = arith.constant 8 : i32
    %838 = arith.cmpi sle, %c9_i32, %c8_i32_288 : i32
    %839 = arith.andi %837, %838 : i1
    %840 = arith.select %839, %836, %754 : vector<8x128xf32>
    %841 = arith.select %839, %834, %755 : vector<8x128xf32>
    %c0_289 = arith.constant 0 : index
    %c0_290 = arith.constant 0 : index
    %842 = vector.load %arg8[%c0_289, %c0_290] : memref<128x512xbf16, #tpu.memory_space<vmem>>, vector<128x512xbf16>
    %cst_291 = arith.constant dense<0.000000e+00> : vector<8x512xf32>
    %843 = tpu.matmul %784, %842, %cst_291 {dimension_numbers = #tpu.dot_dimension_numbers<[1], [0], [0], [1], [0, 0, 1, 1], [], []>} : vector<8x128xbf16>, vector<128x512xbf16>, vector<8x512xf32> -> vector<8x512xf32>
    %c0_292 = arith.constant 0 : index
    %c0_293 = arith.constant 0 : index
    %844 = vector.load %arg9[%c0_292, %c0_293] : memref<128x512xbf16, #tpu.memory_space<vmem>>, vector<128x512xbf16>
    %cst_294 = arith.constant dense<0.000000e+00> : vector<8x512xf32>
    %845 = tpu.matmul %785, %844, %cst_294 {dimension_numbers = #tpu.dot_dimension_numbers<[1], [0], [0], [1], [0, 0, 1, 1], [], []>} : vector<8x128xbf16>, vector<128x512xbf16>, vector<8x512xf32> -> vector<8x512xf32>
    %846 = arith.addf %843, %845 : vector<8x512xf32>
    %c0_295 = arith.constant 0 : index
    %c0_296 = arith.constant 0 : index
    %847 = vector.load %arg10[%c0_295, %c0_296] : memref<1x512xf32, #tpu.memory_space<vmem>>, vector<1x512xf32>
    %848 = vector.broadcast %847 : vector<1x512xf32> to vector<8x512xf32>
    %849 = arith.addf %846, %848 : vector<8x512xf32>
    %850 = vector.extract_strided_slice %849 {offsets = [0, 0], sizes = [8, 384], strides = [1, 1]} : vector<8x512xf32> to vector<8x384xf32>
    %851 = arith.negf %850 : vector<8x384xf32>
    %852 = math.exp %851 : vector<8x384xf32>
    %cst_297 = arith.constant 1.000000e+00 : f32
    %853 = vector.broadcast %cst_297 : f32 to vector<8x384xf32>
    %854 = arith.addf %853, %852 : vector<8x384xf32>
    %855 = arith.divf %853, %854 : vector<8x384xf32>
    %856 = vector.extract_strided_slice %855 {offsets = [0, 0], sizes = [8, 128], strides = [1, 1]} : vector<8x384xf32> to vector<8x128xf32>
    %857 = vector.extract_strided_slice %855 {offsets = [0, 128], sizes = [8, 128], strides = [1, 1]} : vector<8x384xf32> to vector<8x128xf32>
    %858 = vector.extract_strided_slice %855 {offsets = [0, 256], sizes = [8, 128], strides = [1, 1]} : vector<8x384xf32> to vector<8x128xf32>
    %859 = vector.extract_strided_slice %849 {offsets = [0, 384], sizes = [8, 128], strides = [1, 1]} : vector<8x512xf32> to vector<8x128xf32>
    %860 = math.tanh %859 : vector<8x128xf32>
    %861 = arith.mulf %857, %782 : vector<8x128xf32>
    %862 = arith.mulf %856, %860 : vector<8x128xf32>
    %863 = arith.addf %861, %862 : vector<8x128xf32>
    %864 = math.tanh %863 : vector<8x128xf32>
    %865 = arith.mulf %858, %864 : vector<8x128xf32>
    %c2_i32_298 = arith.constant 2 : i32
    %866 = arith.cmpi sge, %c9_i32, %c2_i32_298 : i32
    %867 = arith.select %866, %865, %781 : vector<8x128xf32>
    %868 = arith.select %866, %863, %782 : vector<8x128xf32>
    %c10_i32 = arith.constant 10 : i32
    %c0_299 = arith.constant 0 : index
    %c0_300 = arith.constant 0 : index
    %869 = vector.load %arg11[%c0_299, %c0_300] : memref<128x64xf32, #tpu.memory_space<vmem>>, vector<128x64xf32>
    %cst_301 = arith.constant dense<0.000000e+00> : vector<8x64xf32>
    %870 = tpu.matmul %867, %869, %cst_301 {dimension_numbers = #tpu.dot_dimension_numbers<[1], [0], [0], [1], [0, 0, 1, 1], [], []>} : vector<8x128xf32>, vector<128x64xf32>, vector<8x64xf32> -> vector<8x64xf32>
    %c0_302 = arith.constant 0 : index
    %c0_303 = arith.constant 0 : index
    %871 = vector.load %arg12[%c0_302, %c0_303] : memref<1x64xf32, #tpu.memory_space<vmem>>, vector<1x64xf32>
    %872 = vector.broadcast %871 : vector<1x64xf32> to vector<8x64xf32>
    %873 = arith.addf %870, %872 : vector<8x64xf32>
    %874 = arith.mulf %873, %873 : vector<8x64xf32>
    %cst_304 = arith.constant dense<0.000000e+00> : vector<8xf32>
    %875 = vector.multi_reduction <add>, %874, %cst_304 [1] : vector<8x64xf32> to vector<8xf32>
    %876 = vector.shape_cast %875 : vector<8xf32> to vector<8x1xf32>
    %877 = math.rsqrt %876 : vector<8x1xf32>
    %878 = vector.broadcast %877 : vector<8x1xf32> to vector<8x64xf32>
    %879 = arith.mulf %873, %878 : vector<8x64xf32>
    %c0_305 = arith.constant 0 : index
    %c0_306 = arith.constant 0 : index
    %c0_307 = arith.constant 0 : index
    %880 = vector.load %arg13[%c0_305, %c0_306, %c0_307] : memref<1x8x64xf32, #tpu.memory_space<vmem>>, vector<1x8x64xf32>
    %881 = vector.shape_cast %880 : vector<1x8x64xf32> to vector<8x64xf32>
    %882 = vector.shape_cast %879 : vector<8x64xf32> to vector<1x8x64xf32>
    tpu.vector_store %arg13[%c0_305, %c0_306, %c0_307], %882 {strides = array<i32>} : memref<1x8x64xf32, #tpu.memory_space<vmem>>, vector<1x8x64xf32>,
    return
  }
  func.func @transform_0(%arg0: i32) -> (i32, i32, i32) {
    %c0_i32 = arith.constant 0 : i32
    %c0_i32_0 = arith.constant 0 : i32
    %c0_i32_1 = arith.constant 0 : i32
    return %arg0, %c0_i32, %c0_i32_0 : i32, i32, i32
  }
  func.func @transform_1(%arg0: i32) -> (i32, i32) {
    %c0_i32 = arith.constant 0 : i32
    %c0_i32_0 = arith.constant 0 : i32
    %c0_i32_1 = arith.constant 0 : i32
    return %c0_i32, %c0_i32_0 : i32, i32
  }
  func.func @transform_2(%arg0: i32) -> (i32, i32) {
    %c0_i32 = arith.constant 0 : i32
    %c0_i32_0 = arith.constant 0 : i32
    %c0_i32_1 = arith.constant 0 : i32
    return %c0_i32, %c0_i32_0 : i32, i32
  }
  func.func @transform_3(%arg0: i32) -> (i32, i32) {
    %c0_i32 = arith.constant 0 : i32
    %c0_i32_0 = arith.constant 0 : i32
    %c0_i32_1 = arith.constant 0 : i32
    return %c0_i32, %c0_i32_0 : i32, i32
  }
  func.func @transform_4(%arg0: i32) -> (i32, i32) {
    %c0_i32 = arith.constant 0 : i32
    %c0_i32_0 = arith.constant 0 : i32
    %c0_i32_1 = arith.constant 0 : i32
    return %c0_i32, %c0_i32_0 : i32, i32
  }
  func.func @transform_5(%arg0: i32) -> (i32, i32) {
    %c0_i32 = arith.constant 0 : i32
    %c0_i32_0 = arith.constant 0 : i32
    %c0_i32_1 = arith.constant 0 : i32
    return %c0_i32, %c0_i32_0 : i32, i32
  }
  func.func @transform_6(%arg0: i32) -> (i32, i32) {
    %c0_i32 = arith.constant 0 : i32
    %c0_i32_0 = arith.constant 0 : i32
    %c0_i32_1 = arith.constant 0 : i32
    return %c0_i32, %c0_i32_0 : i32, i32
  }
  func.func @transform_7(%arg0: i32) -> (i32, i32) {
    %c0_i32 = arith.constant 0 : i32
    %c0_i32_0 = arith.constant 0 : i32
    %c0_i32_1 = arith.constant 0 : i32
    return %c0_i32, %c0_i32_0 : i32, i32
  }
  func.func @transform_8(%arg0: i32) -> (i32, i32) {
    %c0_i32 = arith.constant 0 : i32
    %c0_i32_0 = arith.constant 0 : i32
    %c0_i32_1 = arith.constant 0 : i32
    return %c0_i32, %c0_i32_0 : i32, i32
  }
  func.func @transform_9(%arg0: i32) -> (i32, i32) {
    %c0_i32 = arith.constant 0 : i32
    %c0_i32_0 = arith.constant 0 : i32
    %c0_i32_1 = arith.constant 0 : i32
    return %c0_i32, %c0_i32_0 : i32, i32
  }
  func.func @transform_10(%arg0: i32) -> (i32, i32) {
    %c0_i32 = arith.constant 0 : i32
    %c0_i32_0 = arith.constant 0 : i32
    %c0_i32_1 = arith.constant 0 : i32
    return %c0_i32, %c0_i32_0 : i32, i32
  }
  func.func @transform_11(%arg0: i32) -> (i32, i32) {
    %c0_i32 = arith.constant 0 : i32
    %c0_i32_0 = arith.constant 0 : i32
    %c0_i32_1 = arith.constant 0 : i32
    return %c0_i32, %c0_i32_0 : i32, i32
  }
  func.func @transform_12(%arg0: i32) -> (i32, i32, i32) {
    %c0_i32 = arith.constant 0 : i32
    %c0_i32_0 = arith.constant 0 : i32
    %c0_i32_1 = arith.constant 0 : i32
    return %arg0, %c0_i32, %c0_i32_0 : i32, i32, i32
  }
}

</mosaic_0001>

<bundles_post_ra>
// kernel: tpu_custom_call.1
= control target key start
LH: loop header
LB: loop body
LE: loop exit
PB: predicated region body
PF: predicated region fallthrough
CT: control target
= control target key end

     0   :  { %17 = vsyncpa [#allocation4], 0  ;;  %s9322_s0 = inlined_call_operand.vmem [shape: f32[1,64,40], index: 0, kind: input, shape index: {}]   ;;  %s9323_s1 = inlined_call_operand.vmem [shape: f32[40,512], index: 1, kind: input, shape index: {}]   ;;  %s9324_s2 = inlined_call_operand.hbm [shape: bf16[128,512], index: 2, kind: input, shape index: {}]   ;;  %s9325_s3 = inlined_call_operand.vmem [shape: f32[1,512], index: 3, kind: input, shape index: {}]   ;;  %s9326_s4 = inlined_call_operand.hbm [shape: bf16[128,512], index: 4, kind: input, shape index: {}]   ;;  %s9327_s5 = inlined_call_operand.hbm [shape: bf16[128,512], index: 5, kind: input, shape index: {}]   ;;  %s9328_s6 = inlined_call_operand.vmem [shape: f32[1,512], index: 6, kind: input, shape index: {}]   ;;  %s9329_s7 = inlined_call_operand.hbm [shape: bf16[128,512], index: 7, kind: input, shape index: {}]   ;;  %s9330_s8 = inlined_call_operand.hbm [shape: bf16[128,512], index: 8, kind: input, shape index: {}]   ;;  %s9331_s9 = inlined_call_operand.vmem [shape: f32[1,512], index: 9, kind: input, shape index: {}]   ;;  %s9332_s10 = inlined_call_operand.vmem [shape: f32[128,64], index: 10, kind: input, shape index: {}]   ;;  %s9333_s11 = inlined_call_operand.vmem [shape: f32[1,64], index: 11, kind: input, shape index: {}]   ;;  %s9334_s12 = inlined_call_operand.hbm [shape: f32[1,8,64], index: 12, kind: output, shape index: {}]  }
   0x1   :  { %18 = vsyncpa [#allocation7], 0 }
   0x2   :  { %19 = vsyncpa [#allocation10], 0 }
   0x3   :  { %20 = vsyncpa [#allocation5], 0  ;;  %s44_s23 = sshll.u32 %s9326_s4, 4  ;;  %s6672_s24 = smov [#allocation6]   ;;  %s45_s23 = int_to_ptr.hbm [resolvable:$true] %s44_s23 }
   0x4   :  { %s46_s25 = sshll.u32 %s6672_s24, 4  ;;  %s72_s28 = sshll.u32 %s9329_s7, 4  ;;  %s47_s25 = int_to_ptr.vmem [resolvable:$true] %s46_s25  ;;  %s73_s28 = int_to_ptr.hbm [resolvable:$true] %s72_s28 }
   0x5   :  { %s6673_s29 = smov 256   ;;  %s6674_s30 = smov 16  }
   0x6   :  { %52 = dma.hbm_to_vmem [thread:$0]  %s45_s23, 4096, %s47_s25, [#allocation7], %s6673_s29, %s6673_s29, %s6674_s30  }
   0x7   :  { %s6675_s13 = smov [#allocation9]   ;;  %s29_s17 = sshll.u32 %s9324_s2, 4  ;;  %s30_s17 = int_to_ptr.hbm [resolvable:$true] %s29_s17 }
   0x8   :  { %s74_s14 = sshll.u32 %s6675_s13, 4  ;;  %s57_s19 = sshll.u32 %s9327_s5, 4  ;;  %s75_s14 = int_to_ptr.vmem [resolvable:$true] %s74_s14  ;;  %s58_s19 = int_to_ptr.hbm [resolvable:$true] %s57_s19 }
   0x9   :  { %80 = dma.hbm_to_vmem [thread:$0]  %s73_s28, 4096, %s75_s14, [#allocation10], %s6673_s29, %s6673_s29, %s6674_s30  }
   0xa   :  { %s6676_s20 = smov [#allocation3]   ;;  %s6677_s7 = smov [#allocation8]  }
   0xb   :  { %s31_s21 = sshll.u32 %s6676_s20, 4  ;;  %s59_s22 = sshll.u32 %s6677_s7, 4  ;;  %s32_s21 = int_to_ptr.vmem [resolvable:$true] %s31_s21  ;;  %s60_s22 = int_to_ptr.vmem [resolvable:$true] %s59_s22 }
   0xc   :  { %37 = dma.hbm_to_vmem [thread:$0]  %s30_s17, 4096, %s32_s21, [#allocation4], %s6673_s29, %s6673_s29, %s6674_s30  }
   0xd   :  { %s85_s25 = sshll.u32 %s9330_s8, 4  ;;  %s6678_s2 = smov [#allocation11]   ;;  %s86_s25 = int_to_ptr.hbm [resolvable:$true] %s85_s25 }
   0xe   :  { %65 = dma.hbm_to_vmem [thread:$0]  %s58_s19, 4096, %s60_s22, [#allocation7], %s6673_s29, %s6673_s29, %s6674_s30  }
   0xf   :  { %s87_s26 = sshll.u32 %s6678_s2, 4  ;;  %s88_s26 = int_to_ptr.vmem [resolvable:$true] %s87_s26 }
  0x10   :  { %93 = dma.hbm_to_vmem [thread:$0]  %s86_s25, 4096, %s88_s26, [#allocation10], %s6673_s29, %s6673_s29, %s6674_s30  }
  0x11   :  { %6664 = dma.done.wait [#allocation4], 4096  }
  0x12   :  { %6665 = vsyncadd [#allocation4], 4294963200 }
  0x13   :  { %6666 = dma.done.wait [#allocation7], 8192  }
  0x14   :  { %6667 = vsyncadd [#allocation7], 4294959104 }
  0x15   :  { %6668 = dma.done.wait [#allocation10], 8192  }
  0x16   :  { %6669 = vsyncadd [#allocation10], 4294959104  ;;  %v145_v0 = vld [vmem:[%s9323_s1 + $0x80] sm:$0xff]  ;;  %v146_v1 = vld [vmem:[%s9323_s1 + $0x88] sm:$0xff]  ;;  %vm159_vm0 = vcmask 326656   ;;  %s6680_s7 = smov [#allocation12]  }
  0x17   :  { %v148_v2 = vld [vmem:[%s9323_s1 + $0x98] sm:$0xff]  ;;  %195 = vmatpush.msra.mxu0 %v145_v0  ;;  %6114 = vmatpush.msra.mxu1 %v145_v0  ;;  %v141_v3 = vld [vmem:[%s9323_s1 + $0x60] sm:$0xff]  ;;  %v142_v4 = vld [vmem:[%s9323_s1 + $0x68] sm:$0xff]  ;;  %s5189_s22 = sshll.u32 %s6680_s7, 4  ;;  %s5191_s24 = sshll.u32 %s9334_s12, 4  ;;  %s5190_s22 = int_to_ptr.vmem [resolvable:$true] %s5189_s22  ;;  %s5192_s24 = int_to_ptr.hbm [resolvable:$true] %s5191_s24 }
  0x18   :  { %v144_v5 = vld [vmem:[%s9323_s1 + $0x78] sm:$0xff]  ;;  %6119 = vmatpush.msra.mxu2 %v146_v1  ;;  %318 = vmatpush.msra.mxu3 %v148_v2  ;;  %v137_v6 = vld [vmem:[%s9323_s1 + $0x40] sm:$0xff]  ;;  %v138_v7 = vld [vmem:[%s9323_s1 + $0x48] sm:$0xff] }
  0x19   :  { %196 = vmatpush.msra.mxu0 %v141_v3  ;;  %6115 = vmatpush.msra.mxu1 %v141_v3  ;;  %v140_v8 = vld [vmem:[%s9323_s1 + $0x58] sm:$0xff]  ;;  %v133_v9 = vld [vmem:[%s9323_s1 + $0x20] sm:$0xff]  ;;  %v6794_v10 = vld [vmem:[%s9323_s1 + $0x28] sm:$0xff] }
  0x1a   :  { %6120 = vmatpush.msra.mxu2 %v142_v4  ;;  %319 = vmatpush.msra.mxu3 %v144_v5  ;;  %v136_v11 = vld [vmem:[%s9323_s1 + $0x38] sm:$0xff]  ;;  %v129_v12 = vld [vmem:[%s9323_s1] sm:$0xff]  ;;  %v6805_v13 = vld [vmem:[%s9323_s1 + $0x8] sm:$0xff] }
  0x1b   :  { %197 = vmatpush.msra.mxu0 %v137_v6  ;;  %6116 = vmatpush.msra.mxu1 %v137_v6  ;;  %v132_v14 = vld [vmem:[%s9323_s1 + $0x18] sm:$0xff]  ;;  %v6813_v15 = vld [vmem:[%s9322_s0] sm:$0xff]  ;;  %v6819_v16 = vld [vmem:[%s9322_s0 + $0x30] sm:$0xff] }
  0x1c   :  { %6121 = vmatpush.msra.mxu2 %v138_v7  ;;  %320 = vmatpush.msra.mxu3 %v140_v8  ;;  %v5356_v17 = vld [vmem:[#allocation3 + $0xe0] sm:$0xf]  ;;  %v5984_v18 = vld [vmem:[#allocation3 + $0xec] sm:$0xf0]  ;;  %v6828_v20 = vld [vmem:[%s9322_s0 + $0x38] sm:$0xff] }
  0x1d   :  { %198 = vmatpush.msra.mxu0 %v133_v9  ;;  %6117 = vmatpush.msra.mxu1 %v133_v9  ;;  %v147_v19 = vld [vmem:[%s9323_s1 + $0x90] sm:$0xff]  ;;  %v6830_v21 = vor.u32 %v5984_v18, %v5356_v17  ;;  %v5340_v23 = vld [vmem:[#allocation3 + $0xc0] sm:$0xf]  ;;  %v6852_v27 = vld [vmem:[%s9322_s0 + $0x8] sm:$0xff] }
  0x1e   :  { %6122 = vmatpush.msra.mxu2 %v6794_v10  ;;  %321 = vmatpush.msra.mxu3 %v136_v11  ;;  %v143_v22 = vld [vmem:[%s9323_s1 + $0x70] sm:$0xff]  ;;  %v5324_v29 = vld [vmem:[#allocation3 + $0xa0] sm:$0xf]  ;;  %v5983_v30 = vld [vmem:[#allocation3 + $0xec] sm:$0xf] }
  0x1f   :  { %199 = vmatpush.msra.mxu0 %v129_v12  ;;  %6118 = vmatpush.msra.mxu1 %v129_v12  ;;  %9721 = vst [vmem:[#allocation17_spill] sm:$0xff] %v6830_v21  ;;  %v5980_v24 = vld [vmem:[#allocation3 + $0xcc] sm:$0xf0]  ;;  %v5366_v31 = vld [vmem:[#allocation3 + $0xf8] sm:$0xf0] }
  0x20   :  { %6123 = vmatpush.msra.mxu2 %v6805_v13  ;;  %322 = vmatpush.msra.mxu3 %v132_v14  ;;  %v139_v25 = vld [vmem:[%s9323_s1 + $0x50] sm:$0xff]  ;;  %v6855_v28 = vor.u32 %v5980_v24, %v5340_v23  ;;  %v5364_v33 = vld [vmem:[#allocation3 + $0xe8] sm:$0xf]  ;;  %v5985_v34 = vld [vmem:[#allocation3 + $0xf4] sm:$0xf0]  ;;  %v6857_v35 = vor.u32 %v5983_v30, %v5366_v31 }
  0x21   :  { %5210 = vmatmul.msk.f32.vlgmr.msra.gmra.mxu0 %vm159_vm0, %v6813_v15  ;;  %5216 = vmatmul.msk.f32.vlgmr.msra.gmra.mxu1 %vm159_vm0, %v6819_v16  ;;  %v135_v26 = vld [vmem:[%s9323_s1 + $0x30] sm:$0xff]  ;;  %v5979_v37 = vld [vmem:[#allocation3 + $0xcc] sm:$0xf]  ;;  %v5350_v38 = vld [vmem:[#allocation3 + $0xd8] sm:$0xf0]  ;;  %v6866_v42 = vor.u32 %v5985_v34, %v5364_v33 }
  0x22   :  { %277 = vmatpush.msrb.mxu2 %v147_v19  ;;  %5234 = vmatmul.msk.f32.vlgmr.msra.gmra.mxu3 %vm159_vm0, %v6813_v15  ;;  %9722 = vst [vmem:[#allocation18_spill] sm:$0xff] %v6855_v28  ;;  %v5976_v32 = vld [vmem:[#allocation3 + $0xac] sm:$0xf0]  ;;  %v5982_v39 = vld [vmem:[#allocation3 + $0xe4] sm:$0xf]  ;;  %v6872_v47 = vor.u32 %v5979_v37, %v5350_v38  ;;  %v6928_v19 = vld [vmem:[%s9322_s0 + $0x18] sm:$0xff] }
  0x23   :  { %5225 = vmatmul.msk.f32.vlgmr.msra.gmra.mxu2 %vm159_vm0, %v6828_v20  ;;  %236 = vmatpush.msrb.mxu1 %v146_v1  ;;  %9723 = vst [vmem:[#allocation19_spill] sm:$0xff] %v6857_v35  ;;  %v131_v36 = vld [vmem:[%s9323_s1 + $0x10] sm:$0xff]  ;;  %v6864_v41 = vor.u32 %v5976_v32, %v5324_v29  ;;  %v5308_v43 = vld [vmem:[#allocation3 + $0x80] sm:$0xf]  ;;  %v5348_v45 = vld [vmem:[#allocation3 + $0xc8] sm:$0xf] }
  0x24   :  { %278 = vmatpush.msrb.mxu2 %v143_v22  ;;  %579 = vmatpush.bf16.msrb.mxu0 %v6830_v21  ;;  %v5358_v40 = vld [vmem:[#allocation3 + $0xf0] sm:$0xf0]  ;;  %9725 = vst [vmem:[#allocation21_spill] sm:$0xff] %v6866_v42  ;;  %v5972_v44 = vld [vmem:[#allocation3 + $0x8c] sm:$0xf0] }
  0x25   :  { %237 = vmatpush.msrb.mxu1 %v142_v4  ;;  %618 = vmatpush.bf16.msrb.mxu3 %v6857_v35  ;;  %9724 = vst [vmem:[#allocation20_spill] sm:$0xff] %v6864_v41  ;;  %v5981_v46 = vld [vmem:[#allocation3 + $0xd4] sm:$0xf0]  ;;  %v6876_v48 = vor.u32 %v5982_v39, %v5358_v40  ;;  %v5978_v49 = vld [vmem:[#allocation3 + $0xc4] sm:$0xf]  ;;  %v6883_v51 = vor.u32 %v5972_v44, %v5308_v43  ;;  %v6892_v59 = vld [vmem:[%s9322_s0 + $0x10] sm:$0xff] }
  0x26   :  { %279 = vmatpush.msrb.mxu2 %v139_v25  ;;  %9726 = vst [vmem:[#allocation22_spill] sm:$0xff] %v6872_v47  ;;  %v5342_v50 = vld [vmem:[#allocation3 + $0xd0] sm:$0xf0]  ;;  %v5292_v52 = vld [vmem:[#allocation3 + $0x60] sm:$0xf]  ;;  %v6885_v53 = vor.u32 %v5981_v46, %v5348_v45 }
  0x27   :  { %238 = vmatpush.msrb.mxu1 %v138_v7  ;;  %9727 = vst [vmem:[#allocation23_spill] sm:$0xff] %v6876_v48  ;;  %v5975_v54 = vld [vmem:[#allocation3 + $0xac] sm:$0xf]  ;;  %v5334_v55 = vld [vmem:[#allocation3 + $0xb8] sm:$0xf0]  ;;  %v6895_v60 = vor.u32 %v5978_v49, %v5342_v50  ;;  %v125_v50 = vld [vmem:[%s9322_s0 + $0x20] sm:$0xff] }
  0x28   :  { %280 = vmatpush.msrb.mxu2 %v135_v26  ;;  %580 = vmatpush.bf16.msrb.mxu0 %v6855_v28  ;;  %9728 = vst [vmem:[#allocation24_spill] sm:$0xff] %v6883_v51  ;;  %v5968_v56 = vld [vmem:[#allocation3 + $0x6c] sm:$0xf0]  ;;  %v5332_v57 = vld [vmem:[#allocation3 + $0xa8] sm:$0xf]  ;;  %v6897_v61 = vor.u32 %v5975_v54, %v5334_v55 }
  0x29   :  { %5211 = vmatmul.msk.f32.gmra.mxu0 %vm159_vm0, %v6852_v27  ;;  %5217 = vmatmul.msk.f32.gmra.mxu1 %vm159_vm0, %v6828_v20  ;;  %9729 = vst [vmem:[#allocation25_spill] sm:$0xff] %v6885_v53  ;;  %v5977_v58 = vld [vmem:[#allocation3 + $0xb4] sm:$0xf0]  ;;  %v5974_v62 = vld [vmem:[#allocation3 + $0xa4] sm:$0xf]  ;;  %v6900_v0 = vor.u32 %v5968_v56, %v5292_v52 }
  0x2a   :  { %281 = vmatpush.msrb.mxu2 %v131_v36  ;;  %5235 = vmatmul.msk.f32.gmra.mxu3 %vm159_vm0, %v6852_v27  ;;  %9730 = vst [vmem:[#allocation26_spill] sm:$0xff] %v6895_v60  ;;  %v5326_v63 = vld [vmem:[#allocation3 + $0xb0] sm:$0xf0]  ;;  %v6903_v1 = vor.u32 %v5977_v58, %v5332_v57  ;;  %v5971_v2 = vld [vmem:[#allocation3 + $0x8c] sm:$0xf] }
  0x2b   :  { %5226 = vmatmul.msk.f32.vlgmr.msrb.gmra.mxu2 %vm159_vm0, %v6813_v15  ;;  %239 = vmatpush.msrb.mxu1 %v6794_v10  ;;  %9731 = vst [vmem:[#allocation27_spill] sm:$0xff] %v6897_v61  ;;  %v5318_v3 = vld [vmem:[#allocation3 + $0x98] sm:$0xf0]  ;;  %v5276_v4 = vld [vmem:[#allocation3 + $0x40] sm:$0xf]  ;;  %v6912_v6 = vor.u32 %v5974_v62, %v5326_v63 }
  0x2c   :  { %581 = vmatpush.bf16.msrb.mxu0 %v6864_v41  ;;  %605 = vmatpush.bf16.msra.mxu2 %v6866_v42  ;;  %9732 = vst [vmem:[#allocation28_spill] sm:$0xff] %v6900_v0  ;;  %v5964_v5 = vld [vmem:[#allocation3 + $0x4c] sm:$0xf0]  ;;  %v6917_v7 = vor.u32 %v5971_v2, %v5318_v3  ;;  %v5970_v8 = vld [vmem:[#allocation3 + $0x84] sm:$0xf] }
  0x2d   :  { %240 = vmatpush.msrb.mxu1 %v6805_v13  ;;  %619 = vmatpush.bf16.msrb.mxu3 %v6872_v47  ;;  %9733 = vst [vmem:[#allocation29_spill] sm:$0xff] %v6903_v1  ;;  %v5310_v9 = vld [vmem:[#allocation3 + $0x90] sm:$0xf0]  ;;  %v5316_v10 = vld [vmem:[#allocation3 + $0x88] sm:$0xf]  ;;  %v6920_v11 = vor.u32 %v5964_v5, %v5276_v4 }
  0x2e   :  { %9734 = vst [vmem:[#allocation30_spill] sm:$0xff] %v6912_v6  ;;  %v5973_v12 = vld [vmem:[#allocation3 + $0x94] sm:$0xf0]  ;;  %v5967_v13 = vld [vmem:[#allocation3 + $0x6c] sm:$0xf]  ;;  %v6931_v22 = vor.u32 %v5970_v8, %v5310_v9 }
  0x2f   :  { %592 = vmatpush.bf16.msra.mxu1 %v6876_v48  ;;  %9735 = vst [vmem:[#allocation31_spill] sm:$0xff] %v6917_v7  ;;  %v5302_v14 = vld [vmem:[#allocation3 + $0x78] sm:$0xf0]  ;;  %v5960_v17 = vld [vmem:[#allocation3 + $0x2c] sm:$0xf0]  ;;  %v6923_v18 = vor.u32 %v5973_v12, %v5316_v10  ;;  %v126_v12 = vld [vmem:[%s9322_s0 + $0x28] sm:$0xff] }
  0x30   :  { %582 = vmatpush.bf16.msrb.mxu0 %v6883_v51  ;;  %606 = vmatpush.bf16.msra.mxu2 %v6885_v53  ;;  %9736 = vst [vmem:[#allocation32_spill] sm:$0xff] %v6920_v11  ;;  %v5244_v23 = vld [vmem:[#allocation3] sm:$0xf]  ;;  %v6934_v24 = vor.u32 %v5967_v13, %v5302_v14  ;;  %v5963_v25 = vld [vmem:[#allocation3 + $0x4c] sm:$0xf]  ;;  %v9335_v14 = vmov 0  }
  0x31   :  { %5212 = vmatmul.msk.f32.gmra.mxu0 %vm159_vm0, %v6892_v59  ;;  %5218 = vmatmul.msk.f32.vlgmr.msrb.gmra.mxu1 %vm159_vm0, %v6813_v15  ;;  %v5260_v15 = vld [vmem:[#allocation3 + $0x20] sm:$0xf]  ;;  %9737 = vst [vmem:[#allocation33_spill] sm:$0xff] %v6923_v18  ;;  %v5286_v29 = vld [vmem:[#allocation3 + $0x58] sm:$0xf0] }
  0x32   :  { %5236 = vmatmul.msk.f32.gmra.mxu3 %vm159_vm0, %v6892_v59  ;;  %9738 = vst [vmem:[#allocation34_spill] sm:$0xff] %v6931_v22  ;;  %v6937_v26 = vor.u32 %v5960_v17, %v5260_v15  ;;  %v5966_v30 = vld [vmem:[#allocation3 + $0x64] sm:$0xf]  ;;  %v5294_v31 = vld [vmem:[#allocation3 + $0x70] sm:$0xf0]  ;;  %v6954_v38 = vor.u32 %v5963_v25, %v5286_v29 }
  0x33   :  { %593 = vmatpush.bf16.msra.mxu1 %v6895_v60  ;;  %5227 = vmatmul.msk.f32.gmra.mxu2 %vm159_vm0, %v6852_v27  ;;  %9739 = vst [vmem:[#allocation35_spill] sm:$0xff] %v6934_v24  ;;  %v5956_v32 = vld [vmem:[#allocation3 + $0xc] sm:$0xf0]  ;;  %v5300_v33 = vld [vmem:[#allocation3 + $0x68] sm:$0xf]  ;;  %v6947_v36 = vor.u32 %v5966_v30, %v5294_v31 }
  0x34   :  { %620 = vmatpush.bf16.msrb.mxu3 %v6897_v61  ;;  %583 = vmatpush.bf16.msrb.mxu0 %v6900_v0  ;;  %9740 = vst [vmem:[#allocation36_spill] sm:$0xff] %v6937_v26  ;;  %v5969_v34 = vld [vmem:[#allocation3 + $0x74] sm:$0xf0]  ;;  %v5962_v39 = vld [vmem:[#allocation3 + $0x44] sm:$0xf]  ;;  %v6957_v43 = vor.u32 %v5956_v32, %v5244_v23 }
  0x35   :  { %607 = vmatpush.bf16.msra.mxu2 %v6903_v1  ;;  %9741 = vst [vmem:[#allocation37_spill] sm:$0xff] %v6947_v36  ;;  %v6949_v37 = vor.u32 %v5969_v34, %v5300_v33  ;;  %v5278_v40 = vld [vmem:[#allocation3 + $0x50] sm:$0xf0]  ;;  %v5270_v44 = vld [vmem:[#allocation3 + $0x38] sm:$0xf0] }
  0x36   :  { %9743 = vst [vmem:[#allocation39_spill] sm:$0xff] %v6954_v38  ;;  %v5284_v45 = vld [vmem:[#allocation3 + $0x48] sm:$0xf]  ;;  %v5965_v46 = vld [vmem:[#allocation3 + $0x54] sm:$0xf0]  ;;  %v6966_v52 = vor.u32 %v5962_v39, %v5278_v40 }
  0x37   :  { %594 = vmatpush.bf16.msra.mxu1 %v6912_v6  ;;  %9742 = vst [vmem:[#allocation38_spill] sm:$0xff] %v6949_v37  ;;  %v6960_v49 = vor.u32 %v5965_v46, %v5284_v45  ;;  %v5955_v55 = vld [vmem:[#allocation3 + $0xc] sm:$0xf]  ;;  %v5254_v56 = vld [vmem:[#allocation3 + $0x18] sm:$0xf0] }
  0x38   :  { %621 = vmatpush.bf16.msrb.mxu3 %v6917_v7  ;;  %584 = vmatpush.bf16.msrb.mxu0 %v6920_v11  ;;  %9744 = vst [vmem:[#allocation40_spill] sm:$0xff] %v6957_v43  ;;  %v5958_v57 = vld [vmem:[#allocation3 + $0x24] sm:$0xf]  ;;  %v5262_v58 = vld [vmem:[#allocation3 + $0x30] sm:$0xf0]  ;;  %v6985_v4 = vor.u32 %v5955_v55, %v5254_v56 }
  0x39   :  { %608 = vmatpush.bf16.msra.mxu2 %v6923_v18  ;;  %5213 = vmatmul.msk.f32.gmra.mxu0 %vm159_vm0, %v6928_v19  ;;  %9745 = vst [vmem:[#allocation41_spill] sm:$0xff] %v6960_v49  ;;  %v5268_v62 = vld [vmem:[#allocation3 + $0x28] sm:$0xf]  ;;  %v5961_v63 = vld [vmem:[#allocation3 + $0x34] sm:$0xf0]  ;;  %v6978_v2 = vor.u32 %v5958_v57, %v5262_v58 }
  0x3a   :  { %5219 = vmatmul.msk.f32.gmra.mxu1 %vm159_vm0, %v6852_v27  ;;  %5237 = vmatmul.msk.f32.gmra.mxu3 %vm159_vm0, %v6928_v19  ;;  %v5959_v27 = vld [vmem:[#allocation3 + $0x2c] sm:$0xf]  ;;  %9746 = vst [vmem:[#allocation42_spill] sm:$0xff] %v6966_v52  ;;  %v6980_v3 = vor.u32 %v5961_v63, %v5268_v62  ;;  %v5954_v5 = vld [vmem:[#allocation3 + $0x4] sm:$0xf] }
  0x3b   :  { %595 = vmatpush.bf16.msra.mxu1 %v6931_v22  ;;  %5228 = vmatmul.msk.f32.gmra.mxu2 %vm159_vm0, %v6892_v59  ;;  %v6969_v54 = vor.u32 %v5959_v27, %v5270_v44  ;;  %9748 = vst [vmem:[#allocation44_spill] sm:$0xff] %v6978_v2  ;;  %v5246_v8 = vld [vmem:[#allocation3 + $0x10] sm:$0xf0]  ;;  %v5957_v9 = vld [vmem:[#allocation3 + $0x14] sm:$0xf0] }
  0x3c   :  { %622 = vmatpush.bf16.msrb.mxu3 %v6934_v24  ;;  %585 = vmatpush.bf16.msrb.mxu0 %v6937_v26  ;;  %9749 = vst [vmem:[#allocation45_spill] sm:$0xff] %v6980_v3  ;;  %v6995_v13 = vor.u32 %v5954_v5, %v5246_v8  ;;  %v149_v15 = vld [vmem:[%s9325_s3] sm:$0xf] }
  0x3d   :  { %609 = vmatpush.bf16.msra.mxu2 %v6949_v37  ;;  %9747 = vst [vmem:[#allocation43_spill] sm:$0xff] %v6969_v54  ;;  %v7078_v39 = vperm.slane %v149_v15, 3  ;;  %v7080_v44 = vperm.slane %v149_v15, 1  ;;  %v7092_v57 = vperm.slane %v149_v15, 2 }
  0x3e   :  { %9750 = vst [vmem:[#allocation46_spill] sm:$0xff] %v6985_v4 }
  0x3f   :  { %596 = vmatpush.bf16.msra.mxu1 %v6947_v36  ;;  %9752 = vst [vmem:[#allocation48_spill] sm:$0xff] %v6995_v13 }
  0x40   :  { %623 = vmatpush.bf16.msrb.mxu3 %v6954_v38  ;;  %586 = vmatpush.bf16.msrb.mxu0 %v6957_v43  ;;  %9760 = vst [vmem:[#allocation56_spill] sm:$0xff] %v7078_v39 }
  0x41   :  { %610 = vmatpush.bf16.msra.mxu2 %v6960_v49  ;;  %5214 = vmatmul.msk.f32.gmra.mxu0 %vm159_vm0, %v125_v50  ;;  %9761 = vst [vmem:[#allocation57_spill] sm:$0xff] %v7080_v44 }
  0x42   :  { %5220 = vmatmul.msk.f32.gmra.mxu1 %vm159_vm0, %v6892_v59  ;;  %5238 = vmatmul.msk.f32.gmra.mxu3 %vm159_vm0, %v125_v50  ;;  %v5252_v59 = vld [vmem:[#allocation3 + $0x8] sm:$0xf]  ;;  %9766 = vst [vmem:[#allocation62_spill] sm:$0xff] %v7092_v57 }
  0x43   :  { %597 = vmatpush.bf16.msra.mxu1 %v6966_v52  ;;  %5229 = vmatmul.msk.f32.gmra.mxu2 %vm159_vm0, %v6928_v19  ;;  %v6989_v10 = vor.u32 %v5957_v9, %v5252_v59 }
  0x44   :  { %624 = vmatpush.bf16.msrb.mxu3 %v6969_v54  ;;  %706 = vmatpush.bf16.msra.mxu0 %v6830_v21 }
  0x45   :  { %611 = vmatpush.bf16.msra.mxu2 %v6980_v3  ;;  %9751 = vst [vmem:[#allocation47_spill] sm:$0xff] %v6989_v10 }
  0x47   :  { %598 = vmatpush.bf16.msra.mxu1 %v6978_v2 }
  0x48   :  { %625 = vmatpush.bf16.msrb.mxu3 %v6985_v4  ;;  %707 = vmatpush.bf16.msra.mxu0 %v6855_v28 }
  0x49   :  { %612 = vmatpush.bf16.msra.mxu2 %v6989_v10  ;;  %5215 = vmatmul.msk.f32.gmra.mxu0 %vm159_vm0, %v126_v12 }
  0x4a   :  { %5221 = vmatmul.msk.f32.gmra.mxu1 %vm159_vm0, %v6928_v19  ;;  %5239 = vmatmul.msk.f32.gmra.mxu3 %vm159_vm0, %v126_v12  ;;  %v7060_v19 = vperm.slane %v149_v15, 0 }
  0x4b   :  { %599 = vmatpush.bf16.msra.mxu1 %v6995_v13  ;;  %5230 = vmatmul.msk.f32.gmra.mxu2 %vm159_vm0, %v125_v50 }
  0x4c   :  { %745 = vmatpush.bf16.msra.mxu3 %v6857_v35  ;;  %708 = vmatpush.bf16.msra.mxu0 %v6864_v41  ;;  %9754 = vst [vmem:[#allocation50_spill] sm:$0xff] %v7060_v19 }
  0x4d   :  { %732 = vmatpush.bf16.msrb.mxu2 %v6866_v42 }
  0x4f   :  { %719 = vmatpush.bf16.msrb.mxu1 %v6876_v48 }
  0x50   :  { %746 = vmatpush.bf16.msra.mxu3 %v6872_v47  ;;  %709 = vmatpush.bf16.msra.mxu0 %v6883_v51 }
  0x51   :  { %733 = vmatpush.bf16.msrb.mxu2 %v6885_v53  ;;  %587 = vmatmul.bf16.vlgmr.msrb.gmra.mxu0 %v9335_v14 }
  0x52   :  { %5222 = vmatmul.msk.f32.gmra.mxu1 %vm159_vm0, %v125_v50  ;;  %5240 = vmatmul.msk.f32.gmra.mxu3 %vm159_vm0, %v6819_v16 }
  0x53   :  { %720 = vmatpush.bf16.msrb.mxu1 %v6895_v60  ;;  %5231 = vmatmul.msk.f32.gmra.mxu2 %vm159_vm0, %v126_v12 }
  0x54   :  { %747 = vmatpush.bf16.msra.mxu3 %v6897_v61  ;;  %710 = vmatpush.bf16.msra.mxu0 %v6900_v0 }
  0x55   :  { %734 = vmatpush.bf16.msrb.mxu2 %v6903_v1 }
  0x57   :  { %721 = vmatpush.bf16.msrb.mxu1 %v6912_v6 }
  0x58   :  { %748 = vmatpush.bf16.msra.mxu3 %v6917_v7  ;;  %711 = vmatpush.bf16.msra.mxu0 %v6920_v11 }
  0x59   :  { %735 = vmatpush.bf16.msrb.mxu2 %v6923_v18 }
  0x5a   :  { %5223 = vmatmul.msk.f32.gmra.mxu1 %vm159_vm0, %v126_v12  ;;  %5241 = vmatmul.msk.f32.gmra.mxu3 %vm159_vm0, %v6828_v20 }
  0x5b   :  { %722 = vmatpush.bf16.msrb.mxu1 %v6931_v22  ;;  %5232 = vmatmul.msk.f32.gmra.mxu2 %vm159_vm0, %v6819_v16 }
  0x5c   :  { %749 = vmatpush.bf16.msra.mxu3 %v6934_v24  ;;  %712 = vmatpush.bf16.msra.mxu0 %v6937_v26 }
  0x5d   :  { %736 = vmatpush.bf16.msrb.mxu2 %v6949_v37 }
  0x5f   :  { %723 = vmatpush.bf16.msrb.mxu1 %v6947_v36 }
  0x60   :  { %750 = vmatpush.bf16.msra.mxu3 %v6954_v38  ;;  %713 = vmatpush.bf16.msra.mxu0 %v6957_v43 }
  0x61   :  { %737 = vmatpush.bf16.msrb.mxu2 %v6960_v49 }
  0x62   :  { %5224 = vmatmul.msk.f32.gmra.mxu1 %vm159_vm0, %v6819_v16  ;;  %626 = vmatmul.bf16.vlgmr.msrb.gmra.mxu3 %v9335_v14 }
  0x63   :  { %724 = vmatpush.bf16.msrb.mxu1 %v6966_v52  ;;  %5233 = vmatmul.msk.f32.gmra.mxu2 %vm159_vm0, %v6828_v20 }
  0x64   :  { %751 = vmatpush.bf16.msra.mxu3 %v6969_v54 }
  0x65   :  { %738 = vmatpush.bf16.msrb.mxu2 %v6980_v3 }
  0x67   :  { %725 = vmatpush.bf16.msrb.mxu1 %v6978_v2 }
  0x68   :  { %752 = vmatpush.bf16.msra.mxu3 %v6985_v4 }
  0x69   :  { %739 = vmatpush.bf16.msrb.mxu2 %v6989_v10 }
  0x6a   :  { %600 = vmatmul.bf16.vlgmr.msra.gmra.mxu1 %v9335_v14 }
  0x6b   :  { %726 = vmatpush.bf16.msrb.mxu1 %v6995_v13  ;;  %613 = vmatmul.bf16.vlgmr.msra.gmra.mxu2 %v9335_v14 }
  0x9e   :  { %v201_v16 = vpop.f32.mrf.mxu0  ;;  %v7053_v20 = vpop.f32.mrf.mxu1 }
  0x9f   :  { %9753 = vst [vmem:[#allocation49_spill] sm:$0xff] %v7053_v20 }
  0xa5   :  { %v7058_v17 = vpop.f32.mrf.mxu3 }
  0xa6   :  { %v7062_v23 = vpop.f32.mrf.mxu2  ;;  %v7064_v25 = vpop.f32.mrf.mxu0 }
  0xa7   :  { %9755 = vst [vmem:[#allocation51_spill] sm:$0xff] %v7062_v23  ;;  %v222_v29 = vpop.f32.mrf.mxu1 }
  0xa8   :  { %9756 = vst [vmem:[#allocation52_spill] sm:$0xff] %v7064_v25  ;;  %v7067_v30 = vadd.f32 %v222_v29, %v7060_v19 }
  0xaa   :  { %9757 = vst [vmem:[#allocation53_spill] sm:$0xff] %v7067_v30 }
  0xad   :  { %v7069_v31 = vpop.f32.mrf.mxu3 }
  0xae   :  { %9758 = vst [vmem:[#allocation54_spill] sm:$0xff] %v7069_v31  ;;  %v7071_v32 = vpop.f32.mrf.mxu2  ;;  %v207_v33 = vpop.f32.mrf.mxu0  ;;  %v5468_v31 = vld [vmem:[#allocation8 + $0xb8] sm:$0xf0] }
  0xaf   :  { %v7074_v34 = vadd.f32 %v207_v33, %v7060_v19  ;;  %v7076_v27 = vpop.f32.mrf.mxu1 }
  0xb1   :  { %9759 = vst [vmem:[#allocation55_spill] sm:$0xff] %v7074_v34 }
  0xb5   :  { %v330_v40 = vpop.f32.mrf.mxu3 }
  0xb6   :  { %v7083_v45 = vadd.f32 %v330_v40, %v7078_v39  ;;  %v7085_v46 = vpop.f32.mrf.mxu2  ;;  %v7087_v50 = vpop.f32.mrf.mxu0 }
  0xb7   :  { %9763 = vst [vmem:[#allocation59_spill] sm:$0xff] %v7085_v46  ;;  %v245_v55 = vpop.f32.mrf.mxu1 }
  0xb8   :  { %9762 = vst [vmem:[#allocation58_spill] sm:$0xff] %v7083_v45  ;;  %v7090_v56 = vadd.f32 %v245_v55, %v7080_v44  ;;  %v202_v55 = vadd.f32 %v201_v16, %v7060_v19  ;;  %v5484_v45 = vld [vmem:[#allocation8 + $0xd8] sm:$0xf0] }
  0xb9   :  { %9764 = vst [vmem:[#allocation60_spill] sm:$0xff] %v7087_v50 }
  0xba   :  { %9765 = vst [vmem:[#allocation61_spill] sm:$0xff] %v7090_v56  ;;  %v6034_v56 = vld [vmem:[#allocation8 + $0x84] sm:$0xf] }
  0xbd   :  { %v7094_v58 = vpop.f32.mrf.mxu3 }
  0xbe   :  { %9767 = vst [vmem:[#allocation63_spill] sm:$0xff] %v7094_v58  ;;  %v289_v62 = vpop.f32.mrf.mxu2  ;;  %v213_v63 = vpop.f32.mrf.mxu0  ;;  %v5490_v58 = vld [vmem:[#allocation8 + $0xe0] sm:$0xf] }
  0xbf   :  { %v7097_v5 = vadd.f32 %v289_v62, %v7092_v57  ;;  %v7100_v8 = vadd.f32 %v213_v63, %v7060_v19  ;;  %v7102_v59 = vpop.f32.mrf.mxu1 }
  0xc0   :  { %9770 = vst [vmem:[#allocation66_spill] sm:$0xff] %v7102_v59  ;;  %v6041_v59 = vld [vmem:[#allocation8 + $0xb4] sm:$0xf0] }
  0xc1   :  { %9768 = vst [vmem:[#allocation64_spill] sm:$0xff] %v7097_v5 }
  0xc2   :  { %9769 = vst [vmem:[#allocation65_spill] sm:$0xff] %v7100_v8 }
  0xc5   :  { %v336_v9 = vpop.f32.mrf.mxu3 }
  0xc6   :  { %v7105_v12 = vadd.f32 %v336_v9, %v7078_v39  ;;  %v7107_v29 = vpop.f32.mrf.mxu2  ;;  %v7109_v15 = vpop.f32.mrf.mxu0 }
  0xc7   :  { %9772 = vst [vmem:[#allocation68_spill] sm:$0xff] %v7107_v29  ;;  %v251_v33 = vpop.f32.mrf.mxu1  ;;  %v6046_v29 = vld [vmem:[#allocation8 + $0xe4] sm:$0xf] }
  0xc8   :  { %9771 = vst [vmem:[#allocation67_spill] sm:$0xff] %v7105_v12  ;;  %v7112_v40 = vadd.f32 %v251_v33, %v7080_v44 }
  0xc9   :  { %9773 = vst [vmem:[#allocation69_spill] sm:$0xff] %v7109_v15 }
  0xca   :  { %9774 = vst [vmem:[#allocation70_spill] sm:$0xff] %v7112_v40 }
  0xcd   :  { %v7115_v62 = vpop.f32.mrf.mxu3 }
  0xce   :  { %9775 = vst [vmem:[#allocation71_spill] sm:$0xff] %v7115_v62  ;;  %v295_v63 = vpop.f32.mrf.mxu2  ;;  %v588_v14 = vpop.f32.mrf.mxu0  ;;  %v6048_v62 = vld [vmem:[#allocation8 + $0xec] sm:$0xf0] }
  0xcf   :  { %v7118_v30 = vadd.f32 %v295_v63, %v7092_v57  ;;  %v7120_v23 = vpop.f32.mrf.mxu1  ;;  %v631_v9 = vadd.f32 %v588_v14, %v202_v55  ;;  %v7130_v63 = vor.u32 %v6048_v62, %v5490_v58  ;;  %v5498_v14 = vld [vmem:[#allocation8 + $0xe8] sm:$0xf]  ;;  %v6049_v55 = vld [vmem:[#allocation8 + $0xf4] sm:$0xf0]  ;;  %v5474_v58 = vld [vmem:[#allocation8 + $0xc0] sm:$0xf] }
  0xd0   :  { %9777 = vst [vmem:[#allocation73_spill] sm:$0xff] %v7120_v23  ;;  %v6044_v62 = vld [vmem:[#allocation8 + $0xcc] sm:$0xf0] }
  0xd1   :  { %9776 = vst [vmem:[#allocation72_spill] sm:$0xff] %v7118_v30  ;;  %v5370_v20 = vmul.f32 -1.442695, %v631_v9  ;;  %v5492_v30 = vld [vmem:[#allocation8 + $0xf0] sm:$0xf0]  ;;  %1049 = vmatpush.bf16.msrb.mxu0 %v7130_v63 }
  0xd2   :  { %9781 = vst [vmem:[#allocation77_spill] sm:$0xff] %v7130_v63  ;;  %v7132_v9 = vor.u32 %v6046_v29, %v5492_v30  ;;  %v5476_v30 = vld [vmem:[#allocation8 + $0xd0] sm:$0xf0] }
  0xd3   :  { %6134 = vpow2.f32 %v5370_v20 }
  0xd4   :  { %9782 = vst [vmem:[#allocation78_spill] sm:$0xff] %v7132_v9  ;;  %1062 = vmatpush.bf16.msra.mxu1 %v7132_v9 }
  0xd5   :  { %v342_v12 = vpop.f32.mrf.mxu3 }
  0xd6   :  { %v7123_v15 = vadd.f32 %v342_v12, %v7078_v39  ;;  %v7125_v33 = vpop.f32.mrf.mxu2  ;;  %v590_v8 = vpop.f32.mrf.mxu0  ;;  %v7134_v12 = vor.u32 %v6049_v55, %v5498_v14  ;;  %v7147_v14 = vor.u32 %v6044_v62, %v5474_v58  ;;  %v5458_v62 = vld [vmem:[#allocation8 + $0xa0] sm:$0xf] }
  0xd7   :  { %9779 = vst [vmem:[#allocation75_spill] sm:$0xff] %v7125_v33  ;;  %v257_v16 = vpop.f32.mrf.mxu1  ;;  %v5500_v33 = vld [vmem:[#allocation8 + $0xf8] sm:$0xf0] }
  0xd8   :  { %9778 = vst [vmem:[#allocation74_spill] sm:$0xff] %v7123_v15  ;;  %v7128_v40 = vadd.f32 %v257_v16, %v7080_v44  ;;  %v6047_v15 = vld [vmem:[#allocation8 + $0xec] sm:$0xf]  ;;  %1075 = vmatpush.bf16.msra.mxu2 %v7134_v12  ;;  %v6042_v16 = vld [vmem:[#allocation8 + $0xc4] sm:$0xf]  ;;  %1050 = vmatpush.bf16.msrb.mxu0 %v7147_v14 }
  0xd9   :  { %v6135_v20 = vpop.eup %6134  ;;  %9783 = vst [vmem:[#allocation79_spill] sm:$0xff] %v7134_v12  ;;  %v7139_v23 = vor.u32 %v6047_v15, %v5500_v33  ;;  %v7149_v55 = vor.u32 %v6042_v16, %v5476_v30  ;;  %v5482_v15 = vld [vmem:[#allocation8 + $0xc8] sm:$0xf]  ;;  %v6045_v33 = vld [vmem:[#allocation8 + $0xd4] sm:$0xf0] }
  0xda   :  { %9780 = vst [vmem:[#allocation76_spill] sm:$0xff] %v7128_v40  ;;  %v7136_v8 = vadd.f32 1.0, %v6135_v20  ;;  %v6043_v20 = vld [vmem:[#allocation8 + $0xcc] sm:$0xf]  ;;  %v7151_v50 = vor.u32 %v6045_v33, %v5482_v15  ;;  %v6040_v16 = vld [vmem:[#allocation8 + $0xac] sm:$0xf0] }
  0xdb   :  { %9784 = vst [vmem:[#allocation80_spill] sm:$0xff] %v7139_v23  ;;  %1088 = vmatpush.bf16.msrb.mxu3 %v7139_v23  ;;  %1063 = vmatpush.bf16.msra.mxu1 %v7149_v55  ;;  %v7160_v58 = vor.u32 %v6043_v20, %v5484_v45  ;;  %v6038_v30 = vld [vmem:[#allocation8 + $0xa4] sm:$0xf]  ;;  %v5460_v15 = vld [vmem:[#allocation8 + $0xb0] sm:$0xf0] }
  0xdc   :  { %6136 = vrcp.f32 %v7136_v8  ;;  %9786 = vst [vmem:[#allocation82_spill] sm:$0xff] %v7147_v14  ;;  %1076 = vmatpush.bf16.msra.mxu2 %v7151_v50  ;;  %v5466_v33 = vld [vmem:[#allocation8 + $0xa8] sm:$0xf]  ;;  %vm652_vm2 = vweird.f32 %v7136_v8 }
  0xdd   :  { %v7145_v29 = vpop.f32.mrf.mxu3  ;;  %9787 = vst [vmem:[#allocation83_spill] sm:$0xff] %v7149_v55 }
  0xde   :  { %9785 = vst [vmem:[#allocation81_spill] sm:$0xff] %v7145_v29  ;;  %v301_v40 = vpop.f32.mrf.mxu2  ;;  %v7163_v29 = vor.u32 %v6040_v16, %v5458_v62  ;;  %v5442_v62 = vld [vmem:[#allocation8 + $0x80] sm:$0xf]  ;;  %v6036_v16 = vld [vmem:[#allocation8 + $0x8c] sm:$0xf0] }
  0xdf   :  { %9788 = vst [vmem:[#allocation84_spill] sm:$0xff] %v7151_v50  ;;  %v7154_v5 = vadd.f32 %v301_v40, %v7092_v57  ;;  %v7156_v34 = vpop.f32.mrf.mxu1  ;;  %1089 = vmatpush.bf16.msrb.mxu3 %v7160_v58  ;;  %v7166_v40 = vor.u32 %v6038_v30, %v5460_v15  ;;  %v325_v30 = vadd.f32 %v7058_v17, %v7078_v39  ;;  %v5444_v15 = vld [vmem:[#allocation8 + $0x90] sm:$0xf0]  ;;  %v656_v17 = vand.u32 2147483647, %v7136_v8 }
  0xe0   :  { %9790 = vst [vmem:[#allocation86_spill] sm:$0xff] %v7156_v34  ;;  %v6039_v34 = vld [vmem:[#allocation8 + $0xac] sm:$0xf]  ;;  %1051 = vmatpush.bf16.msrb.mxu0 %v7163_v29  ;;  %v7183_v19 = vor.u32 %v6034_v56, %v5444_v15  ;;  %v658_v39 = vand.u32 2147483648, %v7136_v8  ;;  %v5426_v56 = vld [vmem:[#allocation8 + $0x60] sm:$0xf] }
  0xe1   :  { %9789 = vst [vmem:[#allocation85_spill] sm:$0xff] %v7154_v5  ;;  %v7168_v5 = vor.u32 %v6041_v59, %v5466_v33  ;;  %v7170_v20 = vor.u32 %v6039_v34, %v5468_v31  ;;  %1064 = vmatpush.bf16.msra.mxu1 %v7166_v40  ;;  %v7178_v59 = vor.u32 %v6036_v16, %v5442_v62  ;;  %v5450_v33 = vld [vmem:[#allocation8 + $0x88] sm:$0xf]  ;;  %vm657_vm4 = vcmp.eq.f32.partialorder %v656_v17, 8.507059e+37 }
  0xe2   :  { %9791 = vst [vmem:[#allocation87_spill] sm:$0xff] %v7160_v58  ;;  %v6137_v45 = vpop.eup %6136  ;;  %v243_v31 = vadd.f32 %v7076_v27, %v7080_v44  ;;  %v5418_v17 = vld [vmem:[#allocation8 + $0x48] sm:$0xf] }
  0xe3   :  { %9792 = vst [vmem:[#allocation88_spill] sm:$0xff] %v7163_v29  ;;  %v648_v46 = vmul.f32 %v6137_v45, %v7136_v8  ;;  %1077 = vmatpush.bf16.msra.mxu2 %v7168_v5  ;;  %1090 = vmatpush.bf16.msrb.mxu3 %v7170_v20  ;;  %v6035_v29 = vld [vmem:[#allocation8 + $0x8c] sm:$0xf]  ;;  %vm653_vm1 = vweird.f32 %v6137_v45  ;;  %v6028_v8 = vld [vmem:[#allocation8 + $0x4c] sm:$0xf0] }
  0xe4   :  { %9793 = vst [vmem:[#allocation89_spill] sm:$0xff] %v7166_v40  ;;  %v6037_v40 = vld [vmem:[#allocation8 + $0x94] sm:$0xf0]  ;;  %1052 = vmatpush.bf16.msrb.mxu0 %v7178_v59  ;;  %vm654_vm3 = vmor %vm652_vm2, %vm653_vm1 }
  0xe5   :  { %9794 = vst [vmem:[#allocation90_spill] sm:$0xff] %v7168_v5  ;;  %v649_v34 = vsub.f32 1.0, %v648_v46  ;;  %v627_v25 = vpop.f32.mrf.mxu3  ;;  %v7189_v16 = vor.u32 %v6037_v40, %v5450_v33  ;;  %v5452_v5 = vld [vmem:[#allocation8 + $0x98] sm:$0xf0]  ;;  %1065 = vmatpush.bf16.msra.mxu1 %v7183_v19  ;;  %v5428_v40 = vld [vmem:[#allocation8 + $0x70] sm:$0xf0] }
  0xe6   :  { %9795 = vst [vmem:[#allocation91_spill] sm:$0xff] %v7170_v20  ;;  %v634_v58 = vadd.f32 %v627_v25, %v325_v30  ;;  %v7187_v62 = vpop.f32.mrf.mxu2  ;;  %v7193_v46 = vor.u32 %v6035_v29, %v5452_v5  ;;  %v6032_v25 = vld [vmem:[#allocation8 + $0x6c] sm:$0xf0]  ;;  %v6030_v30 = vld [vmem:[#allocation8 + $0x64] sm:$0xf] }
  0xe7   :  { %9796 = vst [vmem:[#allocation92_spill] sm:$0xff] %v7178_v59  ;;  %v650_v50 = vmul.f32 %v6137_v45, %v649_v34  ;;  %v601_v27 = vpop.f32.mrf.mxu1  ;;  %1078 = vmatpush.bf16.msra.mxu2 %v7189_v16  ;;  %v5434_v33 = vld [vmem:[#allocation8 + $0x68] sm:$0xf]  ;;  %v6033_v34 = vld [vmem:[#allocation8 + $0x74] sm:$0xf0] }
  0xe8   :  { %9797 = vst [vmem:[#allocation93_spill] sm:$0xff] %v7183_v19  ;;  %6138 = vtanh.f32 %v634_v58  ;;  %v632_v15 = vadd.f32 %v601_v27, %v243_v31  ;;  %1091 = vmatpush.bf16.msrb.mxu3 %v7193_v46  ;;  %v7200_v19 = vor.u32 %v6030_v30, %v5428_v40  ;;  %v7202_v5 = vor.u32 %v6033_v34, %v5434_v33  ;;  %v6031_v29 = vld [vmem:[#allocation8 + $0x6c] sm:$0xf]  ;;  %v5436_v59 = vld [vmem:[#allocation8 + $0x78] sm:$0xf0] }
  0xe9   :  { %9798 = vst [vmem:[#allocation94_spill] sm:$0xff] %v7187_v62  ;;  %v7196_v62 = vor.u32 %v6032_v25, %v5426_v56  ;;  %v651_v44 = vadd.f32 %v6137_v45, %v650_v50  ;;  %v659_v58 = vor.u32 1.1754944e-38, %v658_v39  ;;  %v7205_v27 = vor.u32 %v6031_v29, %v5436_v59  ;;  %v5410_v50 = vld [vmem:[#allocation8 + $0x40] sm:$0xf]  ;;  %v6026_v25 = vld [vmem:[#allocation8 + $0x44] sm:$0xf] }
  0xea   :  { %9799 = vst [vmem:[#allocation95_spill] sm:$0xff] %v7189_v16  ;;  %v5371_v31 = vmul.f32 -1.442695, %v632_v15  ;;  %1066 = vmatpush.bf16.msra.mxu1 %v7200_v19  ;;  %v7210_v40 = vor.u32 %v6028_v8, %v5410_v50  ;;  %v5412_v33 = vld [vmem:[#allocation8 + $0x50] sm:$0xf0]  ;;  %v284_v59 = vadd.f32 %v7071_v32, %v7092_v57 }
  0xeb   :  { %9800 = vst [vmem:[#allocation96_spill] sm:$0xff] %v7193_v46  ;;  %v655_v56 = vsel %vm654_vm3, %v6137_v45, %v651_v44  ;;  %1053 = vmatpush.bf16.msrb.mxu0 %v7196_v62  ;;  %1079 = vmatpush.bf16.msra.mxu2 %v7202_v5  ;;  %v6029_v39 = vld [vmem:[#allocation8 + $0x54] sm:$0xf0]  ;;  %v7215_v45 = vor.u32 %v6026_v25, %v5412_v33  ;;  %v6027_v34 = vld [vmem:[#allocation8 + $0x4c] sm:$0xf] }
  0xec   :  { %9801 = vst [vmem:[#allocation97_spill] sm:$0xff] %v7196_v62  ;;  %v660_v30 = vsel %vm657_vm4, %v659_v58, %v655_v56  ;;  %6140 = vpow2.f32 %v5371_v31  ;;  %1092 = vmatpush.bf16.msrb.mxu3 %v7205_v27  ;;  %v7217_v15 = vor.u32 %v6029_v39, %v5418_v17  ;;  %v5420_v29 = vld [vmem:[#allocation8 + $0x58] sm:$0xf0]  ;;  %v5394_v32 = vld [vmem:[#allocation8 + $0x20] sm:$0xf] }
  0xed   :  { %9802 = vst [vmem:[#allocation98_spill] sm:$0xff] %v7200_v19  ;;  %v629_v44 = vpop.f32.mrf.mxu3  ;;  %v7219_v56 = vor.u32 %v6027_v34, %v5420_v29  ;;  %v6022_v25 = vld [vmem:[#allocation8 + $0x24] sm:$0xf]  ;;  %v5396_v17 = vld [vmem:[#allocation8 + $0x30] sm:$0xf0] }
  0xee   :  { %9803 = vst [vmem:[#allocation99_spill] sm:$0xff] %v7202_v5  ;;  %v6139_v58 = vpop.eup %6138  ;;  %v614_v31 = vpop.f32.mrf.mxu2  ;;  %1067 = vmatpush.bf16.msra.mxu1 %v7215_v45  ;;  %v6024_v44 = vld [vmem:[#allocation8 + $0x2c] sm:$0xf0]  ;;  %v5402_v39 = vld [vmem:[#allocation8 + $0x28] sm:$0xf] }
  0xef   :  { %9804 = vst [vmem:[#allocation100_spill] sm:$0xff] %v7205_v27  ;;  %v7221_v50 = vmul.f32 %v6139_v58, %v660_v30  ;;  %v633_v8 = vadd.f32 %v614_v31, %v284_v59  ;;  %v603_v5 = vpop.f32.mrf.mxu1  ;;  %1054 = vmatpush.bf16.msrb.mxu0 %v7210_v40  ;;  %1080 = vmatpush.bf16.msra.mxu2 %v7217_v15  ;;  %v6025_v57 = vld [vmem:[#allocation8 + $0x34] sm:$0xf0]  ;;  %v6023_v59 = vld [vmem:[#allocation8 + $0x2c] sm:$0xf] }
  0xf0   :  { %9805 = vst [vmem:[#allocation101_spill] sm:$0xff] %v7210_v40  ;;  %v7226_v33 = vor.u32 %v6024_v44, %v5394_v32  ;;  %1093 = vmatpush.bf16.msrb.mxu3 %v7219_v56  ;;  %v7229_v30 = vor.u32 %v6022_v25, %v5396_v17  ;;  %v7231_v5 = vor.u32 %v6025_v57, %v5402_v39  ;;  %v5404_v29 = vld [vmem:[#allocation8 + $0x38] sm:$0xf0]  ;;  %v5378_v32 = vld [vmem:[#allocation8] sm:$0xf] }
  0xf1   :  { %9806 = vst [vmem:[#allocation102_spill] sm:$0xff] %v7215_v45  ;;  %v5372_v34 = vmul.f32 -1.442695, %v633_v8  ;;  %v7233_v31 = vor.u32 %v6023_v59, %v5404_v29  ;;  %v6020_v44 = vld [vmem:[#allocation8 + $0xc] sm:$0xf0] }
  0xf2   :  { %9807 = vst [vmem:[#allocation103_spill] sm:$0xff] %v7217_v15  ;;  %v6141_v58 = vpop.eup %6140  ;;  %1068 = vmatpush.bf16.msra.mxu1 %v7229_v30  ;;  %v7238_v8 = vor.u32 %v6020_v44, %v5378_v32  ;;  %v6018_v25 = vld [vmem:[#allocation8 + $0x4] sm:$0xf]  ;;  %v5380_v57 = vld [vmem:[#allocation8 + $0x10] sm:$0xf0] }
  0xf3   :  { %9808 = vst [vmem:[#allocation104_spill] sm:$0xff] %v7219_v56  ;;  %v645_v45 = vadd.f32 1.0, %v6141_v58  ;;  %6142 = vpow2.f32 %v5372_v34  ;;  %1055 = vmatpush.bf16.msrb.mxu0 %v7226_v33  ;;  %1081 = vmatpush.bf16.msra.mxu2 %v7231_v5  ;;  %v5386_v17 = vld [vmem:[#allocation8 + $0x8] sm:$0xf]  ;;  %v6021_v39 = vld [vmem:[#allocation8 + $0x14] sm:$0xf0]  ;;  %v7241_v29 = vor.u32 %v6018_v25, %v5380_v57 }
  0xf4   :  { %9809 = vst [vmem:[#allocation105_spill] sm:$0xff] %v7226_v33  ;;  %1094 = vmatpush.bf16.msrb.mxu3 %v7233_v31  ;;  %v7243_v34 = vor.u32 %v6021_v39, %v5386_v17  ;;  %v6019_v58 = vld [vmem:[#allocation8 + $0xc] sm:$0xf]  ;;  %v5610_v27 = vld [vmem:[#allocation6 + $0xc8] sm:$0xf] }
  0xf5   :  { %9810 = vst [vmem:[#allocation106_spill] sm:$0xff] %v7229_v30  ;;  %6144 = vrcp.f32 %v645_v45  ;;  %v5388_v30 = vld [vmem:[#allocation8 + $0x18] sm:$0xf0]  ;;  %v673_v57 = vand.u32 2147483648, %v645_v45  ;;  %v671_v39 = vand.u32 2147483647, %v645_v45  ;;  %vm667_vm6 = vweird.f32 %v645_v45 }
  0xf6   :  { %9811 = vst [vmem:[#allocation107_spill] sm:$0xff] %v7231_v5  ;;  %v616_v59 = vpop.f32.mrf.mxu2  ;;  %v7246_v33 = vor.u32 %v6019_v58, %v5388_v30  ;;  %1069 = vmatpush.bf16.msra.mxu1 %v7241_v29  ;;  %v5594_v19 = vld [vmem:[#allocation6 + $0xa8] sm:$0xf]  ;;  %v6007_v62 = vld [vmem:[#allocation6 + $0xac] sm:$0xf] }
  0xf7   :  { %9812 = vst [vmem:[#allocation108_spill] sm:$0xff] %v7233_v31  ;;  %1056 = vmatpush.bf16.msrb.mxu0 %v7238_v8  ;;  %1082 = vmatpush.bf16.msra.mxu2 %v7243_v34  ;;  %v674_v30 = vor.u32 1.1754944e-38, %v673_v57  ;;  %vm672_vm8 = vcmp.eq.f32.partialorder %v671_v39, 8.507059e+37 }
  0xf8   :  { %9813 = vst [vmem:[#allocation109_spill] sm:$0xff] %v7238_v8  ;;  %1095 = vmatpush.bf16.msrb.mxu3 %v7246_v33 }
  0xf9   :  { %9814 = vst [vmem:[#allocation110_spill] sm:$0xff] %v7241_v29  ;;  %v6143_v32 = vpop.eup %6142 }
  0xfa   :  { %9815 = vst [vmem:[#allocation111_spill] sm:$0xff] %v7243_v34  ;;  %v646_v44 = vadd.f32 1.0, %v6143_v32 }
  0xfb   :  { %9816 = vst [vmem:[#allocation112_spill] sm:$0xff] %v7246_v33  ;;  %v6145_v31 = vpop.eup %6144 }
  0xfc   :  { %v663_v59 = vmul.f32 %v6145_v31, %v645_v45  ;;  %6146 = vrcp.f32 %v646_v44  ;;  %vm668_vm5 = vweird.f32 %v6145_v31  ;;  %vm682_vm10 = vweird.f32 %v646_v44 }
  0xfd   :  { %vm669_vm7 = vmor %vm667_vm6, %vm668_vm5 }
  0xfe   :  { %v664_v25 = vsub.f32 1.0, %v663_v59 }
 0x100   :  { %v665_v17 = vmul.f32 %v6145_v31, %v664_v25  ;;  %v688_v25 = vand.u32 2147483648, %v646_v44 }
 0x102   :  { %v6147_v5 = vpop.eup %6146  ;;  %v666_v8 = vadd.f32 %v6145_v31, %v665_v17  ;;  %v686_v17 = vand.u32 2147483647, %v646_v44  ;;  %v689_v57 = vor.u32 1.1754944e-38, %v688_v25 }
 0x103   :  { %v678_v58 = vmul.f32 %v6147_v5, %v646_v44  ;;  %vm683_vm9 = vweird.f32 %v6147_v5 }
 0x104   :  { %v670_v29 = vsel %vm669_vm7, %v6145_v31, %v666_v8  ;;  %vm684_vm11 = vmor %vm682_vm10, %vm683_vm9  ;;  %vm687_vm12 = vcmp.eq.f32.partialorder %v686_v17, 8.507059e+37  ;;  %v5618_v31 = vld [vmem:[#allocation6 + $0xe0] sm:$0xf]  ;;  %v6016_v8 = vld [vmem:[#allocation6 + $0xec] sm:$0xf0] }
 0x105   :  { %v675_v34 = vsel %vm672_vm8, %v674_v30, %v670_v29  ;;  %v679_v56 = vsub.f32 1.0, %v678_v58  ;;  %v5626_v30 = vld [vmem:[#allocation6 + $0xe8] sm:$0xf]  ;;  %v6015_v58 = vld [vmem:[#allocation6 + $0xec] sm:$0xf] }
 0x106   :  { %v693_v33 = vmul.f32 0.0, %v675_v34  ;;  %v6014_v34 = vld [vmem:[#allocation6 + $0xe4] sm:$0xf] }
 0x107   :  { %v680_v32 = vmul.f32 %v6147_v5, %v679_v56  ;;  %v5620_v56 = vld [vmem:[#allocation6 + $0xf0] sm:$0xf0] }
 0x108   :  { %v7252_v15 = vadd.f32 %v7221_v50, %v693_v33  ;;  %v6017_v33 = vld [vmem:[#allocation6 + $0xf4] sm:$0xf0]  ;;  %v7259_v44 = vor.u32 %v6014_v34, %v5620_v56  ;;  %v5586_v34 = vld [vmem:[#allocation6 + $0xa0] sm:$0xf]  ;;  %v6008_v56 = vld [vmem:[#allocation6 + $0xac] sm:$0xf0] }
 0x109   :  { %v681_v59 = vadd.f32 %v6147_v5, %v680_v32  ;;  %v5628_v32 = vld [vmem:[#allocation6 + $0xf8] sm:$0xf0]  ;;  %v7261_v25 = vor.u32 %v6017_v33, %v5626_v30 }
 0x10a   :  { %9817 = vst [vmem:[#allocation113_spill] sm:$0xff] %v7252_v15  ;;  %6148 = vtanh.f32 %v7252_v15  ;;  %v7257_v15 = vor.u32 %v6016_v8, %v5618_v31  ;;  %v7263_v17 = vor.u32 %v6015_v58, %v5628_v32  ;;  %v6006_v58 = vld [vmem:[#allocation6 + $0xa4] sm:$0xf]  ;;  %v5588_v32 = vld [vmem:[#allocation6 + $0xb0] sm:$0xf0] }
 0x10b   :  { %v685_v45 = vsel %vm684_vm11, %v6147_v5, %v681_v59  ;;  %9819 = vst [vmem:[#allocation115_spill] sm:$0xff] %v7259_v44  ;;  %v5602_v5 = vld [vmem:[#allocation6 + $0xc0] sm:$0xf]  ;;  %v6012_v59 = vld [vmem:[#allocation6 + $0xcc] sm:$0xf0] }
 0x10c   :  { %v690_v39 = vsel %vm687_vm12, %v689_v57, %v685_v45  ;;  %9818 = vst [vmem:[#allocation114_spill] sm:$0xff] %v7257_v15  ;;  %v6010_v45 = vld [vmem:[#allocation6 + $0xc4] sm:$0xf]  ;;  %v5604_v57 = vld [vmem:[#allocation6 + $0xd0] sm:$0xf0]  ;;  %v7271_v31 = vor.u32 %v6012_v59, %v5602_v5  ;;  %v7283_v5 = vor.u32 %v6008_v56, %v5586_v34  ;;  %v7285_v59 = vor.u32 %v6006_v58, %v5588_v32 }
 0x10d   :  { %9820 = vst [vmem:[#allocation116_spill] sm:$0xff] %v7261_v25  ;;  %v7273_v8 = vor.u32 %v6010_v45, %v5604_v57  ;;  %v5570_v45 = vld [vmem:[#allocation6 + $0x80] sm:$0xf]  ;;  %v6004_v57 = vld [vmem:[#allocation6 + $0x8c] sm:$0xf0] }
 0x10e   :  { %9821 = vst [vmem:[#allocation117_spill] sm:$0xff] %v7263_v17  ;;  %v7295_v34 = vor.u32 %v6004_v57, %v5570_v45  ;;  %v5554_v58 = vld [vmem:[#allocation6 + $0x60] sm:$0xf]  ;;  %v6000_v32 = vld [vmem:[#allocation6 + $0x6c] sm:$0xf0] }
 0x10f   :  { %9822 = vst [vmem:[#allocation118_spill] sm:$0xff] %v7271_v31  ;;  %v7307_v45 = vor.u32 %v6000_v32, %v5554_v58  ;;  %v5997_v58 = vld [vmem:[#allocation6 + $0x54] sm:$0xf0]  ;;  %v5995_v32 = vld [vmem:[#allocation6 + $0x4c] sm:$0xf] }
 0x110   :  { %v6149_v29 = vpop.eup %6148  ;;  %9823 = vst [vmem:[#allocation119_spill] sm:$0xff] %v7273_v8 }
 0x111   :  { %v697_v50 = vmul.f32 %v6149_v29, %v690_v39  ;;  %v6013_v29 = vld [vmem:[#allocation6 + $0xd4] sm:$0xf0]  ;;  %v6011_v39 = vld [vmem:[#allocation6 + $0xcc] sm:$0xf]  ;;  %9826 = vst [vmem:[#allocation122_spill] sm:$0xff] %v7283_v5 }
 0x112   :  { %v7277_v30 = vor.u32 %v6013_v29, %v5610_v27  ;;  %9827 = vst [vmem:[#allocation123_spill] sm:$0xff] %v7285_v59 }
 0x113   :  { %v7255_v40 = vpack.c.bf16 %v697_v50, %v697_v50  ;;  %v5612_v50 = vld [vmem:[#allocation6 + $0xd8] sm:$0xf0]  ;;  %9830 = vst [vmem:[#allocation126_spill] sm:$0xff] %v7295_v34 }
 0x114   :  { %9824 = vst [vmem:[#allocation120_spill] sm:$0xff] %v7277_v30  ;;  %v7279_v33 = vor.u32 %v6011_v39, %v5612_v50  ;;  %v6002_v39 = vld [vmem:[#allocation6 + $0x84] sm:$0xf]  ;;  %v5572_v50 = vld [vmem:[#allocation6 + $0x90] sm:$0xf0] }
 0x115   :  { %714 = vmatmul.bf16.vlgmr.msra.gmra.mxu0 %v7255_v40  ;;  %727 = vmatmul.bf16.vlgmr.msrb.gmra.mxu1 %v7255_v40  ;;  %v7297_v56 = vor.u32 %v6002_v39, %v5572_v50  ;;  %9834 = vst [vmem:[#allocation130_spill] sm:$0xff] %v7307_v45  ;;  %v5538_v39 = vld [vmem:[#allocation6 + $0x40] sm:$0xf]  ;;  %v5996_v50 = vld [vmem:[#allocation6 + $0x4c] sm:$0xf0] }
 0x116   :  { %740 = vmatmul.bf16.vlgmr.msrb.gmra.mxu2 %v7255_v40  ;;  %753 = vmatmul.bf16.vlgmr.msra.gmra.mxu3 %v7255_v40  ;;  %9825 = vst [vmem:[#allocation121_spill] sm:$0xff] %v7279_v33 }
 0x117   :  { %1261 = vmatpush.bf16.msra.mxu0 %v7257_v15  ;;  %1274 = vmatpush.bf16.msrb.mxu1 %v7259_v44  ;;  %v6009_v15 = vld [vmem:[#allocation6 + $0xb4] sm:$0xf0]  ;;  %v5596_v44 = vld [vmem:[#allocation6 + $0xb8] sm:$0xf0]  ;;  %9831 = vst [vmem:[#allocation127_spill] sm:$0xff] %v7297_v56 }
 0x118   :  { %1287 = vmatpush.bf16.msrb.mxu2 %v7261_v25  ;;  %1300 = vmatpush.bf16.msra.mxu3 %v7263_v17  ;;  %v7289_v27 = vor.u32 %v6009_v15, %v5594_v19  ;;  %v7291_v29 = vor.u32 %v6007_v62, %v5596_v44  ;;  %v5578_v17 = vld [vmem:[#allocation6 + $0x88] sm:$0xf]  ;;  %v6003_v25 = vld [vmem:[#allocation6 + $0x8c] sm:$0xf]  ;;  %v5998_v15 = vld [vmem:[#allocation6 + $0x64] sm:$0xf] }
 0x119   :  { %v5556_v44 = vld [vmem:[#allocation6 + $0x70] sm:$0xf0] }
 0x11a   :  { %9828 = vst [vmem:[#allocation124_spill] sm:$0xff] %v7289_v27  ;;  %v7309_v57 = vor.u32 %v5998_v15, %v5556_v44  ;;  %v5548_v15 = vld [vmem:[#allocation6 + $0x58] sm:$0xf0] }
 0x11b   :  { %1262 = vmatpush.bf16.msra.mxu0 %v7271_v31  ;;  %1275 = vmatpush.bf16.msrb.mxu1 %v7273_v8  ;;  %9829 = vst [vmem:[#allocation125_spill] sm:$0xff] %v7291_v29  ;;  %v6005_v31 = vld [vmem:[#allocation6 + $0x94] sm:$0xf0]  ;;  %v5580_v8 = vld [vmem:[#allocation6 + $0x98] sm:$0xf0] }
 0x11c   :  { %1288 = vmatpush.bf16.msrb.mxu2 %v7277_v30  ;;  %1301 = vmatpush.bf16.msra.mxu3 %v7279_v33  ;;  %v7301_v19 = vor.u32 %v6005_v31, %v5578_v17  ;;  %v7303_v62 = vor.u32 %v6003_v25, %v5580_v8  ;;  %v5562_v33 = vld [vmem:[#allocation6 + $0x68] sm:$0xf]  ;;  %v5999_v30 = vld [vmem:[#allocation6 + $0x6c] sm:$0xf]  ;;  %9835 = vst [vmem:[#allocation131_spill] sm:$0xff] %v7309_v57 }
 0x11d   :  { %v5994_v31 = vld [vmem:[#allocation6 + $0x44] sm:$0xf]  ;;  %v5540_v8 = vld [vmem:[#allocation6 + $0x50] sm:$0xf0] }
 0x11e   :  { %9832 = vst [vmem:[#allocation128_spill] sm:$0xff] %v7301_v19 }
 0x11f   :  { %1263 = vmatpush.bf16.msra.mxu0 %v7283_v5  ;;  %1276 = vmatpush.bf16.msrb.mxu1 %v7285_v59  ;;  %9833 = vst [vmem:[#allocation129_spill] sm:$0xff] %v7303_v62  ;;  %v6001_v5 = vld [vmem:[#allocation6 + $0x74] sm:$0xf0]  ;;  %v5564_v59 = vld [vmem:[#allocation6 + $0x78] sm:$0xf0] }
 0x120   :  { %1289 = vmatpush.bf16.msrb.mxu2 %v7289_v27  ;;  %1302 = vmatpush.bf16.msra.mxu3 %v7291_v29  ;;  %v7313_v25 = vor.u32 %v6001_v5, %v5562_v33  ;;  %v7315_v17 = vor.u32 %v5999_v30, %v5564_v59  ;;  %v5546_v29 = vld [vmem:[#allocation6 + $0x48] sm:$0xf]  ;;  %v7323_v30 = vor.u32 %v5996_v50, %v5538_v39  ;;  %v5522_v5 = vld [vmem:[#allocation6 + $0x20] sm:$0xf]  ;;  %v5992_v59 = vld [vmem:[#allocation6 + $0x2c] sm:$0xf0] }
 0x121   :  { %v7325_v33 = vor.u32 %v5994_v31, %v5540_v8  ;;  %v7329_v44 = vor.u32 %v5997_v58, %v5546_v29  ;;  %v5991_v27 = vld [vmem:[#allocation6 + $0x2c] sm:$0xf]  ;;  %v7335_v39 = vor.u32 %v5992_v59, %v5522_v5  ;;  %v5506_v31 = vld [vmem:[#allocation6] sm:$0xf]  ;;  %v5988_v8 = vld [vmem:[#allocation6 + $0xc] sm:$0xf0] }
 0x122   :  { %9836 = vst [vmem:[#allocation132_spill] sm:$0xff] %v7313_v25  ;;  %v9858_v5 = vld [vmem:[#allocation97_spill] sm:$0xff]  ;;  %v9859_v59 = vld [vmem:[#allocation98_spill] sm:$0xff] }
 0x123   :  { %1264 = vmatpush.bf16.msra.mxu0 %v7295_v34  ;;  %1277 = vmatpush.bf16.msrb.mxu1 %v7297_v56  ;;  %9837 = vst [vmem:[#allocation133_spill] sm:$0xff] %v7315_v17  ;;  %v9838_v34 = vmov 0   ;;  %v5530_v56 = vld [vmem:[#allocation6 + $0x28] sm:$0xf] }
 0x124   :  { %1290 = vmatpush.bf16.msrb.mxu2 %v7301_v19  ;;  %1303 = vmatpush.bf16.msra.mxu3 %v7303_v62  ;;  %9839 = vst [vmem:[#allocation134_spill] sm:$0xff] %v7323_v30  ;;  %v7331_v62 = vor.u32 %v5995_v32, %v5548_v15  ;;  %v5990_v19 = vld [vmem:[#allocation6 + $0x24] sm:$0xf]  ;;  %v5508_v15 = vld [vmem:[#allocation6 + $0x10] sm:$0xf0] }
 0x125   :  { %1057 = vmatmul.bf16.vlgmr.msrb.gmra.mxu0 %v9838_v34  ;;  %1070 = vmatmul.bf16.vlgmr.msra.gmra.mxu1 %v9838_v34  ;;  %9840 = vst [vmem:[#allocation135_spill] sm:$0xff] %v7325_v33  ;;  %v5986_v32 = vld [vmem:[#allocation6 + $0x4] sm:$0xf] }
 0x126   :  { %1083 = vmatmul.bf16.vlgmr.msra.gmra.mxu2 %v9838_v34  ;;  %1096 = vmatmul.bf16.vlgmr.msrb.gmra.mxu3 %v9838_v34  ;;  %9841 = vst [vmem:[#allocation136_spill] sm:$0xff] %v7329_v44  ;;  %v5524_v34 = vld [vmem:[#allocation6 + $0x30] sm:$0xf0] }
 0x127   :  { %1265 = vmatpush.bf16.msra.mxu0 %v7307_v45  ;;  %1278 = vmatpush.bf16.msrb.mxu1 %v7309_v57  ;;  %9842 = vst [vmem:[#allocation137_spill] sm:$0xff] %v7331_v62  ;;  %v5993_v45 = vld [vmem:[#allocation6 + $0x34] sm:$0xf0]  ;;  %v5532_v57 = vld [vmem:[#allocation6 + $0x38] sm:$0xf0]  ;;  %v7337_v50 = vor.u32 %v5990_v19, %v5524_v34  ;;  %v7347_v34 = vor.u32 %v5988_v8, %v5506_v31  ;;  %v9861_v8 = vld [vmem:[#allocation100_spill] sm:$0xff] }
 0x128   :  { %1291 = vmatpush.bf16.msrb.mxu2 %v7313_v25  ;;  %1304 = vmatpush.bf16.msra.mxu3 %v7315_v17  ;;  %9843 = vst [vmem:[#allocation138_spill] sm:$0xff] %v7335_v39  ;;  %v7341_v29 = vor.u32 %v5993_v45, %v5530_v56  ;;  %v7343_v58 = vor.u32 %v5991_v27, %v5532_v57  ;;  %v5514_v17 = vld [vmem:[#allocation6 + $0x8] sm:$0xf]  ;;  %v5987_v25 = vld [vmem:[#allocation6 + $0xc] sm:$0xf]  ;;  %v9852_v45 = vld [vmem:[#allocation87_spill] sm:$0xff] }
 0x129   :  { %9844 = vst [vmem:[#allocation139_spill] sm:$0xff] %v7337_v50  ;;  %v7349_v19 = vor.u32 %v5986_v32, %v5508_v15  ;;  %v9853_v57 = vld [vmem:[#allocation88_spill] sm:$0xff]  ;;  %v9860_v31 = vld [vmem:[#allocation99_spill] sm:$0xff]  ;;  %v9862_v32 = vld [vmem:[#allocation101_spill] sm:$0xff] }
 0x12a   :  { %9845 = vst [vmem:[#allocation140_spill] sm:$0xff] %v7341_v29  ;;  %v9863_v15 = vld [vmem:[#allocation102_spill] sm:$0xff] }
 0x12b   :  { %1266 = vmatpush.bf16.msra.mxu0 %v7323_v30  ;;  %1279 = vmatpush.bf16.msrb.mxu1 %v7325_v33  ;;  %9846 = vst [vmem:[#allocation141_spill] sm:$0xff] %v7343_v58  ;;  %v5989_v30 = vld [vmem:[#allocation6 + $0x14] sm:$0xf0]  ;;  %v5516_v33 = vld [vmem:[#allocation6 + $0x18] sm:$0xf0] }
 0x12c   :  { %1292 = vmatpush.bf16.msrb.mxu2 %v7329_v44  ;;  %1305 = vmatpush.bf16.msra.mxu3 %v7331_v62  ;;  %9847 = vst [vmem:[#allocation142_spill] sm:$0xff] %v7347_v34  ;;  %v7353_v27 = vor.u32 %v5989_v30, %v5514_v17  ;;  %v7355_v56 = vor.u32 %v5987_v25, %v5516_v33  ;;  %v9854_v25 = vld [vmem:[#allocation89_spill] sm:$0xff]  ;;  %v9855_v17 = vld [vmem:[#allocation90_spill] sm:$0xff]  ;;  %v9856_v30 = vld [vmem:[#allocation92_spill] sm:$0xff] }
 0x12d   :  { %9848 = vst [vmem:[#allocation143_spill] sm:$0xff] %v7349_v19  ;;  %v9857_v33 = vld [vmem:[#allocation93_spill] sm:$0xff] }
 0x12e   :  { %9849 = vst [vmem:[#allocation144_spill] sm:$0xff] %v7353_v27 }
 0x12f   :  { %1267 = vmatpush.bf16.msra.mxu0 %v7335_v39  ;;  %1280 = vmatpush.bf16.msrb.mxu1 %v7337_v50  ;;  %9850 = vst [vmem:[#allocation145_spill] sm:$0xff] %v7355_v56 }
 0x130   :  { %1293 = vmatpush.bf16.msrb.mxu2 %v7341_v29  ;;  %1306 = vmatpush.bf16.msra.mxu3 %v7343_v58 }
 0x133   :  { %1268 = vmatpush.bf16.msra.mxu0 %v7347_v34  ;;  %1281 = vmatpush.bf16.msrb.mxu1 %v7349_v19 }
 0x134   :  { %1294 = vmatpush.bf16.msrb.mxu2 %v7353_v27  ;;  %1307 = vmatpush.bf16.msra.mxu3 %v7355_v56 }
 0x136   :  { %1269 = vmatmul.bf16.vlgmr.msra.gmra.mxu0 %v7255_v40  ;;  %1282 = vmatmul.bf16.vlgmr.msrb.gmra.mxu1 %v7255_v40 }
 0x137   :  { %1399 = vmatpush.bf16.msrb.mxu0 %v6830_v21  ;;  %1412 = vmatpush.bf16.msra.mxu1 %v6876_v48 }
 0x138   :  { %1295 = vmatmul.bf16.vlgmr.msrb.gmra.mxu2 %v7255_v40  ;;  %1308 = vmatmul.bf16.vlgmr.msra.gmra.mxu3 %v7255_v40  ;;  %v9851_v40 = vld [vmem:[#allocation84_spill] sm:$0xff] }
 0x139   :  { %1425 = vmatpush.bf16.msra.mxu2 %v6866_v42  ;;  %1438 = vmatpush.bf16.msrb.mxu3 %v6857_v35 }
 0x13b   :  { %1400 = vmatpush.bf16.msrb.mxu0 %v6855_v28  ;;  %1413 = vmatpush.bf16.msra.mxu1 %v6895_v60 }
 0x13d   :  { %1426 = vmatpush.bf16.msra.mxu2 %v6885_v53  ;;  %1439 = vmatpush.bf16.msrb.mxu3 %v6872_v47 }
 0x13f   :  { %1401 = vmatpush.bf16.msrb.mxu0 %v6864_v41  ;;  %1414 = vmatpush.bf16.msra.mxu1 %v6912_v6 }
 0x141   :  { %1427 = vmatpush.bf16.msra.mxu2 %v6903_v1  ;;  %1440 = vmatpush.bf16.msrb.mxu3 %v6897_v61 }
 0x143   :  { %1402 = vmatpush.bf16.msrb.mxu0 %v6883_v51  ;;  %1415 = vmatpush.bf16.msra.mxu1 %v6931_v22 }
 0x145   :  { %1428 = vmatpush.bf16.msra.mxu2 %v6923_v18  ;;  %1441 = vmatpush.bf16.msrb.mxu3 %v6917_v7 }
 0x147   :  { %1403 = vmatpush.bf16.msrb.mxu0 %v6900_v0  ;;  %1416 = vmatpush.bf16.msra.mxu1 %v6947_v36 }
 0x149   :  { %1429 = vmatpush.bf16.msra.mxu2 %v6949_v37  ;;  %1442 = vmatpush.bf16.msrb.mxu3 %v6934_v24 }
 0x14b   :  { %1404 = vmatpush.bf16.msrb.mxu0 %v6920_v11  ;;  %1417 = vmatpush.bf16.msra.mxu1 %v6966_v52 }
 0x14d   :  { %1430 = vmatpush.bf16.msra.mxu2 %v6960_v49  ;;  %1443 = vmatpush.bf16.msrb.mxu3 %v6954_v38 }
 0x14f   :  { %1405 = vmatpush.bf16.msrb.mxu0 %v6937_v26  ;;  %1418 = vmatpush.bf16.msra.mxu1 %v6978_v2 }
 0x151   :  { %1431 = vmatpush.bf16.msra.mxu2 %v6980_v3  ;;  %1444 = vmatpush.bf16.msrb.mxu3 %v6969_v54 }
 0x153   :  { %1406 = vmatpush.bf16.msrb.mxu0 %v6957_v43  ;;  %1419 = vmatpush.bf16.msra.mxu1 %v6995_v13 }
 0x155   :  { %1432 = vmatpush.bf16.msra.mxu2 %v6989_v10  ;;  %1445 = vmatpush.bf16.msrb.mxu3 %v6985_v4 }
 0x157   :  { %1518 = vmatpush.bf16.msra.mxu0 %v7130_v63  ;;  %1531 = vmatpush.bf16.msrb.mxu1 %v7132_v9 }
 0x159   :  { %1544 = vmatpush.bf16.msrb.mxu2 %v7134_v12  ;;  %1557 = vmatpush.bf16.msra.mxu3 %v7139_v23 }
 0x15b   :  { %1519 = vmatpush.bf16.msra.mxu0 %v7147_v14  ;;  %1532 = vmatpush.bf16.msrb.mxu1 %v7149_v55 }
 0x15d   :  { %1545 = vmatpush.bf16.msrb.mxu2 %v9851_v40  ;;  %1558 = vmatpush.bf16.msra.mxu3 %v9852_v45  ;;  %v9878_v40 = vld [vmem:[#allocation59_spill] sm:$0xff] }
 0x15f   :  { %1520 = vmatpush.bf16.msra.mxu0 %v9853_v57  ;;  %1533 = vmatpush.bf16.msrb.mxu1 %v9854_v25  ;;  %v9876_v57 = vld [vmem:[#allocation61_spill] sm:$0xff] }
 0x161   :  { %1546 = vmatpush.bf16.msrb.mxu2 %v9855_v17  ;;  %1559 = vmatpush.bf16.msra.mxu3 %v7170_v20  ;;  %v9864_v20 = vld [vmem:[#allocation103_spill] sm:$0xff] }
 0x163   :  { %1521 = vmatpush.bf16.msra.mxu0 %v9856_v30  ;;  %1534 = vmatpush.bf16.msrb.mxu1 %v9857_v33  ;;  %v9865_v30 = vld [vmem:[#allocation104_spill] sm:$0xff]  ;;  %v9866_v33 = vld [vmem:[#allocation105_spill] sm:$0xff] }
 0x165   :  { %1547 = vmatpush.bf16.msrb.mxu2 %v7189_v16  ;;  %1560 = vmatpush.bf16.msra.mxu3 %v7193_v46  ;;  %v9867_v16 = vld [vmem:[#allocation106_spill] sm:$0xff]  ;;  %v9868_v46 = vld [vmem:[#allocation107_spill] sm:$0xff] }
 0x167   :  { %1522 = vmatpush.bf16.msra.mxu0 %v9858_v5  ;;  %1535 = vmatpush.bf16.msrb.mxu1 %v9859_v59  ;;  %v9869_v5 = vld [vmem:[#allocation108_spill] sm:$0xff]  ;;  %v9870_v59 = vld [vmem:[#allocation109_spill] sm:$0xff] }
 0x169   :  { %1548 = vmatpush.bf16.msrb.mxu2 %v9860_v31  ;;  %1561 = vmatpush.bf16.msra.mxu3 %v9861_v8  ;;  %v9871_v31 = vld [vmem:[#allocation110_spill] sm:$0xff]  ;;  %v9872_v8 = vld [vmem:[#allocation111_spill] sm:$0xff] }
 0x16b   :  { %1523 = vmatpush.bf16.msra.mxu0 %v9862_v32  ;;  %1536 = vmatpush.bf16.msrb.mxu1 %v9863_v15  ;;  %v9873_v32 = vld [vmem:[#allocation112_spill] sm:$0xff]  ;;  %v9874_v15 = vld [vmem:[#allocation50_spill] sm:$0xff] }
 0x16d   :  { %1549 = vmatpush.bf16.msrb.mxu2 %v9864_v20  ;;  %1562 = vmatpush.bf16.msra.mxu3 %v9865_v30  ;;  %v9875_v20 = vld [vmem:[#allocation52_spill] sm:$0xff] }
 0x16e   :  { %v205_v17 = vadd.f32 %v9875_v20, %v9874_v15 }
 0x16f   :  { %1524 = vmatpush.bf16.msra.mxu0 %v9866_v33  ;;  %1537 = vmatpush.bf16.msrb.mxu1 %v9867_v16 }
 0x171   :  { %1550 = vmatpush.bf16.msrb.mxu2 %v9868_v46  ;;  %1563 = vmatpush.bf16.msra.mxu3 %v9869_v5  ;;  %v9877_v5 = vld [vmem:[#allocation62_spill] sm:$0xff] }
 0x173   :  { %1525 = vmatpush.bf16.msra.mxu0 %v9870_v59  ;;  %1538 = vmatpush.bf16.msrb.mxu1 %v9871_v31  ;;  %v287_v59 = vadd.f32 %v9878_v40, %v9877_v5  ;;  %v9879_v40 = vld [vmem:[#allocation56_spill] sm:$0xff] }
 0x175   :  { %1551 = vmatpush.bf16.msrb.mxu2 %v9872_v8  ;;  %1564 = vmatpush.bf16.msra.mxu3 %v9873_v32 }
 0x192   :  { %v715_v30 = vpop.f32.mrf.mxu0  ;;  %v728_v25 = vpop.f32.mrf.mxu1 }
 0x193   :  { %v758_v33 = vadd.f32 %v715_v30, %v205_v17  ;;  %v759_v16 = vadd.f32 %v728_v25, %v9876_v57 }
 0x195   :  { %v5373_v45 = vmul.f32 -1.442695, %v758_v33  ;;  %v5374_v46 = vmul.f32 -1.442695, %v759_v16 }
 0x197   :  { %6150 = vpow2.f32 %v5373_v45 }
 0x198   :  { %6152 = vpow2.f32 %v5374_v46  ;;  %v9880_v46 = vld [vmem:[#allocation54_spill] sm:$0xff] }
 0x199   :  { %v741_v31 = vpop.f32.mrf.mxu2  ;;  %v754_v55 = vpop.f32.mrf.mxu3  ;;  %v328_v33 = vadd.f32 %v9880_v46, %v9879_v40 }
 0x19a   :  { %v760_v8 = vadd.f32 %v741_v31, %v287_v59  ;;  %v717_v14 = vpop.f32.mrf.mxu0  ;;  %v730_v32 = vpop.f32.mrf.mxu1 }
 0x19b   :  { %v761_v59 = vadd.f32 %v754_v55, %v328_v33 }
 0x19c   :  { %v5375_v23 = vmul.f32 -1.442695, %v760_v8 }
 0x19d   :  { %v6151_v12 = vpop.eup %6150 }
 0x19e   :  { %v6153_v20 = vpop.eup %6152  ;;  %v771_v15 = vadd.f32 1.0, %v6151_v12  ;;  %6154 = vpow2.f32 %v5375_v23 }
 0x19f   :  { %v772_v17 = vadd.f32 1.0, %v6153_v20 }
 0x1a0   :  { %6156 = vrcp.f32 %v771_v15  ;;  %v783_v40 = vand.u32 2147483647, %v771_v15  ;;  %vm779_vm15 = vweird.f32 %v771_v15 }
 0x1a1   :  { %6158 = vrcp.f32 %v772_v17  ;;  %v743_v57 = vpop.f32.mrf.mxu2  ;;  %v756_v16 = vpop.f32.mrf.mxu3  ;;  %v800_v46 = vand.u32 2147483648, %v772_v17  ;;  %v798_v33 = vand.u32 2147483647, %v772_v17  ;;  %vm794_vm0 = vweird.f32 %v772_v17 }
 0x1a2   :  { %v1058_v45 = vpop.f32.mrf.mxu0  ;;  %v1071_v25 = vpop.f32.mrf.mxu1  ;;  %v785_v16 = vand.u32 2147483648, %v771_v15  ;;  %vm784_vm3 = vcmp.eq.f32.partialorder %v783_v40, 8.507059e+37 }
 0x1a3   :  { %vm799_vm4 = vcmp.eq.f32.partialorder %v798_v33, 8.507059e+37 }
 0x1a4   :  { %v6155_v30 = vpop.eup %6154  ;;  %v786_v13 = vor.u32 1.1754944e-38, %v785_v16 }
 0x1a5   :  { %v7436_v5 = vadd.f32 1.0, %v6155_v30 }
 0x1a6   :  { %v6157_v14 = vpop.eup %6156 }
 0x1a7   :  { %v6159_v31 = vpop.eup %6158  ;;  %v775_v8 = vmul.f32 %v6157_v14, %v771_v15  ;;  %6160 = vrcp.f32 %v7436_v5  ;;  %vm780_vm13 = vweird.f32 %v6157_v14  ;;  %vm809_vm6 = vweird.f32 %v7436_v5 }
 0x1a8   :  { %v790_v23 = vmul.f32 %v6159_v31, %v772_v17  ;;  %6162 = vtanh.f32 %v761_v59  ;;  %vm795_vm14 = vweird.f32 %v6159_v31  ;;  %vm781_vm1 = vmor %vm779_vm15, %vm780_vm13  ;;  %v801_v59 = vor.u32 1.1754944e-38, %v800_v46 }
 0x1a9   :  { %v776_v12 = vsub.f32 1.0, %v775_v8  ;;  %v7439_v32 = vpop.f32.mrf.mxu2  ;;  %v7441_v20 = vpop.f32.mrf.mxu3  ;;  %vm796_vm2 = vmor %vm794_vm0, %vm795_vm14 }
 0x1aa   :  { %v791_v57 = vsub.f32 1.0, %v790_v23  ;;  %v1060_v4 = vpop.f32.mrf.mxu0  ;;  %v1073_v10 = vpop.f32.mrf.mxu1 }
 0x1ab   :  { %v777_v30 = vmul.f32 %v6157_v14, %v776_v12  ;;  %v7447_v10 = vld [vmem:[%s9328_s6] sm:$0xf] }
 0x1ac   :  { %v792_v55 = vmul.f32 %v6159_v31, %v791_v57  ;;  %v7454_v40 = vperm.slane %v7447_v10, 1 }
 0x1ad   :  { %v6161_v9 = vpop.eup %6160  ;;  %v778_v63 = vadd.f32 %v6157_v14, %v777_v30 }
 0x1ae   :  { %v805_v8 = vmul.f32 %v6161_v9, %v7436_v5  ;;  %v793_v23 = vadd.f32 %v6159_v31, %v792_v55  ;;  %v6163_v12 = vpop.eup %6162  ;;  %v9881_v55 = vld [vmem:[#allocation113_spill] sm:$0xff]  ;;  %9883 = vst [vmem:[#allocation61_spill] sm:$0xff] %v7454_v40  ;;  %vm810_vm5 = vweird.f32 %v6161_v9 }
 0x1af   :  { %v782_v4 = vsel %vm781_vm1, %v6157_v14, %v778_v63  ;;  %v7451_v63 = vperm.slane %v7447_v10, 0  ;;  %vm7464_vm7 = vmor %vm809_vm6, %vm810_vm5 }
 0x1b0   :  { %v806_v57 = vsub.f32 1.0, %v805_v8  ;;  %v787_v43 = vsel %vm784_vm3, %v786_v13, %v782_v4  ;;  %v797_v30 = vsel %vm796_vm2, %v6159_v31, %v793_v23  ;;  %v813_v8 = vand.u32 2147483647, %v7436_v5  ;;  %v9889_v23 = vld [vmem:[#allocation116_spill] sm:$0xff] }
 0x1b1   :  { %v802_v15 = vsel %vm799_vm4, %v801_v59, %v797_v30  ;;  %v821_v17 = vmul.f32 %v6163_v12, %v787_v43  ;;  %v1086_v54 = vpop.f32.mrf.mxu2  ;;  %v1099_v3 = vpop.f32.mrf.mxu3  ;;  %9882 = vst [vmem:[#allocation52_spill] sm:$0xff] %v7451_v63  ;;  %v815_v43 = vand.u32 2147483648, %v7436_v5  ;;  %v7471_v59 = vperm.slane %v7447_v10, 2 }
 0x1b2   :  { %v807_v16 = vmul.f32 %v6161_v9, %v806_v57  ;;  %v820_v2 = vmul.f32 %v802_v15, %v9881_v55  ;;  %vm814_vm8 = vcmp.eq.f32.partialorder %v813_v8, 8.507059e+37  ;;  %v9888_v8 = vld [vmem:[#allocation115_spill] sm:$0xff] }
 0x1b3   :  { %v1270_v14 = vpop.f32.mrf.mxu0  ;;  %v1283_v46 = vpop.f32.mrf.mxu1  ;;  %9886 = vst [vmem:[#allocation59_spill] sm:$0xff] %v7471_v59  ;;  %v816_v4 = vor.u32 1.1754944e-38, %v815_v43 }
 0x1b4   :  { %v7456_v26 = vadd.f32 %v821_v17, %v820_v2  ;;  %v1271_v13 = vadd.f32 %v1270_v14, %v1058_v45  ;;  %v1284_v31 = vadd.f32 %v1283_v46, %v1071_v25  ;;  %v808_v33 = vadd.f32 %v6161_v9, %v807_v16 }
 0x1b6   :  { %6164 = vtanh.f32 %v7456_v26  ;;  %v1323_v54 = vadd.f32 %v7451_v63, %v1271_v13  ;;  %v1324_v3 = vadd.f32 %v7454_v40, %v1284_v31  ;;  %v812_v25 = vsel %vm7464_vm7, %v6161_v9, %v808_v33  ;;  %v9900_v40 = vld [vmem:[#allocation126_spill] sm:$0xff] }
 0x1b7   :  { %v817_v16 = vsel %vm814_vm8, %v816_v4, %v812_v25  ;;  %v7487_v25 = vperm.slane %v7447_v10, 3  ;;  %v9896_v10 = vld [vmem:[#allocation122_spill] sm:$0xff] }
 0x1b8   :  { %v5632_v2 = vmul.f32 -1.442695, %v1323_v54  ;;  %v5633_v45 = vmul.f32 -1.442695, %v1324_v3  ;;  %v9887_v3 = vld [vmem:[#allocation114_spill] sm:$0xff] }
 0x1b9   :  { %9891 = vst [vmem:[#allocation54_spill] sm:$0xff] %v7487_v25 }
 0x1ba   :  { %6166 = vpow2.f32 %v5632_v2  ;;  %v9890_v2 = vld [vmem:[#allocation117_spill] sm:$0xff] }
 0x1bb   :  { %v1296_v12 = vpop.f32.mrf.mxu2  ;;  %v1309_v57 = vpop.f32.mrf.mxu3  ;;  %6168 = vpow2.f32 %v5633_v45 }
 0x1bc   :  { %v1297_v5 = vadd.f32 %v1296_v12, %v7439_v32  ;;  %v1272_v30 = vpop.f32.mrf.mxu0  ;;  %v1285_v15 = vpop.f32.mrf.mxu1  ;;  %v1310_v45 = vadd.f32 %v1309_v57, %v7441_v20  ;;  %v9892_v12 = vld [vmem:[#allocation118_spill] sm:$0xff]  ;;  %v9897_v57 = vld [vmem:[#allocation123_spill] sm:$0xff] }
 0x1bd   :  { %v6165_v17 = vpop.eup %6164  ;;  %v9894_v15 = vld [vmem:[#allocation120_spill] sm:$0xff] }
 0x1be   :  { %v824_v55 = vmul.f32 %v6165_v17, %v817_v16  ;;  %v1325_v14 = vadd.f32 %v7471_v59, %v1297_v5  ;;  %v9893_v5 = vld [vmem:[#allocation119_spill] sm:$0xff]  ;;  %v9895_v17 = vld [vmem:[#allocation121_spill] sm:$0xff] }
 0x1c0   :  { %v7475_v46 = vpack.c.bf16 %v824_v55, %v824_v55  ;;  %v5634_v9 = vmul.f32 -1.442695, %v1325_v14  ;;  %v6167_v13 = vpop.eup %6166  ;;  %v1326_v55 = vadd.f32 %v7487_v25, %v1310_v45 }
 0x1c1   :  { %v6169_v31 = vpop.eup %6168  ;;  %v1336_v33 = vadd.f32 1.0, %v6167_v13 }
 0x1c2   :  { %6170 = vpow2.f32 %v5634_v9  ;;  %1407 = vmatmul.bf16.vlgmr.msrb.gmra.mxu0 %v7475_v46  ;;  %1420 = vmatmul.bf16.vlgmr.msra.gmra.mxu1 %v7475_v46  ;;  %v1337_v43 = vadd.f32 1.0, %v6169_v31  ;;  %v9898_v31 = vld [vmem:[#allocation124_spill] sm:$0xff] }
 0x1c3   :  { %v1298_v32 = vpop.f32.mrf.mxu2  ;;  %v1311_v54 = vpop.f32.mrf.mxu3  ;;  %1433 = vmatmul.bf16.vlgmr.msra.gmra.mxu2 %v7475_v46  ;;  %1446 = vmatmul.bf16.vlgmr.msrb.gmra.mxu3 %v7475_v46  ;;  %6172 = vrcp.f32 %v1336_v33  ;;  %v1348_v45 = vand.u32 2147483647, %v1336_v33  ;;  %vm1344_vm11 = vweird.f32 %v1336_v33 }
 0x1c4   :  { %1570 = vmatpush.bf16.msrb.mxu0 %v9887_v3  ;;  %1583 = vmatpush.bf16.msra.mxu1 %v9888_v8  ;;  %6174 = vrcp.f32 %v1337_v43  ;;  %v9899_v32 = vld [vmem:[#allocation125_spill] sm:$0xff]  ;;  %v1365_v59 = vand.u32 2147483648, %v1337_v43  ;;  %vm1359_vm12 = vweird.f32 %v1337_v43 }
 0x1c5   :  { %1596 = vmatpush.bf16.msra.mxu2 %v9889_v23  ;;  %1609 = vmatpush.bf16.msrb.mxu3 %v9890_v2  ;;  %vm1349_vm14 = vcmp.eq.f32.partialorder %v1348_v45, 8.507059e+37  ;;  %v9909_v45 = vld [vmem:[#allocation134_spill] sm:$0xff] }
 0x1c8   :  { %v6171_v4 = vpop.eup %6170  ;;  %1571 = vmatpush.bf16.msrb.mxu0 %v9892_v12  ;;  %1584 = vmatpush.bf16.msra.mxu1 %v9893_v5  ;;  %v9906_v12 = vld [vmem:[#allocation132_spill] sm:$0xff] }
 0x1c9   :  { %v7491_v30 = vadd.f32 1.0, %v6171_v4  ;;  %1597 = vmatpush.bf16.msra.mxu2 %v9894_v15  ;;  %1610 = vmatpush.bf16.msrb.mxu3 %v9895_v17  ;;  %v6173_v16 = vpop.eup %6172  ;;  %v1350_v4 = vand.u32 2147483648, %v1336_v33  ;;  %v1363_v15 = vand.u32 2147483647, %v1337_v43 }
 0x1ca   :  { %v6175_v14 = vpop.eup %6174  ;;  %v1340_v9 = vmul.f32 %v6173_v16, %v1336_v33  ;;  %vm1345_vm9 = vweird.f32 %v6173_v16  ;;  %v9904_v33 = vld [vmem:[#allocation130_spill] sm:$0xff] }
 0x1cb   :  { %6176 = vrcp.f32 %v7491_v30  ;;  %v1355_v20 = vmul.f32 %v6175_v14, %v1337_v43  ;;  %vm1360_vm10 = vweird.f32 %v6175_v14  ;;  %vm1346_vm13 = vmor %vm1344_vm11, %vm1345_vm9  ;;  %vm1364_vm0 = vcmp.eq.f32.partialorder %v1363_v15, 8.507059e+37 }
 0x1cc   :  { %1572 = vmatpush.bf16.msrb.mxu0 %v9896_v10  ;;  %1585 = vmatpush.bf16.msra.mxu1 %v9897_v57  ;;  %v1341_v13 = vsub.f32 1.0, %v1340_v9  ;;  %6178 = vtanh.f32 %v1326_v55  ;;  %v9901_v10 = vld [vmem:[#allocation127_spill] sm:$0xff]  ;;  %vm1361_vm15 = vmor %vm1359_vm12, %vm1360_vm10  ;;  %vm1374_vm2 = vweird.f32 %v7491_v30 }
 0x1cd   :  { %1598 = vmatpush.bf16.msra.mxu2 %v9898_v31  ;;  %1611 = vmatpush.bf16.msrb.mxu3 %v9899_v32  ;;  %v1356_v54 = vsub.f32 1.0, %v1355_v20  ;;  %v9902_v31 = vld [vmem:[#allocation128_spill] sm:$0xff]  ;;  %v9903_v32 = vld [vmem:[#allocation129_spill] sm:$0xff]  ;;  %v1351_v20 = vor.u32 1.1754944e-38, %v1350_v4 }
 0x1ce   :  { %v1342_v17 = vmul.f32 %v6173_v16, %v1341_v13  ;;  %v9907_v4 = vld [vmem:[#allocation133_spill] sm:$0xff] }
 0x1cf   :  { %v1357_v25 = vmul.f32 %v6175_v14, %v1356_v54  ;;  %v1366_v54 = vor.u32 1.1754944e-38, %v1365_v59 }
 0x1d0   :  { %1573 = vmatpush.bf16.msrb.mxu0 %v9900_v40  ;;  %1586 = vmatpush.bf16.msra.mxu1 %v9901_v10  ;;  %v1343_v9 = vadd.f32 %v6173_v16, %v1342_v17 }
 0x1d1   :  { %v6177_v57 = vpop.eup %6176  ;;  %1599 = vmatpush.bf16.msra.mxu2 %v9902_v31  ;;  %1612 = vmatpush.bf16.msrb.mxu3 %v9903_v32  ;;  %v1358_v13 = vadd.f32 %v6175_v14, %v1357_v25  ;;  %v9905_v31 = vld [vmem:[#allocation131_spill] sm:$0xff] }
 0x1d2   :  { %v1370_v55 = vmul.f32 %v6177_v57, %v7491_v30  ;;  %v1347_v63 = vsel %vm1346_vm13, %v6173_v16, %v1343_v9  ;;  %v6179_v40 = vpop.eup %6178  ;;  %v9910_v9 = vld [vmem:[#allocation135_spill] sm:$0xff]  ;;  %vm1375_vm1 = vweird.f32 %v6177_v57 }
 0x1d3   :  { %v1352_v5 = vsel %vm1349_vm14, %v1351_v20, %v1347_v63  ;;  %v1362_v17 = vsel %vm1361_vm15, %v6175_v14, %v1358_v13  ;;  %vm1376_vm3 = vmor %vm1374_vm2, %vm1375_vm1  ;;  %v5757_v13 = vld [vmem:[#allocation11 + $0xf0] sm:$0xf0] }
 0x1d4   :  { %v1371_v10 = vsub.f32 1.0, %v1370_v55  ;;  %1574 = vmatpush.bf16.msrb.mxu0 %v9904_v33  ;;  %1587 = vmatpush.bf16.msra.mxu1 %v9905_v31  ;;  %v1367_v43 = vsel %vm1364_vm0, %v1366_v54, %v1362_v17  ;;  %v1386_v32 = vmul.f32 %v6179_v40, %v1352_v5  ;;  %v1380_v40 = vand.u32 2147483648, %v7491_v30  ;;  %v5763_v54 = vld [vmem:[#allocation11 + $0xe8] sm:$0xf] }
 0x1d5   :  { %1600 = vmatpush.bf16.msra.mxu2 %v9906_v12  ;;  %1613 = vmatpush.bf16.msrb.mxu3 %v9907_v4  ;;  %v1385_v25 = vmul.f32 0.0, %v1367_v43  ;;  %v1378_v5 = vand.u32 2147483647, %v7491_v30  ;;  %v6110_v30 = vld [vmem:[#allocation11 + $0xe4] sm:$0xf] }
 0x1d6   :  { %v1372_v59 = vmul.f32 %v6177_v57, %v1371_v10  ;;  %v1381_v14 = vor.u32 1.1754944e-38, %v1380_v40  ;;  %v5755_v10 = vld [vmem:[#allocation11 + $0xe0] sm:$0xf]  ;;  %v6111_v43 = vld [vmem:[#allocation11 + $0xec] sm:$0xf]  ;;  %v7533_v40 = vor.u32 %v6110_v30, %v5757_v13 }
 0x1d7   :  { %v7511_v16 = vadd.f32 %v1386_v32, %v1385_v25  ;;  %vm1379_vm4 = vcmp.eq.f32.partialorder %v1378_v5, 8.507059e+37  ;;  %v6112_v32 = vld [vmem:[#allocation11 + $0xec] sm:$0xf0]  ;;  %v5739_v5 = vld [vmem:[#allocation11 + $0xc0] sm:$0xf] }
 0x1d8   :  { %1575 = vmatpush.bf16.msrb.mxu0 %v9909_v45  ;;  %1588 = vmatpush.bf16.msra.mxu1 %v9910_v9  ;;  %v1373_v63 = vadd.f32 %v6177_v57, %v1372_v59  ;;  %v5765_v59 = vld [vmem:[#allocation11 + $0xf8] sm:$0xf0]  ;;  %9912 = vst [vmem:[#allocation147_spill] sm:$0xff] %v7533_v40  ;;  %v5723_v30 = vld [vmem:[#allocation11 + $0xa0] sm:$0xf] }
 0x1d9   :  { %9908 = vst [vmem:[#allocation113_spill] sm:$0xff] %v7511_v16  ;;  %1601 = vmatpush.bf16.msra.mxu2 %v7329_v44  ;;  %1614 = vmatpush.bf16.msrb.mxu3 %v7331_v62  ;;  %6180 = vtanh.f32 %v7511_v16  ;;  %v7537_v16 = vor.u32 %v6111_v43, %v5765_v59  ;;  %v6104_v13 = vld [vmem:[#allocation11 + $0xac] sm:$0xf0]  ;;  %v6102_v43 = vld [vmem:[#allocation11 + $0xa4] sm:$0xf] }
 0x1da   :  { %v1377_v15 = vsel %vm1376_vm3, %v6177_v57, %v1373_v63  ;;  %v6113_v57 = vld [vmem:[#allocation11 + $0xf4] sm:$0xf0]  ;;  %v7531_v63 = vor.u32 %v6112_v32, %v5755_v10  ;;  %v5725_v59 = vld [vmem:[#allocation11 + $0xb0] sm:$0xf0]  ;;  %v5875_v62 = vld [vmem:[#allocation9 + $0xc8] sm:$0xf] }
 0x1db   :  { %v1382_v20 = vsel %vm1379_vm4, %v1381_v14, %v1377_v15  ;;  %v6108_v15 = vld [vmem:[#allocation11 + $0xcc] sm:$0xf0]  ;;  %v7535_v14 = vor.u32 %v6113_v57, %v5763_v54  ;;  %9914 = vst [vmem:[#allocation149_spill] sm:$0xff] %v7537_v16 }
 0x1dc   :  { %1576 = vmatpush.bf16.msrb.mxu0 %v7335_v39  ;;  %1589 = vmatpush.bf16.msra.mxu1 %v7337_v50  ;;  %9911 = vst [vmem:[#allocation146_spill] sm:$0xff] %v7531_v63  ;;  %v7545_v10 = vor.u32 %v6108_v15, %v5739_v5  ;;  %v7557_v5 = vor.u32 %v6104_v13, %v5723_v30  ;;  %v5869_v39 = vld [vmem:[#allocation9 + $0xd0] sm:$0xf0] }
 0x1dd   :  { %1602 = vmatpush.bf16.msra.mxu2 %v7341_v29  ;;  %1615 = vmatpush.bf16.msrb.mxu3 %v7343_v58  ;;  %9913 = vst [vmem:[#allocation148_spill] sm:$0xff] %v7535_v14  ;;  %v6103_v58 = vld [vmem:[#allocation11 + $0xac] sm:$0xf]  ;;  %v7559_v15 = vor.u32 %v6102_v43, %v5725_v59  ;;  %v5691_v43 = vld [vmem:[#allocation11 + $0x60] sm:$0xf] }
 0x1de   :  { %9915 = vst [vmem:[#allocation150_spill] sm:$0xff] %v7545_v10  ;;  %v6096_v59 = vld [vmem:[#allocation11 + $0x6c] sm:$0xf0] }
 0x1df   :  { %v6181_v55 = vpop.eup %6180  ;;  %9919 = vst [vmem:[#allocation154_spill] sm:$0xff] %v7557_v5 }
 0x1e0   :  { %1577 = vmatpush.bf16.msrb.mxu0 %v7347_v34  ;;  %1590 = vmatpush.bf16.msra.mxu1 %v7349_v19  ;;  %v1389_v17 = vmul.f32 %v6181_v55, %v1382_v20  ;;  %v6106_v55 = vld [vmem:[#allocation11 + $0xc4] sm:$0xf]  ;;  %v5741_v20 = vld [vmem:[#allocation11 + $0xd0] sm:$0xf0]  ;;  %v5749_v19 = vld [vmem:[#allocation11 + $0xd8] sm:$0xf0] }
 0x1e1   :  { %1603 = vmatpush.bf16.msra.mxu2 %v7353_v27  ;;  %1616 = vmatpush.bf16.msrb.mxu3 %v7355_v56  ;;  %v5747_v27 = vld [vmem:[#allocation11 + $0xc8] sm:$0xf]  ;;  %v6109_v56 = vld [vmem:[#allocation11 + $0xd4] sm:$0xf0]  ;;  %v7547_v32 = vor.u32 %v6106_v55, %v5741_v20  ;;  %9920 = vst [vmem:[#allocation155_spill] sm:$0xff] %v7559_v15 }
 0x1e2   :  { %v7529_v25 = vpack.c.bf16 %v1389_v17, %v1389_v17  ;;  %v6107_v17 = vld [vmem:[#allocation11 + $0xcc] sm:$0xf]  ;;  %v7551_v54 = vor.u32 %v6109_v56, %v5747_v27  ;;  %v5731_v34 = vld [vmem:[#allocation11 + $0xa8] sm:$0xf]  ;;  %v5707_v55 = vld [vmem:[#allocation11 + $0x80] sm:$0xf] }
 0x1e3   :  { %9916 = vst [vmem:[#allocation151_spill] sm:$0xff] %v7547_v32  ;;  %v7553_v57 = vor.u32 %v6107_v17, %v5749_v19  ;;  %v6100_v20 = vld [vmem:[#allocation11 + $0x8c] sm:$0xf0]  ;;  %v6098_v56 = vld [vmem:[#allocation11 + $0x84] sm:$0xf] }
 0x1e4   :  { %1526 = vmatmul.bf16.vlgmr.msra.gmra.mxu0 %v7529_v25  ;;  %1539 = vmatmul.bf16.vlgmr.msrb.gmra.mxu1 %v7529_v25  ;;  %9917 = vst [vmem:[#allocation152_spill] sm:$0xff] %v7551_v54  ;;  %v5709_v17 = vld [vmem:[#allocation11 + $0x90] sm:$0xf0]  ;;  %v7569_v30 = vor.u32 %v6100_v20, %v5707_v55  ;;  %v7581_v55 = vor.u32 %v6096_v59, %v5691_v43  ;;  %v6093_v43 = vld [vmem:[#allocation11 + $0x54] sm:$0xf0] }
 0x1e5   :  { %1552 = vmatmul.bf16.vlgmr.msrb.gmra.mxu2 %v7529_v25  ;;  %1565 = vmatmul.bf16.vlgmr.msra.gmra.mxu3 %v7529_v25  ;;  %9918 = vst [vmem:[#allocation153_spill] sm:$0xff] %v7553_v57  ;;  %v7571_v13 = vor.u32 %v6098_v56, %v5709_v17  ;;  %v5675_v56 = vld [vmem:[#allocation11 + $0x40] sm:$0xf]  ;;  %v6092_v17 = vld [vmem:[#allocation11 + $0x4c] sm:$0xf0] }
 0x1e6   :  { %1913 = vmatpush.bf16.msra.mxu0 %v7531_v63  ;;  %1926 = vmatpush.bf16.msrb.mxu1 %v7533_v40  ;;  %v6105_v63 = vld [vmem:[#allocation11 + $0xb4] sm:$0xf0]  ;;  %v5733_v40 = vld [vmem:[#allocation11 + $0xb8] sm:$0xf0]  ;;  %9923 = vst [vmem:[#allocation158_spill] sm:$0xff] %v7569_v30 }
 0x1e7   :  { %1939 = vmatpush.bf16.msrb.mxu2 %v7535_v14  ;;  %1952 = vmatpush.bf16.msra.mxu3 %v7537_v16  ;;  %v7563_v19 = vor.u32 %v6105_v63, %v5731_v34  ;;  %v7565_v27 = vor.u32 %v6103_v58, %v5733_v40  ;;  %v5715_v16 = vld [vmem:[#allocation11 + $0x88] sm:$0xf]  ;;  %v6099_v14 = vld [vmem:[#allocation11 + $0x8c] sm:$0xf]  ;;  %9924 = vst [vmem:[#allocation159_spill] sm:$0xff] %v7571_v13 }
 0x1e8   :  { %v6094_v63 = vld [vmem:[#allocation11 + $0x64] sm:$0xf]  ;;  %v5693_v40 = vld [vmem:[#allocation11 + $0x70] sm:$0xf0]  ;;  %9927 = vst [vmem:[#allocation162_spill] sm:$0xff] %v7581_v55 }
 0x1e9   :  { %9921 = vst [vmem:[#allocation156_spill] sm:$0xff] %v7563_v19  ;;  %v7583_v20 = vor.u32 %v6094_v63, %v5693_v40  ;;  %v6091_v59 = vld [vmem:[#allocation11 + $0x4c] sm:$0xf]  ;;  %v5685_v63 = vld [vmem:[#allocation11 + $0x58] sm:$0xf0] }
 0x1ea   :  { %1914 = vmatpush.bf16.msra.mxu0 %v7545_v10  ;;  %1927 = vmatpush.bf16.msrb.mxu1 %v7547_v32  ;;  %9922 = vst [vmem:[#allocation157_spill] sm:$0xff] %v7565_v27  ;;  %v6101_v10 = vld [vmem:[#allocation11 + $0x94] sm:$0xf0]  ;;  %v5717_v32 = vld [vmem:[#allocation11 + $0x98] sm:$0xf0] }
 0x1eb   :  { %1940 = vmatpush.bf16.msrb.mxu2 %v7551_v54  ;;  %1953 = vmatpush.bf16.msra.mxu3 %v7553_v57  ;;  %v7575_v58 = vor.u32 %v6101_v10, %v5715_v16  ;;  %v7577_v34 = vor.u32 %v6099_v14, %v5717_v32  ;;  %v5699_v57 = vld [vmem:[#allocation11 + $0x68] sm:$0xf]  ;;  %v6095_v54 = vld [vmem:[#allocation11 + $0x6c] sm:$0xf]  ;;  %9928 = vst [vmem:[#allocation163_spill] sm:$0xff] %v7583_v20 }
 0x1ec   :  { %v6090_v10 = vld [vmem:[#allocation11 + $0x44] sm:$0xf]  ;;  %v5677_v32 = vld [vmem:[#allocation11 + $0x50] sm:$0xf0] }
 0x1ed   :  { %9925 = vst [vmem:[#allocation160_spill] sm:$0xff] %v7575_v58 }
 0x1ee   :  { %1915 = vmatpush.bf16.msra.mxu0 %v7557_v5  ;;  %1928 = vmatpush.bf16.msrb.mxu1 %v7559_v15  ;;  %9926 = vst [vmem:[#allocation161_spill] sm:$0xff] %v7577_v34  ;;  %v6097_v5 = vld [vmem:[#allocation11 + $0x74] sm:$0xf0]  ;;  %v5701_v15 = vld [vmem:[#allocation11 + $0x78] sm:$0xf0] }
 0x1ef   :  { %1941 = vmatpush.bf16.msrb.mxu2 %v7563_v19  ;;  %1954 = vmatpush.bf16.msra.mxu3 %v7565_v27  ;;  %v7587_v16 = vor.u32 %v6097_v5, %v5699_v57  ;;  %v7589_v14 = vor.u32 %v6095_v54, %v5701_v15  ;;  %v5683_v27 = vld [vmem:[#allocation11 + $0x48] sm:$0xf]  ;;  %v7597_v54 = vor.u32 %v6092_v17, %v5675_v56  ;;  %v5659_v5 = vld [vmem:[#allocation11 + $0x20] sm:$0xf]  ;;  %v6088_v15 = vld [vmem:[#allocation11 + $0x2c] sm:$0xf0] }
 0x1f0   :  { %v7599_v57 = vor.u32 %v6090_v10, %v5677_v32  ;;  %v7603_v40 = vor.u32 %v6093_v43, %v5683_v27  ;;  %v5643_v56 = vld [vmem:[#allocation11] sm:$0xf]  ;;  %v7609_v17 = vor.u32 %v6088_v15, %v5659_v5  ;;  %v6084_v32 = vld [vmem:[#allocation11 + $0xc] sm:$0xf0]  ;;  %v6082_v27 = vld [vmem:[#allocation11 + $0x4] sm:$0xf] }
 0x1f1   :  { %9929 = vst [vmem:[#allocation164_spill] sm:$0xff] %v7587_v16  ;;  %v5645_v43 = vld [vmem:[#allocation11 + $0x10] sm:$0xf0]  ;;  %v5653_v19 = vld [vmem:[#allocation11 + $0x18] sm:$0xf0] }
 0x1f2   :  { %1916 = vmatpush.bf16.msra.mxu0 %v7569_v30  ;;  %1929 = vmatpush.bf16.msrb.mxu1 %v7571_v13  ;;  %9930 = vst [vmem:[#allocation165_spill] sm:$0xff] %v7589_v14  ;;  %v5667_v13 = vld [vmem:[#allocation11 + $0x28] sm:$0xf]  ;;  %v6087_v30 = vld [vmem:[#allocation11 + $0x2c] sm:$0xf] }
 0x1f3   :  { %1942 = vmatpush.bf16.msrb.mxu2 %v7575_v58  ;;  %1955 = vmatpush.bf16.msra.mxu3 %v7577_v34  ;;  %9931 = vst [vmem:[#allocation166_spill] sm:$0xff] %v7597_v54  ;;  %v7605_v34 = vor.u32 %v6091_v59, %v5685_v63  ;;  %v6086_v58 = vld [vmem:[#allocation11 + $0x24] sm:$0xf]  ;;  %v6080_v5 = vld [vmem:[#allocation9 + $0xec] sm:$0xf0] }
 0x1f4   :  { %1578 = vmatmul.bf16.vlgmr.msrb.gmra.mxu0 %v7475_v46  ;;  %1591 = vmatmul.bf16.vlgmr.msra.gmra.mxu1 %v7475_v46  ;;  %9932 = vst [vmem:[#allocation167_spill] sm:$0xff] %v7599_v57  ;;  %v6078_v15 = vld [vmem:[#allocation9 + $0xe4] sm:$0xf] }
 0x1f5   :  { %1604 = vmatmul.bf16.vlgmr.msra.gmra.mxu2 %v7475_v46  ;;  %1617 = vmatmul.bf16.vlgmr.msrb.gmra.mxu3 %v7475_v46  ;;  %9933 = vst [vmem:[#allocation168_spill] sm:$0xff] %v7603_v40  ;;  %v5661_v46 = vld [vmem:[#allocation11 + $0x30] sm:$0xf0] }
 0x1f6   :  { %1917 = vmatpush.bf16.msra.mxu0 %v7581_v55  ;;  %1930 = vmatpush.bf16.msrb.mxu1 %v7583_v20  ;;  %9934 = vst [vmem:[#allocation169_spill] sm:$0xff] %v7605_v34  ;;  %v6089_v55 = vld [vmem:[#allocation11 + $0x34] sm:$0xf0]  ;;  %v5669_v20 = vld [vmem:[#allocation11 + $0x38] sm:$0xf0]  ;;  %v7611_v10 = vor.u32 %v6086_v58, %v5661_v46 }
 0x1f7   :  { %1943 = vmatpush.bf16.msrb.mxu2 %v7587_v16  ;;  %1956 = vmatpush.bf16.msra.mxu3 %v7589_v14  ;;  %9935 = vst [vmem:[#allocation170_spill] sm:$0xff] %v7609_v17  ;;  %v7615_v59 = vor.u32 %v6089_v55, %v5667_v13  ;;  %v7617_v63 = vor.u32 %v6087_v30, %v5669_v20  ;;  %v5651_v14 = vld [vmem:[#allocation11 + $0x8] sm:$0xf]  ;;  %v6085_v16 = vld [vmem:[#allocation11 + $0x14] sm:$0xf0] }
 0x1f8   :  { %9936 = vst [vmem:[#allocation171_spill] sm:$0xff] %v7611_v10  ;;  %v5885_v58 = vld [vmem:[#allocation9 + $0xf0] sm:$0xf0]  ;;  %v5891_v46 = vld [vmem:[#allocation9 + $0xe8] sm:$0xf]  ;;  %v7627_v20 = vor.u32 %v6085_v16, %v5651_v14 }
 0x1f9   :  { %9937 = vst [vmem:[#allocation172_spill] sm:$0xff] %v7615_v59  ;;  %v6081_v13 = vld [vmem:[#allocation9 + $0xf4] sm:$0xf0]  ;;  %v6079_v30 = vld [vmem:[#allocation9 + $0xec] sm:$0xf] }
 0x1fa   :  { %1918 = vmatpush.bf16.msra.mxu0 %v7597_v54  ;;  %1931 = vmatpush.bf16.msrb.mxu1 %v7599_v57  ;;  %9938 = vst [vmem:[#allocation173_spill] sm:$0xff] %v7617_v63  ;;  %v6083_v54 = vld [vmem:[#allocation11 + $0xc] sm:$0xf]  ;;  %v5883_v57 = vld [vmem:[#allocation9 + $0xe0] sm:$0xf] }
 0x1fb   :  { %1944 = vmatpush.bf16.msrb.mxu2 %v7603_v40  ;;  %1957 = vmatpush.bf16.msra.mxu3 %v7605_v34  ;;  %v7621_v40 = vor.u32 %v6084_v32, %v5643_v56  ;;  %v7623_v34 = vor.u32 %v6082_v27, %v5645_v43  ;;  %v5893_v55 = vld [vmem:[#allocation9 + $0xf8] sm:$0xf0]  ;;  %v7629_v29 = vor.u32 %v6083_v54, %v5653_v19  ;;  %v6076_v56 = vld [vmem:[#allocation9 + $0xcc] sm:$0xf0]  ;;  %v6074_v43 = vld [vmem:[#allocation9 + $0xc4] sm:$0xf] }
 0x1fc   :  { %v7631_v50 = vor.u32 %v6080_v5, %v5883_v57  ;;  %v7635_v32 = vor.u32 %v6081_v13, %v5891_v46  ;;  %v7637_v27 = vor.u32 %v6079_v30, %v5893_v55  ;;  %v6077_v16 = vld [vmem:[#allocation9 + $0xd4] sm:$0xf0]  ;;  %v6075_v19 = vld [vmem:[#allocation9 + $0xcc] sm:$0xf]  ;;  %v5877_v14 = vld [vmem:[#allocation9 + $0xd8] sm:$0xf0]  ;;  %v7647_v57 = vor.u32 %v6074_v43, %v5869_v39 }
 0x1fd   :  { %9939 = vst [vmem:[#allocation174_spill] sm:$0xff] %v7621_v40  ;;  %v5851_v5 = vld [vmem:[#allocation9 + $0xa0] sm:$0xf]  ;;  %v7653_v46 = vor.u32 %v6075_v19, %v5877_v14  ;;  %v6070_v13 = vld [vmem:[#allocation9 + $0xa4] sm:$0xf] }
 0x1fe   :  { %1919 = vmatpush.bf16.msra.mxu0 %v7609_v17  ;;  %1932 = vmatpush.bf16.msrb.mxu1 %v7611_v10  ;;  %9940 = vst [vmem:[#allocation175_spill] sm:$0xff] %v7623_v34  ;;  %v7633_v17 = vor.u32 %v6078_v15, %v5885_v58  ;;  %v5867_v10 = vld [vmem:[#allocation9 + $0xc0] sm:$0xf]  ;;  %v6072_v15 = vld [vmem:[#allocation9 + $0xac] sm:$0xf0]  ;;  %v7651_v58 = vor.u32 %v6077_v16, %v5875_v62 }
 0x1ff   :  { %1945 = vmatpush.bf16.msrb.mxu2 %v7615_v59  ;;  %1958 = vmatpush.bf16.msra.mxu3 %v7617_v63  ;;  %9941 = vst [vmem:[#allocation176_spill] sm:$0xff] %v7629_v29  ;;  %v7645_v54 = vor.u32 %v6076_v56, %v5867_v10  ;;  %v5853_v30 = vld [vmem:[#allocation9 + $0xb0] sm:$0xf0]  ;;  %v5859_v55 = vld [vmem:[#allocation9 + $0xa8] sm:$0xf]  ;;  %v7661_v62 = vor.u32 %v6072_v15, %v5851_v5 }
 0x200   :  { %9942 = vst [vmem:[#allocation177_spill] sm:$0xff] %v7631_v50  ;;  %v6073_v10 = vld [vmem:[#allocation9 + $0xb4] sm:$0xf0]  ;;  %v6071_v39 = vld [vmem:[#allocation9 + $0xac] sm:$0xf]  ;;  %v7663_v43 = vor.u32 %v6070_v13, %v5853_v30 }
 0x201   :  { %9943 = vst [vmem:[#allocation178_spill] sm:$0xff] %v7633_v17  ;;  %v5861_v56 = vld [vmem:[#allocation9 + $0xb8] sm:$0xf0]  ;;  %v5835_v16 = vld [vmem:[#allocation9 + $0x80] sm:$0xf]  ;;  %v7667_v14 = vor.u32 %v6073_v10, %v5859_v55 }
 0x202   :  { %9944 = vst [vmem:[#allocation179_spill] sm:$0xff] %v7635_v32  ;;  %1920 = vmatpush.bf16.msra.mxu0 %v7621_v40  ;;  %1933 = vmatpush.bf16.msrb.mxu1 %v7623_v34  ;;  %v6068_v19 = vld [vmem:[#allocation9 + $0x8c] sm:$0xf0]  ;;  %v5819_v13 = vld [vmem:[#allocation9 + $0x60] sm:$0xf] }
 0x203   :  { %9945 = vst [vmem:[#allocation180_spill] sm:$0xff] %v7637_v27  ;;  %1946 = vmatpush.bf16.msrb.mxu2 %v7627_v20  ;;  %1959 = vmatpush.bf16.msra.mxu3 %v7629_v29  ;;  %v6067_v29 = vld [vmem:[#allocation9 + $0x8c] sm:$0xf]  ;;  %v7673_v5 = vor.u32 %v6068_v19, %v5835_v16  ;;  %v6064_v30 = vld [vmem:[#allocation9 + $0x6c] sm:$0xf0] }
 0x204   :  { %9946 = vst [vmem:[#allocation181_spill] sm:$0xff] %v7645_v54  ;;  %v5803_v19 = vld [vmem:[#allocation9 + $0x40] sm:$0xf] }
 0x205   :  { %9947 = vst [vmem:[#allocation182_spill] sm:$0xff] %v7647_v57 }
 0x206   :  { %2125 = vmatpush.bf16.msrb.mxu0 %v7631_v50  ;;  %2138 = vmatpush.bf16.msra.mxu1 %v7633_v17  ;;  %9948 = vst [vmem:[#allocation183_spill] sm:$0xff] %v7651_v58  ;;  %v9950_v50 = vmov 0   ;;  %v5843_v17 = vld [vmem:[#allocation9 + $0x88] sm:$0xf] }
 0x207   :  { %2151 = vmatpush.bf16.msra.mxu2 %v7635_v32  ;;  %2164 = vmatpush.bf16.msrb.mxu3 %v7637_v27  ;;  %9949 = vst [vmem:[#allocation184_spill] sm:$0xff] %v7653_v46  ;;  %v7669_v27 = vor.u32 %v6071_v39, %v5861_v56  ;;  %v6066_v32 = vld [vmem:[#allocation9 + $0x84] sm:$0xf]  ;;  %v5821_v56 = vld [vmem:[#allocation9 + $0x70] sm:$0xf0] }
 0x208   :  { %1921 = vmatmul.bf16.vlgmr.msra.gmra.mxu0 %v9950_v50  ;;  %1934 = vmatmul.bf16.vlgmr.msrb.gmra.mxu1 %v9950_v50  ;;  %9951 = vst [vmem:[#allocation185_spill] sm:$0xff] %v7661_v62  ;;  %v6062_v39 = vld [vmem:[#allocation9 + $0x64] sm:$0xf] }
 0x209   :  { %1947 = vmatmul.bf16.vlgmr.msrb.gmra.mxu2 %v9950_v50  ;;  %1960 = vmatmul.bf16.vlgmr.msra.gmra.mxu3 %v9950_v50  ;;  %9952 = vst [vmem:[#allocation186_spill] sm:$0xff] %v7663_v43  ;;  %v5837_v50 = vld [vmem:[#allocation9 + $0x90] sm:$0xf0]  ;;  %v7687_v16 = vor.u32 %v6062_v39, %v5821_v56  ;;  %v5787_v39 = vld [vmem:[#allocation9 + $0x20] sm:$0xf] }
 0x20a   :  { %2126 = vmatpush.bf16.msrb.mxu0 %v7645_v54  ;;  %2139 = vmatpush.bf16.msra.mxu1 %v7647_v57  ;;  %9953 = vst [vmem:[#allocation187_spill] sm:$0xff] %v7667_v14  ;;  %v6069_v54 = vld [vmem:[#allocation9 + $0x94] sm:$0xf0]  ;;  %v5845_v57 = vld [vmem:[#allocation9 + $0x98] sm:$0xf0]  ;;  %v7675_v15 = vor.u32 %v6066_v32, %v5837_v50  ;;  %v7685_v32 = vor.u32 %v6064_v30, %v5819_v13 }
 0x20b   :  { %2152 = vmatpush.bf16.msra.mxu2 %v7651_v58  ;;  %2165 = vmatpush.bf16.msrb.mxu3 %v7653_v46  ;;  %9954 = vst [vmem:[#allocation188_spill] sm:$0xff] %v7669_v27  ;;  %v7679_v55 = vor.u32 %v6069_v54, %v5843_v17  ;;  %v7681_v10 = vor.u32 %v6067_v29, %v5845_v57  ;;  %v5827_v46 = vld [vmem:[#allocation9 + $0x68] sm:$0xf]  ;;  %v6063_v58 = vld [vmem:[#allocation9 + $0x6c] sm:$0xf] }
 0x20c   :  { %9955 = vst [vmem:[#allocation189_spill] sm:$0xff] %v7673_v5  ;;  %v6060_v50 = vld [vmem:[#allocation9 + $0x4c] sm:$0xf0]  ;;  %v6058_v54 = vld [vmem:[#allocation9 + $0x44] sm:$0xf] }
 0x20d   :  { %9956 = vst [vmem:[#allocation190_spill] sm:$0xff] %v7675_v15  ;;  %v5805_v57 = vld [vmem:[#allocation9 + $0x50] sm:$0xf0]  ;;  %v7697_v13 = vor.u32 %v6060_v50, %v5803_v19  ;;  %v6056_v56 = vld [vmem:[#allocation9 + $0x2c] sm:$0xf0] }
 0x20e   :  { %2127 = vmatpush.bf16.msrb.mxu0 %v7661_v62  ;;  %2140 = vmatpush.bf16.msra.mxu1 %v7663_v43  ;;  %9957 = vst [vmem:[#allocation191_spill] sm:$0xff] %v7679_v55  ;;  %v6065_v62 = vld [vmem:[#allocation9 + $0x74] sm:$0xf0]  ;;  %v5829_v43 = vld [vmem:[#allocation9 + $0x78] sm:$0xf0]  ;;  %v7699_v30 = vor.u32 %v6058_v54, %v5805_v57  ;;  %v7709_v19 = vor.u32 %v6056_v56, %v5787_v39 }
 0x20f   :  { %2153 = vmatpush.bf16.msra.mxu2 %v7667_v14  ;;  %2166 = vmatpush.bf16.msrb.mxu3 %v7669_v27  ;;  %9958 = vst [vmem:[#allocation192_spill] sm:$0xff] %v7681_v10  ;;  %v7691_v29 = vor.u32 %v6065_v62, %v5827_v46  ;;  %v7693_v17 = vor.u32 %v6063_v58, %v5829_v43  ;;  %v5811_v27 = vld [vmem:[#allocation9 + $0x48] sm:$0xf]  ;;  %v6059_v14 = vld [vmem:[#allocation9 + $0x4c] sm:$0xf] }
 0x210   :  { %9959 = vst [vmem:[#allocation193_spill] sm:$0xff] %v7685_v32  ;;  %v6054_v62 = vld [vmem:[#allocation9 + $0x24] sm:$0xf]  ;;  %v5789_v43 = vld [vmem:[#allocation9 + $0x30] sm:$0xf0] }
 0x211   :  { %9960 = vst [vmem:[#allocation194_spill] sm:$0xff] %v7687_v16  ;;  %v7711_v50 = vor.u32 %v6054_v62, %v5789_v43  ;;  %v5771_v54 = vld [vmem:[#allocation9] sm:$0xf]  ;;  %v6052_v57 = vld [vmem:[#allocation9 + $0xc] sm:$0xf0] }
 0x212   :  { %2128 = vmatpush.bf16.msrb.mxu0 %v7673_v5  ;;  %2141 = vmatpush.bf16.msra.mxu1 %v7675_v15  ;;  %9961 = vst [vmem:[#allocation195_spill] sm:$0xff] %v7691_v29  ;;  %v6061_v5 = vld [vmem:[#allocation9 + $0x54] sm:$0xf0]  ;;  %v5813_v15 = vld [vmem:[#allocation9 + $0x58] sm:$0xf0]  ;;  %v7721_v39 = vor.u32 %v6052_v57, %v5771_v54  ;;  %v9981_v54 = vld [vmem:[#allocation40_spill] sm:$0xff] }
 0x213   :  { %2154 = vmatpush.bf16.msra.mxu2 %v7679_v55  ;;  %2167 = vmatpush.bf16.msrb.mxu3 %v7681_v10  ;;  %9962 = vst [vmem:[#allocation196_spill] sm:$0xff] %v7693_v17  ;;  %v7703_v58 = vor.u32 %v6061_v5, %v5811_v27  ;;  %v7705_v46 = vor.u32 %v6059_v14, %v5813_v15  ;;  %v5795_v10 = vld [vmem:[#allocation9 + $0x28] sm:$0xf]  ;;  %v6055_v55 = vld [vmem:[#allocation9 + $0x2c] sm:$0xf]  ;;  %v9982_v57 = vld [vmem:[#allocation48_spill] sm:$0xff] }
 0x214   :  { %9963 = vst [vmem:[#allocation197_spill] sm:$0xff] %v7697_v13  ;;  %v6050_v5 = vld [vmem:[#allocation9 + $0x4] sm:$0xf]  ;;  %v5773_v15 = vld [vmem:[#allocation9 + $0x10] sm:$0xf0] }
 0x215   :  { %9964 = vst [vmem:[#allocation198_spill] sm:$0xff] %v7699_v30  ;;  %v7723_v56 = vor.u32 %v6050_v5, %v5773_v15  ;;  %v9983_v5 = vld [vmem:[#allocation55_spill] sm:$0xff] }
 0x216   :  { %2129 = vmatpush.bf16.msrb.mxu0 %v7685_v32  ;;  %2142 = vmatpush.bf16.msra.mxu1 %v7687_v16  ;;  %9965 = vst [vmem:[#allocation199_spill] sm:$0xff] %v7703_v58  ;;  %v6057_v32 = vld [vmem:[#allocation9 + $0x34] sm:$0xf0]  ;;  %v5797_v16 = vld [vmem:[#allocation9 + $0x38] sm:$0xf0] }
 0x217   :  { %2155 = vmatpush.bf16.msra.mxu2 %v7691_v29  ;;  %2168 = vmatpush.bf16.msrb.mxu3 %v7693_v17  ;;  %9966 = vst [vmem:[#allocation200_spill] sm:$0xff] %v7705_v46  ;;  %v7715_v27 = vor.u32 %v6057_v32, %v5795_v10  ;;  %v7717_v14 = vor.u32 %v6055_v55, %v5797_v16  ;;  %v5779_v17 = vld [vmem:[#allocation9 + $0x8] sm:$0xf]  ;;  %v6051_v29 = vld [vmem:[#allocation9 + $0xc] sm:$0xf]  ;;  %v9976_v32 = vld [vmem:[#allocation44_spill] sm:$0xff] }
 0x218   :  { %9967 = vst [vmem:[#allocation201_spill] sm:$0xff] %v7709_v19  ;;  %v9977_v16 = vld [vmem:[#allocation57_spill] sm:$0xff] }
 0x219   :  { %9968 = vst [vmem:[#allocation202_spill] sm:$0xff] %v7711_v50 }
 0x21a   :  { %2130 = vmatpush.bf16.msrb.mxu0 %v7697_v13  ;;  %2143 = vmatpush.bf16.msra.mxu1 %v7699_v30  ;;  %9969 = vst [vmem:[#allocation203_spill] sm:$0xff] %v7715_v27  ;;  %v6053_v13 = vld [vmem:[#allocation9 + $0x14] sm:$0xf0]  ;;  %v5781_v30 = vld [vmem:[#allocation9 + $0x18] sm:$0xf0] }
 0x21b   :  { %2156 = vmatpush.bf16.msra.mxu2 %v7703_v58  ;;  %2169 = vmatpush.bf16.msrb.mxu3 %v7705_v46  ;;  %9970 = vst [vmem:[#allocation204_spill] sm:$0xff] %v7717_v14  ;;  %v7727_v55 = vor.u32 %v6053_v13, %v5779_v17  ;;  %v7729_v10 = vor.u32 %v6051_v29, %v5781_v30  ;;  %v9978_v29 = vld [vmem:[#allocation66_spill] sm:$0xff]  ;;  %v9979_v13 = vld [vmem:[#allocation45_spill] sm:$0xff]  ;;  %v9980_v30 = vld [vmem:[#allocation43_spill] sm:$0xff] }
 0x21c   :  { %9971 = vst [vmem:[#allocation205_spill] sm:$0xff] %v7721_v39  ;;  %v249_v17 = vadd.f32 %v9978_v29, %v9977_v16  ;;  %v9986_v29 = vld [vmem:[#allocation47_spill] sm:$0xff]  ;;  %v9987_v16 = vld [vmem:[#allocation46_spill] sm:$0xff] }
 0x21d   :  { %9972 = vst [vmem:[#allocation206_spill] sm:$0xff] %v7723_v56 }
 0x21e   :  { %2131 = vmatpush.bf16.msrb.mxu0 %v7709_v19  ;;  %2144 = vmatpush.bf16.msra.mxu1 %v7711_v50  ;;  %9973 = vst [vmem:[#allocation207_spill] sm:$0xff] %v7727_v55 }
 0x21f   :  { %2157 = vmatpush.bf16.msra.mxu2 %v7715_v27  ;;  %2170 = vmatpush.bf16.msrb.mxu3 %v7717_v14  ;;  %9974 = vst [vmem:[#allocation208_spill] sm:$0xff] %v7729_v10 }
 0x222   :  { %2132 = vmatpush.bf16.msrb.mxu0 %v7721_v39  ;;  %2145 = vmatpush.bf16.msra.mxu1 %v7723_v56 }
 0x223   :  { %2158 = vmatpush.bf16.msra.mxu2 %v7727_v55  ;;  %2171 = vmatpush.bf16.msrb.mxu3 %v7729_v10 }
 0x225   :  { %2133 = vmatmul.bf16.vlgmr.msrb.gmra.mxu0 %v7529_v25  ;;  %2146 = vmatmul.bf16.vlgmr.msra.gmra.mxu1 %v7529_v25 }
 0x226   :  { %2264 = vmatpush.bf16.msra.mxu0 %v6830_v21  ;;  %2277 = vmatpush.bf16.msrb.mxu1 %v6876_v48 }
 0x227   :  { %2159 = vmatmul.bf16.vlgmr.msra.gmra.mxu2 %v7529_v25  ;;  %2172 = vmatmul.bf16.vlgmr.msrb.gmra.mxu3 %v7529_v25  ;;  %v9975_v25 = vld [vmem:[#allocation36_spill] sm:$0xff] }
 0x228   :  { %2290 = vmatpush.bf16.msrb.mxu2 %v6866_v42  ;;  %2303 = vmatpush.bf16.msra.mxu3 %v6857_v35 }
 0x22a   :  { %2265 = vmatpush.bf16.msra.mxu0 %v6855_v28  ;;  %2278 = vmatpush.bf16.msrb.mxu1 %v6895_v60 }
 0x22c   :  { %2291 = vmatpush.bf16.msrb.mxu2 %v6885_v53  ;;  %2304 = vmatpush.bf16.msra.mxu3 %v6872_v47 }
 0x22e   :  { %2266 = vmatpush.bf16.msra.mxu0 %v6864_v41  ;;  %2279 = vmatpush.bf16.msrb.mxu1 %v6912_v6 }
 0x230   :  { %2292 = vmatpush.bf16.msrb.mxu2 %v6903_v1  ;;  %2305 = vmatpush.bf16.msra.mxu3 %v6897_v61 }
 0x232   :  { %2267 = vmatpush.bf16.msra.mxu0 %v6883_v51  ;;  %2280 = vmatpush.bf16.msrb.mxu1 %v6931_v22  ;;  %v10018_v51 = vld [vmem:[#allocation111_spill] sm:$0xff] }
 0x234   :  { %2293 = vmatpush.bf16.msrb.mxu2 %v6923_v18  ;;  %2306 = vmatpush.bf16.msra.mxu3 %v6917_v7 }
 0x236   :  { %2268 = vmatpush.bf16.msra.mxu0 %v6900_v0  ;;  %2281 = vmatpush.bf16.msrb.mxu1 %v6947_v36  ;;  %v10013_v36 = vld [vmem:[#allocation106_spill] sm:$0xff] }
 0x238   :  { %2294 = vmatpush.bf16.msrb.mxu2 %v6949_v37  ;;  %2307 = vmatpush.bf16.msra.mxu3 %v6934_v24  ;;  %v10010_v24 = vld [vmem:[#allocation103_spill] sm:$0xff]  ;;  %v10012_v37 = vld [vmem:[#allocation105_spill] sm:$0xff] }
 0x23a   :  { %2269 = vmatpush.bf16.msra.mxu0 %v6920_v11  ;;  %2282 = vmatpush.bf16.msrb.mxu1 %v6966_v52 }
 0x23c   :  { %2295 = vmatpush.bf16.msrb.mxu2 %v6960_v49  ;;  %2308 = vmatpush.bf16.msra.mxu3 %v6954_v38  ;;  %v9984_v49 = vld [vmem:[#allocation77_spill] sm:$0xff] }
 0x23e   :  { %2270 = vmatpush.bf16.msra.mxu0 %v9975_v25  ;;  %2283 = vmatpush.bf16.msrb.mxu1 %v9976_v32  ;;  %v9985_v25 = vld [vmem:[#allocation78_spill] sm:$0xff] }
 0x23f   :  { %v1408_v62 = vpop.f32.mrf.mxu0  ;;  %v1421_v43 = vpop.f32.mrf.mxu1 }
 0x240   :  { %2296 = vmatpush.bf16.msrb.mxu2 %v9979_v13  ;;  %2309 = vmatpush.bf16.msra.mxu3 %v9980_v30  ;;  %v1451_v15 = vadd.f32 %v1408_v62, %v9983_v5  ;;  %v1452_v38 = vadd.f32 %v1421_v43, %v249_v17  ;;  %v9988_v30 = vld [vmem:[#allocation79_spill] sm:$0xff]  ;;  %v9989_v13 = vld [vmem:[#allocation80_spill] sm:$0xff] }
 0x241   :  { %v9992_v43 = vld [vmem:[#allocation64_spill] sm:$0xff] }
 0x242   :  { %2271 = vmatpush.bf16.msra.mxu0 %v9981_v54  ;;  %2284 = vmatpush.bf16.msrb.mxu1 %v9982_v57  ;;  %v5635_v32 = vmul.f32 -1.442695, %v1451_v15  ;;  %v5636_v52 = vmul.f32 -1.442695, %v1452_v38  ;;  %v9990_v54 = vld [vmem:[#allocation82_spill] sm:$0xff]  ;;  %v9991_v57 = vld [vmem:[#allocation83_spill] sm:$0xff] }
 0x244   :  { %2297 = vmatpush.bf16.msrb.mxu2 %v9986_v29  ;;  %2310 = vmatpush.bf16.msra.mxu3 %v9987_v16  ;;  %6182 = vpow2.f32 %v5635_v32  ;;  %v9994_v29 = vld [vmem:[#allocation87_spill] sm:$0xff]  ;;  %v9995_v16 = vld [vmem:[#allocation88_spill] sm:$0xff] }
 0x245   :  { %6184 = vpow2.f32 %v5636_v52  ;;  %v9997_v52 = vld [vmem:[#allocation90_spill] sm:$0xff] }
 0x246   :  { %2383 = vmatpush.bf16.msrb.mxu0 %v9984_v49  ;;  %2396 = vmatpush.bf16.msra.mxu1 %v9985_v25  ;;  %v1434_v17 = vpop.f32.mrf.mxu2  ;;  %v1447_v62 = vpop.f32.mrf.mxu3  ;;  %v9993_v25 = vld [vmem:[#allocation84_spill] sm:$0xff] }
 0x247   :  { %v1453_v5 = vadd.f32 %v1434_v17, %v9992_v43  ;;  %v1410_v15 = vpop.f32.mrf.mxu0  ;;  %v1423_v38 = vpop.f32.mrf.mxu1  ;;  %v9999_v43 = vld [vmem:[#allocation92_spill] sm:$0xff] }
 0x248   :  { %2409 = vmatpush.bf16.msra.mxu2 %v9988_v30  ;;  %2422 = vmatpush.bf16.msrb.mxu3 %v9989_v13  ;;  %v9996_v30 = vld [vmem:[#allocation89_spill] sm:$0xff] }
 0x249   :  { %v5637_v32 = vmul.f32 -1.442695, %v1453_v5  ;;  %v10000_v15 = vld [vmem:[#allocation93_spill] sm:$0xff]  ;;  %v10002_v5 = vld [vmem:[#allocation96_spill] sm:$0xff] }
 0x24a   :  { %2384 = vmatpush.bf16.msrb.mxu0 %v9990_v54  ;;  %2397 = vmatpush.bf16.msra.mxu1 %v9991_v57  ;;  %v6183_v13 = vpop.eup %6182  ;;  %v9998_v57 = vld [vmem:[#allocation91_spill] sm:$0xff] }
 0x24b   :  { %v6185_v54 = vpop.eup %6184  ;;  %v1464_v49 = vadd.f32 1.0, %v6183_v13  ;;  %6186 = vpow2.f32 %v5637_v32  ;;  %v10004_v13 = vld [vmem:[#allocation98_spill] sm:$0xff] }
 0x24c   :  { %2410 = vmatpush.bf16.msra.mxu2 %v9993_v25  ;;  %2423 = vmatpush.bf16.msrb.mxu3 %v9994_v29  ;;  %v1465_v17 = vadd.f32 1.0, %v6185_v54  ;;  %v10001_v29 = vld [vmem:[#allocation95_spill] sm:$0xff] }
 0x24d   :  { %6188 = vrcp.f32 %v1464_v49  ;;  %v10006_v25 = vld [vmem:[#allocation99_spill] sm:$0xff]  ;;  %vm1472_vm7 = vweird.f32 %v1464_v49 }
 0x24e   :  { %2385 = vmatpush.bf16.msrb.mxu0 %v9995_v16  ;;  %2398 = vmatpush.bf16.msra.mxu1 %v9996_v30  ;;  %6190 = vrcp.f32 %v1465_v17  ;;  %v1436_v38 = vpop.f32.mrf.mxu2  ;;  %v1449_v16 = vpop.f32.mrf.mxu3  ;;  %v10003_v30 = vld [vmem:[#allocation97_spill] sm:$0xff]  ;;  %vm1487_vm8 = vweird.f32 %v1465_v17 }
 0x250   :  { %2411 = vmatpush.bf16.msra.mxu2 %v9997_v52  ;;  %2424 = vmatpush.bf16.msrb.mxu3 %v9998_v57  ;;  %v10005_v57 = vld [vmem:[#allocation58_spill] sm:$0xff] }
 0x251   :  { %v6187_v32 = vpop.eup %6186 }
 0x252   :  { %2386 = vmatpush.bf16.msrb.mxu0 %v9999_v43  ;;  %2399 = vmatpush.bf16.msra.mxu1 %v10000_v15  ;;  %v7793_v52 = vadd.f32 1.0, %v6187_v32  ;;  %v1454_v43 = vadd.f32 %v1447_v62, %v10005_v57  ;;  %v10007_v15 = vld [vmem:[#allocation100_spill] sm:$0xff]  ;;  %v1478_v32 = vand.u32 2147483648, %v1464_v49  ;;  %v1493_v62 = vand.u32 2147483648, %v1465_v17 }
 0x253   :  { %v6189_v54 = vpop.eup %6188  ;;  %v10011_v57 = vld [vmem:[#allocation104_spill] sm:$0xff] }
 0x254   :  { %2412 = vmatpush.bf16.msra.mxu2 %v10001_v29  ;;  %2425 = vmatpush.bf16.msrb.mxu3 %v10002_v5  ;;  %v6191_v38 = vpop.eup %6190  ;;  %v1468_v16 = vmul.f32 %v6189_v54, %v1464_v49  ;;  %6192 = vrcp.f32 %v7793_v52  ;;  %v10008_v29 = vld [vmem:[#allocation101_spill] sm:$0xff]  ;;  %v10009_v5 = vld [vmem:[#allocation102_spill] sm:$0xff]  ;;  %vm1473_vm5 = vweird.f32 %v6189_v54  ;;  %vm1502_vm14 = vweird.f32 %v7793_v52 }
 0x255   :  { %6194 = vtanh.f32 %v1454_v43  ;;  %vm1488_vm6 = vweird.f32 %v6191_v38  ;;  %vm1474_vm9 = vmor %vm1472_vm7, %vm1473_vm5  ;;  %v1479_v43 = vor.u32 1.1754944e-38, %v1478_v32 }
 0x256   :  { %2387 = vmatpush.bf16.msrb.mxu0 %v10003_v30  ;;  %2400 = vmatpush.bf16.msra.mxu1 %v10004_v13  ;;  %v1483_v30 = vmul.f32 %v6191_v38, %v1465_v17  ;;  %v1469_v13 = vsub.f32 1.0, %v1468_v16  ;;  %vm1489_vm10 = vmor %vm1487_vm8, %vm1488_vm6 }
 0x258   :  { %2413 = vmatpush.bf16.msra.mxu2 %v10006_v25  ;;  %2426 = vmatpush.bf16.msrb.mxu3 %v10007_v15  ;;  %v1484_v11 = vsub.f32 1.0, %v1483_v30  ;;  %v1470_v25 = vmul.f32 %v6189_v54, %v1469_v13  ;;  %v1476_v15 = vand.u32 2147483647, %v1464_v49  ;;  %v10015_v13 = vld [vmem:[#allocation108_spill] sm:$0xff] }
 0x25a   :  { %2388 = vmatpush.bf16.msrb.mxu0 %v10008_v29  ;;  %2401 = vmatpush.bf16.msra.mxu1 %v10009_v5  ;;  %v1485_v29 = vmul.f32 %v6191_v38, %v1484_v11  ;;  %v1491_v5 = vand.u32 2147483647, %v1465_v17  ;;  %v6193_v0 = vpop.eup %6192  ;;  %v1471_v16 = vadd.f32 %v6189_v54, %v1470_v25  ;;  %vm1477_vm11 = vcmp.eq.f32.partialorder %v1476_v15, 8.507059e+37  ;;  %v10016_v11 = vld [vmem:[#allocation109_spill] sm:$0xff] }
 0x25b   :  { %v1498_v30 = vmul.f32 %v6193_v0, %v7793_v52  ;;  %v6195_v25 = vpop.eup %6194  ;;  %vm1503_vm13 = vweird.f32 %v6193_v0 }
 0x25c   :  { %2414 = vmatpush.bf16.msra.mxu2 %v10010_v24  ;;  %2427 = vmatpush.bf16.msrb.mxu3 %v10011_v57  ;;  %v1486_v57 = vadd.f32 %v6191_v38, %v1485_v29  ;;  %v10014_v24 = vld [vmem:[#allocation107_spill] sm:$0xff]  ;;  %v1475_v7 = vsel %vm1474_vm9, %v6189_v54, %v1471_v16  ;;  %vm1492_vm12 = vcmp.eq.f32.partialorder %v1491_v5, 8.507059e+37  ;;  %vm1504_vm15 = vmor %vm1502_vm14, %vm1503_vm13 }
 0x25d   :  { %v1499_v49 = vsub.f32 1.0, %v1498_v30  ;;  %v1480_v17 = vsel %vm1477_vm11, %v1479_v43, %v1475_v7  ;;  %v1508_v30 = vand.u32 2147483648, %v7793_v52  ;;  %v1506_v7 = vand.u32 2147483647, %v7793_v52 }
 0x25e   :  { %2389 = vmatpush.bf16.msrb.mxu0 %v10012_v37  ;;  %2402 = vmatpush.bf16.msra.mxu1 %v10013_v36  ;;  %v1494_v37 = vor.u32 1.1754944e-38, %v1493_v62  ;;  %v10017_v36 = vld [vmem:[#allocation110_spill] sm:$0xff]  ;;  %v1490_v18 = vsel %vm1489_vm10, %v6191_v38, %v1486_v57  ;;  %v1514_v32 = vmul.f32 %v6195_v25, %v1480_v17 }
 0x25f   :  { %v1500_v29 = vmul.f32 %v6193_v0, %v1499_v49  ;;  %vm1507_vm0 = vcmp.eq.f32.partialorder %v1506_v7, 8.507059e+37  ;;  %v10022_v7 = vld [vmem:[#allocation52_spill] sm:$0xff] }
 0x260   :  { %2415 = vmatpush.bf16.msra.mxu2 %v10014_v24  ;;  %2428 = vmatpush.bf16.msrb.mxu3 %v10015_v13  ;;  %v1495_v22 = vsel %vm1492_vm12, %v1494_v37, %v1490_v18  ;;  %v10019_v13 = vld [vmem:[#allocation112_spill] sm:$0xff] }
 0x261   :  { %v1513_v24 = vmul.f32 %v1495_v22, %v7456_v26  ;;  %v1501_v15 = vadd.f32 %v6193_v0, %v1500_v29  ;;  %v1527_v62 = vpop.f32.mrf.mxu0  ;;  %v1540_v16 = vpop.f32.mrf.mxu1  ;;  %v1509_v22 = vor.u32 1.1754944e-38, %v1508_v30  ;;  %v10021_v30 = vld [vmem:[#allocation119_spill] sm:$0xff] }
 0x262   :  { %2390 = vmatpush.bf16.msrb.mxu0 %v10016_v11  ;;  %2403 = vmatpush.bf16.msra.mxu1 %v10017_v36 }
 0x263   :  { %v7813_v54 = vadd.f32 %v1514_v32, %v1513_v24  ;;  %v1505_v18 = vsel %vm1504_vm15, %v6193_v0, %v1501_v15  ;;  %v10020_v15 = vld [vmem:[#allocation118_spill] sm:$0xff] }
 0x264   :  { %2416 = vmatpush.bf16.msra.mxu2 %v10018_v51  ;;  %2429 = vmatpush.bf16.msrb.mxu3 %v10019_v13  ;;  %v1510_v37 = vsel %vm1507_vm0, %v1509_v22, %v1505_v18  ;;  %v10023_v22 = vld [vmem:[#allocation61_spill] sm:$0xff] }
 0x265   :  { %6196 = vtanh.f32 %v7813_v54 }
 0x268   :  { %v1553_v24 = vpop.f32.mrf.mxu2  ;;  %v1566_v5 = vpop.f32.mrf.mxu3 }
 0x269   :  { %v1529_v57 = vpop.f32.mrf.mxu0  ;;  %v1542_v43 = vpop.f32.mrf.mxu1 }
 0x26b   :  { %v6197_v26 = vpop.eup %6196 }
 0x26c   :  { %v1517_v38 = vmul.f32 %v6197_v26, %v1510_v37  ;;  %v10024_v37 = vld [vmem:[#allocation120_spill] sm:$0xff] }
 0x26e   :  { %v7819_v25 = vpack.c.bf16 %v1517_v38, %v1517_v38  ;;  %v10025_v38 = vld [vmem:[#allocation121_spill] sm:$0xff] }
 0x270   :  { %2272 = vmatmul.bf16.vlgmr.msra.gmra.mxu0 %v7819_v25  ;;  %2285 = vmatmul.bf16.vlgmr.msrb.gmra.mxu1 %v7819_v25  ;;  %v1555_v0 = vpop.f32.mrf.mxu2  ;;  %v1568_v52 = vpop.f32.mrf.mxu3 }
 0x271   :  { %2298 = vmatmul.bf16.vlgmr.msrb.gmra.mxu2 %v7819_v25  ;;  %2311 = vmatmul.bf16.vlgmr.msra.gmra.mxu3 %v7819_v25  ;;  %v1579_v49 = vpop.f32.mrf.mxu0  ;;  %v1592_v17 = vpop.f32.mrf.mxu1  ;;  %v10026_v0 = vld [vmem:[#allocation122_spill] sm:$0xff]  ;;  %v10027_v52 = vld [vmem:[#allocation123_spill] sm:$0xff] }
 0x272   :  { %2435 = vmatpush.bf16.msra.mxu0 %v9887_v3  ;;  %2448 = vmatpush.bf16.msrb.mxu1 %v9888_v8  ;;  %v1580_v32 = vadd.f32 %v1579_v49, %v1527_v62  ;;  %v1593_v29 = vadd.f32 %v1592_v17, %v1540_v16  ;;  %v10028_v49 = vld [vmem:[#allocation124_spill] sm:$0xff]  ;;  %v10029_v17 = vld [vmem:[#allocation125_spill] sm:$0xff] }
 0x273   :  { %2461 = vmatpush.bf16.msrb.mxu2 %v9889_v23  ;;  %2474 = vmatpush.bf16.msra.mxu3 %v9890_v2 }
 0x274   :  { %v1622_v18 = vadd.f32 %v1580_v32, %v10022_v7  ;;  %v1623_v26 = vadd.f32 %v1593_v29, %v10023_v22  ;;  %v10030_v7 = vld [vmem:[#allocation59_spill] sm:$0xff] }
 0x276   :  { %2436 = vmatpush.bf16.msra.mxu0 %v10020_v15  ;;  %2449 = vmatpush.bf16.msrb.mxu1 %v10021_v30  ;;  %v5638_v57 = vmul.f32 -1.442695, %v1622_v18  ;;  %v5639_v43 = vmul.f32 -1.442695, %v1623_v26  ;;  %v10032_v18 = vld [vmem:[#allocation127_spill] sm:$0xff]  ;;  %v10033_v26 = vld [vmem:[#allocation128_spill] sm:$0xff] }
 0x277   :  { %2462 = vmatpush.bf16.msrb.mxu2 %v10024_v37  ;;  %2475 = vmatpush.bf16.msra.mxu3 %v10025_v38  ;;  %v10031_v38 = vld [vmem:[#allocation126_spill] sm:$0xff] }
 0x278   :  { %6198 = vpow2.f32 %v5638_v57  ;;  %v1605_v62 = vpop.f32.mrf.mxu2  ;;  %v1618_v16 = vpop.f32.mrf.mxu3 }
 0x279   :  { %6200 = vpow2.f32 %v5639_v43  ;;  %v1606_v32 = vadd.f32 %v1605_v62, %v1553_v24  ;;  %v1581_v29 = vpop.f32.mrf.mxu0  ;;  %v1594_v22 = vpop.f32.mrf.mxu1  ;;  %v1619_v62 = vadd.f32 %v1618_v16, %v1566_v5  ;;  %v10038_v5 = vld [vmem:[#allocation139_spill] sm:$0xff] }
 0x27a   :  { %2437 = vmatpush.bf16.msra.mxu0 %v10026_v0  ;;  %2450 = vmatpush.bf16.msrb.mxu1 %v10027_v52  ;;  %v10034_v52 = vld [vmem:[#allocation129_spill] sm:$0xff] }
 0x27b   :  { %2463 = vmatpush.bf16.msrb.mxu2 %v10028_v49  ;;  %2476 = vmatpush.bf16.msra.mxu3 %v10029_v17  ;;  %v1624_v37 = vadd.f32 %v1606_v32, %v10030_v7  ;;  %v10037_v7 = vld [vmem:[#allocation138_spill] sm:$0xff] }
 0x27d   :  { %v5640_v57 = vmul.f32 -1.442695, %v1624_v37 }
 0x27e   :  { %2438 = vmatpush.bf16.msra.mxu0 %v10031_v38  ;;  %2451 = vmatpush.bf16.msrb.mxu1 %v10032_v18  ;;  %v6199_v0 = vpop.eup %6198 }
 0x27f   :  { %2464 = vmatpush.bf16.msrb.mxu2 %v10033_v26  ;;  %2477 = vmatpush.bf16.msra.mxu3 %v10034_v52  ;;  %v6201_v30 = vpop.eup %6200  ;;  %v1635_v49 = vadd.f32 1.0, %v6199_v0  ;;  %6202 = vpow2.f32 %v5640_v57 }
 0x280   :  { %v1636_v24 = vadd.f32 1.0, %v6201_v30  ;;  %v1607_v22 = vpop.f32.mrf.mxu2  ;;  %v1620_v43 = vpop.f32.mrf.mxu3  ;;  %v10035_v30 = vld [vmem:[#allocation137_spill] sm:$0xff] }
 0x281   :  { %6204 = vrcp.f32 %v1635_v49  ;;  %v10036_v22 = vld [vmem:[#allocation54_spill] sm:$0xff]  ;;  %vm1643_vm3 = vweird.f32 %v1635_v49 }
 0x282   :  { %2439 = vmatpush.bf16.msra.mxu0 %v9904_v33  ;;  %2452 = vmatpush.bf16.msrb.mxu1 %v9905_v31  ;;  %6206 = vrcp.f32 %v1636_v24  ;;  %v1625_v43 = vadd.f32 %v1619_v62, %v10036_v22  ;;  %v1649_v62 = vand.u32 2147483648, %v1635_v49  ;;  %v10042_v33 = vld [vmem:[#allocation143_spill] sm:$0xff]  ;;  %v1664_v52 = vand.u32 2147483648, %v1636_v24 }
 0x283   :  { %2465 = vmatpush.bf16.msrb.mxu2 %v9906_v12  ;;  %2478 = vmatpush.bf16.msra.mxu3 %v9907_v4  ;;  %v1662_v38 = vand.u32 2147483647, %v1636_v24  ;;  %vm1658_vm4 = vweird.f32 %v1636_v24 }
 0x285   :  { %v7848_v32 = vpop.f32.mrf.mxu0  ;;  %v7850_v37 = vpop.f32.mrf.mxu1  ;;  %vm1663_vm8 = vcmp.eq.f32.partialorder %v1662_v38, 8.507059e+37 }
 0x286   :  { %2440 = vmatpush.bf16.msra.mxu0 %v9909_v45  ;;  %2453 = vmatpush.bf16.msrb.mxu1 %v9910_v9  ;;  %v6203_v0 = vpop.eup %6202  ;;  %v10039_v45 = vld [vmem:[#allocation140_spill] sm:$0xff]  ;;  %v10040_v9 = vld [vmem:[#allocation141_spill] sm:$0xff] }
 0x287   :  { %2466 = vmatpush.bf16.msrb.mxu2 %v7329_v44  ;;  %2479 = vmatpush.bf16.msra.mxu3 %v10035_v30  ;;  %v7856_v29 = vadd.f32 1.0, %v6203_v0  ;;  %v6205_v57 = vpop.eup %6204 }
 0x288   :  { %v6207_v16 = vpop.eup %6206  ;;  %v1639_v4 = vmul.f32 %v6205_v57, %v1635_v49  ;;  %vm1644_vm1 = vweird.f32 %v6205_v57 }
 0x289   :  { %6208 = vrcp.f32 %v7856_v29  ;;  %v1654_v44 = vmul.f32 %v6207_v16, %v1636_v24  ;;  %vm1659_vm2 = vweird.f32 %v6207_v16  ;;  %vm1645_vm5 = vmor %vm1643_vm3, %vm1644_vm1  ;;  %v10045_v24 = vld [vmem:[#allocation113_spill] sm:$0xff]  ;;  %vm1673_vm10 = vweird.f32 %v7856_v29 }
 0x28a   :  { %2441 = vmatpush.bf16.msra.mxu0 %v10037_v7  ;;  %2454 = vmatpush.bf16.msrb.mxu1 %v10038_v5  ;;  %v1640_v30 = vsub.f32 1.0, %v1639_v4  ;;  %6210 = vtanh.f32 %v1625_v43  ;;  %v10041_v5 = vld [vmem:[#allocation142_spill] sm:$0xff]  ;;  %v10044_v4 = vld [vmem:[#allocation145_spill] sm:$0xff]  ;;  %vm1660_vm6 = vmor %vm1658_vm4, %vm1659_vm2 }
 0x28b   :  { %2467 = vmatpush.bf16.msrb.mxu2 %v10039_v45  ;;  %2480 = vmatpush.bf16.msra.mxu3 %v10040_v9  ;;  %v1655_v31 = vsub.f32 1.0, %v1654_v44  ;;  %v1647_v45 = vand.u32 2147483647, %v1635_v49  ;;  %v10043_v9 = vld [vmem:[#allocation144_spill] sm:$0xff] }
 0x28c   :  { %v7864_v12 = vpop.f32.mrf.mxu2  ;;  %v7866_v0 = vpop.f32.mrf.mxu3  ;;  %v1641_v26 = vmul.f32 %v6205_v57, %v1640_v30  ;;  %v1665_v30 = vor.u32 1.1754944e-38, %v1664_v52  ;;  %v1679_v52 = vand.u32 2147483648, %v7856_v29 }
 0x28d   :  { %v1924_v22 = vpop.f32.mrf.mxu0  ;;  %v1937_v7 = vpop.f32.mrf.mxu1  ;;  %v1656_v18 = vmul.f32 %v6207_v16, %v1655_v31  ;;  %vm1648_vm7 = vcmp.eq.f32.partialorder %v1647_v45, 8.507059e+37 }
 0x28e   :  { %2442 = vmatpush.bf16.msra.mxu0 %v10041_v5  ;;  %2455 = vmatpush.bf16.msrb.mxu1 %v10042_v33  ;;  %v1642_v17 = vadd.f32 %v6205_v57, %v1641_v26  ;;  %v1650_v22 = vor.u32 1.1754944e-38, %v1649_v62 }
 0x28f   :  { %2468 = vmatpush.bf16.msrb.mxu2 %v10043_v9  ;;  %2481 = vmatpush.bf16.msra.mxu3 %v10044_v4  ;;  %v6209_v44 = vpop.eup %6208  ;;  %v1657_v43 = vadd.f32 %v6207_v16, %v1656_v18 }
 0x290   :  { %v1669_v7 = vmul.f32 %v6209_v44, %v7856_v29  ;;  %v1646_v33 = vsel %vm1645_vm5, %v6205_v57, %v1642_v17  ;;  %v6211_v5 = vpop.eup %6210  ;;  %vm1674_vm9 = vweird.f32 %v6209_v44 }
 0x291   :  { %v1651_v15 = vsel %vm1648_vm7, %v1650_v22, %v1646_v33  ;;  %v1661_v4 = vsel %vm1660_vm6, %v6207_v16, %v1657_v43  ;;  %v1677_v33 = vand.u32 2147483647, %v7856_v29  ;;  %vm1675_vm11 = vmor %vm1673_vm10, %vm1674_vm9  ;;  %v10049_v22 = vld [vmem:[#allocation147_spill] sm:$0xff] }
 0x292   :  { %v1670_v9 = vsub.f32 1.0, %v1669_v7  ;;  %v1666_v31 = vsel %vm1663_vm8, %v1665_v30, %v1661_v4  ;;  %v1685_v2 = vmul.f32 %v6211_v5, %v1651_v15  ;;  %v1680_v15 = vor.u32 1.1754944e-38, %v1679_v52  ;;  %v10048_v7 = vld [vmem:[#allocation146_spill] sm:$0xff]  ;;  %v10050_v30 = vld [vmem:[#allocation148_spill] sm:$0xff] }
 0x293   :  { %v1684_v13 = vmul.f32 %v1666_v31, %v10045_v24  ;;  %vm1678_vm12 = vcmp.eq.f32.partialorder %v1677_v33, 8.507059e+37  ;;  %v10053_v33 = vld [vmem:[#allocation150_spill] sm:$0xff] }
 0x294   :  { %v1950_v23 = vpop.f32.mrf.mxu2  ;;  %v1963_v26 = vpop.f32.mrf.mxu3  ;;  %v1671_v49 = vmul.f32 %v6209_v44, %v1670_v9 }
 0x295   :  { %v7874_v51 = vadd.f32 %v1685_v2, %v1684_v13  ;;  %v2177_v23 = vld [vmem:[%s9331_s9] sm:$0xf] }
 0x296   :  { %v1672_v62 = vadd.f32 %v6209_v44, %v1671_v49  ;;  %v7883_v38 = vperm.slane %v2177_v23, 0  ;;  %v7885_v17 = vperm.slane %v2177_v23, 1  ;;  %v7901_v31 = vperm.slane %v2177_v23, 2 }
 0x297   :  { %6212 = vtanh.f32 %v7874_v51 }
 0x298   :  { %v1676_v45 = vsel %vm1675_vm11, %v6209_v44, %v1672_v62  ;;  %10046 = vst [vmem:[#allocation66_spill] sm:$0xff] %v7883_v38 }
 0x299   :  { %v1681_v9 = vsel %vm1678_vm12, %v1680_v15, %v1676_v45  ;;  %10047 = vst [vmem:[#allocation55_spill] sm:$0xff] %v7885_v17  ;;  %v10054_v45 = vld [vmem:[#allocation151_spill] sm:$0xff]  ;;  %v10055_v15 = vld [vmem:[#allocation152_spill] sm:$0xff] }
 0x29a   :  { %10052 = vst [vmem:[#allocation64_spill] sm:$0xff] %v7901_v31 }
 0x29d   :  { %v6213_v2 = vpop.eup %6212 }
 0x29e   :  { %v1688_v13 = vmul.f32 %v6213_v2, %v1681_v9  ;;  %v10056_v2 = vld [vmem:[#allocation153_spill] sm:$0xff] }
 0x2a0   :  { %v7887_v18 = vpack.c.bf16 %v1688_v13, %v1688_v13 }
 0x2a2   :  { %v2134_v57 = vpop.f32.mrf.mxu0  ;;  %v2147_v5 = vpop.f32.mrf.mxu1  ;;  %2391 = vmatmul.bf16.vlgmr.msrb.gmra.mxu0 %v7887_v18  ;;  %2404 = vmatmul.bf16.vlgmr.msra.gmra.mxu1 %v7887_v18 }
 0x2a3   :  { %v2135_v29 = vadd.f32 %v2134_v57, %v7848_v32  ;;  %v2148_v16 = vadd.f32 %v2147_v5, %v7850_v37  ;;  %2417 = vmatmul.bf16.vlgmr.msra.gmra.mxu2 %v7887_v18  ;;  %2430 = vmatmul.bf16.vlgmr.msrb.gmra.mxu3 %v7887_v18  ;;  %v10051_v37 = vld [vmem:[#allocation149_spill] sm:$0xff]  ;;  %v10057_v57 = vld [vmem:[#allocation154_spill] sm:$0xff]  ;;  %v10058_v5 = vld [vmem:[#allocation155_spill] sm:$0xff] }
 0x2a4   :  { %2554 = vmatpush.bf16.msrb.mxu0 %v10048_v7  ;;  %2567 = vmatpush.bf16.msra.mxu1 %v10049_v22 }
 0x2a5   :  { %v2187_v4 = vadd.f32 %v7883_v38, %v2135_v29  ;;  %v2188_v44 = vadd.f32 %v7885_v17, %v2148_v16  ;;  %2580 = vmatpush.bf16.msra.mxu2 %v10050_v30  ;;  %2593 = vmatpush.bf16.msrb.mxu3 %v10051_v37  ;;  %v10059_v16 = vld [vmem:[#allocation156_spill] sm:$0xff] }
 0x2a7   :  { %v5897_v43 = vmul.f32 -1.442695, %v2187_v4  ;;  %v5898_v32 = vmul.f32 -1.442695, %v2188_v44 }
 0x2a8   :  { %2555 = vmatpush.bf16.msrb.mxu0 %v10053_v33  ;;  %2568 = vmatpush.bf16.msra.mxu1 %v10054_v45 }
 0x2a9   :  { %6214 = vpow2.f32 %v5897_v43  ;;  %2581 = vmatpush.bf16.msra.mxu2 %v10055_v15  ;;  %2594 = vmatpush.bf16.msrb.mxu3 %v10056_v2 }
 0x2aa   :  { %v2160_v26 = vpop.f32.mrf.mxu2  ;;  %v2173_v49 = vpop.f32.mrf.mxu3  ;;  %6216 = vpow2.f32 %v5898_v32 }
 0x2ab   :  { %v2161_v24 = vadd.f32 %v2160_v26, %v7864_v12  ;;  %v2136_v62 = vpop.f32.mrf.mxu0  ;;  %v2149_v52 = vpop.f32.mrf.mxu1  ;;  %v10060_v12 = vld [vmem:[#allocation157_spill] sm:$0xff] }
 0x2ac   :  { %2556 = vmatpush.bf16.msrb.mxu0 %v10057_v57  ;;  %2569 = vmatpush.bf16.msra.mxu1 %v10058_v5  ;;  %v10061_v62 = vld [vmem:[#allocation158_spill] sm:$0xff]  ;;  %v10063_v52 = vld [vmem:[#allocation160_spill] sm:$0xff] }
 0x2ad   :  { %v2189_v9 = vadd.f32 %v7901_v31, %v2161_v24  ;;  %2582 = vmatpush.bf16.msra.mxu2 %v10059_v16  ;;  %2595 = vmatpush.bf16.msrb.mxu3 %v10060_v12  ;;  %v10062_v24 = vld [vmem:[#allocation159_spill] sm:$0xff]  ;;  %v2174_v12 = vadd.f32 %v2173_v49, %v7866_v0  ;;  %v7921_v16 = vperm.slane %v2177_v23, 3  ;;  %v10069_v0 = vld [vmem:[#allocation165_spill] sm:$0xff] }
 0x2af   :  { %v5899_v13 = vmul.f32 -1.442695, %v2189_v9  ;;  %v6215_v29 = vpop.eup %6214  ;;  %v10064_v9 = vld [vmem:[#allocation161_spill] sm:$0xff]  ;;  %10065 = vst [vmem:[#allocation58_spill] sm:$0xff] %v7921_v16  ;;  %v2190_v49 = vadd.f32 %v7921_v16, %v2174_v12 }
 0x2b0   :  { %v6217_v4 = vpop.eup %6216  ;;  %v2200_v44 = vadd.f32 1.0, %v6215_v29  ;;  %2557 = vmatpush.bf16.msrb.mxu0 %v10061_v62  ;;  %2570 = vmatpush.bf16.msra.mxu1 %v10062_v24  ;;  %v10066_v29 = vld [vmem:[#allocation162_spill] sm:$0xff]  ;;  %v10073_v62 = vld [vmem:[#allocation169_spill] sm:$0xff] }
 0x2b1   :  { %6218 = vpow2.f32 %v5899_v13  ;;  %v7913_v43 = vadd.f32 1.0, %v6217_v4  ;;  %2583 = vmatpush.bf16.msra.mxu2 %v10063_v52  ;;  %2596 = vmatpush.bf16.msrb.mxu3 %v10064_v9  ;;  %v10067_v4 = vld [vmem:[#allocation163_spill] sm:$0xff]  ;;  %v10070_v24 = vld [vmem:[#allocation166_spill] sm:$0xff] }
 0x2b2   :  { %v2162_v32 = vpop.f32.mrf.mxu2  ;;  %v2175_v26 = vpop.f32.mrf.mxu3  ;;  %6220 = vrcp.f32 %v2200_v44  ;;  %2443 = vmatmul.bf16.vlgmr.msra.gmra.mxu0 %v7819_v25  ;;  %2456 = vmatmul.bf16.vlgmr.msrb.gmra.mxu1 %v7819_v25  ;;  %v2212_v5 = vand.u32 2147483647, %v2200_v44  ;;  %vm2208_vm15 = vweird.f32 %v2200_v44 }
 0x2b3   :  { %6222 = vrcp.f32 %v7913_v43  ;;  %2469 = vmatmul.bf16.vlgmr.msrb.gmra.mxu2 %v7819_v25  ;;  %2482 = vmatmul.bf16.vlgmr.msra.gmra.mxu3 %v7819_v25  ;;  %v10068_v26 = vld [vmem:[#allocation164_spill] sm:$0xff]  ;;  %v2229_v12 = vand.u32 2147483648, %v7913_v43  ;;  %v2227_v31 = vand.u32 2147483647, %v7913_v43  ;;  %vm2223_vm0 = vweird.f32 %v7913_v43 }
 0x2b4   :  { %2558 = vmatpush.bf16.msrb.mxu0 %v10066_v29  ;;  %2571 = vmatpush.bf16.msra.mxu1 %v10067_v4  ;;  %v10071_v29 = vld [vmem:[#allocation167_spill] sm:$0xff]  ;;  %vm2213_vm2 = vcmp.eq.f32.partialorder %v2212_v5, 8.507059e+37  ;;  %v10077_v5 = vld [vmem:[#allocation177_spill] sm:$0xff] }
 0x2b5   :  { %2584 = vmatpush.bf16.msra.mxu2 %v10068_v26  ;;  %2597 = vmatpush.bf16.msrb.mxu3 %v10069_v0  ;;  %v2214_v0 = vand.u32 2147483648, %v2200_v44  ;;  %vm2228_vm4 = vcmp.eq.f32.partialorder %v2227_v31, 8.507059e+37 }
 0x2b7   :  { %v6219_v13 = vpop.eup %6218 }
 0x2b8   :  { %v7929_v32 = vadd.f32 1.0, %v6219_v13  ;;  %v6221_v23 = vpop.eup %6220  ;;  %2559 = vmatpush.bf16.msrb.mxu0 %v10070_v24  ;;  %2572 = vmatpush.bf16.msra.mxu1 %v10071_v29  ;;  %v10072_v13 = vld [vmem:[#allocation168_spill] sm:$0xff]  ;;  %v10074_v24 = vld [vmem:[#allocation170_spill] sm:$0xff]  ;;  %v10075_v29 = vld [vmem:[#allocation171_spill] sm:$0xff] }
 0x2b9   :  { %v6223_v9 = vpop.eup %6222  ;;  %v2204_v52 = vmul.f32 %v6221_v23, %v2200_v44  ;;  %2585 = vmatpush.bf16.msra.mxu2 %v10072_v13  ;;  %2598 = vmatpush.bf16.msrb.mxu3 %v10073_v62  ;;  %vm2209_vm13 = vweird.f32 %v6221_v23 }
 0x2ba   :  { %6224 = vrcp.f32 %v7929_v32  ;;  %v2219_v25 = vmul.f32 %v6223_v9, %v7913_v43  ;;  %vm2224_vm14 = vweird.f32 %v6223_v9  ;;  %vm2210_vm1 = vmor %vm2208_vm15, %vm2209_vm13  ;;  %vm2238_vm6 = vweird.f32 %v7929_v32 }
 0x2bb   :  { %v2205_v4 = vsub.f32 1.0, %v2204_v52  ;;  %6226 = vtanh.f32 %v2190_v49  ;;  %vm2225_vm3 = vmor %vm2223_vm0, %vm2224_vm14 }
 0x2bc   :  { %v2220_v26 = vsub.f32 1.0, %v2219_v25  ;;  %2560 = vmatpush.bf16.msrb.mxu0 %v10074_v24  ;;  %2573 = vmatpush.bf16.msra.mxu1 %v10075_v29  ;;  %v2230_v25 = vor.u32 1.1754944e-38, %v2229_v12  ;;  %v10079_v12 = vld [vmem:[#allocation179_spill] sm:$0xff] }
 0x2bd   :  { %v2206_v16 = vmul.f32 %v6221_v23, %v2205_v4  ;;  %2586 = vmatpush.bf16.msra.mxu2 %v7615_v59  ;;  %2599 = vmatpush.bf16.msrb.mxu3 %v7617_v63 }
 0x2be   :  { %v2221_v57 = vmul.f32 %v6223_v9, %v2220_v26  ;;  %v2215_v26 = vor.u32 1.1754944e-38, %v2214_v0  ;;  %v10076_v0 = vld [vmem:[#allocation176_spill] sm:$0xff] }
 0x2bf   :  { %v2207_v13 = vadd.f32 %v6221_v23, %v2206_v16 }
 0x2c0   :  { %v6225_v52 = vpop.eup %6224  ;;  %v2222_v49 = vadd.f32 %v6223_v9, %v2221_v57  ;;  %2561 = vmatpush.bf16.msrb.mxu0 %v7621_v40  ;;  %2574 = vmatpush.bf16.msra.mxu1 %v7623_v34 }
 0x2c1   :  { %v2234_v4 = vmul.f32 %v6225_v52, %v7929_v32  ;;  %v2211_v62 = vsel %vm2210_vm1, %v6221_v23, %v2207_v13  ;;  %v6227_v29 = vpop.eup %6226  ;;  %2587 = vmatpush.bf16.msra.mxu2 %v7627_v20  ;;  %2600 = vmatpush.bf16.msrb.mxu3 %v10076_v0  ;;  %v10078_v13 = vld [vmem:[#allocation178_spill] sm:$0xff]  ;;  %vm2239_vm5 = vweird.f32 %v6225_v52 }
 0x2c2   :  { %v2216_v16 = vsel %vm2213_vm2, %v2215_v26, %v2211_v62  ;;  %v2226_v44 = vsel %vm2225_vm3, %v6223_v9, %v2222_v49  ;;  %v10080_v62 = vld [vmem:[#allocation180_spill] sm:$0xff]  ;;  %v10083_v26 = vld [vmem:[#allocation183_spill] sm:$0xff]  ;;  %vm2240_vm7 = vmor %vm2238_vm6, %vm2239_vm5 }
 0x2c3   :  { %v2235_v24 = vsub.f32 1.0, %v2234_v4  ;;  %v2231_v43 = vsel %vm2228_vm4, %v2230_v25, %v2226_v44  ;;  %v2250_v63 = vmul.f32 %v6227_v29, %v2216_v16  ;;  %v2244_v29 = vand.u32 2147483648, %v7929_v32  ;;  %v10081_v4 = vld [vmem:[#allocation181_spill] sm:$0xff]  ;;  %v10084_v49 = vld [vmem:[#allocation184_spill] sm:$0xff]  ;;  %v10086_v44 = vld [vmem:[#allocation186_spill] sm:$0xff] }
 0x2c4   :  { %v2249_v23 = vmul.f32 0.0, %v2231_v43  ;;  %2606 = vmatpush.bf16.msra.mxu0 %v10077_v5  ;;  %2619 = vmatpush.bf16.msrb.mxu1 %v10078_v13  ;;  %v2242_v25 = vand.u32 2147483647, %v7929_v32  ;;  %v10085_v16 = vld [vmem:[#allocation185_spill] sm:$0xff]  ;;  %v10091_v32 = vld [vmem:[#allocation191_spill] sm:$0xff] }
 0x2c5   :  { %v2236_v57 = vmul.f32 %v6225_v52, %v2235_v24  ;;  %2632 = vmatpush.bf16.msrb.mxu2 %v10079_v12  ;;  %2645 = vmatpush.bf16.msra.mxu3 %v10080_v62  ;;  %v10082_v24 = vld [vmem:[#allocation182_spill] sm:$0xff]  ;;  %v2245_v43 = vor.u32 1.1754944e-38, %v2244_v29  ;;  %v10093_v29 = vld [vmem:[#allocation193_spill] sm:$0xff] }
 0x2c6   :  { %v7957_v31 = vadd.f32 %v2250_v63, %v2249_v23  ;;  %v10088_v23 = vld [vmem:[#allocation188_spill] sm:$0xff]  ;;  %vm2243_vm8 = vcmp.eq.f32.partialorder %v2242_v25, 8.507059e+37  ;;  %v10095_v25 = vld [vmem:[#allocation195_spill] sm:$0xff] }
 0x2c7   :  { %v2237_v9 = vadd.f32 %v6225_v52, %v2236_v57  ;;  %v10087_v57 = vld [vmem:[#allocation187_spill] sm:$0xff] }
 0x2c8   :  { %6228 = vtanh.f32 %v7957_v31  ;;  %2607 = vmatpush.bf16.msra.mxu0 %v10081_v4  ;;  %2620 = vmatpush.bf16.msrb.mxu1 %v10082_v24 }
 0x2c9   :  { %2633 = vmatpush.bf16.msrb.mxu2 %v10083_v26  ;;  %2646 = vmatpush.bf16.msra.mxu3 %v10084_v49  ;;  %v2241_v63 = vsel %vm2240_vm7, %v6225_v52, %v2237_v9  ;;  %v10089_v26 = vld [vmem:[#allocation189_spill] sm:$0xff]  ;;  %v10090_v49 = vld [vmem:[#allocation190_spill] sm:$0xff]  ;;  %v10092_v52 = vld [vmem:[#allocation192_spill] sm:$0xff] }
 0x2ca   :  { %v2246_v4 = vsel %vm2243_vm8, %v2245_v43, %v2241_v63  ;;  %v10098_v63 = vld [vmem:[#allocation198_spill] sm:$0xff]  ;;  %v10100_v43 = vld [vmem:[#allocation60_spill] sm:$0xff] }
 0x2cc   :  { %2608 = vmatpush.bf16.msra.mxu0 %v10085_v16  ;;  %2621 = vmatpush.bf16.msrb.mxu1 %v10086_v44 }
 0x2cd   :  { %2634 = vmatpush.bf16.msrb.mxu2 %v10087_v57  ;;  %2647 = vmatpush.bf16.msra.mxu3 %v10088_v23  ;;  %v10094_v23 = vld [vmem:[#allocation194_spill] sm:$0xff] }
 0x2ce   :  { %v6229_v24 = vpop.eup %6228 }
 0x2cf   :  { %v2253_v62 = vmul.f32 %v6229_v24, %v2246_v4  ;;  %v10096_v4 = vld [vmem:[#allocation196_spill] sm:$0xff]  ;;  %v10097_v24 = vld [vmem:[#allocation197_spill] sm:$0xff] }
 0x2d0   :  { %2609 = vmatpush.bf16.msra.mxu0 %v10089_v26  ;;  %2622 = vmatpush.bf16.msrb.mxu1 %v10090_v49 }
 0x2d1   :  { %2635 = vmatpush.bf16.msrb.mxu2 %v10091_v32  ;;  %2648 = vmatpush.bf16.msra.mxu3 %v10092_v52  ;;  %v2256_v9 = vpack.c.bf16 %v2253_v62, %v2253_v62  ;;  %v10099_v62 = vld [vmem:[#allocation50_spill] sm:$0xff] }
 0x2d3   :  { %2562 = vmatmul.bf16.vlgmr.msrb.gmra.mxu0 %v2256_v9  ;;  %2575 = vmatmul.bf16.vlgmr.msra.gmra.mxu1 %v2256_v9 }
 0x2d4   :  { %2588 = vmatmul.bf16.vlgmr.msra.gmra.mxu2 %v2256_v9  ;;  %2601 = vmatmul.bf16.vlgmr.msrb.gmra.mxu3 %v2256_v9  ;;  %v211_v9 = vadd.f32 %v10100_v43, %v10099_v62  ;;  %v10104_v43 = vld [vmem:[#allocation62_spill] sm:$0xff]  ;;  %v10105_v62 = vld [vmem:[#allocation68_spill] sm:$0xff] }
 0x2d5   :  { %2610 = vmatpush.bf16.msra.mxu0 %v10093_v29  ;;  %2623 = vmatpush.bf16.msrb.mxu1 %v10094_v23 }
 0x2d6   :  { %2636 = vmatpush.bf16.msrb.mxu2 %v10095_v25  ;;  %2649 = vmatpush.bf16.msra.mxu3 %v10096_v4 }
 0x2d9   :  { %2611 = vmatpush.bf16.msra.mxu0 %v10097_v24  ;;  %2624 = vmatpush.bf16.msrb.mxu1 %v10098_v63 }
 0x2da   :  { %2637 = vmatpush.bf16.msrb.mxu2 %v7703_v58  ;;  %2650 = vmatpush.bf16.msra.mxu3 %v7705_v46  ;;  %v10137_v46 = vld [vmem:[#allocation91_spill] sm:$0xff] }
 0x2dd   :  { %2612 = vmatpush.bf16.msra.mxu0 %v7709_v19  ;;  %2625 = vmatpush.bf16.msrb.mxu1 %v7711_v50  ;;  %v10136_v19 = vld [vmem:[#allocation90_spill] sm:$0xff] }
 0x2de   :  { %2638 = vmatpush.bf16.msrb.mxu2 %v7715_v27  ;;  %2651 = vmatpush.bf16.msra.mxu3 %v7717_v14 }
 0x2e1   :  { %2613 = vmatpush.bf16.msra.mxu0 %v7721_v39  ;;  %2626 = vmatpush.bf16.msrb.mxu1 %v7723_v56 }
 0x2e2   :  { %2639 = vmatpush.bf16.msrb.mxu2 %v7727_v55  ;;  %2652 = vmatpush.bf16.msra.mxu3 %v7729_v10 }
 0x2e4   :  { %2614 = vmatmul.bf16.vlgmr.msra.gmra.mxu0 %v7887_v18  ;;  %2627 = vmatmul.bf16.vlgmr.msrb.gmra.mxu1 %v7887_v18 }
 0x2e5   :  { %2735 = vmatpush.bf16.msrb.mxu0 %v6830_v21  ;;  %2748 = vmatpush.bf16.msra.mxu1 %v6876_v48  ;;  %v10101_v21 = vld [vmem:[#allocation70_spill] sm:$0xff] }
 0x2e6   :  { %2640 = vmatmul.bf16.vlgmr.msrb.gmra.mxu2 %v7887_v18  ;;  %2653 = vmatmul.bf16.vlgmr.msra.gmra.mxu3 %v7887_v18 }
 0x2e7   :  { %2761 = vmatpush.bf16.msra.mxu2 %v6866_v42  ;;  %2774 = vmatpush.bf16.msrb.mxu3 %v6857_v35 }
 0x2e9   :  { %2736 = vmatpush.bf16.msrb.mxu0 %v6855_v28  ;;  %2749 = vmatpush.bf16.msra.mxu1 %v6895_v60  ;;  %v10102_v28 = vld [vmem:[#allocation24_spill] sm:$0xff] }
 0x2eb   :  { %2762 = vmatpush.bf16.msra.mxu2 %v6885_v53  ;;  %2775 = vmatpush.bf16.msrb.mxu3 %v6872_v47  ;;  %v10103_v47 = vld [vmem:[#allocation34_spill] sm:$0xff] }
 0x2ed   :  { %2737 = vmatpush.bf16.msrb.mxu0 %v6864_v41  ;;  %2750 = vmatpush.bf16.msra.mxu1 %v6912_v6  ;;  %v2273_v18 = vpop.f32.mrf.mxu0  ;;  %v2286_v48 = vpop.f32.mrf.mxu1  ;;  %v293_v41 = vadd.f32 %v10105_v62, %v10104_v43  ;;  %v10106_v6 = vld [vmem:[#allocation33_spill] sm:$0xff]  ;;  %v10113_v43 = vld [vmem:[#allocation42_spill] sm:$0xff] }
 0x2ee   :  { %v2316_v42 = vadd.f32 %v2273_v18, %v211_v9  ;;  %v2317_v35 = vadd.f32 %v2286_v48, %v10101_v21  ;;  %v10107_v9 = vld [vmem:[#allocation31_spill] sm:$0xff]  ;;  %v10108_v18 = vld [vmem:[#allocation28_spill] sm:$0xff] }
 0x2ef   :  { %2763 = vmatpush.bf16.msra.mxu2 %v6903_v1  ;;  %2776 = vmatpush.bf16.msrb.mxu3 %v6897_v61  ;;  %v10109_v61 = vld [vmem:[#allocation37_spill] sm:$0xff] }
 0x2f0   :  { %v5900_v60 = vmul.f32 -1.442695, %v2316_v42  ;;  %v5901_v53 = vmul.f32 -1.442695, %v2317_v35 }
 0x2f1   :  { %2738 = vmatpush.bf16.msrb.mxu0 %v10102_v28  ;;  %2751 = vmatpush.bf16.msra.mxu1 %v10103_v47  ;;  %v10110_v47 = vld [vmem:[#allocation38_spill] sm:$0xff] }
 0x2f2   :  { %6230 = vpow2.f32 %v5900_v60  ;;  %v10111_v60 = vld [vmem:[#allocation35_spill] sm:$0xff] }
 0x2f3   :  { %6232 = vpow2.f32 %v5901_v53  ;;  %2764 = vmatpush.bf16.msra.mxu2 %v10106_v6  ;;  %2777 = vmatpush.bf16.msrb.mxu3 %v10107_v9  ;;  %v10112_v53 = vld [vmem:[#allocation32_spill] sm:$0xff] }
 0x2f4   :  { %v2299_v21 = vpop.f32.mrf.mxu2  ;;  %v2312_v48 = vpop.f32.mrf.mxu3 }
 0x2f5   :  { %2739 = vmatpush.bf16.msrb.mxu0 %v10108_v18  ;;  %2752 = vmatpush.bf16.msra.mxu1 %v10109_v61  ;;  %v2318_v35 = vadd.f32 %v2299_v21, %v293_v41  ;;  %v2275_v42 = vpop.f32.mrf.mxu0  ;;  %v2288_v28 = vpop.f32.mrf.mxu1  ;;  %v10114_v18 = vld [vmem:[#allocation41_spill] sm:$0xff]  ;;  %v10115_v41 = vld [vmem:[#allocation39_spill] sm:$0xff] }
 0x2f6   :  { %v10117_v42 = vld [vmem:[#allocation44_spill] sm:$0xff]  ;;  %v10120_v61 = vld [vmem:[#allocation45_spill] sm:$0xff] }
 0x2f7   :  { %v5902_v1 = vmul.f32 -1.442695, %v2318_v35  ;;  %2765 = vmatpush.bf16.msra.mxu2 %v10110_v47  ;;  %2778 = vmatpush.bf16.msrb.mxu3 %v10111_v60  ;;  %v10116_v35 = vld [vmem:[#allocation36_spill] sm:$0xff]  ;;  %v10119_v47 = vld [vmem:[#allocation63_spill] sm:$0xff] }
 0x2f8   :  { %v6231_v62 = vpop.eup %6230 }
 0x2f9   :  { %2740 = vmatpush.bf16.msrb.mxu0 %v10112_v53  ;;  %2753 = vmatpush.bf16.msra.mxu1 %v10113_v43  ;;  %v6233_v9 = vpop.eup %6232  ;;  %v2329_v6 = vadd.f32 1.0, %v6231_v62  ;;  %6234 = vpow2.f32 %v5902_v1  ;;  %v10118_v53 = vld [vmem:[#allocation56_spill] sm:$0xff]  ;;  %v10121_v1 = vld [vmem:[#allocation43_spill] sm:$0xff] }
 0x2fa   :  { %v2330_v10 = vadd.f32 1.0, %v6233_v9  ;;  %v334_v43 = vadd.f32 %v10119_v47, %v10118_v53  ;;  %v10122_v62 = vld [vmem:[#allocation40_spill] sm:$0xff]  ;;  %v10126_v53 = vld [vmem:[#allocation47_spill] sm:$0xff] }
 0x2fb   :  { %6236 = vrcp.f32 %v2329_v6  ;;  %2766 = vmatpush.bf16.msra.mxu2 %v10114_v18  ;;  %2779 = vmatpush.bf16.msrb.mxu3 %v10115_v41  ;;  %v10123_v41 = vld [vmem:[#allocation48_spill] sm:$0xff]  ;;  %v10124_v18 = vld [vmem:[#allocation77_spill] sm:$0xff]  ;;  %v2341_v39 = vand.u32 2147483647, %v2329_v6  ;;  %vm2337_vm11 = vweird.f32 %v2329_v6 }
 0x2fc   :  { %6238 = vrcp.f32 %v2330_v10  ;;  %v2301_v28 = vpop.f32.mrf.mxu2  ;;  %v2314_v21 = vpop.f32.mrf.mxu3  ;;  %vm2352_vm12 = vweird.f32 %v2330_v10 }
 0x2fd   :  { %2741 = vmatpush.bf16.msrb.mxu0 %v10116_v35  ;;  %2754 = vmatpush.bf16.msra.mxu1 %v10117_v42  ;;  %v2319_v21 = vadd.f32 %v2312_v48, %v334_v43  ;;  %v10125_v35 = vld [vmem:[#allocation78_spill] sm:$0xff]  ;;  %v2343_v43 = vand.u32 2147483648, %v2329_v6  ;;  %vm2342_vm15 = vcmp.eq.f32.partialorder %v2341_v39, 8.507059e+37 }
 0x2fe   :  { %v10130_v48 = vld [vmem:[#allocation82_spill] sm:$0xff] }
 0x2ff   :  { %v6235_v60 = vpop.eup %6234  ;;  %2767 = vmatpush.bf16.msra.mxu2 %v10120_v61  ;;  %2780 = vmatpush.bf16.msrb.mxu3 %v10121_v1  ;;  %v10127_v1 = vld [vmem:[#allocation46_spill] sm:$0xff]  ;;  %v10128_v61 = vld [vmem:[#allocation79_spill] sm:$0xff] }
 0x300   :  { %v8030_v9 = vadd.f32 1.0, %v6235_v60 }
 0x301   :  { %2742 = vmatpush.bf16.msrb.mxu0 %v10122_v62  ;;  %2755 = vmatpush.bf16.msra.mxu1 %v10123_v41  ;;  %v6237_v28 = vpop.eup %6236  ;;  %v10129_v62 = vld [vmem:[#allocation80_spill] sm:$0xff] }
 0x302   :  { %v6239_v42 = vpop.eup %6238  ;;  %v2333_v55 = vmul.f32 %v6237_v28, %v2329_v6  ;;  %6240 = vrcp.f32 %v8030_v9  ;;  %vm2338_vm9 = vweird.f32 %v6237_v28  ;;  %vm2367_vm2 = vweird.f32 %v8030_v9 }
 0x303   :  { %v2348_v47 = vmul.f32 %v6239_v42, %v2330_v10  ;;  %2768 = vmatpush.bf16.msra.mxu2 %v10126_v53  ;;  %2781 = vmatpush.bf16.msrb.mxu3 %v10127_v1  ;;  %6242 = vtanh.f32 %v2319_v21  ;;  %vm2353_vm10 = vweird.f32 %v6239_v42  ;;  %v2356_v53 = vand.u32 2147483647, %v2330_v10  ;;  %vm2339_vm13 = vmor %vm2337_vm11, %vm2338_vm9 }
 0x304   :  { %v2334_v60 = vsub.f32 1.0, %v2333_v55  ;;  %vm2354_vm14 = vmor %vm2352_vm12, %vm2353_vm10 }
 0x305   :  { %2854 = vmatpush.bf16.msra.mxu0 %v10124_v18  ;;  %2867 = vmatpush.bf16.msrb.mxu1 %v10125_v35  ;;  %v2349_v41 = vsub.f32 1.0, %v2348_v47  ;;  %v10131_v35 = vld [vmem:[#allocation83_spill] sm:$0xff]  ;;  %v2358_v18 = vand.u32 2147483648, %v2330_v10  ;;  %v2344_v47 = vor.u32 1.1754944e-38, %v2343_v43  ;;  %vm2357_vm0 = vcmp.eq.f32.partialorder %v2356_v53, 8.507059e+37  ;;  %v10141_v53 = vld [vmem:[#allocation96_spill] sm:$0xff] }
 0x306   :  { %v2335_v56 = vmul.f32 %v6237_v28, %v2334_v60  ;;  %v10135_v60 = vld [vmem:[#allocation89_spill] sm:$0xff] }
 0x307   :  { %2880 = vmatpush.bf16.msrb.mxu2 %v10128_v61  ;;  %2893 = vmatpush.bf16.msra.mxu3 %v10129_v62  ;;  %v2350_v14 = vmul.f32 %v6239_v42, %v2349_v41  ;;  %v10132_v61 = vld [vmem:[#allocation84_spill] sm:$0xff]  ;;  %v10133_v62 = vld [vmem:[#allocation87_spill] sm:$0xff]  ;;  %v2359_v41 = vor.u32 1.1754944e-38, %v2358_v18 }
 0x308   :  { %v6241_v1 = vpop.eup %6240  ;;  %v2336_v55 = vadd.f32 %v6237_v28, %v2335_v56 }
 0x309   :  { %2855 = vmatpush.bf16.msra.mxu0 %v10130_v48  ;;  %2868 = vmatpush.bf16.msrb.mxu1 %v10131_v35  ;;  %v2363_v21 = vmul.f32 %v6241_v1, %v8030_v9  ;;  %v2351_v35 = vadd.f32 %v6239_v42, %v2350_v14  ;;  %v10134_v48 = vld [vmem:[#allocation88_spill] sm:$0xff]  ;;  %v6243_v56 = vpop.eup %6242  ;;  %vm2368_vm1 = vweird.f32 %v6241_v1 }
 0x30a   :  { %v2340_v27 = vsel %vm2339_vm13, %v6237_v28, %v2336_v55  ;;  %vm2369_vm3 = vmor %vm2367_vm2, %vm2368_vm1  ;;  %v10145_v28 = vld [vmem:[#allocation100_spill] sm:$0xff] }
 0x30b   :  { %2881 = vmatpush.bf16.msrb.mxu2 %v10132_v61  ;;  %2894 = vmatpush.bf16.msra.mxu3 %v10133_v62  ;;  %v2364_v6 = vsub.f32 1.0, %v2363_v21  ;;  %v2345_v50 = vsel %vm2342_vm15, %v2344_v47, %v2340_v27  ;;  %v2355_v61 = vsel %vm2354_vm14, %v6239_v42, %v2351_v35  ;;  %v10140_v27 = vld [vmem:[#allocation95_spill] sm:$0xff]  ;;  %v10143_v35 = vld [vmem:[#allocation98_spill] sm:$0xff]  ;;  %v10146_v21 = vld [vmem:[#allocation101_spill] sm:$0xff] }
 0x30c   :  { %v2360_v62 = vsel %vm2357_vm0, %v2359_v41, %v2355_v61  ;;  %v2379_v10 = vmul.f32 %v6243_v56, %v2345_v50  ;;  %v2373_v61 = vand.u32 2147483648, %v8030_v9  ;;  %v10142_v50 = vld [vmem:[#allocation97_spill] sm:$0xff]  ;;  %v10147_v47 = vld [vmem:[#allocation102_spill] sm:$0xff] }
 0x30d   :  { %2856 = vmatpush.bf16.msra.mxu0 %v10134_v48  ;;  %2869 = vmatpush.bf16.msrb.mxu1 %v10135_v60  ;;  %v2365_v14 = vmul.f32 %v6241_v1, %v2364_v6  ;;  %v2378_v43 = vmul.f32 %v2360_v62, %v7813_v54  ;;  %v10138_v48 = vld [vmem:[#allocation92_spill] sm:$0xff]  ;;  %v10139_v60 = vld [vmem:[#allocation93_spill] sm:$0xff]  ;;  %v2371_v54 = vand.u32 2147483647, %v8030_v9  ;;  %v10144_v62 = vld [vmem:[#allocation99_spill] sm:$0xff] }
 0x30e   :  { %v2374_v55 = vor.u32 1.1754944e-38, %v2373_v61  ;;  %v10150_v9 = vld [vmem:[#allocation105_spill] sm:$0xff]  ;;  %v10153_v61 = vld [vmem:[#allocation108_spill] sm:$0xff] }
 0x30f   :  { %2882 = vmatpush.bf16.msrb.mxu2 %v10136_v19  ;;  %2895 = vmatpush.bf16.msra.mxu3 %v10137_v46  ;;  %v8053_v18 = vadd.f32 %v2379_v10, %v2378_v43  ;;  %v2366_v39 = vadd.f32 %v6241_v1, %v2365_v14  ;;  %vm2372_vm4 = vcmp.eq.f32.partialorder %v2371_v54, 8.507059e+37  ;;  %v10148_v10 = vld [vmem:[#allocation103_spill] sm:$0xff]  ;;  %v10149_v14 = vld [vmem:[#allocation104_spill] sm:$0xff] }
 0x311   :  { %2857 = vmatpush.bf16.msra.mxu0 %v10138_v48  ;;  %2870 = vmatpush.bf16.msrb.mxu1 %v10139_v60  ;;  %6244 = vtanh.f32 %v8053_v18  ;;  %v2370_v42 = vsel %vm2369_vm3, %v6241_v1, %v2366_v39  ;;  %v10151_v1 = vld [vmem:[#allocation106_spill] sm:$0xff]  ;;  %v10152_v39 = vld [vmem:[#allocation107_spill] sm:$0xff] }
 0x312   :  { %v2375_v56 = vsel %vm2372_vm4, %v2374_v55, %v2370_v42  ;;  %v10154_v55 = vld [vmem:[#allocation111_spill] sm:$0xff] }
 0x313   :  { %2883 = vmatpush.bf16.msrb.mxu2 %v10140_v27  ;;  %2896 = vmatpush.bf16.msra.mxu3 %v10141_v53 }
 0x315   :  { %2858 = vmatpush.bf16.msra.mxu0 %v10142_v50  ;;  %2871 = vmatpush.bf16.msrb.mxu1 %v10143_v35 }
 0x317   :  { %2884 = vmatpush.bf16.msrb.mxu2 %v10144_v62  ;;  %2897 = vmatpush.bf16.msra.mxu3 %v10145_v28  ;;  %v6245_v41 = vpop.eup %6244  ;;  %v10177_v28 = vld [vmem:[#allocation61_spill] sm:$0xff] }
 0x318   :  { %v2382_v6 = vmul.f32 %v6245_v41, %v2375_v56  ;;  %v10155_v41 = vld [vmem:[#allocation112_spill] sm:$0xff] }
 0x319   :  { %2859 = vmatpush.bf16.msra.mxu0 %v10146_v21  ;;  %2872 = vmatpush.bf16.msrb.mxu1 %v10147_v47  ;;  %v10156_v56 = vld [vmem:[#allocation116_spill] sm:$0xff] }
 0x31a   :  { %v8071_v43 = vpack.c.bf16 %v2382_v6, %v2382_v6  ;;  %v10157_v6 = vld [vmem:[#allocation117_spill] sm:$0xff]  ;;  %v10172_v21 = vld [vmem:[#allocation132_spill] sm:$0xff] }
 0x31b   :  { %2885 = vmatpush.bf16.msrb.mxu2 %v10148_v10  ;;  %2898 = vmatpush.bf16.msra.mxu3 %v10149_v14  ;;  %v10164_v14 = vld [vmem:[#allocation124_spill] sm:$0xff] }
 0x31c   :  { %2743 = vmatmul.bf16.vlgmr.msrb.gmra.mxu0 %v8071_v43  ;;  %2756 = vmatmul.bf16.vlgmr.msra.gmra.mxu1 %v8071_v43 }
 0x31d   :  { %2860 = vmatpush.bf16.msra.mxu0 %v10150_v9  ;;  %2873 = vmatpush.bf16.msrb.mxu1 %v10151_v1 }
 0x31e   :  { %2769 = vmatmul.bf16.vlgmr.msra.gmra.mxu2 %v8071_v43  ;;  %2782 = vmatmul.bf16.vlgmr.msrb.gmra.mxu3 %v8071_v43 }
 0x31f   :  { %2886 = vmatpush.bf16.msrb.mxu2 %v10152_v39  ;;  %2899 = vmatpush.bf16.msra.mxu3 %v10153_v61  ;;  %v2392_v54 = vpop.f32.mrf.mxu0  ;;  %v2405_v42 = vpop.f32.mrf.mxu1  ;;  %v10158_v39 = vld [vmem:[#allocation118_spill] sm:$0xff]  ;;  %v10159_v61 = vld [vmem:[#allocation119_spill] sm:$0xff] }
 0x321   :  { %2861 = vmatpush.bf16.msra.mxu0 %v10016_v11  ;;  %2874 = vmatpush.bf16.msrb.mxu1 %v10017_v36  ;;  %v10160_v11 = vld [vmem:[#allocation120_spill] sm:$0xff]  ;;  %v10161_v36 = vld [vmem:[#allocation121_spill] sm:$0xff] }
 0x323   :  { %2887 = vmatpush.bf16.msrb.mxu2 %v10154_v55  ;;  %2900 = vmatpush.bf16.msra.mxu3 %v10155_v41 }
 0x325   :  { %2906 = vmatpush.bf16.msrb.mxu0 %v9887_v3  ;;  %2919 = vmatpush.bf16.msra.mxu1 %v9888_v8  ;;  %v10162_v3 = vld [vmem:[#allocation122_spill] sm:$0xff]  ;;  %v10163_v8 = vld [vmem:[#allocation123_spill] sm:$0xff] }
 0x326   :  { %v2418_v1 = vpop.f32.mrf.mxu2  ;;  %v2431_v55 = vpop.f32.mrf.mxu3 }
 0x327   :  { %2932 = vmatpush.bf16.msra.mxu2 %v10156_v56  ;;  %2945 = vmatpush.bf16.msrb.mxu3 %v10157_v6  ;;  %v2394_v9 = vpop.f32.mrf.mxu0  ;;  %v2407_v41 = vpop.f32.mrf.mxu1  ;;  %v10165_v56 = vld [vmem:[#allocation125_spill] sm:$0xff]  ;;  %v10166_v6 = vld [vmem:[#allocation126_spill] sm:$0xff] }
 0x329   :  { %2907 = vmatpush.bf16.msrb.mxu0 %v10158_v39  ;;  %2920 = vmatpush.bf16.msra.mxu1 %v10159_v61  ;;  %v10167_v39 = vld [vmem:[#allocation127_spill] sm:$0xff]  ;;  %v10168_v61 = vld [vmem:[#allocation128_spill] sm:$0xff] }
 0x32b   :  { %2933 = vmatpush.bf16.msra.mxu2 %v10160_v11  ;;  %2946 = vmatpush.bf16.msrb.mxu3 %v10161_v36  ;;  %v10169_v11 = vld [vmem:[#allocation129_spill] sm:$0xff]  ;;  %v10170_v36 = vld [vmem:[#allocation130_spill] sm:$0xff] }
 0x32d   :  { %2908 = vmatpush.bf16.msrb.mxu0 %v10162_v3  ;;  %2921 = vmatpush.bf16.msra.mxu1 %v10163_v8  ;;  %v10171_v3 = vld [vmem:[#allocation131_spill] sm:$0xff] }
 0x32e   :  { %v2420_v8 = vpop.f32.mrf.mxu2  ;;  %v2433_v10 = vpop.f32.mrf.mxu3 }
 0x32f   :  { %2934 = vmatpush.bf16.msra.mxu2 %v10164_v14  ;;  %2947 = vmatpush.bf16.msrb.mxu3 %v10165_v56  ;;  %v2444_v9 = vpop.f32.mrf.mxu0  ;;  %v2457_v41 = vpop.f32.mrf.mxu1  ;;  %v10173_v56 = vld [vmem:[#allocation133_spill] sm:$0xff]  ;;  %v10178_v8 = vld [vmem:[#allocation136_spill] sm:$0xff] }
 0x330   :  { %v2445_v47 = vadd.f32 %v2444_v9, %v2392_v54  ;;  %v2458_v14 = vadd.f32 %v2457_v41, %v2405_v42  ;;  %v10179_v10 = vld [vmem:[#allocation137_spill] sm:$0xff]  ;;  %v10180_v54 = vld [vmem:[#allocation138_spill] sm:$0xff]  ;;  %v10181_v42 = vld [vmem:[#allocation139_spill] sm:$0xff] }
 0x331   :  { %2909 = vmatpush.bf16.msrb.mxu0 %v10166_v6  ;;  %2922 = vmatpush.bf16.msra.mxu1 %v10167_v39  ;;  %v10174_v6 = vld [vmem:[#allocation134_spill] sm:$0xff]  ;;  %v10175_v39 = vld [vmem:[#allocation135_spill] sm:$0xff] }
 0x333   :  { %2935 = vmatpush.bf16.msra.mxu2 %v10168_v61  ;;  %2948 = vmatpush.bf16.msrb.mxu3 %v10169_v11  ;;  %v10176_v61 = vld [vmem:[#allocation52_spill] sm:$0xff] }
 0x334   :  { %v2487_v11 = vadd.f32 %v2445_v47, %v10176_v61  ;;  %v10182_v47 = vld [vmem:[#allocation140_spill] sm:$0xff] }
 0x335   :  { %2910 = vmatpush.bf16.msrb.mxu0 %v10170_v36  ;;  %2923 = vmatpush.bf16.msra.mxu1 %v10171_v3  ;;  %v2488_v36 = vadd.f32 %v2458_v14, %v10177_v28  ;;  %v10183_v14 = vld [vmem:[#allocation141_spill] sm:$0xff] }
 0x336   :  { %v5903_v62 = vmul.f32 -1.442695, %v2487_v11  ;;  %v2470_v9 = vpop.f32.mrf.mxu2  ;;  %v2483_v41 = vpop.f32.mrf.mxu3 }
 0x337   :  { %2936 = vmatpush.bf16.msra.mxu2 %v10172_v21  ;;  %2949 = vmatpush.bf16.msrb.mxu3 %v10173_v56  ;;  %v5904_v3 = vmul.f32 -1.442695, %v2488_v36  ;;  %v2459_v56 = vpop.f32.mrf.mxu1  ;;  %v10184_v36 = vld [vmem:[#allocation59_spill] sm:$0xff] }
 0x338   :  { %6246 = vpow2.f32 %v5903_v62  ;;  %v10188_v62 = vld [vmem:[#allocation145_spill] sm:$0xff] }
 0x339   :  { %2911 = vmatpush.bf16.msrb.mxu0 %v10174_v6  ;;  %2924 = vmatpush.bf16.msra.mxu1 %v10175_v39  ;;  %6248 = vpow2.f32 %v5904_v3  ;;  %v2471_v6 = vadd.f32 %v2470_v9, %v2418_v1  ;;  %v2446_v39 = vpop.f32.mrf.mxu0 }
 0x33b   :  { %2937 = vmatpush.bf16.msra.mxu2 %v10178_v8  ;;  %2950 = vmatpush.bf16.msrb.mxu3 %v10179_v10  ;;  %v2489_v11 = vadd.f32 %v2471_v6, %v10184_v36  ;;  %v10185_v8 = vld [vmem:[#allocation142_spill] sm:$0xff]  ;;  %v10186_v10 = vld [vmem:[#allocation143_spill] sm:$0xff] }
 0x33d   :  { %2912 = vmatpush.bf16.msrb.mxu0 %v10180_v54  ;;  %2925 = vmatpush.bf16.msra.mxu1 %v10181_v42  ;;  %v5905_v54 = vmul.f32 -1.442695, %v2489_v11  ;;  %v10187_v42 = vld [vmem:[#allocation144_spill] sm:$0xff] }
 0x33e   :  { %v6247_v28 = vpop.eup %6246  ;;  %v2472_v56 = vpop.f32.mrf.mxu2 }
 0x33f   :  { %2938 = vmatpush.bf16.msra.mxu2 %v10182_v47  ;;  %2951 = vmatpush.bf16.msrb.mxu3 %v10183_v14  ;;  %v6249_v3 = vpop.eup %6248  ;;  %v2500_v1 = vadd.f32 1.0, %v6247_v28  ;;  %6250 = vpow2.f32 %v5905_v54  ;;  %v2485_v9 = vpop.f32.mrf.mxu3  ;;  %v2484_v14 = vadd.f32 %v2483_v41, %v2431_v55  ;;  %v10189_v47 = vld [vmem:[#allocation54_spill] sm:$0xff] }
 0x340   :  { %v2501_v39 = vadd.f32 1.0, %v6249_v3 }
 0x341   :  { %2913 = vmatpush.bf16.msrb.mxu0 %v10185_v8  ;;  %2926 = vmatpush.bf16.msra.mxu1 %v10186_v10  ;;  %6252 = vrcp.f32 %v2500_v1  ;;  %v2490_v10 = vadd.f32 %v2484_v14, %v10189_v47  ;;  %v2514_v35 = vand.u32 2147483648, %v2500_v1  ;;  %v2512_v3 = vand.u32 2147483647, %v2500_v1 }
 0x342   :  { %6254 = vrcp.f32 %v2501_v39  ;;  %v2529_v28 = vand.u32 2147483648, %v2501_v39  ;;  %v2527_v55 = vand.u32 2147483647, %v2501_v39  ;;  %vm2508_vm7 = vweird.f32 %v2500_v1 }
 0x343   :  { %2939 = vmatpush.bf16.msra.mxu2 %v10187_v42  ;;  %2952 = vmatpush.bf16.msrb.mxu3 %v10188_v62  ;;  %vm2523_vm8 = vweird.f32 %v2501_v39  ;;  %vm2513_vm11 = vcmp.eq.f32.partialorder %v2512_v3, 8.507059e+37 }
 0x344   :  { %vm2528_vm12 = vcmp.eq.f32.partialorder %v2527_v55, 8.507059e+37 }
 0x345   :  { %v6251_v6 = vpop.eup %6250 }
 0x346   :  { %v2502_v36 = vadd.f32 1.0, %v6251_v6  ;;  %v2515_v6 = vor.u32 1.1754944e-38, %v2514_v35 }
 0x347   :  { %v6253_v8 = vpop.eup %6252 }
 0x348   :  { %v6255_v11 = vpop.eup %6254  ;;  %v2504_v61 = vmul.f32 %v6253_v8, %v2500_v1  ;;  %6256 = vrcp.f32 %v2502_v36  ;;  %vm2509_vm5 = vweird.f32 %v6253_v8  ;;  %vm2538_vm14 = vweird.f32 %v2502_v36 }
 0x349   :  { %v2519_v42 = vmul.f32 %v6255_v11, %v2501_v39  ;;  %6258 = vtanh.f32 %v2490_v10  ;;  %vm2524_vm6 = vweird.f32 %v6255_v11  ;;  %vm2510_vm9 = vmor %vm2508_vm7, %vm2509_vm5  ;;  %v2542_v3 = vand.u32 2147483647, %v2502_v36 }
 0x34a   :  { %v2505_v21 = vsub.f32 1.0, %v2504_v61  ;;  %vm2525_vm10 = vmor %vm2523_vm8, %vm2524_vm6  ;;  %v2530_v61 = vor.u32 1.1754944e-38, %v2529_v28 }
 0x34b   :  { %v2520_v62 = vsub.f32 1.0, %v2519_v42  ;;  %vm2543_vm0 = vcmp.eq.f32.partialorder %v2542_v3, 8.507059e+37  ;;  %v10190_v3 = vld [vmem:[#allocation64_spill] sm:$0xff] }
 0x34c   :  { %v2506_v54 = vmul.f32 %v6253_v8, %v2505_v21 }
 0x34d   :  { %v2521_v56 = vmul.f32 %v6255_v11, %v2520_v62 }
 0x34e   :  { %v6257_v41 = vpop.eup %6256  ;;  %v2507_v9 = vadd.f32 %v6253_v8, %v2506_v54 }
 0x34f   :  { %v2534_v14 = vmul.f32 %v6257_v41, %v2502_v36  ;;  %v2522_v47 = vadd.f32 %v6255_v11, %v2521_v56  ;;  %v6259_v21 = vpop.eup %6258  ;;  %vm2539_vm13 = vweird.f32 %v6257_v41  ;;  %v2544_v56 = vand.u32 2147483648, %v2502_v36 }
 0x350   :  { %v2511_v42 = vsel %vm2510_vm9, %v6253_v8, %v2507_v9  ;;  %v2563_v10 = vpop.f32.mrf.mxu0  ;;  %v2576_v50 = vpop.f32.mrf.mxu1  ;;  %vm2540_vm15 = vmor %vm2538_vm14, %vm2539_vm13 }
 0x351   :  { %v2535_v53 = vsub.f32 1.0, %v2534_v14  ;;  %v2516_v27 = vsel %vm2513_vm11, %v2515_v6, %v2511_v42  ;;  %v2526_v62 = vsel %vm2525_vm10, %v6255_v11, %v2522_v47 }
 0x352   :  { %v2531_v60 = vsel %vm2528_vm12, %v2530_v61, %v2526_v62  ;;  %v2550_v48 = vmul.f32 %v6259_v21, %v2516_v27  ;;  %v2545_v27 = vor.u32 1.1754944e-38, %v2544_v56 }
 0x353   :  { %v2536_v54 = vmul.f32 %v6257_v41, %v2535_v53  ;;  %v2549_v1 = vmul.f32 %v2531_v60, %v7874_v51 }
 0x355   :  { %v8120_v39 = vadd.f32 %v2550_v48, %v2549_v1  ;;  %v2537_v35 = vadd.f32 %v6257_v41, %v2536_v54 }
 0x357   :  { %6260 = vtanh.f32 %v8120_v39  ;;  %v2589_v8 = vpop.f32.mrf.mxu2  ;;  %v8123_v28 = vpop.f32.mrf.mxu3  ;;  %v2541_v11 = vsel %vm2540_vm15, %v6257_v41, %v2537_v35 }
 0x358   :  { %v2565_v9 = vpop.f32.mrf.mxu0  ;;  %v2578_v47 = vpop.f32.mrf.mxu1  ;;  %v2546_v51 = vsel %vm2543_vm0, %v2545_v27, %v2541_v11  ;;  %v10192_v11 = vld [vmem:[#allocation155_spill] sm:$0xff] }
 0x359   :  { %v10191_v47 = vld [vmem:[#allocation154_spill] sm:$0xff] }
 0x35d   :  { %v6261_v53 = vpop.eup %6260 }
 0x35e   :  { %v2553_v48 = vmul.f32 %v6261_v53, %v2546_v51  ;;  %v10193_v53 = vld [vmem:[#allocation156_spill] sm:$0xff]  ;;  %v10194_v51 = vld [vmem:[#allocation157_spill] sm:$0xff] }
 0x35f   :  { %v2591_v60 = vpop.f32.mrf.mxu2  ;;  %v2604_v55 = vpop.f32.mrf.mxu3 }
 0x360   :  { %v8125_v14 = vpack.c.bf16 %v2553_v48, %v2553_v48 }
 0x361   :  { %v2615_v6 = vpop.f32.mrf.mxu0  ;;  %v2628_v61 = vpop.f32.mrf.mxu1 }
 0x362   :  { %v2616_v42 = vadd.f32 %v2615_v6, %v2563_v10  ;;  %v2629_v21 = vadd.f32 %v2628_v61, %v2576_v50  ;;  %2862 = vmatmul.bf16.vlgmr.msra.gmra.mxu0 %v8125_v14  ;;  %2875 = vmatmul.bf16.vlgmr.msrb.gmra.mxu1 %v8125_v14 }
 0x363   :  { %2888 = vmatmul.bf16.vlgmr.msrb.gmra.mxu2 %v8125_v14  ;;  %2901 = vmatmul.bf16.vlgmr.msra.gmra.mxu3 %v8125_v14 }
 0x364   :  { %v2658_v36 = vadd.f32 %v2616_v42, %v7883_v38  ;;  %v2659_v41 = vadd.f32 %v2629_v21, %v7885_v17  ;;  %3025 = vmatpush.bf16.msra.mxu0 %v10048_v7  ;;  %3038 = vmatpush.bf16.msrb.mxu1 %v10049_v22  ;;  %v10195_v42 = vld [vmem:[#allocation158_spill] sm:$0xff]  ;;  %v10196_v21 = vld [vmem:[#allocation159_spill] sm:$0xff] }
 0x365   :  { %3051 = vmatpush.bf16.msrb.mxu2 %v10050_v30  ;;  %3064 = vmatpush.bf16.msra.mxu3 %v10051_v37 }
 0x366   :  { %v5906_v50 = vmul.f32 -1.442695, %v2658_v36  ;;  %v5907_v10 = vmul.f32 -1.442695, %v2659_v41  ;;  %v10197_v36 = vld [vmem:[#allocation160_spill] sm:$0xff]  ;;  %v10198_v41 = vld [vmem:[#allocation161_spill] sm:$0xff] }
 0x368   :  { %6262 = vpow2.f32 %v5906_v50  ;;  %3026 = vmatpush.bf16.msra.mxu0 %v10053_v33  ;;  %3039 = vmatpush.bf16.msrb.mxu1 %v10054_v45 }
 0x369   :  { %v2641_v62 = vpop.f32.mrf.mxu2  ;;  %v2654_v54 = vpop.f32.mrf.mxu3  ;;  %6264 = vpow2.f32 %v5907_v10  ;;  %3052 = vmatpush.bf16.msrb.mxu2 %v10055_v15  ;;  %3065 = vmatpush.bf16.msra.mxu3 %v10056_v2  ;;  %v10199_v10 = vld [vmem:[#allocation162_spill] sm:$0xff] }
 0x36a   :  { %v2642_v1 = vadd.f32 %v2641_v62, %v2589_v8  ;;  %v2617_v35 = vpop.f32.mrf.mxu0  ;;  %v2630_v56 = vpop.f32.mrf.mxu1  ;;  %v2655_v50 = vadd.f32 %v2654_v54, %v8123_v28  ;;  %v10200_v62 = vld [vmem:[#allocation163_spill] sm:$0xff]  ;;  %v10204_v54 = vld [vmem:[#allocation166_spill] sm:$0xff] }
 0x36b   :  { %v10201_v35 = vld [vmem:[#allocation164_spill] sm:$0xff]  ;;  %v10202_v56 = vld [vmem:[#allocation165_spill] sm:$0xff] }
 0x36c   :  { %v2660_v9 = vadd.f32 %v2642_v1, %v10190_v3  ;;  %3027 = vmatpush.bf16.msra.mxu0 %v10191_v47  ;;  %3040 = vmatpush.bf16.msrb.mxu1 %v10192_v11 }
 0x36d   :  { %3053 = vmatpush.bf16.msrb.mxu2 %v10193_v53  ;;  %3066 = vmatpush.bf16.msra.mxu3 %v10194_v51 }
 0x36e   :  { %v5908_v27 = vmul.f32 -1.442695, %v2660_v9  ;;  %v6263_v48 = vpop.eup %6262 }
 0x36f   :  { %v6265_v60 = vpop.eup %6264  ;;  %v2671_v8 = vadd.f32 1.0, %v6263_v48  ;;  %v10203_v48 = vld [vmem:[#allocation58_spill] sm:$0xff] }
 0x370   :  { %6266 = vpow2.f32 %v5908_v27  ;;  %v8146_v55 = vadd.f32 1.0, %v6265_v60  ;;  %3028 = vmatpush.bf16.msra.mxu0 %v10195_v42  ;;  %3041 = vmatpush.bf16.msrb.mxu1 %v10196_v21  ;;  %v2661_v60 = vadd.f32 %v2655_v50, %v10203_v48 }
 0x371   :  { %v2643_v6 = vpop.f32.mrf.mxu2  ;;  %v2656_v61 = vpop.f32.mrf.mxu3  ;;  %6268 = vrcp.f32 %v2671_v8  ;;  %3054 = vmatpush.bf16.msrb.mxu2 %v10197_v36  ;;  %3067 = vmatpush.bf16.msra.mxu3 %v10198_v41  ;;  %v2683_v41 = vand.u32 2147483647, %v2671_v8  ;;  %v10208_v36 = vld [vmem:[#allocation170_spill] sm:$0xff]  ;;  %vm2679_vm3 = vweird.f32 %v2671_v8 }
 0x372   :  { %6270 = vrcp.f32 %v8146_v55  ;;  %2914 = vmatmul.bf16.vlgmr.msrb.gmra.mxu0 %v8071_v43  ;;  %2927 = vmatmul.bf16.vlgmr.msra.gmra.mxu1 %v8071_v43  ;;  %v2700_v50 = vand.u32 2147483648, %v8146_v55  ;;  %v2698_v21 = vand.u32 2147483647, %v8146_v55  ;;  %vm2694_vm4 = vweird.f32 %v8146_v55 }
 0x373   :  { %2940 = vmatmul.bf16.vlgmr.msra.gmra.mxu2 %v8071_v43  ;;  %2953 = vmatmul.bf16.vlgmr.msrb.gmra.mxu3 %v8071_v43  ;;  %v10205_v43 = vld [vmem:[#allocation167_spill] sm:$0xff]  ;;  %vm2684_vm7 = vcmp.eq.f32.partialorder %v2683_v41, 8.507059e+37 }
 0x374   :  { %3029 = vmatpush.bf16.msra.mxu0 %v10199_v10  ;;  %3042 = vmatpush.bf16.msrb.mxu1 %v10200_v62  ;;  %v10206_v62 = vld [vmem:[#allocation168_spill] sm:$0xff]  ;;  %v2685_v10 = vand.u32 2147483648, %v2671_v8  ;;  %vm2699_vm8 = vcmp.eq.f32.partialorder %v2698_v21, 8.507059e+37  ;;  %v10212_v21 = vld [vmem:[#allocation181_spill] sm:$0xff] }
 0x375   :  { %3055 = vmatpush.bf16.msrb.mxu2 %v10201_v35  ;;  %3068 = vmatpush.bf16.msra.mxu3 %v10202_v56  ;;  %v10207_v35 = vld [vmem:[#allocation169_spill] sm:$0xff] }
 0x376   :  { %v6267_v1 = vpop.eup %6266 }
 0x377   :  { %v8162_v9 = vadd.f32 1.0, %v6267_v1  ;;  %v6269_v27 = vpop.eup %6268 }
 0x378   :  { %v6271_v6 = vpop.eup %6270  ;;  %v2675_v28 = vmul.f32 %v6269_v27, %v2671_v8  ;;  %3030 = vmatpush.bf16.msra.mxu0 %v10204_v54  ;;  %3043 = vmatpush.bf16.msrb.mxu1 %v10205_v43  ;;  %vm2680_vm1 = vweird.f32 %v6269_v27  ;;  %v10209_v54 = vld [vmem:[#allocation171_spill] sm:$0xff] }
 0x379   :  { %6272 = vrcp.f32 %v8162_v9  ;;  %v2690_v61 = vmul.f32 %v6271_v6, %v8146_v55  ;;  %3056 = vmatpush.bf16.msrb.mxu2 %v10206_v62  ;;  %3069 = vmatpush.bf16.msra.mxu3 %v10207_v35  ;;  %vm2695_vm2 = vweird.f32 %v6271_v6  ;;  %v10210_v35 = vld [vmem:[#allocation173_spill] sm:$0xff]  ;;  %vm2681_vm5 = vmor %vm2679_vm3, %vm2680_vm1  ;;  %vm2709_vm10 = vweird.f32 %v8162_v9 }
 0x37a   :  { %v2676_v56 = vsub.f32 1.0, %v2675_v28  ;;  %6274 = vtanh.f32 %v2661_v60  ;;  %v2686_v60 = vor.u32 1.1754944e-38, %v2685_v10  ;;  %vm2696_vm6 = vmor %vm2694_vm4, %vm2695_vm2 }
 0x37b   :  { %v2691_v1 = vsub.f32 1.0, %v2690_v61 }
 0x37c   :  { %v2677_v48 = vmul.f32 %v6269_v27, %v2676_v56  ;;  %3031 = vmatpush.bf16.msra.mxu0 %v10208_v36  ;;  %3044 = vmatpush.bf16.msrb.mxu1 %v10209_v54  ;;  %v2701_v54 = vor.u32 1.1754944e-38, %v2700_v50  ;;  %v10216_v50 = vld [vmem:[#allocation188_spill] sm:$0xff] }
 0x37d   :  { %v2692_v43 = vmul.f32 %v6271_v6, %v2691_v1  ;;  %3057 = vmatpush.bf16.msrb.mxu2 %v7615_v59  ;;  %3070 = vmatpush.bf16.msra.mxu3 %v10210_v35 }
 0x37e   :  { %v2678_v61 = vadd.f32 %v6269_v27, %v2677_v48 }
 0x37f   :  { %v6273_v28 = vpop.eup %6272  ;;  %v2693_v36 = vadd.f32 %v6271_v6, %v2692_v43 }
 0x380   :  { %v2705_v56 = vmul.f32 %v6273_v28, %v8162_v9  ;;  %v2682_v1 = vsel %vm2681_vm5, %v6269_v27, %v2678_v61  ;;  %3032 = vmatpush.bf16.msra.mxu0 %v7621_v40  ;;  %3045 = vmatpush.bf16.msrb.mxu1 %v7623_v34  ;;  %v6275_v59 = vpop.eup %6274  ;;  %v10211_v27 = vld [vmem:[#allocation180_spill] sm:$0xff]  ;;  %vm2710_vm9 = vweird.f32 %v6273_v28 }
 0x381   :  { %v2687_v62 = vsel %vm2684_vm7, %v2686_v60, %v2682_v1  ;;  %v2697_v48 = vsel %vm2696_vm6, %v6271_v6, %v2693_v36  ;;  %3058 = vmatpush.bf16.msrb.mxu2 %v7627_v20  ;;  %3071 = vmatpush.bf16.msra.mxu3 %v10076_v0  ;;  %v10213_v36 = vld [vmem:[#allocation182_spill] sm:$0xff]  ;;  %vm2711_vm11 = vmor %vm2709_vm10, %vm2710_vm9 }
 0x382   :  { %v2706_v35 = vsub.f32 1.0, %v2705_v56  ;;  %v2702_v8 = vsel %vm2699_vm8, %v2701_v54, %v2697_v48  ;;  %v2721_v55 = vmul.f32 %v6275_v59, %v2687_v62  ;;  %v2715_v59 = vand.u32 2147483648, %v8162_v9  ;;  %v10214_v62 = vld [vmem:[#allocation183_spill] sm:$0xff]  ;;  %v10218_v48 = vld [vmem:[#allocation73_spill] sm:$0xff] }
 0x383   :  { %v2720_v10 = vmul.f32 %v2702_v8, %v7957_v31  ;;  %v2713_v31 = vand.u32 2147483647, %v8162_v9 }
 0x384   :  { %3077 = vmatpush.bf16.msrb.mxu0 %v10077_v5  ;;  %3090 = vmatpush.bf16.msra.mxu1 %v10078_v13  ;;  %v2707_v41 = vmul.f32 %v6273_v28, %v2706_v35  ;;  %v10215_v35 = vld [vmem:[#allocation184_spill] sm:$0xff]  ;;  %v2716_v61 = vor.u32 1.1754944e-38, %v2715_v59 }
 0x385   :  { %3103 = vmatpush.bf16.msra.mxu2 %v10079_v12  ;;  %3116 = vmatpush.bf16.msrb.mxu3 %v10211_v27  ;;  %v8188_v43 = vadd.f32 %v2721_v55, %v2720_v10  ;;  %vm2714_vm12 = vcmp.eq.f32.partialorder %v2713_v31, 8.507059e+37  ;;  %v10219_v10 = vld [vmem:[#allocation200_spill] sm:$0xff] }
 0x386   :  { %v2708_v6 = vadd.f32 %v6273_v28, %v2707_v41 }
 0x387   :  { %6276 = vtanh.f32 %v8188_v43 }
 0x388   :  { %3078 = vmatpush.bf16.msrb.mxu0 %v10212_v21  ;;  %3091 = vmatpush.bf16.msra.mxu1 %v10213_v36  ;;  %v2712_v54 = vsel %vm2711_vm11, %v6273_v28, %v2708_v6  ;;  %v10217_v28 = vld [vmem:[#allocation57_spill] sm:$0xff] }
 0x389   :  { %3104 = vmatpush.bf16.msra.mxu2 %v10214_v62  ;;  %3117 = vmatpush.bf16.msrb.mxu3 %v10215_v35  ;;  %v2717_v60 = vsel %vm2714_vm12, %v2716_v61, %v2712_v54  ;;  %v255_v8 = vadd.f32 %v10218_v48, %v10217_v28  ;;  %v10220_v6 = vld [vmem:[#allocation65_spill] sm:$0xff] }
 0x38c   :  { %3079 = vmatpush.bf16.msrb.mxu0 %v10085_v16  ;;  %3092 = vmatpush.bf16.msra.mxu1 %v10086_v44 }
 0x38d   :  { %3105 = vmatpush.bf16.msra.mxu2 %v10087_v57  ;;  %3118 = vmatpush.bf16.msrb.mxu3 %v10216_v50  ;;  %v6277_v56 = vpop.eup %6276 }
 0x38e   :  { %v2724_v1 = vmul.f32 %v6277_v56, %v2717_v60  ;;  %v10221_v56 = vld [vmem:[#allocation201_spill] sm:$0xff]  ;;  %v10222_v60 = vld [vmem:[#allocation202_spill] sm:$0xff] }
 0x390   :  { %3080 = vmatpush.bf16.msrb.mxu0 %v10089_v26  ;;  %3093 = vmatpush.bf16.msra.mxu1 %v10090_v49  ;;  %v2727_v9 = vpack.c.bf16 %v2724_v1, %v2724_v1  ;;  %v10223_v1 = vld [vmem:[#allocation203_spill] sm:$0xff] }
 0x391   :  { %3106 = vmatpush.bf16.msra.mxu2 %v10091_v32  ;;  %3119 = vmatpush.bf16.msrb.mxu3 %v10092_v52 }
 0x392   :  { %3033 = vmatmul.bf16.vlgmr.msra.gmra.mxu0 %v2727_v9  ;;  %3046 = vmatmul.bf16.vlgmr.msrb.gmra.mxu1 %v2727_v9 }
 0x393   :  { %3059 = vmatmul.bf16.vlgmr.msrb.gmra.mxu2 %v2727_v9  ;;  %3072 = vmatmul.bf16.vlgmr.msra.gmra.mxu3 %v2727_v9  ;;  %v10224_v9 = vld [vmem:[#allocation204_spill] sm:$0xff] }
 0x394   :  { %3081 = vmatpush.bf16.msrb.mxu0 %v10093_v29  ;;  %3094 = vmatpush.bf16.msra.mxu1 %v10094_v23 }
 0x395   :  { %3107 = vmatpush.bf16.msra.mxu2 %v10095_v25  ;;  %3120 = vmatpush.bf16.msrb.mxu3 %v10096_v4  ;;  %v10246_v4 = vld [vmem:[#allocation31_spill] sm:$0xff]  ;;  %v10247_v25 = vld [vmem:[#allocation28_spill] sm:$0xff] }
 0x398   :  { %3082 = vmatpush.bf16.msrb.mxu0 %v10097_v24  ;;  %3095 = vmatpush.bf16.msra.mxu1 %v10098_v63 }
 0x399   :  { %v2744_v55 = vpop.f32.mrf.mxu0  ;;  %v2757_v41 = vpop.f32.mrf.mxu1  ;;  %3108 = vmatpush.bf16.msra.mxu2 %v7703_v58  ;;  %3121 = vmatpush.bf16.msrb.mxu3 %v10219_v10  ;;  %v10225_v58 = vld [vmem:[#allocation205_spill] sm:$0xff]  ;;  %v10226_v10 = vld [vmem:[#allocation206_spill] sm:$0xff] }
 0x39a   :  { %v2787_v59 = vadd.f32 %v2744_v55, %v10220_v6  ;;  %v2788_v31 = vadd.f32 %v2757_v41, %v255_v8  ;;  %v10227_v55 = vld [vmem:[#allocation72_spill] sm:$0xff] }
 0x39c   :  { %v5909_v54 = vmul.f32 -1.442695, %v2787_v59  ;;  %v5910_v61 = vmul.f32 -1.442695, %v2788_v31  ;;  %3083 = vmatpush.bf16.msrb.mxu0 %v10221_v56  ;;  %3096 = vmatpush.bf16.msra.mxu1 %v10222_v60  ;;  %v10228_v59 = vld [vmem:[#allocation207_spill] sm:$0xff]  ;;  %v10229_v31 = vld [vmem:[#allocation208_spill] sm:$0xff] }
 0x39d   :  { %3109 = vmatpush.bf16.msra.mxu2 %v10223_v1  ;;  %3122 = vmatpush.bf16.msrb.mxu3 %v10224_v9  ;;  %v10230_v1 = vld [vmem:[#allocation17_spill] sm:$0xff]  ;;  %v10231_v9 = vld [vmem:[#allocation23_spill] sm:$0xff] }
 0x39e   :  { %6278 = vpow2.f32 %v5909_v54 }
 0x39f   :  { %6280 = vpow2.f32 %v5910_v61 }
 0x3a0   :  { %3084 = vmatpush.bf16.msrb.mxu0 %v10225_v58  ;;  %3097 = vmatpush.bf16.msra.mxu1 %v10226_v10 }
 0x3a1   :  { %v2770_v48 = vpop.f32.mrf.mxu2  ;;  %v2783_v28 = vpop.f32.mrf.mxu3  ;;  %3110 = vmatpush.bf16.msra.mxu2 %v10228_v59  ;;  %3123 = vmatpush.bf16.msrb.mxu3 %v10229_v31 }
 0x3a2   :  { %v2789_v8 = vadd.f32 %v2770_v48, %v10227_v55  ;;  %v2746_v41 = vpop.f32.mrf.mxu0  ;;  %v2759_v6 = vpop.f32.mrf.mxu1  ;;  %v10232_v55 = vld [vmem:[#allocation21_spill] sm:$0xff] }
 0x3a3   :  { %3085 = vmatmul.bf16.vlgmr.msrb.gmra.mxu0 %v8125_v14  ;;  %3098 = vmatmul.bf16.vlgmr.msra.gmra.mxu1 %v8125_v14  ;;  %v10234_v41 = vld [vmem:[#allocation18_spill] sm:$0xff] }
 0x3a4   :  { %v5911_v60 = vmul.f32 -1.442695, %v2789_v8  ;;  %3206 = vmatpush.bf16.msra.mxu0 %v10230_v1  ;;  %3219 = vmatpush.bf16.msrb.mxu1 %v10231_v9  ;;  %v6279_v54 = vpop.eup %6278  ;;  %v10233_v8 = vld [vmem:[#allocation19_spill] sm:$0xff]  ;;  %v10235_v6 = vld [vmem:[#allocation26_spill] sm:$0xff]  ;;  %v10236_v9 = vld [vmem:[#allocation25_spill] sm:$0xff] }
 0x3a5   :  { %v6281_v61 = vpop.eup %6280  ;;  %v2800_v10 = vadd.f32 1.0, %v6279_v54  ;;  %3111 = vmatmul.bf16.vlgmr.msra.gmra.mxu2 %v8125_v14  ;;  %3124 = vmatmul.bf16.vlgmr.msrb.gmra.mxu3 %v8125_v14  ;;  %v10237_v54 = vld [vmem:[#allocation22_spill] sm:$0xff]  ;;  %v10238_v14 = vld [vmem:[#allocation20_spill] sm:$0xff] }
 0x3a6   :  { %6282 = vpow2.f32 %v5911_v60  ;;  %v2801_v48 = vadd.f32 1.0, %v6281_v61  ;;  %3232 = vmatpush.bf16.msrb.mxu2 %v10232_v55  ;;  %3245 = vmatpush.bf16.msra.mxu3 %v10233_v8  ;;  %v10239_v60 = vld [vmem:[#allocation30_spill] sm:$0xff]  ;;  %v10240_v55 = vld [vmem:[#allocation67_spill] sm:$0xff] }
 0x3a7   :  { %6284 = vrcp.f32 %v2800_v10  ;;  %v2790_v58 = vadd.f32 %v2783_v28, %v10240_v55  ;;  %v2812_v28 = vand.u32 2147483647, %v2800_v10  ;;  %v10245_v55 = vld [vmem:[#allocation33_spill] sm:$0xff]  ;;  %vm2808_vm15 = vweird.f32 %v2800_v10 }
 0x3a8   :  { %3207 = vmatpush.bf16.msra.mxu0 %v10234_v41  ;;  %3220 = vmatpush.bf16.msrb.mxu1 %v10235_v6  ;;  %6286 = vrcp.f32 %v2801_v48  ;;  %v10244_v6 = vld [vmem:[#allocation34_spill] sm:$0xff]  ;;  %v2829_v63 = vand.u32 2147483648, %v2801_v48  ;;  %vm2823_vm0 = vweird.f32 %v2801_v48 }
 0x3a9   :  { %v2772_v31 = vpop.f32.mrf.mxu2  ;;  %v2785_v59 = vpop.f32.mrf.mxu3  ;;  %vm2813_vm3 = vcmp.eq.f32.partialorder %v2812_v28, 8.507059e+37  ;;  %v10254_v28 = vld [vmem:[#allocation39_spill] sm:$0xff] }
 0x3aa   :  { %3233 = vmatpush.bf16.msrb.mxu2 %v10236_v9  ;;  %3246 = vmatpush.bf16.msra.mxu3 %v10237_v54  ;;  %v10241_v31 = vld [vmem:[#allocation29_spill] sm:$0xff]  ;;  %v10242_v59 = vld [vmem:[#allocation27_spill] sm:$0xff]  ;;  %v10243_v54 = vld [vmem:[#allocation24_spill] sm:$0xff] }
 0x3ac   :  { %v6283_v1 = vpop.eup %6282  ;;  %3208 = vmatpush.bf16.msra.mxu0 %v10238_v14  ;;  %3221 = vmatpush.bf16.msrb.mxu1 %v10239_v60 }
 0x3ad   :  { %v8240_v61 = vadd.f32 1.0, %v6283_v1  ;;  %v6285_v8 = vpop.eup %6284  ;;  %v2814_v1 = vand.u32 2147483648, %v2800_v10 }
 0x3ae   :  { %v6287_v41 = vpop.eup %6286  ;;  %v2804_v56 = vmul.f32 %v6285_v8, %v2800_v10  ;;  %3234 = vmatpush.bf16.msrb.mxu2 %v10241_v31  ;;  %3247 = vmatpush.bf16.msra.mxu3 %v10242_v59  ;;  %vm2809_vm13 = vweird.f32 %v6285_v8  ;;  %v2827_v59 = vand.u32 2147483647, %v2801_v48  ;;  %v10252_v10 = vld [vmem:[#allocation42_spill] sm:$0xff] }
 0x3af   :  { %6288 = vrcp.f32 %v8240_v61  ;;  %v2819_v9 = vmul.f32 %v6287_v41, %v2801_v48  ;;  %vm2824_vm14 = vweird.f32 %v6287_v41  ;;  %vm2810_vm1 = vmor %vm2808_vm15, %vm2809_vm13  ;;  %vm2838_vm6 = vweird.f32 %v8240_v61 }
 0x3b0   :  { %3209 = vmatpush.bf16.msra.mxu0 %v10243_v54  ;;  %3222 = vmatpush.bf16.msrb.mxu1 %v10244_v6  ;;  %v2805_v14 = vsub.f32 1.0, %v2804_v56  ;;  %6290 = vtanh.f32 %v2790_v58  ;;  %v10248_v54 = vld [vmem:[#allocation37_spill] sm:$0xff]  ;;  %vm2825_vm2 = vmor %vm2823_vm0, %vm2824_vm14  ;;  %vm2828_vm4 = vcmp.eq.f32.partialorder %v2827_v59, 8.507059e+37  ;;  %v2844_v59 = vand.u32 2147483648, %v8240_v61 }
 0x3b1   :  { %v2820_v60 = vsub.f32 1.0, %v2819_v9  ;;  %v2815_v9 = vor.u32 1.1754944e-38, %v2814_v1 }
 0x3b2   :  { %v2806_v24 = vmul.f32 %v6285_v8, %v2805_v14  ;;  %3235 = vmatpush.bf16.msrb.mxu2 %v10245_v55  ;;  %3248 = vmatpush.bf16.msra.mxu3 %v10246_v4  ;;  %v2830_v55 = vor.u32 1.1754944e-38, %v2829_v63  ;;  %v10250_v4 = vld [vmem:[#allocation35_spill] sm:$0xff] }
 0x3b3   :  { %v2821_v31 = vmul.f32 %v6287_v41, %v2820_v60  ;;  %v10249_v60 = vld [vmem:[#allocation38_spill] sm:$0xff] }
 0x3b4   :  { %3210 = vmatpush.bf16.msra.mxu0 %v10247_v25  ;;  %3223 = vmatpush.bf16.msrb.mxu1 %v10248_v54  ;;  %v2807_v56 = vadd.f32 %v6285_v8, %v2806_v24  ;;  %v10251_v24 = vld [vmem:[#allocation32_spill] sm:$0xff] }
 0x3b5   :  { %v6289_v6 = vpop.eup %6288  ;;  %v2822_v14 = vadd.f32 %v6287_v41, %v2821_v31 }
 0x3b6   :  { %v2834_v58 = vmul.f32 %v6289_v6, %v8240_v61  ;;  %v2811_v23 = vsel %vm2810_vm1, %v6285_v8, %v2807_v56  ;;  %3236 = vmatpush.bf16.msrb.mxu2 %v10249_v60  ;;  %3249 = vmatpush.bf16.msra.mxu3 %v10250_v4  ;;  %v6291_v25 = vpop.eup %6290  ;;  %v10253_v8 = vld [vmem:[#allocation41_spill] sm:$0xff]  ;;  %v10256_v4 = vld [vmem:[#allocation36_spill] sm:$0xff]  ;;  %vm2839_vm5 = vweird.f32 %v6289_v6 }
 0x3b7   :  { %v2816_v54 = vsel %vm2813_vm3, %v2815_v9, %v2811_v23  ;;  %v2826_v52 = vsel %vm2825_vm2, %v6287_v41, %v2822_v14  ;;  %v10257_v23 = vld [vmem:[#allocation44_spill] sm:$0xff]  ;;  %vm2840_vm7 = vmor %vm2838_vm6, %vm2839_vm5  ;;  %v10263_v9 = vld [vmem:[#allocation78_spill] sm:$0xff]  ;;  %v2845_v14 = vor.u32 1.1754944e-38, %v2844_v59 }
 0x3b8   :  { %v2835_v29 = vsub.f32 1.0, %v2834_v58  ;;  %3211 = vmatpush.bf16.msra.mxu0 %v10251_v24  ;;  %3224 = vmatpush.bf16.msrb.mxu1 %v10252_v10  ;;  %v2831_v48 = vsel %vm2828_vm4, %v2830_v55, %v2826_v52  ;;  %v2850_v1 = vmul.f32 %v6291_v25, %v2816_v54  ;;  %v2842_v52 = vand.u32 2147483647, %v8240_v61  ;;  %v10259_v25 = vld [vmem:[#allocation43_spill] sm:$0xff]  ;;  %v10261_v54 = vld [vmem:[#allocation48_spill] sm:$0xff]  ;;  %v10262_v58 = vld [vmem:[#allocation77_spill] sm:$0xff] }
 0x3b9   :  { %v2849_v63 = vmul.f32 %v2831_v48, %v8053_v18  ;;  %v10260_v18 = vld [vmem:[#allocation40_spill] sm:$0xff]  ;;  %v10264_v48 = vld [vmem:[#allocation47_spill] sm:$0xff] }
 0x3ba   :  { %v2836_v31 = vmul.f32 %v6289_v6, %v2835_v29  ;;  %3237 = vmatpush.bf16.msrb.mxu2 %v10253_v8  ;;  %3250 = vmatpush.bf16.msra.mxu3 %v10254_v28  ;;  %v10258_v29 = vld [vmem:[#allocation45_spill] sm:$0xff]  ;;  %vm2843_vm8 = vcmp.eq.f32.partialorder %v2842_v52, 8.507059e+37  ;;  %v10271_v59 = vld [vmem:[#allocation87_spill] sm:$0xff]  ;;  %v10272_v52 = vld [vmem:[#allocation88_spill] sm:$0xff] }
 0x3bb   :  { %v8260_v56 = vadd.f32 %v2850_v1, %v2849_v63  ;;  %v10265_v1 = vld [vmem:[#allocation46_spill] sm:$0xff]  ;;  %v10266_v63 = vld [vmem:[#allocation79_spill] sm:$0xff]  ;;  %v10318_v28 = vld [vmem:[#allocation136_spill] sm:$0xff] }
 0x3bc   :  { %3212 = vmatpush.bf16.msra.mxu0 %v10256_v4  ;;  %3225 = vmatpush.bf16.msrb.mxu1 %v10257_v23  ;;  %v2837_v41 = vadd.f32 %v6289_v6, %v2836_v31  ;;  %v10315_v23 = vld [vmem:[#allocation61_spill] sm:$0xff]  ;;  %v10316_v4 = vld [vmem:[#allocation134_spill] sm:$0xff] }
 0x3bd   :  { %10255 = vst [vmem:[#allocation113_spill] sm:$0xff] %v8260_v56  ;;  %6292 = vtanh.f32 %v8260_v56 }
 0x3be   :  { %3238 = vmatpush.bf16.msrb.mxu2 %v10258_v29  ;;  %3251 = vmatpush.bf16.msra.mxu3 %v10259_v25  ;;  %v2841_v55 = vsel %vm2840_vm7, %v6289_v6, %v2837_v41  ;;  %v10267_v25 = vld [vmem:[#allocation80_spill] sm:$0xff]  ;;  %v10268_v29 = vld [vmem:[#allocation82_spill] sm:$0xff]  ;;  %v10269_v6 = vld [vmem:[#allocation83_spill] sm:$0xff] }
 0x3bf   :  { %v2846_v31 = vsel %vm2843_vm8, %v2845_v14, %v2841_v55  ;;  %v10273_v55 = vld [vmem:[#allocation89_spill] sm:$0xff] }
 0x3c0   :  { %3213 = vmatpush.bf16.msra.mxu0 %v10260_v18  ;;  %3226 = vmatpush.bf16.msrb.mxu1 %v10261_v54  ;;  %v10275_v14 = vld [vmem:[#allocation93_spill] sm:$0xff]  ;;  %v10312_v54 = vld [vmem:[#allocation132_spill] sm:$0xff] }
 0x3c2   :  { %3239 = vmatpush.bf16.msrb.mxu2 %v10264_v48  ;;  %3252 = vmatpush.bf16.msra.mxu3 %v10265_v1  ;;  %v10310_v48 = vld [vmem:[#allocation130_spill] sm:$0xff] }
 0x3c3   :  { %v6293_v61 = vpop.eup %6292 }
 0x3c4   :  { %3325 = vmatpush.bf16.msrb.mxu0 %v10262_v58  ;;  %3338 = vmatpush.bf16.msra.mxu1 %v10263_v9  ;;  %v2853_v18 = vmul.f32 %v6293_v61, %v2846_v31  ;;  %v10270_v9 = vld [vmem:[#allocation84_spill] sm:$0xff]  ;;  %v10276_v61 = vld [vmem:[#allocation95_spill] sm:$0xff]  ;;  %v10302_v58 = vld [vmem:[#allocation122_spill] sm:$0xff] }
 0x3c5   :  { %v10277_v31 = vld [vmem:[#allocation96_spill] sm:$0xff] }
 0x3c6   :  { %3351 = vmatpush.bf16.msra.mxu2 %v10266_v63  ;;  %3364 = vmatpush.bf16.msrb.mxu3 %v10267_v25  ;;  %v8280_v41 = vpack.c.bf16 %v2853_v18, %v2853_v18  ;;  %v10274_v18 = vld [vmem:[#allocation92_spill] sm:$0xff] }
 0x3c8   :  { %3326 = vmatpush.bf16.msrb.mxu0 %v10268_v29  ;;  %3339 = vmatpush.bf16.msra.mxu1 %v10269_v6  ;;  %v10280_v6 = vld [vmem:[#allocation99_spill] sm:$0xff]  ;;  %v10294_v29 = vld [vmem:[#allocation114_spill] sm:$0xff] }
 0x3c9   :  { %3214 = vmatmul.bf16.vlgmr.msra.gmra.mxu0 %v8280_v41  ;;  %3227 = vmatmul.bf16.vlgmr.msrb.gmra.mxu1 %v8280_v41 }
 0x3ca   :  { %3352 = vmatpush.bf16.msra.mxu2 %v10270_v9  ;;  %3365 = vmatpush.bf16.msrb.mxu3 %v10271_v59  ;;  %v10278_v59 = vld [vmem:[#allocation97_spill] sm:$0xff]  ;;  %v10279_v9 = vld [vmem:[#allocation98_spill] sm:$0xff] }
 0x3cb   :  { %3240 = vmatmul.bf16.vlgmr.msrb.gmra.mxu2 %v8280_v41  ;;  %3253 = vmatmul.bf16.vlgmr.msra.gmra.mxu3 %v8280_v41 }
 0x3cc   :  { %3327 = vmatpush.bf16.msrb.mxu0 %v10272_v52  ;;  %3340 = vmatpush.bf16.msra.mxu1 %v10273_v55  ;;  %v10281_v52 = vld [vmem:[#allocation100_spill] sm:$0xff]  ;;  %v10282_v55 = vld [vmem:[#allocation101_spill] sm:$0xff] }
 0x3ce   :  { %3353 = vmatpush.bf16.msra.mxu2 %v10136_v19  ;;  %3366 = vmatpush.bf16.msrb.mxu3 %v10137_v46  ;;  %v10283_v19 = vld [vmem:[#allocation102_spill] sm:$0xff]  ;;  %v10284_v46 = vld [vmem:[#allocation103_spill] sm:$0xff] }
 0x3d0   :  { %3328 = vmatpush.bf16.msrb.mxu0 %v10274_v18  ;;  %3341 = vmatpush.bf16.msra.mxu1 %v10275_v14  ;;  %v10285_v18 = vld [vmem:[#allocation104_spill] sm:$0xff]  ;;  %v10286_v14 = vld [vmem:[#allocation105_spill] sm:$0xff] }
 0x3d2   :  { %3354 = vmatpush.bf16.msra.mxu2 %v10276_v61  ;;  %3367 = vmatpush.bf16.msrb.mxu3 %v10277_v31  ;;  %v10287_v61 = vld [vmem:[#allocation106_spill] sm:$0xff]  ;;  %v10288_v31 = vld [vmem:[#allocation107_spill] sm:$0xff] }
 0x3d4   :  { %3329 = vmatpush.bf16.msrb.mxu0 %v10278_v59  ;;  %3342 = vmatpush.bf16.msra.mxu1 %v10279_v9  ;;  %v10289_v59 = vld [vmem:[#allocation108_spill] sm:$0xff]  ;;  %v10290_v9 = vld [vmem:[#allocation109_spill] sm:$0xff] }
 0x3d6   :  { %3355 = vmatpush.bf16.msra.mxu2 %v10280_v6  ;;  %3368 = vmatpush.bf16.msrb.mxu3 %v10281_v52  ;;  %v10291_v6 = vld [vmem:[#allocation110_spill] sm:$0xff]  ;;  %v10292_v52 = vld [vmem:[#allocation111_spill] sm:$0xff] }
 0x3d8   :  { %3330 = vmatpush.bf16.msrb.mxu0 %v10282_v55  ;;  %3343 = vmatpush.bf16.msra.mxu1 %v10283_v19  ;;  %v10293_v55 = vld [vmem:[#allocation112_spill] sm:$0xff] }
 0x3da   :  { %3356 = vmatpush.bf16.msra.mxu2 %v10284_v46  ;;  %3369 = vmatpush.bf16.msrb.mxu3 %v10285_v18  ;;  %v10295_v18 = vld [vmem:[#allocation115_spill] sm:$0xff] }
 0x3dc   :  { %3331 = vmatpush.bf16.msrb.mxu0 %v10286_v14  ;;  %3344 = vmatpush.bf16.msra.mxu1 %v10287_v61  ;;  %v10296_v14 = vld [vmem:[#allocation116_spill] sm:$0xff]  ;;  %v10297_v61 = vld [vmem:[#allocation117_spill] sm:$0xff] }
 0x3de   :  { %3357 = vmatpush.bf16.msra.mxu2 %v10288_v31  ;;  %3370 = vmatpush.bf16.msrb.mxu3 %v10289_v59  ;;  %v10298_v31 = vld [vmem:[#allocation118_spill] sm:$0xff]  ;;  %v10299_v59 = vld [vmem:[#allocation119_spill] sm:$0xff] }
 0x3df   :  { %v2863_v19 = vpop.f32.mrf.mxu0  ;;  %v2876_v46 = vpop.f32.mrf.mxu1 }
 0x3e0   :  { %3332 = vmatpush.bf16.msrb.mxu0 %v10290_v9  ;;  %3345 = vmatpush.bf16.msra.mxu1 %v10291_v6  ;;  %v10300_v9 = vld [vmem:[#allocation120_spill] sm:$0xff]  ;;  %v10301_v6 = vld [vmem:[#allocation121_spill] sm:$0xff] }
 0x3e2   :  { %3358 = vmatpush.bf16.msra.mxu2 %v10292_v52  ;;  %3371 = vmatpush.bf16.msrb.mxu3 %v10293_v55 }
 0x3e4   :  { %3377 = vmatpush.bf16.msra.mxu0 %v10294_v29  ;;  %3390 = vmatpush.bf16.msrb.mxu1 %v10295_v18  ;;  %v10303_v29 = vld [vmem:[#allocation123_spill] sm:$0xff]  ;;  %v10304_v18 = vld [vmem:[#allocation124_spill] sm:$0xff] }
 0x3e6   :  { %3403 = vmatpush.bf16.msrb.mxu2 %v10296_v14  ;;  %3416 = vmatpush.bf16.msra.mxu3 %v10297_v61  ;;  %v2889_v52 = vpop.f32.mrf.mxu2  ;;  %v2902_v55 = vpop.f32.mrf.mxu3  ;;  %v10305_v14 = vld [vmem:[#allocation125_spill] sm:$0xff]  ;;  %v10306_v61 = vld [vmem:[#allocation126_spill] sm:$0xff] }
 0x3e7   :  { %v2865_v25 = vpop.f32.mrf.mxu0  ;;  %v2878_v63 = vpop.f32.mrf.mxu1 }
 0x3e8   :  { %3378 = vmatpush.bf16.msra.mxu0 %v10298_v31  ;;  %3391 = vmatpush.bf16.msrb.mxu1 %v10299_v59  ;;  %v10307_v31 = vld [vmem:[#allocation127_spill] sm:$0xff]  ;;  %v10308_v59 = vld [vmem:[#allocation128_spill] sm:$0xff] }
 0x3ea   :  { %3404 = vmatpush.bf16.msrb.mxu2 %v10300_v9  ;;  %3417 = vmatpush.bf16.msra.mxu3 %v10301_v6  ;;  %v10309_v9 = vld [vmem:[#allocation129_spill] sm:$0xff] }
 0x3ec   :  { %3379 = vmatpush.bf16.msra.mxu0 %v10302_v58  ;;  %3392 = vmatpush.bf16.msrb.mxu1 %v10303_v29  ;;  %v10311_v58 = vld [vmem:[#allocation131_spill] sm:$0xff] }
 0x3ee   :  { %3405 = vmatpush.bf16.msrb.mxu2 %v10304_v18  ;;  %3418 = vmatpush.bf16.msra.mxu3 %v10305_v14  ;;  %v2891_v6 = vpop.f32.mrf.mxu2  ;;  %v2904_v1 = vpop.f32.mrf.mxu3  ;;  %v10313_v14 = vld [vmem:[#allocation133_spill] sm:$0xff] }
 0x3ef   :  { %v2915_v25 = vpop.f32.mrf.mxu0  ;;  %v2928_v63 = vpop.f32.mrf.mxu1  ;;  %v10317_v6 = vld [vmem:[#allocation135_spill] sm:$0xff] }
 0x3f0   :  { %3380 = vmatpush.bf16.msra.mxu0 %v10306_v61  ;;  %3393 = vmatpush.bf16.msrb.mxu1 %v10307_v31  ;;  %v2916_v29 = vadd.f32 %v2915_v25, %v2863_v19  ;;  %v2929_v18 = vadd.f32 %v2928_v63, %v2876_v46  ;;  %v10314_v61 = vld [vmem:[#allocation52_spill] sm:$0xff] }
 0x3f2   :  { %3406 = vmatpush.bf16.msrb.mxu2 %v10308_v59  ;;  %3419 = vmatpush.bf16.msra.mxu3 %v10309_v9  ;;  %v2958_v31 = vadd.f32 %v2916_v29, %v10314_v61  ;;  %v2959_v59 = vadd.f32 %v2929_v18, %v10315_v23  ;;  %v10320_v29 = vld [vmem:[#allocation138_spill] sm:$0xff]  ;;  %v10321_v18 = vld [vmem:[#allocation139_spill] sm:$0xff]  ;;  %v10322_v23 = vld [vmem:[#allocation140_spill] sm:$0xff] }
 0x3f3   :  { %v10323_v61 = vld [vmem:[#allocation141_spill] sm:$0xff] }
 0x3f4   :  { %3381 = vmatpush.bf16.msra.mxu0 %v10310_v48  ;;  %3394 = vmatpush.bf16.msrb.mxu1 %v10311_v58  ;;  %v5912_v1 = vmul.f32 -1.442695, %v2958_v31  ;;  %v5913_v9 = vmul.f32 -1.442695, %v2959_v59  ;;  %v10319_v48 = vld [vmem:[#allocation137_spill] sm:$0xff]  ;;  %v10324_v59 = vld [vmem:[#allocation59_spill] sm:$0xff] }
 0x3f6   :  { %3407 = vmatpush.bf16.msrb.mxu2 %v10312_v54  ;;  %3420 = vmatpush.bf16.msra.mxu3 %v10313_v14  ;;  %6294 = vpow2.f32 %v5912_v1  ;;  %v2941_v46 = vpop.f32.mrf.mxu2  ;;  %v2954_v19 = vpop.f32.mrf.mxu3  ;;  %v10326_v1 = vld [vmem:[#allocation143_spill] sm:$0xff] }
 0x3f7   :  { %6296 = vpow2.f32 %v5913_v9  ;;  %v2942_v25 = vadd.f32 %v2941_v46, %v2889_v52  ;;  %v2917_v63 = vpop.f32.mrf.mxu0  ;;  %v2930_v14 = vpop.f32.mrf.mxu1  ;;  %v10327_v9 = vld [vmem:[#allocation144_spill] sm:$0xff]  ;;  %v10328_v52 = vld [vmem:[#allocation145_spill] sm:$0xff] }
 0x3f8   :  { %3382 = vmatpush.bf16.msra.mxu0 %v10316_v4  ;;  %3395 = vmatpush.bf16.msrb.mxu1 %v10317_v6  ;;  %v10325_v6 = vld [vmem:[#allocation142_spill] sm:$0xff] }
 0x3f9   :  { %v2960_v31 = vadd.f32 %v2942_v25, %v10324_v59 }
 0x3fa   :  { %3408 = vmatpush.bf16.msrb.mxu2 %v10318_v28  ;;  %3421 = vmatpush.bf16.msra.mxu3 %v10319_v48 }
 0x3fb   :  { %v5914_v28 = vmul.f32 -1.442695, %v2960_v31 }
 0x3fc   :  { %3383 = vmatpush.bf16.msra.mxu0 %v10320_v29  ;;  %3396 = vmatpush.bf16.msrb.mxu1 %v10321_v18  ;;  %v6295_v48 = vpop.eup %6294 }
 0x3fd   :  { %v6297_v14 = vpop.eup %6296  ;;  %v2971_v46 = vadd.f32 1.0, %v6295_v48  ;;  %6298 = vpow2.f32 %v5914_v28 }
 0x3fe   :  { %3409 = vmatpush.bf16.msrb.mxu2 %v10322_v23  ;;  %3422 = vmatpush.bf16.msra.mxu3 %v10323_v61  ;;  %v2972_v63 = vadd.f32 1.0, %v6297_v14  ;;  %v2943_v18 = vpop.f32.mrf.mxu2  ;;  %v2956_v23 = vpop.f32.mrf.mxu3  ;;  %v2955_v61 = vadd.f32 %v2954_v19, %v2902_v55 }
 0x3ff   :  { %6300 = vrcp.f32 %v2971_v46  ;;  %v2985_v58 = vand.u32 2147483648, %v2971_v46  ;;  %v2983_v23 = vand.u32 2147483647, %v2971_v46  ;;  %vm2979_vm11 = vweird.f32 %v2971_v46 }
 0x400   :  { %3384 = vmatpush.bf16.msra.mxu0 %v10325_v6  ;;  %3397 = vmatpush.bf16.msrb.mxu1 %v10326_v1  ;;  %6302 = vrcp.f32 %v2972_v63  ;;  %v10329_v6 = vld [vmem:[#allocation54_spill] sm:$0xff]  ;;  %v3000_v28 = vand.u32 2147483648, %v2972_v63  ;;  %v2998_v55 = vand.u32 2147483647, %v2972_v63  ;;  %vm2994_vm12 = vweird.f32 %v2972_v63 }
 0x401   :  { %v2961_v29 = vadd.f32 %v2955_v61, %v10329_v6  ;;  %vm2984_vm15 = vcmp.eq.f32.partialorder %v2983_v23, 8.507059e+37 }
 0x402   :  { %3410 = vmatpush.bf16.msrb.mxu2 %v10327_v9  ;;  %3423 = vmatpush.bf16.msra.mxu3 %v10328_v52  ;;  %vm2999_vm0 = vcmp.eq.f32.partialorder %v2998_v55, 8.507059e+37 }
 0x403   :  { %v6299_v25 = vpop.eup %6298 }
 0x404   :  { %v2973_v31 = vadd.f32 1.0, %v6299_v25  ;;  %v2986_v25 = vor.u32 1.1754944e-38, %v2985_v58 }
 0x405   :  { %v6301_v59 = vpop.eup %6300 }
 0x406   :  { %v6303_v1 = vpop.eup %6302  ;;  %v2975_v4 = vmul.f32 %v6301_v59, %v2971_v46  ;;  %6304 = vrcp.f32 %v2973_v31  ;;  %vm2980_vm9 = vweird.f32 %v6301_v59  ;;  %vm3009_vm2 = vweird.f32 %v2973_v31 }
 0x407   :  { %v2990_v9 = vmul.f32 %v6303_v1, %v2972_v63  ;;  %6306 = vtanh.f32 %v2961_v29  ;;  %vm2995_vm10 = vweird.f32 %v6303_v1  ;;  %vm2981_vm13 = vmor %vm2979_vm11, %vm2980_vm9 }
 0x408   :  { %v2976_v54 = vsub.f32 1.0, %v2975_v4  ;;  %vm2996_vm14 = vmor %vm2994_vm12, %vm2995_vm10  ;;  %v3001_v4 = vor.u32 1.1754944e-38, %v3000_v28 }
 0x409   :  { %v2991_v52 = vsub.f32 1.0, %v2990_v9 }
 0x40a   :  { %v2977_v48 = vmul.f32 %v6301_v59, %v2976_v54 }
 0x40b   :  { %v2992_v18 = vmul.f32 %v6303_v1, %v2991_v52 }
 0x40c   :  { %v6305_v19 = vpop.eup %6304  ;;  %v2978_v14 = vadd.f32 %v6301_v59, %v2977_v48 }
 0x40d   :  { %v3005_v61 = vmul.f32 %v6305_v19, %v2973_v31  ;;  %v2993_v6 = vadd.f32 %v6303_v1, %v2992_v18  ;;  %v6307_v29 = vpop.eup %6306  ;;  %vm3010_vm1 = vweird.f32 %v6305_v19  ;;  %v3015_v18 = vand.u32 2147483648, %v2973_v31 }
 0x40e   :  { %v2982_v9 = vsel %vm2981_vm13, %v6301_v59, %v2978_v14  ;;  %v3013_v59 = vand.u32 2147483647, %v2973_v31  ;;  %vm3011_vm3 = vmor %vm3009_vm2, %vm3010_vm1 }
 0x40f   :  { %v3006_v8 = vsub.f32 1.0, %v3005_v61  ;;  %v2987_v54 = vsel %vm2984_vm15, %v2986_v25, %v2982_v9  ;;  %v2997_v10 = vsel %vm2996_vm14, %v6303_v1, %v2993_v6  ;;  %v3034_v52 = vpop.f32.mrf.mxu0  ;;  %v3047_v24 = vpop.f32.mrf.mxu1  ;;  %v3016_v55 = vor.u32 1.1754944e-38, %v3015_v18 }
 0x410   :  { %v3002_v60 = vsel %vm2999_vm0, %v3001_v4, %v2997_v10  ;;  %v3021_v56 = vmul.f32 %v6307_v29, %v2987_v54  ;;  %vm3014_vm4 = vcmp.eq.f32.partialorder %v3013_v59, 8.507059e+37 }
 0x411   :  { %v3007_v48 = vmul.f32 %v6305_v19, %v3006_v8  ;;  %v3020_v46 = vmul.f32 %v3002_v60, %v8120_v39 }
 0x413   :  { %v8349_v63 = vadd.f32 %v3021_v56, %v3020_v46  ;;  %v3008_v58 = vadd.f32 %v6305_v19, %v3007_v48 }
 0x415   :  { %6308 = vtanh.f32 %v8349_v63  ;;  %v3012_v10 = vsel %vm3011_vm3, %v6305_v19, %v3008_v58 }
 0x416   :  { %v3060_v28 = vpop.f32.mrf.mxu2  ;;  %v8352_v23 = vpop.f32.mrf.mxu3  ;;  %v3017_v39 = vsel %vm3014_vm4, %v3016_v55, %v3012_v10 }
 0x417   :  { %v3036_v6 = vpop.f32.mrf.mxu0  ;;  %v3049_v1 = vpop.f32.mrf.mxu1 }
 0x41b   :  { %v6309_v8 = vpop.eup %6308 }
 0x41c   :  { %v3024_v60 = vmul.f32 %v6309_v8, %v3017_v39 }
 0x41e   :  { %v8354_v56 = vpack.c.bf16 %v3024_v60, %v3024_v60  ;;  %v3062_v14 = vpop.f32.mrf.mxu2  ;;  %v3075_v61 = vpop.f32.mrf.mxu3 }
 0x41f   :  { %v10331_v14 = vld [vmem:[#allocation160_spill] sm:$0xff]  ;;  %v10332_v61 = vld [vmem:[#allocation161_spill] sm:$0xff] }
 0x420   :  { %v3086_v25 = vpop.f32.mrf.mxu0  ;;  %v3099_v4 = vpop.f32.mrf.mxu1  ;;  %3333 = vmatmul.bf16.vlgmr.msrb.gmra.mxu0 %v8354_v56  ;;  %3346 = vmatmul.bf16.vlgmr.msra.gmra.mxu1 %v8354_v56 }
 0x421   :  { %v3087_v31 = vadd.f32 %v3086_v25, %v3034_v52  ;;  %v3100_v9 = vadd.f32 %v3099_v4, %v3047_v24  ;;  %3359 = vmatmul.bf16.vlgmr.msra.gmra.mxu2 %v8354_v56  ;;  %3372 = vmatmul.bf16.vlgmr.msrb.gmra.mxu3 %v8354_v56  ;;  %v10333_v4 = vld [vmem:[#allocation162_spill] sm:$0xff] }
 0x422   :  { %3496 = vmatpush.bf16.msrb.mxu0 %v10048_v7  ;;  %3509 = vmatpush.bf16.msra.mxu1 %v10049_v22 }
 0x423   :  { %v3129_v19 = vadd.f32 %v3087_v31, %v7883_v38  ;;  %v3130_v29 = vadd.f32 %v3100_v9, %v7885_v17  ;;  %3522 = vmatpush.bf16.msra.mxu2 %v10050_v30  ;;  %3535 = vmatpush.bf16.msrb.mxu3 %v10051_v37  ;;  %v10334_v31 = vld [vmem:[#allocation163_spill] sm:$0xff]  ;;  %v10335_v9 = vld [vmem:[#allocation164_spill] sm:$0xff] }
 0x425   :  { %v5915_v54 = vmul.f32 -1.442695, %v3129_v19  ;;  %v5916_v48 = vmul.f32 -1.442695, %v3130_v29  ;;  %v10336_v19 = vld [vmem:[#allocation165_spill] sm:$0xff] }
 0x426   :  { %3497 = vmatpush.bf16.msrb.mxu0 %v10053_v33  ;;  %3510 = vmatpush.bf16.msra.mxu1 %v10054_v45 }
 0x427   :  { %6310 = vpow2.f32 %v5915_v54  ;;  %3523 = vmatpush.bf16.msra.mxu2 %v10055_v15  ;;  %3536 = vmatpush.bf16.msrb.mxu3 %v10056_v2 }
 0x428   :  { %v3112_v24 = vpop.f32.mrf.mxu2  ;;  %v3125_v52 = vpop.f32.mrf.mxu3  ;;  %6312 = vpow2.f32 %v5916_v48 }
 0x429   :  { %v3113_v46 = vadd.f32 %v3112_v24, %v3060_v28  ;;  %v3088_v58 = vpop.f32.mrf.mxu0  ;;  %v3101_v18 = vpop.f32.mrf.mxu1  ;;  %v10330_v28 = vld [vmem:[#allocation159_spill] sm:$0xff]  ;;  %v3126_v25 = vadd.f32 %v3125_v52, %v8352_v23  ;;  %v10337_v24 = vld [vmem:[#allocation58_spill] sm:$0xff]  ;;  %v10340_v52 = vld [vmem:[#allocation168_spill] sm:$0xff] }
 0x42a   :  { %3498 = vmatpush.bf16.msrb.mxu0 %v10191_v47  ;;  %3511 = vmatpush.bf16.msra.mxu1 %v10192_v11  ;;  %v10338_v58 = vld [vmem:[#allocation166_spill] sm:$0xff]  ;;  %v10339_v18 = vld [vmem:[#allocation167_spill] sm:$0xff] }
 0x42b   :  { %v3131_v59 = vadd.f32 %v3113_v46, %v10190_v3  ;;  %3524 = vmatpush.bf16.msra.mxu2 %v10193_v53  ;;  %3537 = vmatpush.bf16.msrb.mxu3 %v10194_v51  ;;  %v3132_v46 = vadd.f32 %v3126_v25, %v10337_v24  ;;  %v10343_v25 = vld [vmem:[#allocation171_spill] sm:$0xff]  ;;  %v10344_v24 = vld [vmem:[#allocation172_spill] sm:$0xff] }
 0x42d   :  { %v5917_v6 = vmul.f32 -1.442695, %v3131_v59  ;;  %v6311_v1 = vpop.eup %6310  ;;  %v10341_v59 = vld [vmem:[#allocation169_spill] sm:$0xff] }
 0x42e   :  { %v6313_v10 = vpop.eup %6312  ;;  %v3142_v55 = vadd.f32 1.0, %v6311_v1  ;;  %3499 = vmatpush.bf16.msrb.mxu0 %v10195_v42  ;;  %3512 = vmatpush.bf16.msra.mxu1 %v10330_v28 }
 0x42f   :  { %6314 = vpow2.f32 %v5917_v6  ;;  %v8377_v8 = vadd.f32 1.0, %v6313_v10  ;;  %3525 = vmatpush.bf16.msra.mxu2 %v10331_v14  ;;  %3538 = vmatpush.bf16.msrb.mxu3 %v10332_v61 }
 0x430   :  { %v3114_v39 = vpop.f32.mrf.mxu2  ;;  %v3127_v60 = vpop.f32.mrf.mxu3  ;;  %6316 = vrcp.f32 %v3142_v55  ;;  %3385 = vmatmul.bf16.vlgmr.msra.gmra.mxu0 %v8280_v41  ;;  %3398 = vmatmul.bf16.vlgmr.msrb.gmra.mxu1 %v8280_v41  ;;  %vm3150_vm7 = vweird.f32 %v3142_v55 }
 0x431   :  { %6318 = vrcp.f32 %v8377_v8  ;;  %3411 = vmatmul.bf16.vlgmr.msrb.gmra.mxu2 %v8280_v41  ;;  %3424 = vmatmul.bf16.vlgmr.msra.gmra.mxu3 %v8280_v41  ;;  %v3156_v39 = vand.u32 2147483648, %v3142_v55  ;;  %v10342_v60 = vld [vmem:[#allocation170_spill] sm:$0xff]  ;;  %vm3165_vm8 = vweird.f32 %v8377_v8 }
 0x432   :  { %3500 = vmatpush.bf16.msrb.mxu0 %v10333_v4  ;;  %3513 = vmatpush.bf16.msra.mxu1 %v10334_v31 }
 0x433   :  { %3526 = vmatpush.bf16.msra.mxu2 %v10335_v9  ;;  %3539 = vmatpush.bf16.msrb.mxu3 %v10336_v19 }
 0x435   :  { %v6315_v29 = vpop.eup %6314 }
 0x436   :  { %v8391_v54 = vadd.f32 1.0, %v6315_v29  ;;  %v6317_v48 = vpop.eup %6316  ;;  %3501 = vmatpush.bf16.msrb.mxu0 %v10338_v58  ;;  %3514 = vmatpush.bf16.msra.mxu1 %v10339_v18  ;;  %v3171_v29 = vand.u32 2147483648, %v8377_v8  ;;  %v3154_v58 = vand.u32 2147483647, %v3142_v55 }
 0x437   :  { %v6319_v41 = vpop.eup %6318  ;;  %v3146_v23 = vmul.f32 %v6317_v48, %v3142_v55  ;;  %3527 = vmatpush.bf16.msra.mxu2 %v10340_v52  ;;  %3540 = vmatpush.bf16.msrb.mxu3 %v10341_v59  ;;  %vm3151_vm5 = vweird.f32 %v6317_v48  ;;  %v10345_v52 = vld [vmem:[#allocation173_spill] sm:$0xff] }
 0x438   :  { %6320 = vrcp.f32 %v8391_v54  ;;  %v3161_v6 = vmul.f32 %v6319_v41, %v8377_v8  ;;  %vm3166_vm6 = vweird.f32 %v6319_v41  ;;  %vm3152_vm9 = vmor %vm3150_vm7, %vm3151_vm5  ;;  %vm3155_vm11 = vcmp.eq.f32.partialorder %v3154_v58, 8.507059e+37 }
 0x439   :  { %v3147_v1 = vsub.f32 1.0, %v3146_v23  ;;  %6322 = vtanh.f32 %v3132_v46  ;;  %v3169_v23 = vand.u32 2147483647, %v8377_v8  ;;  %vm3167_vm10 = vmor %vm3165_vm8, %vm3166_vm6  ;;  %vm3180_vm14 = vweird.f32 %v8391_v54 }
 0x43a   :  { %v3162_v10 = vsub.f32 1.0, %v3161_v6  ;;  %3502 = vmatpush.bf16.msrb.mxu0 %v10342_v60  ;;  %3515 = vmatpush.bf16.msra.mxu1 %v10343_v25 }
 0x43b   :  { %v3148_v18 = vmul.f32 %v6317_v48, %v3147_v1  ;;  %3528 = vmatpush.bf16.msra.mxu2 %v10344_v24  ;;  %3541 = vmatpush.bf16.msrb.mxu3 %v10345_v52  ;;  %v3157_v1 = vor.u32 1.1754944e-38, %v3156_v39  ;;  %vm3170_vm12 = vcmp.eq.f32.partialorder %v3169_v23, 8.507059e+37  ;;  %v10348_v23 = vld [vmem:[#allocation76_spill] sm:$0xff] }
 0x43c   :  { %v3163_v59 = vmul.f32 %v6319_v41, %v3162_v10  ;;  %v3172_v10 = vor.u32 1.1754944e-38, %v3171_v29  ;;  %v10346_v29 = vld [vmem:[#allocation50_spill] sm:$0xff] }
 0x43d   :  { %v3149_v46 = vadd.f32 %v6317_v48, %v3148_v18 }
 0x43e   :  { %v8406_v6 = vpop.eup %6320  ;;  %v3164_v60 = vadd.f32 %v6319_v41, %v3163_v59  ;;  %3503 = vmatpush.bf16.msrb.mxu0 %v7621_v40  ;;  %3516 = vmatpush.bf16.msra.mxu1 %v7623_v34 }
 0x43f   :  { %v3176_v25 = vmul.f32 %v8406_v6, %v8391_v54  ;;  %v3153_v52 = vsel %vm3152_vm9, %v6317_v48, %v3149_v46  ;;  %3529 = vmatpush.bf16.msra.mxu2 %v7627_v20  ;;  %3542 = vmatpush.bf16.msrb.mxu3 %v10076_v0  ;;  %v6323_v55 = vpop.eup %6322  ;;  %v10347_v46 = vld [vmem:[#allocation69_spill] sm:$0xff]  ;;  %vm3181_vm13 = vweird.f32 %v8406_v6 }
 0x440   :  { %v3158_v18 = vsel %vm3155_vm11, %v3157_v1, %v3153_v52  ;;  %v3168_v24 = vsel %vm3167_vm10, %v6319_v41, %v3164_v60  ;;  %vm8438_vm15 = vmor %vm3180_vm14, %vm3181_vm13 }
 0x441   :  { %v3177_v8 = vsub.f32 1.0, %v3176_v25  ;;  %v3173_v59 = vsel %vm3170_vm12, %v3172_v10, %v3168_v24  ;;  %v3192_v39 = vmul.f32 %v6323_v55, %v3158_v18  ;;  %v217_v25 = vadd.f32 %v10347_v46, %v10346_v29 }
 0x442   :  { %3548 = vmatpush.bf16.msra.mxu0 %v10077_v5  ;;  %3561 = vmatpush.bf16.msrb.mxu1 %v10078_v13  ;;  %v3191_v58 = vmul.f32 %v3173_v59, %v8188_v43  ;;  %v3186_v10 = vand.u32 2147483648, %v8391_v54  ;;  %v3184_v18 = vand.u32 2147483647, %v8391_v54 }
 0x443   :  { %3574 = vmatpush.bf16.msrb.mxu2 %v10079_v12  ;;  %3587 = vmatpush.bf16.msra.mxu3 %v10211_v27  ;;  %v3178_v48 = vmul.f32 %v8406_v6, %v3177_v8 }
 0x444   :  { %v8423_v52 = vadd.f32 %v3192_v39, %v3191_v58  ;;  %v10352_v58 = vld [vmem:[#allocation75_spill] sm:$0xff]  ;;  %v3187_v46 = vor.u32 1.1754944e-38, %v3186_v10  ;;  %vm3185_vm0 = vcmp.eq.f32.partialorder %v3184_v18, 8.507059e+37  ;;  %v10354_v18 = vld [vmem:[#allocation193_spill] sm:$0xff] }
 0x445   :  { %v3179_v43 = vadd.f32 %v8406_v6, %v3178_v48  ;;  %v10351_v48 = vld [vmem:[#allocation62_spill] sm:$0xff] }
 0x446   :  { %3549 = vmatpush.bf16.msra.mxu0 %v10212_v21  ;;  %3562 = vmatpush.bf16.msrb.mxu1 %v10213_v36  ;;  %v3215_v41 = vpop.f32.mrf.mxu0  ;;  %v3228_v24 = vpop.f32.mrf.mxu1  ;;  %6324 = vtanh.f32 %v8423_v52  ;;  %v299_v54 = vadd.f32 %v10352_v58, %v10351_v48 }
 0x447   :  { %3575 = vmatpush.bf16.msrb.mxu2 %v10214_v62  ;;  %3588 = vmatpush.bf16.msra.mxu3 %v10215_v35  ;;  %v3258_v60 = vadd.f32 %v3215_v41, %v217_v25  ;;  %v3259_v1 = vadd.f32 %v3228_v24, %v10348_v23  ;;  %v3183_v39 = vsel %vm8438_vm15, %v8406_v6, %v3179_v43  ;;  %v10353_v6 = vld [vmem:[#allocation192_spill] sm:$0xff] }
 0x448   :  { %v3188_v23 = vsel %vm3185_vm0, %v3187_v46, %v3183_v39  ;;  %v10356_v39 = vld [vmem:[#allocation195_spill] sm:$0xff] }
 0x449   :  { %v5918_v55 = vmul.f32 -1.442695, %v3258_v60  ;;  %v5919_v8 = vmul.f32 -1.442695, %v3259_v1 }
 0x44a   :  { %3550 = vmatpush.bf16.msra.mxu0 %v10085_v16  ;;  %3563 = vmatpush.bf16.msrb.mxu1 %v10086_v44 }
 0x44b   :  { %6326 = vpow2.f32 %v5918_v55  ;;  %3576 = vmatpush.bf16.msrb.mxu2 %v10087_v57  ;;  %3589 = vmatpush.bf16.msra.mxu3 %v10216_v50 }
 0x44c   :  { %6328 = vpow2.f32 %v5919_v8  ;;  %v6325_v24 = vpop.eup %6324 }
 0x44d   :  { %v3195_v43 = vmul.f32 %v6325_v24, %v3188_v23  ;;  %v10358_v24 = vld [vmem:[#allocation197_spill] sm:$0xff] }
 0x44e   :  { %v3241_v25 = vpop.f32.mrf.mxu2  ;;  %v3254_v41 = vpop.f32.mrf.mxu3  ;;  %3551 = vmatpush.bf16.msra.mxu0 %v10089_v26  ;;  %3564 = vmatpush.bf16.msrb.mxu1 %v10090_v49  ;;  %v10355_v26 = vld [vmem:[#allocation194_spill] sm:$0xff] }
 0x44f   :  { %v3260_v60 = vadd.f32 %v3241_v25, %v299_v54  ;;  %v3217_v1 = vpop.f32.mrf.mxu0  ;;  %v3230_v55 = vpop.f32.mrf.mxu1  ;;  %3577 = vmatpush.bf16.msrb.mxu2 %v10091_v32  ;;  %3590 = vmatpush.bf16.msra.mxu3 %v10353_v6  ;;  %v3198_v10 = vpack.c.bf16 %v3195_v43, %v3195_v43  ;;  %v10357_v54 = vld [vmem:[#allocation196_spill] sm:$0xff] }
 0x450   :  { %v10360_v1 = vld [vmem:[#allocation56_spill] sm:$0xff]  ;;  %v10361_v55 = vld [vmem:[#allocation71_spill] sm:$0xff] }
 0x451   :  { %v5920_v59 = vmul.f32 -1.442695, %v3260_v60  ;;  %v6327_v8 = vpop.eup %6326  ;;  %3504 = vmatmul.bf16.vlgmr.msrb.gmra.mxu0 %v3198_v10  ;;  %3517 = vmatmul.bf16.vlgmr.msra.gmra.mxu1 %v3198_v10  ;;  %v10359_v60 = vld [vmem:[#allocation198_spill] sm:$0xff]  ;;  %v340_v43 = vadd.f32 %v10361_v55, %v10360_v1  ;;  %v10366_v55 = vld [vmem:[#allocation203_spill] sm:$0xff] }
 0x452   :  { %v6329_v58 = vpop.eup %6328  ;;  %v3271_v48 = vadd.f32 1.0, %v6327_v8  ;;  %3552 = vmatpush.bf16.msra.mxu0 %v10354_v18  ;;  %3565 = vmatpush.bf16.msrb.mxu1 %v10355_v26  ;;  %v10362_v8 = vld [vmem:[#allocation199_spill] sm:$0xff]  ;;  %v10364_v26 = vld [vmem:[#allocation201_spill] sm:$0xff] }
 0x453   :  { %6330 = vpow2.f32 %v5920_v59  ;;  %v8455_v49 = vadd.f32 1.0, %v6329_v58  ;;  %3530 = vmatmul.bf16.vlgmr.msra.gmra.mxu2 %v3198_v10  ;;  %3543 = vmatmul.bf16.vlgmr.msrb.gmra.mxu3 %v3198_v10  ;;  %v10363_v10 = vld [vmem:[#allocation200_spill] sm:$0xff]  ;;  %v10370_v18 = vld [vmem:[#allocation17_spill] sm:$0xff] }
 0x454   :  { %6332 = vrcp.f32 %v3271_v48  ;;  %3578 = vmatpush.bf16.msrb.mxu2 %v10356_v39  ;;  %3591 = vmatpush.bf16.msra.mxu3 %v10357_v54  ;;  %v3261_v39 = vadd.f32 %v3254_v41, %v340_v43  ;;  %v10369_v41 = vld [vmem:[#allocation206_spill] sm:$0xff]  ;;  %vm3279_vm3 = vweird.f32 %v3271_v48 }
 0x455   :  { %6334 = vrcp.f32 %v8455_v49  ;;  %v3300_v43 = vand.u32 2147483648, %v8455_v49  ;;  %vm3294_vm4 = vweird.f32 %v8455_v49 }
 0x456   :  { %v3243_v46 = vpop.f32.mrf.mxu2  ;;  %v3256_v25 = vpop.f32.mrf.mxu3  ;;  %3553 = vmatpush.bf16.msra.mxu0 %v10358_v24  ;;  %3566 = vmatpush.bf16.msrb.mxu1 %v10359_v60 }
 0x457   :  { %v10365_v46 = vld [vmem:[#allocation202_spill] sm:$0xff] }
 0x458   :  { %3579 = vmatpush.bf16.msrb.mxu2 %v10362_v8  ;;  %3592 = vmatpush.bf16.msra.mxu3 %v10363_v10  ;;  %v3285_v8 = vand.u32 2147483648, %v3271_v48  ;;  %v10368_v10 = vld [vmem:[#allocation205_spill] sm:$0xff] }
 0x459   :  { %v6331_v23 = vpop.eup %6330 }
 0x45a   :  { %v8464_v59 = vadd.f32 1.0, %v6331_v23  ;;  %v6333_v58 = vpop.eup %6332  ;;  %3554 = vmatpush.bf16.msra.mxu0 %v10364_v26  ;;  %3567 = vmatpush.bf16.msrb.mxu1 %v10365_v46  ;;  %v10367_v23 = vld [vmem:[#allocation204_spill] sm:$0xff]  ;;  %v3283_v26 = vand.u32 2147483647, %v3271_v48 }
 0x45b   :  { %v6335_v25 = vpop.eup %6334  ;;  %v3275_v24 = vmul.f32 %v6333_v58, %v3271_v48  ;;  %vm3280_vm1 = vweird.f32 %v6333_v58 }
 0x45c   :  { %v3290_v60 = vmul.f32 %v6335_v25, %v8455_v49  ;;  %6336 = vrcp.f32 %v8464_v59  ;;  %3580 = vmatpush.bf16.msrb.mxu2 %v10366_v55  ;;  %3593 = vmatpush.bf16.msra.mxu3 %v10367_v23  ;;  %vm3295_vm2 = vweird.f32 %v6335_v25  ;;  %v3298_v23 = vand.u32 2147483647, %v8455_v49  ;;  %vm3281_vm5 = vmor %vm3279_vm3, %vm3280_vm1  ;;  %v10374_v55 = vld [vmem:[#allocation21_spill] sm:$0xff] }
 0x45d   :  { %v3276_v54 = vsub.f32 1.0, %v3275_v24  ;;  %6338 = vtanh.f32 %v3261_v39  ;;  %v10371_v24 = vld [vmem:[#allocation23_spill] sm:$0xff]  ;;  %vm3296_vm6 = vmor %vm3294_vm4, %vm3295_vm2  ;;  %vm3284_vm7 = vcmp.eq.f32.partialorder %v3283_v26, 8.507059e+37  ;;  %vm3309_vm10 = vweird.f32 %v8464_v59 }
 0x45e   :  { %v3291_v1 = vsub.f32 1.0, %v3290_v60  ;;  %3555 = vmatpush.bf16.msra.mxu0 %v10368_v10  ;;  %3568 = vmatpush.bf16.msrb.mxu1 %v10369_v41  ;;  %v10372_v39 = vld [vmem:[#allocation207_spill] sm:$0xff]  ;;  %v10373_v10 = vld [vmem:[#allocation208_spill] sm:$0xff]  ;;  %vm3299_vm8 = vcmp.eq.f32.partialorder %v3298_v23, 8.507059e+37  ;;  %v10383_v23 = vld [vmem:[#allocation30_spill] sm:$0xff] }
 0x45f   :  { %v3277_v46 = vmul.f32 %v6333_v58, %v3276_v54  ;;  %v3286_v54 = vor.u32 1.1754944e-38, %v3285_v8  ;;  %v10376_v8 = vld [vmem:[#allocation18_spill] sm:$0xff] }
 0x460   :  { %v3292_v6 = vmul.f32 %v6335_v25, %v3291_v1  ;;  %3581 = vmatpush.bf16.msrb.mxu2 %v10372_v39  ;;  %3594 = vmatpush.bf16.msra.mxu3 %v10373_v10  ;;  %v3301_v1 = vor.u32 1.1754944e-38, %v3300_v43  ;;  %v10462_v39 = vld [vmem:[#allocation136_spill] sm:$0xff] }
 0x461   :  { %v3278_v60 = vadd.f32 %v6333_v58, %v3277_v46  ;;  %3556 = vmatmul.bf16.vlgmr.msra.gmra.mxu0 %v8354_v56  ;;  %3569 = vmatmul.bf16.vlgmr.msrb.gmra.mxu1 %v8354_v56 }
 0x462   :  { %3677 = vmatpush.bf16.msrb.mxu0 %v10370_v18  ;;  %3690 = vmatpush.bf16.msra.mxu1 %v10371_v24  ;;  %v3293_v41 = vadd.f32 %v6335_v25, %v3292_v6  ;;  %v10375_v18 = vld [vmem:[#allocation19_spill] sm:$0xff]  ;;  %v6337_v24 = vpop.eup %6336 }
 0x463   :  { %v3282_v32 = vsel %vm3281_vm5, %v6333_v58, %v3278_v60  ;;  %v6339_v48 = vpop.eup %6338  ;;  %3582 = vmatmul.bf16.vlgmr.msrb.gmra.mxu2 %v8354_v56  ;;  %3595 = vmatmul.bf16.vlgmr.msra.gmra.mxu3 %v8354_v56  ;;  %v3305_v26 = vmul.f32 %v6337_v24, %v8464_v59  ;;  %v10378_v58 = vld [vmem:[#allocation113_spill] sm:$0xff]  ;;  %vm3310_vm9 = vweird.f32 %v6337_v24 }
 0x464   :  { %3703 = vmatpush.bf16.msra.mxu2 %v10374_v55  ;;  %3716 = vmatpush.bf16.msrb.mxu3 %v10375_v18  ;;  %v3287_v46 = vsel %vm3284_vm7, %v3286_v54, %v3282_v32  ;;  %v3297_v10 = vsel %vm3296_vm6, %v6335_v25, %v3293_v41  ;;  %v10377_v18 = vld [vmem:[#allocation26_spill] sm:$0xff]  ;;  %v10379_v60 = vld [vmem:[#allocation25_spill] sm:$0xff]  ;;  %v10382_v25 = vld [vmem:[#allocation20_spill] sm:$0xff] }
 0x465   :  { %v3302_v49 = vsel %vm3299_vm8, %v3301_v1, %v3297_v10  ;;  %v3321_v6 = vmul.f32 %v6339_v48, %v3287_v46  ;;  %v10380_v55 = vld [vmem:[#allocation22_spill] sm:$0xff]  ;;  %v3306_v56 = vsub.f32 1.0, %v3305_v26  ;;  %v10384_v10 = vld [vmem:[#allocation29_spill] sm:$0xff]  ;;  %v10385_v41 = vld [vmem:[#allocation27_spill] sm:$0xff] }
 0x466   :  { %3678 = vmatpush.bf16.msrb.mxu0 %v10376_v8  ;;  %3691 = vmatpush.bf16.msra.mxu1 %v10377_v18  ;;  %v3320_v43 = vmul.f32 %v3302_v49, %v10378_v58  ;;  %v10386_v54 = vld [vmem:[#allocation24_spill] sm:$0xff]  ;;  %v10387_v1 = vld [vmem:[#allocation34_spill] sm:$0xff]  ;;  %v10388_v46 = vld [vmem:[#allocation33_spill] sm:$0xff] }
 0x467   :  { %v3307_v48 = vmul.f32 %v6337_v24, %v3306_v56  ;;  %v10389_v49 = vld [vmem:[#allocation31_spill] sm:$0xff]  ;;  %v10391_v58 = vld [vmem:[#allocation37_spill] sm:$0xff]  ;;  %v3313_v56 = vand.u32 2147483647, %v8464_v59  ;;  %vm3311_vm11 = vmor %vm3309_vm10, %vm3310_vm9 }
 0x468   :  { %3704 = vmatpush.bf16.msra.mxu2 %v10379_v60  ;;  %3717 = vmatpush.bf16.msrb.mxu3 %v10380_v55  ;;  %v8495_v32 = vadd.f32 %v3321_v6, %v3320_v43  ;;  %v10390_v6 = vld [vmem:[#allocation28_spill] sm:$0xff]  ;;  %v10392_v43 = vld [vmem:[#allocation38_spill] sm:$0xff]  ;;  %v10401_v55 = vld [vmem:[#allocation43_spill] sm:$0xff] }
 0x469   :  { %v3308_v26 = vadd.f32 %v6337_v24, %v3307_v48  ;;  %v10397_v48 = vld [vmem:[#allocation39_spill] sm:$0xff]  ;;  %vm3314_vm12 = vcmp.eq.f32.partialorder %v3313_v56, 8.507059e+37  ;;  %v10456_v60 = vld [vmem:[#allocation132_spill] sm:$0xff]  ;;  %v10458_v18 = vld [vmem:[#allocation134_spill] sm:$0xff] }
 0x46a   :  { %10381 = vst [vmem:[#allocation146_spill] sm:$0xff] %v8495_v32  ;;  %3679 = vmatpush.bf16.msrb.mxu0 %v10382_v25  ;;  %3692 = vmatpush.bf16.msra.mxu1 %v10383_v23  ;;  %6340 = vtanh.f32 %v8495_v32  ;;  %v10399_v23 = vld [vmem:[#allocation44_spill] sm:$0xff]  ;;  %v10411_v56 = vld [vmem:[#allocation83_spill] sm:$0xff]  ;;  %v10461_v8 = vld [vmem:[#allocation61_spill] sm:$0xff] }
 0x46b   :  { %v10464_v32 = vld [vmem:[#allocation138_spill] sm:$0xff] }
 0x46c   :  { %3705 = vmatpush.bf16.msra.mxu2 %v10384_v10  ;;  %3718 = vmatpush.bf16.msrb.mxu3 %v10385_v41  ;;  %v10393_v41 = vld [vmem:[#allocation35_spill] sm:$0xff]  ;;  %v10398_v10 = vld [vmem:[#allocation36_spill] sm:$0xff] }
 0x46e   :  { %3680 = vmatpush.bf16.msrb.mxu0 %v10386_v54  ;;  %3693 = vmatpush.bf16.msra.mxu1 %v10387_v1  ;;  %v3315_v54 = vand.u32 2147483648, %v8464_v59  ;;  %v10396_v1 = vld [vmem:[#allocation41_spill] sm:$0xff] }
 0x46f   :  { %v10400_v59 = vld [vmem:[#allocation45_spill] sm:$0xff] }
 0x470   :  { %3706 = vmatpush.bf16.msra.mxu2 %v10388_v46  ;;  %3719 = vmatpush.bf16.msrb.mxu3 %v10389_v49  ;;  %v10394_v49 = vld [vmem:[#allocation32_spill] sm:$0xff]  ;;  %v10395_v46 = vld [vmem:[#allocation42_spill] sm:$0xff] }
 0x472   :  { %3681 = vmatpush.bf16.msrb.mxu0 %v10390_v6  ;;  %3694 = vmatpush.bf16.msra.mxu1 %v10391_v58  ;;  %v3312_v6 = vsel %vm3311_vm11, %v6337_v24, %v3308_v26  ;;  %v6341_v58 = vpop.eup %6340  ;;  %v10403_v24 = vld [vmem:[#allocation48_spill] sm:$0xff] }
 0x474   :  { %3707 = vmatpush.bf16.msra.mxu2 %v10392_v43  ;;  %3720 = vmatpush.bf16.msrb.mxu3 %v10393_v41  ;;  %v3316_v43 = vor.u32 1.1754944e-38, %v3315_v54  ;;  %v10405_v54 = vld [vmem:[#allocation46_spill] sm:$0xff] }
 0x476   :  { %3682 = vmatpush.bf16.msrb.mxu0 %v10394_v49  ;;  %3695 = vmatpush.bf16.msra.mxu1 %v10395_v46  ;;  %v3317_v41 = vsel %vm3314_vm12, %v3316_v43, %v3312_v6  ;;  %v10402_v49 = vld [vmem:[#allocation40_spill] sm:$0xff]  ;;  %v10406_v6 = vld [vmem:[#allocation77_spill] sm:$0xff]  ;;  %v10407_v43 = vld [vmem:[#allocation78_spill] sm:$0xff] }
 0x477   :  { %v3324_v25 = vmul.f32 %v6341_v58, %v3317_v41  ;;  %v10408_v41 = vld [vmem:[#allocation79_spill] sm:$0xff]  ;;  %v10410_v58 = vld [vmem:[#allocation82_spill] sm:$0xff] }
 0x478   :  { %3708 = vmatpush.bf16.msra.mxu2 %v10396_v1  ;;  %3721 = vmatpush.bf16.msrb.mxu3 %v10397_v48  ;;  %v10404_v48 = vld [vmem:[#allocation47_spill] sm:$0xff]  ;;  %v10448_v1 = vld [vmem:[#allocation124_spill] sm:$0xff] }
 0x479   :  { %v8523_v26 = vpack.c.bf16 %v3324_v25, %v3324_v25  ;;  %v10409_v25 = vld [vmem:[#allocation80_spill] sm:$0xff] }
 0x47a   :  { %3683 = vmatpush.bf16.msrb.mxu0 %v10398_v10  ;;  %3696 = vmatpush.bf16.msra.mxu1 %v10399_v23 }
 0x47c   :  { %3709 = vmatpush.bf16.msra.mxu2 %v10400_v59  ;;  %3722 = vmatpush.bf16.msrb.mxu3 %v10401_v55  ;;  %v10418_v55 = vld [vmem:[#allocation92_spill] sm:$0xff] }
 0x47d   :  { %v10440_v59 = vld [vmem:[#allocation116_spill] sm:$0xff] }
 0x47e   :  { %3684 = vmatpush.bf16.msrb.mxu0 %v10402_v49  ;;  %3697 = vmatpush.bf16.msra.mxu1 %v10403_v24  ;;  %v10416_v24 = vld [vmem:[#allocation90_spill] sm:$0xff]  ;;  %v10417_v49 = vld [vmem:[#allocation91_spill] sm:$0xff] }
 0x480   :  { %3710 = vmatpush.bf16.msra.mxu2 %v10404_v48  ;;  %3723 = vmatpush.bf16.msrb.mxu3 %v10405_v54  ;;  %v10412_v54 = vld [vmem:[#allocation84_spill] sm:$0xff]  ;;  %v10415_v48 = vld [vmem:[#allocation89_spill] sm:$0xff] }
 0x481   :  { %3685 = vmatmul.bf16.vlgmr.msrb.gmra.mxu0 %v8523_v26  ;;  %3698 = vmatmul.bf16.vlgmr.msra.gmra.mxu1 %v8523_v26 }
 0x482   :  { %3796 = vmatpush.bf16.msra.mxu0 %v10406_v6  ;;  %3809 = vmatpush.bf16.msrb.mxu1 %v10407_v43  ;;  %v10413_v6 = vld [vmem:[#allocation87_spill] sm:$0xff]  ;;  %v10414_v43 = vld [vmem:[#allocation88_spill] sm:$0xff] }
 0x483   :  { %3711 = vmatmul.bf16.vlgmr.msra.gmra.mxu2 %v8523_v26  ;;  %3724 = vmatmul.bf16.vlgmr.msrb.gmra.mxu3 %v8523_v26 }
 0x484   :  { %3822 = vmatpush.bf16.msrb.mxu2 %v10408_v41  ;;  %3835 = vmatpush.bf16.msra.mxu3 %v10409_v25  ;;  %v10419_v41 = vld [vmem:[#allocation93_spill] sm:$0xff]  ;;  %v10420_v25 = vld [vmem:[#allocation95_spill] sm:$0xff] }
 0x486   :  { %3797 = vmatpush.bf16.msra.mxu0 %v10410_v58  ;;  %3810 = vmatpush.bf16.msrb.mxu1 %v10411_v56  ;;  %v10421_v58 = vld [vmem:[#allocation96_spill] sm:$0xff]  ;;  %v10422_v56 = vld [vmem:[#allocation97_spill] sm:$0xff] }
 0x488   :  { %3823 = vmatpush.bf16.msrb.mxu2 %v10412_v54  ;;  %3836 = vmatpush.bf16.msra.mxu3 %v10413_v6  ;;  %v10423_v54 = vld [vmem:[#allocation98_spill] sm:$0xff]  ;;  %v10424_v6 = vld [vmem:[#allocation99_spill] sm:$0xff] }
 0x48a   :  { %3798 = vmatpush.bf16.msra.mxu0 %v10414_v43  ;;  %3811 = vmatpush.bf16.msrb.mxu1 %v10415_v48  ;;  %v10425_v43 = vld [vmem:[#allocation100_spill] sm:$0xff]  ;;  %v10426_v48 = vld [vmem:[#allocation101_spill] sm:$0xff] }
 0x48c   :  { %3824 = vmatpush.bf16.msrb.mxu2 %v10416_v24  ;;  %3837 = vmatpush.bf16.msra.mxu3 %v10417_v49  ;;  %v10427_v24 = vld [vmem:[#allocation102_spill] sm:$0xff]  ;;  %v10428_v49 = vld [vmem:[#allocation103_spill] sm:$0xff] }
 0x48e   :  { %3799 = vmatpush.bf16.msra.mxu0 %v10418_v55  ;;  %3812 = vmatpush.bf16.msrb.mxu1 %v10419_v41  ;;  %v10429_v55 = vld [vmem:[#allocation104_spill] sm:$0xff]  ;;  %v10430_v41 = vld [vmem:[#allocation105_spill] sm:$0xff] }
 0x490   :  { %3825 = vmatpush.bf16.msrb.mxu2 %v10420_v25  ;;  %3838 = vmatpush.bf16.msra.mxu3 %v10421_v58  ;;  %v10431_v25 = vld [vmem:[#allocation106_spill] sm:$0xff]  ;;  %v10432_v58 = vld [vmem:[#allocation107_spill] sm:$0xff] }
 0x492   :  { %3800 = vmatpush.bf16.msra.mxu0 %v10422_v56  ;;  %3813 = vmatpush.bf16.msrb.mxu1 %v10423_v54  ;;  %v10433_v56 = vld [vmem:[#allocation108_spill] sm:$0xff]  ;;  %v10434_v54 = vld [vmem:[#allocation109_spill] sm:$0xff] }
 0x494   :  { %3826 = vmatpush.bf16.msrb.mxu2 %v10424_v6  ;;  %3839 = vmatpush.bf16.msra.mxu3 %v10425_v43  ;;  %v10435_v6 = vld [vmem:[#allocation110_spill] sm:$0xff] }
 0x495   :  { %v10436_v43 = vld [vmem:[#allocation114_spill] sm:$0xff] }
 0x496   :  { %3801 = vmatpush.bf16.msra.mxu0 %v10426_v48  ;;  %3814 = vmatpush.bf16.msrb.mxu1 %v10427_v24  ;;  %v10437_v48 = vld [vmem:[#allocation115_spill] sm:$0xff] }
 0x497   :  { %v10438_v24 = vld [vmem:[#allocation111_spill] sm:$0xff] }
 0x498   :  { %3827 = vmatpush.bf16.msrb.mxu2 %v10428_v49  ;;  %3840 = vmatpush.bf16.msra.mxu3 %v10429_v55  ;;  %v10439_v49 = vld [vmem:[#allocation112_spill] sm:$0xff] }
 0x49a   :  { %3802 = vmatpush.bf16.msra.mxu0 %v10430_v41  ;;  %3815 = vmatpush.bf16.msrb.mxu1 %v10431_v25  ;;  %v10441_v25 = vld [vmem:[#allocation117_spill] sm:$0xff] }
 0x49c   :  { %3828 = vmatpush.bf16.msrb.mxu2 %v10432_v58  ;;  %3841 = vmatpush.bf16.msra.mxu3 %v10433_v56  ;;  %v10442_v58 = vld [vmem:[#allocation118_spill] sm:$0xff]  ;;  %v10443_v56 = vld [vmem:[#allocation119_spill] sm:$0xff] }
 0x49d   :  { %v3334_v55 = vpop.f32.mrf.mxu0  ;;  %v3347_v41 = vpop.f32.mrf.mxu1 }
 0x49e   :  { %3803 = vmatpush.bf16.msra.mxu0 %v10434_v54  ;;  %3816 = vmatpush.bf16.msrb.mxu1 %v10435_v6  ;;  %v10444_v54 = vld [vmem:[#allocation120_spill] sm:$0xff]  ;;  %v10445_v6 = vld [vmem:[#allocation121_spill] sm:$0xff] }
 0x4a0   :  { %3829 = vmatpush.bf16.msrb.mxu2 %v10438_v24  ;;  %3842 = vmatpush.bf16.msra.mxu3 %v10439_v49 }
 0x4a2   :  { %3848 = vmatpush.bf16.msrb.mxu0 %v10436_v43  ;;  %3861 = vmatpush.bf16.msra.mxu1 %v10437_v48  ;;  %v10446_v43 = vld [vmem:[#allocation122_spill] sm:$0xff]  ;;  %v10447_v48 = vld [vmem:[#allocation123_spill] sm:$0xff] }
 0x4a4   :  { %3874 = vmatpush.bf16.msra.mxu2 %v10440_v59  ;;  %3887 = vmatpush.bf16.msrb.mxu3 %v10441_v25  ;;  %v3360_v24 = vpop.f32.mrf.mxu2  ;;  %v3373_v49 = vpop.f32.mrf.mxu3  ;;  %v10449_v59 = vld [vmem:[#allocation125_spill] sm:$0xff]  ;;  %v10450_v25 = vld [vmem:[#allocation126_spill] sm:$0xff] }
 0x4a5   :  { %v3336_v23 = vpop.f32.mrf.mxu0  ;;  %v3349_v10 = vpop.f32.mrf.mxu1 }
 0x4a6   :  { %3849 = vmatpush.bf16.msrb.mxu0 %v10442_v58  ;;  %3862 = vmatpush.bf16.msra.mxu1 %v10443_v56  ;;  %v10451_v58 = vld [vmem:[#allocation127_spill] sm:$0xff]  ;;  %v10452_v56 = vld [vmem:[#allocation128_spill] sm:$0xff] }
 0x4a8   :  { %3875 = vmatpush.bf16.msra.mxu2 %v10444_v54  ;;  %3888 = vmatpush.bf16.msrb.mxu3 %v10445_v6  ;;  %v10453_v54 = vld [vmem:[#allocation129_spill] sm:$0xff]  ;;  %v10454_v6 = vld [vmem:[#allocation130_spill] sm:$0xff] }
 0x4aa   :  { %3850 = vmatpush.bf16.msrb.mxu0 %v10446_v43  ;;  %3863 = vmatpush.bf16.msra.mxu1 %v10447_v48  ;;  %v10455_v43 = vld [vmem:[#allocation131_spill] sm:$0xff] }
 0x4ac   :  { %3876 = vmatpush.bf16.msra.mxu2 %v10448_v1  ;;  %3889 = vmatpush.bf16.msrb.mxu3 %v10449_v59  ;;  %v3362_v48 = vpop.f32.mrf.mxu2  ;;  %v3375_v46 = vpop.f32.mrf.mxu3  ;;  %v10457_v1 = vld [vmem:[#allocation133_spill] sm:$0xff] }
 0x4ad   :  { %v3386_v23 = vpop.f32.mrf.mxu0  ;;  %v3399_v10 = vpop.f32.mrf.mxu1  ;;  %v10463_v48 = vld [vmem:[#allocation137_spill] sm:$0xff] }
 0x4ae   :  { %3851 = vmatpush.bf16.msrb.mxu0 %v10450_v25  ;;  %3864 = vmatpush.bf16.msra.mxu1 %v10451_v58  ;;  %v3387_v59 = vadd.f32 %v3386_v23, %v3334_v55  ;;  %v3400_v25 = vadd.f32 %v3399_v10, %v3347_v41  ;;  %v10459_v58 = vld [vmem:[#allocation135_spill] sm:$0xff] }
 0x4b0   :  { %3877 = vmatpush.bf16.msra.mxu2 %v10452_v56  ;;  %3890 = vmatpush.bf16.msrb.mxu3 %v10453_v54  ;;  %v10460_v56 = vld [vmem:[#allocation52_spill] sm:$0xff] }
 0x4b1   :  { %v3429_v54 = vadd.f32 %v3387_v59, %v10460_v56  ;;  %v10466_v59 = vld [vmem:[#allocation140_spill] sm:$0xff]  ;;  %v10473_v56 = vld [vmem:[#allocation54_spill] sm:$0xff] }
 0x4b2   :  { %3852 = vmatpush.bf16.msrb.mxu0 %v10454_v6  ;;  %3865 = vmatpush.bf16.msra.mxu1 %v10455_v43  ;;  %v3430_v6 = vadd.f32 %v3400_v25, %v10461_v8  ;;  %v10467_v25 = vld [vmem:[#allocation141_spill] sm:$0xff]  ;;  %v10471_v8 = vld [vmem:[#allocation144_spill] sm:$0xff] }
 0x4b3   :  { %v5921_v46 = vmul.f32 -1.442695, %v3429_v54  ;;  %v10470_v54 = vld [vmem:[#allocation59_spill] sm:$0xff] }
 0x4b4   :  { %3878 = vmatpush.bf16.msra.mxu2 %v10456_v60  ;;  %3891 = vmatpush.bf16.msrb.mxu3 %v10457_v1  ;;  %v5922_v43 = vmul.f32 -1.442695, %v3430_v6  ;;  %v10465_v60 = vld [vmem:[#allocation139_spill] sm:$0xff]  ;;  %v3412_v55 = vpop.f32.mrf.mxu2  ;;  %v3425_v41 = vpop.f32.mrf.mxu3 }
 0x4b5   :  { %6342 = vpow2.f32 %v5921_v46  ;;  %v3413_v23 = vadd.f32 %v3412_v55, %v3360_v24  ;;  %v3388_v10 = vpop.f32.mrf.mxu0  ;;  %v10472_v46 = vld [vmem:[#allocation145_spill] sm:$0xff] }
 0x4b6   :  { %3853 = vmatpush.bf16.msrb.mxu0 %v10458_v18  ;;  %3866 = vmatpush.bf16.msra.mxu1 %v10459_v58  ;;  %6344 = vpow2.f32 %v5922_v43  ;;  %v3401_v58 = vpop.f32.mrf.mxu1 }
 0x4b7   :  { %v3431_v6 = vadd.f32 %v3413_v23, %v10470_v54 }
 0x4b8   :  { %3879 = vmatpush.bf16.msra.mxu2 %v10462_v39  ;;  %3892 = vmatpush.bf16.msrb.mxu3 %v10463_v48  ;;  %v10468_v39 = vld [vmem:[#allocation142_spill] sm:$0xff]  ;;  %v10469_v48 = vld [vmem:[#allocation143_spill] sm:$0xff] }
 0x4ba   :  { %3854 = vmatpush.bf16.msrb.mxu0 %v10464_v32  ;;  %3867 = vmatpush.bf16.msra.mxu1 %v10465_v60  ;;  %v5923_v32 = vmul.f32 -1.442695, %v3431_v6 }
 0x4bb   :  { %v6343_v60 = vpop.eup %6342 }
 0x4bc   :  { %3880 = vmatpush.bf16.msra.mxu2 %v10466_v59  ;;  %3893 = vmatpush.bf16.msrb.mxu3 %v10467_v25  ;;  %v6345_v43 = vpop.eup %6344  ;;  %v3442_v24 = vadd.f32 1.0, %v6343_v60  ;;  %6346 = vpow2.f32 %v5923_v32  ;;  %v3414_v55 = vpop.f32.mrf.mxu2  ;;  %v3426_v25 = vadd.f32 %v3425_v41, %v3373_v49 }
 0x4bd   :  { %v3443_v58 = vadd.f32 1.0, %v6345_v43  ;;  %v3427_v10 = vpop.f32.mrf.mxu3 }
 0x4be   :  { %3855 = vmatpush.bf16.msrb.mxu0 %v10468_v39  ;;  %3868 = vmatpush.bf16.msra.mxu1 %v10469_v48  ;;  %6348 = vrcp.f32 %v3442_v24  ;;  %v3432_v23 = vadd.f32 %v3426_v25, %v10473_v56  ;;  %v3456_v1 = vand.u32 2147483648, %v3442_v24  ;;  %v3454_v43 = vand.u32 2147483647, %v3442_v24 }
 0x4bf   :  { %6350 = vrcp.f32 %v3443_v58  ;;  %v3471_v60 = vand.u32 2147483648, %v3443_v58  ;;  %v3469_v49 = vand.u32 2147483647, %v3443_v58  ;;  %vm3450_vm15 = vweird.f32 %v3442_v24 }
 0x4c0   :  { %3881 = vmatpush.bf16.msra.mxu2 %v10471_v8  ;;  %3894 = vmatpush.bf16.msrb.mxu3 %v10472_v46  ;;  %vm3465_vm0 = vweird.f32 %v3443_v58  ;;  %v3457_v10 = vor.u32 1.1754944e-38, %v3456_v1  ;;  %vm3455_vm3 = vcmp.eq.f32.partialorder %v3454_v43, 8.507059e+37 }
 0x4c1   :  { %vm3470_vm4 = vcmp.eq.f32.partialorder %v3469_v49, 8.507059e+37 }
 0x4c2   :  { %v6347_v39 = vpop.eup %6346 }
 0x4c3   :  { %v3444_v59 = vadd.f32 1.0, %v6347_v39 }
 0x4c4   :  { %v6349_v48 = vpop.eup %6348 }
 0x4c5   :  { %v6351_v6 = vpop.eup %6350  ;;  %v3446_v54 = vmul.f32 %v6349_v48, %v3442_v24  ;;  %6352 = vrcp.f32 %v3444_v59  ;;  %vm3451_vm13 = vweird.f32 %v6349_v48  ;;  %vm3480_vm6 = vweird.f32 %v3444_v59 }
 0x4c6   :  { %v3461_v8 = vmul.f32 %v6351_v6, %v3443_v58  ;;  %6354 = vtanh.f32 %v3432_v23  ;;  %vm3466_vm14 = vweird.f32 %v6351_v6  ;;  %vm3452_vm1 = vmor %vm3450_vm15, %vm3451_vm13 }
 0x4c7   :  { %v3447_v46 = vsub.f32 1.0, %v3446_v54  ;;  %vm3467_vm2 = vmor %vm3465_vm0, %vm3466_vm14  ;;  %v3472_v54 = vor.u32 1.1754944e-38, %v3471_v60 }
 0x4c8   :  { %v3462_v18 = vsub.f32 1.0, %v3461_v8 }
 0x4c9   :  { %v3448_v32 = vmul.f32 %v6349_v48, %v3447_v46 }
 0x4ca   :  { %v3463_v55 = vmul.f32 %v6351_v6, %v3462_v18 }
 0x4cb   :  { %v6353_v41 = vpop.eup %6352  ;;  %v3449_v39 = vadd.f32 %v6349_v48, %v3448_v32 }
 0x4cc   :  { %v3476_v25 = vmul.f32 %v6353_v41, %v3444_v59  ;;  %v3464_v56 = vadd.f32 %v6351_v6, %v3463_v55  ;;  %v6355_v23 = vpop.eup %6354  ;;  %vm3481_vm5 = vweird.f32 %v6353_v41  ;;  %v3486_v55 = vand.u32 2147483648, %v3444_v59 }
 0x4cd   :  { %v3453_v8 = vsel %vm3452_vm1, %v6349_v48, %v3449_v39  ;;  %v3484_v48 = vand.u32 2147483647, %v3444_v59  ;;  %vm3482_vm7 = vmor %vm3480_vm6, %vm3481_vm5 }
 0x4ce   :  { %v3477_v50 = vsub.f32 1.0, %v3476_v25  ;;  %v3458_v46 = vsel %vm3455_vm3, %v3457_v10, %v3453_v8  ;;  %v3468_v57 = vsel %vm3467_vm2, %v6351_v6, %v3464_v56  ;;  %v3505_v16 = vpop.f32.mrf.mxu0  ;;  %v3518_v35 = vpop.f32.mrf.mxu1  ;;  %v3487_v49 = vor.u32 1.1754944e-38, %v3486_v55 }
 0x4cf   :  { %v3473_v18 = vsel %vm3470_vm4, %v3472_v54, %v3468_v57  ;;  %v3492_v44 = vmul.f32 %v6355_v23, %v3458_v46  ;;  %vm3485_vm8 = vcmp.eq.f32.partialorder %v3484_v48, 8.507059e+37 }
 0x4d0   :  { %v3478_v32 = vmul.f32 %v6353_v41, %v3477_v50  ;;  %v3491_v24 = vmul.f32 %v3473_v18, %v8349_v63 }
 0x4d2   :  { %v8600_v58 = vadd.f32 %v3492_v44, %v3491_v24  ;;  %v3479_v1 = vadd.f32 %v6353_v41, %v3478_v32 }
 0x4d4   :  { %6356 = vtanh.f32 %v8600_v58  ;;  %v3483_v6 = vsel %vm3482_vm7, %v6353_v41, %v3479_v1 }
 0x4d5   :  { %v3488_v39 = vsel %vm3485_vm8, %v3487_v49, %v3483_v6 }
 0x4d6   :  { %v3531_v60 = vpop.f32.mrf.mxu2  ;;  %v3544_v56 = vpop.f32.mrf.mxu3 }
 0x4d7   :  { %v3507_v57 = vpop.f32.mrf.mxu0  ;;  %v3520_v43 = vpop.f32.mrf.mxu1 }
 0x4da   :  { %v6357_v50 = vpop.eup %6356 }
 0x4db   :  { %v3495_v63 = vmul.f32 %v6357_v50, %v3488_v39 }
 0x4dd   :  { %v8603_v44 = vpack.c.bf16 %v3495_v63, %v3495_v63 }
 0x4de   :  { %v3533_v25 = vpop.f32.mrf.mxu2  ;;  %v3546_v10 = vpop.f32.mrf.mxu3 }
 0x4df   :  { %v3557_v54 = vpop.f32.mrf.mxu0  ;;  %v3570_v8 = vpop.f32.mrf.mxu1  ;;  %3804 = vmatmul.bf16.vlgmr.msra.gmra.mxu0 %v8603_v44  ;;  %3817 = vmatmul.bf16.vlgmr.msrb.gmra.mxu1 %v8603_v44 }
 0x4e0   :  { %v3558_v59 = vadd.f32 %v3557_v54, %v3505_v16  ;;  %v3571_v23 = vadd.f32 %v3570_v8, %v3518_v35  ;;  %3830 = vmatmul.bf16.vlgmr.msrb.gmra.mxu2 %v8603_v44  ;;  %3843 = vmatmul.bf16.vlgmr.msra.gmra.mxu3 %v8603_v44  ;;  %v10474_v8 = vld [vmem:[#allocation58_spill] sm:$0xff] }
 0x4e1   :  { %3967 = vmatpush.bf16.msra.mxu0 %v10048_v7  ;;  %3980 = vmatpush.bf16.msrb.mxu1 %v10049_v22 }
 0x4e2   :  { %v3600_v41 = vadd.f32 %v3558_v59, %v7883_v38  ;;  %v3601_v46 = vadd.f32 %v3571_v23, %v7885_v17  ;;  %3993 = vmatpush.bf16.msrb.mxu2 %v10050_v30  ;;  %4006 = vmatpush.bf16.msra.mxu3 %v10051_v37  ;;  %v10475_v23 = vld [vmem:[#allocation166_spill] sm:$0xff] }
 0x4e4   :  { %v5924_v18 = vmul.f32 -1.442695, %v3600_v41  ;;  %v5925_v32 = vmul.f32 -1.442695, %v3601_v46  ;;  %v10476_v41 = vld [vmem:[#allocation167_spill] sm:$0xff]  ;;  %v10477_v46 = vld [vmem:[#allocation168_spill] sm:$0xff] }
 0x4e5   :  { %3968 = vmatpush.bf16.msra.mxu0 %v10053_v33  ;;  %3981 = vmatpush.bf16.msrb.mxu1 %v10054_v45 }
 0x4e6   :  { %6358 = vpow2.f32 %v5924_v18  ;;  %v3583_v16 = vpop.f32.mrf.mxu2  ;;  %v3596_v35 = vpop.f32.mrf.mxu3  ;;  %3994 = vmatpush.bf16.msrb.mxu2 %v10055_v15  ;;  %4007 = vmatpush.bf16.msra.mxu3 %v10056_v2  ;;  %v10478_v18 = vld [vmem:[#allocation169_spill] sm:$0xff] }
 0x4e7   :  { %6360 = vpow2.f32 %v5925_v32  ;;  %v3584_v24 = vadd.f32 %v3583_v16, %v3531_v60  ;;  %v3559_v1 = vpop.f32.mrf.mxu0  ;;  %v3572_v55 = vpop.f32.mrf.mxu1  ;;  %v3597_v63 = vadd.f32 %v3596_v35, %v3544_v56 }
 0x4e8   :  { %v10479_v55 = vld [vmem:[#allocation170_spill] sm:$0xff] }
 0x4e9   :  { %v3602_v48 = vadd.f32 %v3584_v24, %v10190_v3  ;;  %3969 = vmatpush.bf16.msra.mxu0 %v10191_v47  ;;  %3982 = vmatpush.bf16.msrb.mxu1 %v10192_v11  ;;  %v3603_v59 = vadd.f32 %v3597_v63, %v10474_v8  ;;  %v10483_v63 = vld [vmem:[#allocation49_spill] sm:$0xff] }
 0x4ea   :  { %3995 = vmatpush.bf16.msrb.mxu2 %v10193_v53  ;;  %4008 = vmatpush.bf16.msra.mxu3 %v10194_v51 }
 0x4eb   :  { %v5926_v6 = vmul.f32 -1.442695, %v3602_v48  ;;  %v10480_v48 = vld [vmem:[#allocation171_spill] sm:$0xff] }
 0x4ec   :  { %v6359_v57 = vpop.eup %6358 }
 0x4ed   :  { %v6361_v43 = vpop.eup %6360  ;;  %v8624_v49 = vadd.f32 1.0, %v6359_v57  ;;  %6362 = vpow2.f32 %v5926_v6  ;;  %3970 = vmatpush.bf16.msra.mxu0 %v10195_v42  ;;  %3983 = vmatpush.bf16.msrb.mxu1 %v10330_v28 }
 0x4ee   :  { %v3614_v60 = vadd.f32 1.0, %v6361_v43  ;;  %v3585_v50 = vpop.f32.mrf.mxu2  ;;  %v3598_v39 = vpop.f32.mrf.mxu3  ;;  %3996 = vmatpush.bf16.msrb.mxu2 %v10331_v14  ;;  %4009 = vmatpush.bf16.msra.mxu3 %v10332_v61 }
 0x4ef   :  { %6364 = vrcp.f32 %v8624_v49  ;;  %3856 = vmatmul.bf16.vlgmr.msrb.gmra.mxu0 %v8523_v26  ;;  %3869 = vmatmul.bf16.vlgmr.msra.gmra.mxu1 %v8523_v26  ;;  %v3627_v35 = vand.u32 2147483648, %v8624_v49  ;;  %v3625_v1 = vand.u32 2147483647, %v8624_v49  ;;  %v10481_v50 = vld [vmem:[#allocation172_spill] sm:$0xff]  ;;  %v10482_v39 = vld [vmem:[#allocation173_spill] sm:$0xff]  ;;  %vm3621_vm12 = vweird.f32 %v8624_v49 }
 0x4f0   :  { %6366 = vrcp.f32 %v3614_v60  ;;  %3882 = vmatmul.bf16.vlgmr.msra.gmra.mxu2 %v8523_v26  ;;  %3895 = vmatmul.bf16.vlgmr.msrb.gmra.mxu3 %v8523_v26  ;;  %v3642_v6 = vand.u32 2147483648, %v3614_v60  ;;  %v3640_v43 = vand.u32 2147483647, %v3614_v60  ;;  %vm3636_vm11 = vweird.f32 %v3614_v60 }
 0x4f1   :  { %3971 = vmatpush.bf16.msra.mxu0 %v10333_v4  ;;  %3984 = vmatpush.bf16.msrb.mxu1 %v10334_v31  ;;  %vm3626_vm15 = vcmp.eq.f32.partialorder %v3625_v1, 8.507059e+37 }
 0x4f2   :  { %3997 = vmatpush.bf16.msrb.mxu2 %v10335_v9  ;;  %4010 = vmatpush.bf16.msra.mxu3 %v10336_v19  ;;  %vm3641_vm0 = vcmp.eq.f32.partialorder %v3640_v43, 8.507059e+37 }
 0x4f3   :  { %v6363_v25 = vpop.eup %6362 }
 0x4f4   :  { %v8639_v10 = vadd.f32 1.0, %v6363_v25  ;;  %v220_v25 = vadd.f32 %v10483_v63, %v10346_v29 }
 0x4f5   :  { %v6365_v54 = vpop.eup %6364  ;;  %3972 = vmatpush.bf16.msra.mxu0 %v10475_v23  ;;  %3985 = vmatpush.bf16.msrb.mxu1 %v10476_v41 }
 0x4f6   :  { %v6367_v26 = vpop.eup %6366  ;;  %v3617_v56 = vmul.f32 %v6365_v54, %v8624_v49  ;;  %6368 = vrcp.f32 %v8639_v10  ;;  %3998 = vmatpush.bf16.msrb.mxu2 %v10477_v46  ;;  %4011 = vmatpush.bf16.msra.mxu3 %v10478_v18  ;;  %vm3622_vm9 = vweird.f32 %v6365_v54  ;;  %vm3651_vm2 = vweird.f32 %v8639_v10 }
 0x4f7   :  { %v3632_v32 = vmul.f32 %v6367_v26, %v3614_v60  ;;  %6370 = vtanh.f32 %v3603_v59  ;;  %vm3637_vm10 = vweird.f32 %v6367_v26  ;;  %vm3623_vm13 = vmor %vm3621_vm12, %vm3622_vm9 }
 0x4f8   :  { %v3618_v16 = vsub.f32 1.0, %v3617_v56  ;;  %v10484_v56 = vld [vmem:[#allocation57_spill] sm:$0xff]  ;;  %vm3638_vm14 = vmor %vm3636_vm11, %vm3637_vm10 }
 0x4f9   :  { %v3633_v24 = vsub.f32 1.0, %v3632_v32  ;;  %3973 = vmatpush.bf16.msra.mxu0 %v10479_v55  ;;  %3986 = vmatpush.bf16.msrb.mxu1 %v10480_v48  ;;  %v10485_v32 = vld [vmem:[#allocation86_spill] sm:$0xff] }
 0x4fa   :  { %v3619_v57 = vmul.f32 %v6365_v54, %v3618_v16  ;;  %3999 = vmatpush.bf16.msrb.mxu2 %v10481_v50  ;;  %4012 = vmatpush.bf16.msra.mxu3 %v10482_v39  ;;  %v261_v18 = vadd.f32 %v10485_v32, %v10484_v56  ;;  %v3628_v16 = vor.u32 1.1754944e-38, %v3627_v35 }
 0x4fb   :  { %v3634_v46 = vmul.f32 %v6367_v26, %v3633_v24  ;;  %v3643_v24 = vor.u32 1.1754944e-38, %v3642_v6 }
 0x4fc   :  { %v8658_v59 = vpop.eup %6368  ;;  %v3620_v48 = vadd.f32 %v6365_v54, %v3619_v57 }
 0x4fd   :  { %v3647_v39 = vmul.f32 %v8658_v59, %v8639_v10  ;;  %v3635_v29 = vadd.f32 %v6367_v26, %v3634_v46  ;;  %3974 = vmatpush.bf16.msra.mxu0 %v7621_v40  ;;  %3987 = vmatpush.bf16.msrb.mxu1 %v7623_v34  ;;  %v6371_v49 = vpop.eup %6370  ;;  %vm3652_vm1 = vweird.f32 %v8658_v59 }
 0x4fe   :  { %v3686_v55 = vpop.f32.mrf.mxu0  ;;  %v3699_v8 = vpop.f32.mrf.mxu1  ;;  %v3624_v32 = vsel %vm3623_vm13, %v6365_v54, %v3620_v48  ;;  %4000 = vmatpush.bf16.msrb.mxu2 %v7627_v20  ;;  %4013 = vmatpush.bf16.msra.mxu3 %v10076_v0  ;;  %vm8688_vm3 = vmor %vm3651_vm2, %vm3652_vm1 }
 0x4ff   :  { %v3729_v63 = vadd.f32 %v3686_v55, %v220_v25  ;;  %v3730_v50 = vadd.f32 %v3699_v8, %v261_v18  ;;  %v3648_v60 = vsub.f32 1.0, %v3647_v39  ;;  %v3629_v35 = vsel %vm3626_vm15, %v3628_v16, %v3624_v32  ;;  %v10486_v39 = vld [vmem:[#allocation184_spill] sm:$0xff]  ;;  %v10487_v25 = vld [vmem:[#allocation85_spill] sm:$0xff] }
 0x500   :  { %v3639_v57 = vsel %vm3638_vm14, %v6367_v26, %v3635_v29  ;;  %v3663_v46 = vmul.f32 %v6371_v49, %v3629_v35  ;;  %v3655_v16 = vand.u32 2147483647, %v8639_v10  ;;  %v10492_v35 = vld [vmem:[#allocation187_spill] sm:$0xff] }
 0x501   :  { %v5927_v56 = vmul.f32 -1.442695, %v3729_v63  ;;  %4019 = vmatpush.bf16.msrb.mxu0 %v10077_v5  ;;  %v3644_v8 = vsel %vm3641_vm0, %v3643_v24, %v3639_v57  ;;  %v5928_v18 = vmul.f32 -1.442695, %v3730_v50  ;;  %4032 = vmatpush.bf16.msra.mxu1 %v10078_v13  ;;  %v3649_v54 = vmul.f32 %v8658_v59, %v3648_v60  ;;  %v10488_v63 = vld [vmem:[#allocation185_spill] sm:$0xff]  ;;  %v10491_v60 = vld [vmem:[#allocation186_spill] sm:$0xff] }
 0x502   :  { %4045 = vmatpush.bf16.msra.mxu2 %v10079_v12  ;;  %v3662_v1 = vmul.f32 %v3644_v8, %v8423_v52  ;;  %4058 = vmatpush.bf16.msrb.mxu3 %v10211_v27  ;;  %v3657_v52 = vand.u32 2147483648, %v8639_v10  ;;  %v10493_v10 = vld [vmem:[#allocation188_spill] sm:$0xff]  ;;  %vm3656_vm4 = vcmp.eq.f32.partialorder %v3655_v16, 8.507059e+37  ;;  %v10498_v24 = vld [vmem:[#allocation193_spill] sm:$0xff]  ;;  %v10499_v16 = vld [vmem:[#allocation74_spill] sm:$0xff] }
 0x503   :  { %6372 = vpow2.f32 %v5927_v56  ;;  %v3650_v50 = vadd.f32 %v8658_v59, %v3649_v54 }
 0x504   :  { %6374 = vpow2.f32 %v5928_v18  ;;  %v8674_v26 = vadd.f32 %v3663_v46, %v3662_v1  ;;  %v3658_v46 = vor.u32 1.1754944e-38, %v3657_v52 }
 0x505   :  { %4020 = vmatpush.bf16.msrb.mxu0 %v10212_v21  ;;  %4033 = vmatpush.bf16.msra.mxu1 %v10213_v36  ;;  %v3654_v57 = vsel %vm8688_vm3, %v8658_v59, %v3650_v50  ;;  %v10496_v59 = vld [vmem:[#allocation191_spill] sm:$0xff] }
 0x506   :  { %v3712_v55 = vpop.f32.mrf.mxu2  ;;  %v3725_v48 = vpop.f32.mrf.mxu3  ;;  %4046 = vmatpush.bf16.msra.mxu2 %v10214_v62  ;;  %6376 = vtanh.f32 %v8674_v26  ;;  %4059 = vmatpush.bf16.msrb.mxu3 %v10486_v39 }
 0x507   :  { %v3688_v6 = vpop.f32.mrf.mxu0  ;;  %v3701_v43 = vpop.f32.mrf.mxu1  ;;  %v3731_v56 = vadd.f32 %v3712_v55, %v10487_v25  ;;  %v10495_v25 = vld [vmem:[#allocation190_spill] sm:$0xff] }
 0x508   :  { %v10494_v6 = vld [vmem:[#allocation189_spill] sm:$0xff]  ;;  %v3659_v43 = vsel %vm3656_vm4, %v3658_v46, %v3654_v57  ;;  %v10500_v46 = vld [vmem:[#allocation194_spill] sm:$0xff] }
 0x509   :  { %v6373_v29 = vpop.eup %6372  ;;  %4021 = vmatpush.bf16.msrb.mxu0 %v10488_v63  ;;  %4034 = vmatpush.bf16.msra.mxu1 %v10491_v60  ;;  %v5929_v18 = vmul.f32 -1.442695, %v3731_v56 }
 0x50a   :  { %v6375_v32 = vpop.eup %6374  ;;  %v8692_v49 = vadd.f32 1.0, %v6373_v29  ;;  %4047 = vmatpush.bf16.msra.mxu2 %v10492_v35  ;;  %4060 = vmatpush.bf16.msrb.mxu3 %v10493_v10  ;;  %v10497_v29 = vld [vmem:[#allocation192_spill] sm:$0xff] }
 0x50b   :  { %v8699_v8 = vadd.f32 1.0, %v6375_v32  ;;  %v3732_v32 = vadd.f32 %v3725_v48, %v10499_v16 }
 0x50c   :  { %6378 = vrcp.f32 %v8692_v49  ;;  %v6377_v54 = vpop.eup %6376  ;;  %v3756_v16 = vand.u32 2147483648, %v8692_v49  ;;  %vm3750_vm7 = vweird.f32 %v8692_v49 }
 0x50d   :  { %6380 = vrcp.f32 %v8699_v8  ;;  %4022 = vmatpush.bf16.msrb.mxu0 %v10494_v6  ;;  %4035 = vmatpush.bf16.msra.mxu1 %v10495_v25  ;;  %v3666_v50 = vmul.f32 %v6377_v54, %v3659_v43  ;;  %v10501_v54 = vld [vmem:[#allocation195_spill] sm:$0xff]  ;;  %v10502_v43 = vld [vmem:[#allocation196_spill] sm:$0xff]  ;;  %vm3765_vm8 = vweird.f32 %v8699_v8 }
 0x50e   :  { %v3714_v1 = vpop.f32.mrf.mxu2  ;;  %v3727_v55 = vpop.f32.mrf.mxu3  ;;  %4048 = vmatpush.bf16.msra.mxu2 %v10496_v59  ;;  %4061 = vmatpush.bf16.msrb.mxu3 %v10497_v29  ;;  %6382 = vpow2.f32 %v5929_v18  ;;  %v3771_v29 = vand.u32 2147483648, %v8699_v8 }
 0x50f   :  { %v3669_v52 = vpack.c.bf16 %v3666_v50, %v3666_v50  ;;  %v10503_v50 = vld [vmem:[#allocation197_spill] sm:$0xff]  ;;  %6384 = vtanh.f32 %v3732_v32  ;;  %v10506_v32 = vld [vmem:[#allocation200_spill] sm:$0xff] }
 0x510   :  { %v3772_v6 = vor.u32 1.1754944e-38, %v3771_v29 }
 0x511   :  { %4023 = vmatpush.bf16.msrb.mxu0 %v10498_v24  ;;  %3988 = vmatmul.bf16.vlgmr.msrb.gmra.mxu1 %v3669_v52 }
 0x512   :  { %v6379_v56 = vpop.eup %6378  ;;  %3975 = vmatmul.bf16.vlgmr.msra.gmra.mxu0 %v3669_v52  ;;  %4001 = vmatmul.bf16.vlgmr.msrb.gmra.mxu2 %v3669_v52 }
 0x513   :  { %v6381_v1 = vpop.eup %6380  ;;  %v3746_v55 = vmul.f32 %v6379_v56, %v8692_v49  ;;  %4014 = vmatmul.bf16.vlgmr.msra.gmra.mxu3 %v3669_v52  ;;  %4036 = vmatpush.bf16.msra.mxu1 %v10500_v46  ;;  %vm3751_vm5 = vweird.f32 %v6379_v56  ;;  %v3754_v52 = vand.u32 2147483647, %v8692_v49  ;;  %v10507_v46 = vld [vmem:[#allocation201_spill] sm:$0xff]  ;;  %v10509_v49 = vld [vmem:[#allocation203_spill] sm:$0xff] }
 0x514   :  { %v3761_v57 = vmul.f32 %v6381_v1, %v8699_v8  ;;  %4049 = vmatpush.bf16.msra.mxu2 %v10501_v54  ;;  %4062 = vmatpush.bf16.msrb.mxu3 %v10502_v43  ;;  %v6383_v24 = vpop.eup %6382  ;;  %vm3766_vm6 = vweird.f32 %v6381_v1  ;;  %v3769_v54 = vand.u32 2147483647, %v8699_v8  ;;  %v10505_v43 = vld [vmem:[#allocation199_spill] sm:$0xff]  ;;  %vm3752_vm9 = vmor %vm3750_vm7, %vm3751_vm5  ;;  %v10510_v8 = vld [vmem:[#allocation204_spill] sm:$0xff] }
 0x515   :  { %v3747_v18 = vsub.f32 1.0, %v3746_v55  ;;  %4024 = vmatpush.bf16.msrb.mxu0 %v10503_v50  ;;  %v10504_v55 = vld [vmem:[#allocation198_spill] sm:$0xff]  ;;  %v8722_v50 = vadd.f32 1.0, %v6383_v24  ;;  %vm3767_vm10 = vmor %vm3765_vm8, %vm3766_vm6  ;;  %vm3755_vm11 = vcmp.eq.f32.partialorder %v3754_v52, 8.507059e+37 }
 0x516   :  { %v3762_v48 = vsub.f32 1.0, %v3761_v57  ;;  %vm3770_vm12 = vcmp.eq.f32.partialorder %v3769_v54, 8.507059e+37  ;;  %v10517_v54 = vld [vmem:[#allocation208_spill] sm:$0xff] }
 0x517   :  { %v3748_v59 = vmul.f32 %v6379_v56, %v3747_v18  ;;  %4037 = vmatpush.bf16.msra.mxu1 %v10504_v55  ;;  %v3757_v18 = vor.u32 1.1754944e-38, %v3756_v16  ;;  %v6385_v55 = vpop.eup %6384  ;;  %6386 = vrcp.f32 %v8722_v50  ;;  %v10511_v16 = vld [vmem:[#allocation205_spill] sm:$0xff]  ;;  %vm3780_vm14 = vweird.f32 %v8722_v50 }
 0x518   :  { %v3763_v25 = vmul.f32 %v6381_v1, %v3762_v48  ;;  %4050 = vmatpush.bf16.msra.mxu2 %v10505_v43  ;;  %4063 = vmatpush.bf16.msrb.mxu3 %v10506_v32 }
 0x519   :  { %v3749_v57 = vadd.f32 %v6379_v56, %v3748_v59  ;;  %4025 = vmatpush.bf16.msrb.mxu0 %v10507_v46  ;;  %v10508_v59 = vld [vmem:[#allocation202_spill] sm:$0xff] }
 0x51a   :  { %v3764_v48 = vadd.f32 %v6381_v1, %v3763_v25  ;;  %v10512_v25 = vld [vmem:[#allocation146_spill] sm:$0xff] }
 0x51b   :  { %v3753_v10 = vsel %vm3752_vm9, %v6379_v56, %v3749_v57  ;;  %4038 = vmatpush.bf16.msra.mxu1 %v10508_v59  ;;  %v10513_v56 = vld [vmem:[#allocation17_spill] sm:$0xff]  ;;  %v10518_v57 = vld [vmem:[#allocation23_spill] sm:$0xff] }
 0x51c   :  { %v3758_v43 = vsel %vm3755_vm11, %v3757_v18, %v3753_v10  ;;  %v3768_v24 = vsel %vm3767_vm10, %v6381_v1, %v3764_v48  ;;  %4051 = vmatpush.bf16.msra.mxu2 %v10509_v49  ;;  %4064 = vmatpush.bf16.msrb.mxu3 %v10510_v8  ;;  %v10515_v10 = vld [vmem:[#allocation206_spill] sm:$0xff]  ;;  %v10516_v1 = vld [vmem:[#allocation207_spill] sm:$0xff]  ;;  %v10523_v48 = vld [vmem:[#allocation25_spill] sm:$0xff] }
 0x51d   :  { %v3773_v46 = vsel %vm3770_vm12, %v3772_v6, %v3768_v24  ;;  %v3792_v32 = vmul.f32 %v6385_v55, %v3758_v43  ;;  %4026 = vmatpush.bf16.msrb.mxu0 %v10511_v16  ;;  %v10519_v6 = vld [vmem:[#allocation21_spill] sm:$0xff]  ;;  %v10520_v43 = vld [vmem:[#allocation19_spill] sm:$0xff]  ;;  %v6387_v55 = vpop.eup %6386  ;;  %v10524_v24 = vld [vmem:[#allocation22_spill] sm:$0xff] }
 0x51e   :  { %v3791_v29 = vmul.f32 %v3773_v46, %v10512_v25  ;;  %v10521_v46 = vld [vmem:[#allocation18_spill] sm:$0xff]  ;;  %v3776_v18 = vmul.f32 %v6387_v55, %v8722_v50  ;;  %v10525_v25 = vld [vmem:[#allocation20_spill] sm:$0xff]  ;;  %vm3781_vm13 = vweird.f32 %v6387_v55  ;;  %v10604_v8 = vld [vmem:[#allocation61_spill] sm:$0xff] }
 0x51f   :  { %4039 = vmatpush.bf16.msra.mxu1 %v10515_v10  ;;  %vm3782_vm15 = vmor %vm3780_vm14, %vm3781_vm13  ;;  %v10599_v16 = vld [vmem:[#allocation132_spill] sm:$0xff] }
 0x520   :  { %v8735_v52 = vadd.f32 %v3792_v32, %v3791_v29  ;;  %4052 = vmatpush.bf16.msra.mxu2 %v10516_v1  ;;  %4065 = vmatpush.bf16.msrb.mxu3 %v10517_v54  ;;  %v10522_v32 = vld [vmem:[#allocation26_spill] sm:$0xff]  ;;  %v10532_v54 = vld [vmem:[#allocation31_spill] sm:$0xff] }
 0x521   :  { %4148 = vmatpush.bf16.msra.mxu0 %v10513_v56  ;;  %v10526_v29 = vld [vmem:[#allocation30_spill] sm:$0xff]  ;;  %v3777_v56 = vsub.f32 1.0, %v3776_v18  ;;  %v10544_v1 = vld [vmem:[#allocation43_spill] sm:$0xff] }
 0x522   :  { %10514 = vst [vmem:[#allocation147_spill] sm:$0xff] %v8735_v52  ;;  %4027 = vmatmul.bf16.vlgmr.msrb.gmra.mxu0 %v8603_v44  ;;  %4040 = vmatmul.bf16.vlgmr.msra.gmra.mxu1 %v8603_v44  ;;  %6388 = vtanh.f32 %v8735_v52 }
 0x523   :  { %4161 = vmatpush.bf16.msrb.mxu1 %v10518_v57  ;;  %4053 = vmatmul.bf16.vlgmr.msra.gmra.mxu2 %v8603_v44  ;;  %v10527_v57 = vld [vmem:[#allocation29_spill] sm:$0xff] }
 0x524   :  { %4174 = vmatpush.bf16.msrb.mxu2 %v10519_v6  ;;  %4187 = vmatpush.bf16.msra.mxu3 %v10520_v43  ;;  %v10528_v6 = vld [vmem:[#allocation27_spill] sm:$0xff]  ;;  %v10530_v43 = vld [vmem:[#allocation34_spill] sm:$0xff] }
 0x525   :  { %4066 = vmatmul.bf16.vlgmr.msrb.gmra.mxu3 %v8603_v44  ;;  %4149 = vmatpush.bf16.msra.mxu0 %v10521_v46  ;;  %v10529_v44 = vld [vmem:[#allocation24_spill] sm:$0xff]  ;;  %v3778_v46 = vmul.f32 %v6387_v55, %v3777_v56  ;;  %v3784_v56 = vand.u32 2147483647, %v8722_v50 }
 0x527   :  { %4162 = vmatpush.bf16.msrb.mxu1 %v10522_v32  ;;  %v10531_v32 = vld [vmem:[#allocation33_spill] sm:$0xff]  ;;  %v3779_v18 = vadd.f32 %v6387_v55, %v3778_v46  ;;  %v10540_v46 = vld [vmem:[#allocation39_spill] sm:$0xff]  ;;  %vm3785_vm0 = vcmp.eq.f32.partialorder %v3784_v56, 8.507059e+37 }
 0x528   :  { %4175 = vmatpush.bf16.msrb.mxu2 %v10523_v48  ;;  %4188 = vmatpush.bf16.msra.mxu3 %v10524_v24  ;;  %v10533_v48 = vld [vmem:[#allocation28_spill] sm:$0xff]  ;;  %v10534_v24 = vld [vmem:[#allocation37_spill] sm:$0xff] }
 0x529   :  { %4150 = vmatpush.bf16.msra.mxu0 %v10525_v25  ;;  %v10535_v25 = vld [vmem:[#allocation38_spill] sm:$0xff]  ;;  %v10549_v56 = vld [vmem:[#allocation77_spill] sm:$0xff] }
 0x52b   :  { %4163 = vmatpush.bf16.msrb.mxu1 %v10526_v29  ;;  %v10536_v29 = vld [vmem:[#allocation35_spill] sm:$0xff] }
 0x52c   :  { %4176 = vmatpush.bf16.msrb.mxu2 %v10527_v57  ;;  %4189 = vmatpush.bf16.msra.mxu3 %v10528_v6  ;;  %v3786_v57 = vand.u32 2147483648, %v8722_v50  ;;  %v10538_v6 = vld [vmem:[#allocation42_spill] sm:$0xff]  ;;  %v10543_v50 = vld [vmem:[#allocation45_spill] sm:$0xff] }
 0x52d   :  { %4151 = vmatpush.bf16.msra.mxu0 %v10529_v44  ;;  %v3783_v44 = vsel %vm3782_vm15, %v6387_v55, %v3779_v18  ;;  %v10546_v55 = vld [vmem:[#allocation48_spill] sm:$0xff] }
 0x52f   :  { %4164 = vmatpush.bf16.msrb.mxu1 %v10530_v43  ;;  %v10539_v43 = vld [vmem:[#allocation41_spill] sm:$0xff] }
 0x530   :  { %4177 = vmatpush.bf16.msrb.mxu2 %v10531_v32  ;;  %4190 = vmatpush.bf16.msra.mxu3 %v10532_v54  ;;  %v10537_v54 = vld [vmem:[#allocation32_spill] sm:$0xff]  ;;  %v6389_v32 = vpop.eup %6388 }
 0x531   :  { %4152 = vmatpush.bf16.msra.mxu0 %v10533_v48  ;;  %v3787_v48 = vor.u32 1.1754944e-38, %v3786_v57  ;;  %v10548_v57 = vld [vmem:[#allocation46_spill] sm:$0xff] }
 0x533   :  { %4165 = vmatpush.bf16.msrb.mxu1 %v10534_v24  ;;  %v3788_v24 = vsel %vm3785_vm0, %v3787_v48, %v3783_v44  ;;  %v10550_v44 = vld [vmem:[#allocation78_spill] sm:$0xff]  ;;  %v10556_v48 = vld [vmem:[#allocation87_spill] sm:$0xff] }
 0x534   :  { %4178 = vmatpush.bf16.msrb.mxu2 %v10535_v25  ;;  %4191 = vmatpush.bf16.msra.mxu3 %v10536_v29  ;;  %v10541_v25 = vld [vmem:[#allocation36_spill] sm:$0xff]  ;;  %v3795_v52 = vmul.f32 %v6389_v32, %v3788_v24 }
 0x535   :  { %4153 = vmatpush.bf16.msra.mxu0 %v10537_v54  ;;  %v10542_v29 = vld [vmem:[#allocation44_spill] sm:$0xff] }
 0x536   :  { %v10545_v54 = vld [vmem:[#allocation40_spill] sm:$0xff]  ;;  %v8778_v18 = vpack.c.bf16 %v3795_v52, %v3795_v52 }
 0x537   :  { %4166 = vmatpush.bf16.msrb.mxu1 %v10538_v6  ;;  %v10547_v6 = vld [vmem:[#allocation47_spill] sm:$0xff]  ;;  %v10552_v52 = vld [vmem:[#allocation80_spill] sm:$0xff] }
 0x538   :  { %4179 = vmatpush.bf16.msrb.mxu2 %v10539_v43  ;;  %4192 = vmatpush.bf16.msra.mxu3 %v10540_v46  ;;  %v10553_v43 = vld [vmem:[#allocation82_spill] sm:$0xff]  ;;  %v10554_v46 = vld [vmem:[#allocation83_spill] sm:$0xff]  ;;  %v10555_v32 = vld [vmem:[#allocation84_spill] sm:$0xff] }
 0x539   :  { %4154 = vmatpush.bf16.msra.mxu0 %v10541_v25  ;;  %v10557_v24 = vld [vmem:[#allocation88_spill] sm:$0xff]  ;;  %v10558_v25 = vld [vmem:[#allocation89_spill] sm:$0xff] }
 0x53b   :  { %4167 = vmatpush.bf16.msrb.mxu1 %v10542_v29  ;;  %v10559_v29 = vld [vmem:[#allocation90_spill] sm:$0xff] }
 0x53c   :  { %4180 = vmatpush.bf16.msrb.mxu2 %v10543_v50  ;;  %4193 = vmatpush.bf16.msra.mxu3 %v10544_v1  ;;  %v10551_v1 = vld [vmem:[#allocation79_spill] sm:$0xff] }
 0x53d   :  { %4155 = vmatpush.bf16.msra.mxu0 %v10545_v54  ;;  %v10560_v50 = vld [vmem:[#allocation91_spill] sm:$0xff]  ;;  %v10561_v54 = vld [vmem:[#allocation92_spill] sm:$0xff] }
 0x53f   :  { %4168 = vmatpush.bf16.msrb.mxu1 %v10546_v55  ;;  %v10562_v55 = vld [vmem:[#allocation93_spill] sm:$0xff] }
 0x540   :  { %4181 = vmatpush.bf16.msrb.mxu2 %v10547_v6  ;;  %4194 = vmatpush.bf16.msra.mxu3 %v10548_v57  ;;  %v10563_v6 = vld [vmem:[#allocation95_spill] sm:$0xff]  ;;  %v10564_v57 = vld [vmem:[#allocation96_spill] sm:$0xff] }
 0x541   :  { %4267 = vmatpush.bf16.msrb.mxu0 %v10549_v56 }
 0x542   :  { %4156 = vmatmul.bf16.vlgmr.msra.gmra.mxu0 %v8778_v18  ;;  %4169 = vmatmul.bf16.vlgmr.msrb.gmra.mxu1 %v8778_v18 }
 0x543   :  { %4280 = vmatpush.bf16.msra.mxu1 %v10550_v44  ;;  %4182 = vmatmul.bf16.vlgmr.msrb.gmra.mxu2 %v8778_v18  ;;  %v10591_v44 = vld [vmem:[#allocation124_spill] sm:$0xff] }
 0x544   :  { %4195 = vmatmul.bf16.vlgmr.msra.gmra.mxu3 %v8778_v18  ;;  %4293 = vmatpush.bf16.msra.mxu2 %v10551_v1 }
 0x545   :  { %4306 = vmatpush.bf16.msrb.mxu3 %v10552_v52  ;;  %4268 = vmatpush.bf16.msrb.mxu0 %v10553_v43  ;;  %v10581_v43 = vld [vmem:[#allocation111_spill] sm:$0xff] }
 0x547   :  { %4281 = vmatpush.bf16.msra.mxu1 %v10554_v46  ;;  %v10565_v46 = vld [vmem:[#allocation97_spill] sm:$0xff] }
 0x548   :  { %4294 = vmatpush.bf16.msra.mxu2 %v10555_v32  ;;  %v10566_v32 = vld [vmem:[#allocation98_spill] sm:$0xff] }
 0x549   :  { %4307 = vmatpush.bf16.msrb.mxu3 %v10556_v48  ;;  %4269 = vmatpush.bf16.msrb.mxu0 %v10557_v24  ;;  %v10567_v48 = vld [vmem:[#allocation99_spill] sm:$0xff]  ;;  %v10568_v24 = vld [vmem:[#allocation100_spill] sm:$0xff] }
 0x54b   :  { %4282 = vmatpush.bf16.msra.mxu1 %v10558_v25  ;;  %v10569_v25 = vld [vmem:[#allocation101_spill] sm:$0xff] }
 0x54c   :  { %4295 = vmatpush.bf16.msra.mxu2 %v10559_v29  ;;  %v10570_v29 = vld [vmem:[#allocation102_spill] sm:$0xff] }
 0x54d   :  { %4308 = vmatpush.bf16.msrb.mxu3 %v10560_v50  ;;  %4270 = vmatpush.bf16.msrb.mxu0 %v10561_v54  ;;  %v10571_v50 = vld [vmem:[#allocation103_spill] sm:$0xff]  ;;  %v10572_v54 = vld [vmem:[#allocation104_spill] sm:$0xff] }
 0x54f   :  { %4283 = vmatpush.bf16.msra.mxu1 %v10562_v55  ;;  %v10573_v55 = vld [vmem:[#allocation105_spill] sm:$0xff] }
 0x550   :  { %4296 = vmatpush.bf16.msra.mxu2 %v10563_v6  ;;  %v10574_v6 = vld [vmem:[#allocation106_spill] sm:$0xff] }
 0x551   :  { %4309 = vmatpush.bf16.msrb.mxu3 %v10564_v57  ;;  %4271 = vmatpush.bf16.msrb.mxu0 %v10565_v46  ;;  %v10575_v57 = vld [vmem:[#allocation107_spill] sm:$0xff]  ;;  %v10576_v46 = vld [vmem:[#allocation108_spill] sm:$0xff] }
 0x553   :  { %4284 = vmatpush.bf16.msra.mxu1 %v10566_v32  ;;  %v10577_v32 = vld [vmem:[#allocation109_spill] sm:$0xff] }
 0x554   :  { %4297 = vmatpush.bf16.msra.mxu2 %v10567_v48  ;;  %v10578_v48 = vld [vmem:[#allocation110_spill] sm:$0xff] }
 0x555   :  { %4310 = vmatpush.bf16.msrb.mxu3 %v10568_v24  ;;  %4272 = vmatpush.bf16.msrb.mxu0 %v10569_v25  ;;  %v10579_v24 = vld [vmem:[#allocation114_spill] sm:$0xff]  ;;  %v10580_v25 = vld [vmem:[#allocation115_spill] sm:$0xff] }
 0x557   :  { %4285 = vmatpush.bf16.msra.mxu1 %v10570_v29 }
 0x558   :  { %4298 = vmatpush.bf16.msra.mxu2 %v10571_v50 }
 0x559   :  { %4311 = vmatpush.bf16.msrb.mxu3 %v10572_v54  ;;  %4273 = vmatpush.bf16.msrb.mxu0 %v10573_v55  ;;  %v10582_v54 = vld [vmem:[#allocation112_spill] sm:$0xff] }
 0x55a   :  { %v10583_v55 = vld [vmem:[#allocation116_spill] sm:$0xff] }
 0x55b   :  { %4286 = vmatpush.bf16.msra.mxu1 %v10574_v6  ;;  %v10584_v6 = vld [vmem:[#allocation117_spill] sm:$0xff] }
 0x55c   :  { %4299 = vmatpush.bf16.msra.mxu2 %v10575_v57  ;;  %v3805_v29 = vpop.f32.mrf.mxu0  ;;  %v3818_v50 = vpop.f32.mrf.mxu1  ;;  %v10585_v57 = vld [vmem:[#allocation118_spill] sm:$0xff] }
 0x55d   :  { %4312 = vmatpush.bf16.msrb.mxu3 %v10576_v46  ;;  %4274 = vmatpush.bf16.msrb.mxu0 %v10577_v32  ;;  %v10586_v46 = vld [vmem:[#allocation119_spill] sm:$0xff]  ;;  %v10587_v32 = vld [vmem:[#allocation120_spill] sm:$0xff] }
 0x55f   :  { %4287 = vmatpush.bf16.msra.mxu1 %v10578_v48  ;;  %v10588_v48 = vld [vmem:[#allocation121_spill] sm:$0xff] }
 0x560   :  { %4300 = vmatpush.bf16.msra.mxu2 %v10581_v43 }
 0x561   :  { %4319 = vmatpush.bf16.msra.mxu0 %v10579_v24  ;;  %4313 = vmatpush.bf16.msrb.mxu3 %v10582_v54  ;;  %v10589_v24 = vld [vmem:[#allocation122_spill] sm:$0xff] }
 0x563   :  { %4332 = vmatpush.bf16.msrb.mxu1 %v10580_v25  ;;  %v10590_v25 = vld [vmem:[#allocation123_spill] sm:$0xff]  ;;  %v3831_v52 = vpop.f32.mrf.mxu2  ;;  %v3844_v43 = vpop.f32.mrf.mxu3 }
 0x564   :  { %4345 = vmatpush.bf16.msrb.mxu2 %v10583_v55  ;;  %v3807_v1 = vpop.f32.mrf.mxu0  ;;  %v3820_v54 = vpop.f32.mrf.mxu1  ;;  %v10592_v55 = vld [vmem:[#allocation125_spill] sm:$0xff] }
 0x565   :  { %4358 = vmatpush.bf16.msra.mxu3 %v10584_v6  ;;  %4320 = vmatpush.bf16.msra.mxu0 %v10585_v57  ;;  %v10593_v6 = vld [vmem:[#allocation126_spill] sm:$0xff]  ;;  %v10594_v57 = vld [vmem:[#allocation127_spill] sm:$0xff] }
 0x567   :  { %4333 = vmatpush.bf16.msrb.mxu1 %v10586_v46  ;;  %v10595_v46 = vld [vmem:[#allocation128_spill] sm:$0xff] }
 0x568   :  { %4346 = vmatpush.bf16.msrb.mxu2 %v10587_v32  ;;  %v10596_v32 = vld [vmem:[#allocation129_spill] sm:$0xff] }
 0x569   :  { %4359 = vmatpush.bf16.msra.mxu3 %v10588_v48  ;;  %4321 = vmatpush.bf16.msra.mxu0 %v10589_v24  ;;  %v10597_v48 = vld [vmem:[#allocation130_spill] sm:$0xff]  ;;  %v10598_v24 = vld [vmem:[#allocation131_spill] sm:$0xff] }
 0x56b   :  { %4334 = vmatpush.bf16.msrb.mxu1 %v10590_v25  ;;  %v3833_v25 = vpop.f32.mrf.mxu2  ;;  %v3846_v56 = vpop.f32.mrf.mxu3 }
 0x56c   :  { %4347 = vmatpush.bf16.msrb.mxu2 %v10591_v44  ;;  %v3857_v1 = vpop.f32.mrf.mxu0  ;;  %v3870_v54 = vpop.f32.mrf.mxu1  ;;  %v10605_v25 = vld [vmem:[#allocation136_spill] sm:$0xff]  ;;  %v10606_v56 = vld [vmem:[#allocation137_spill] sm:$0xff] }
 0x56d   :  { %4360 = vmatpush.bf16.msra.mxu3 %v10592_v55  ;;  %4322 = vmatpush.bf16.msra.mxu0 %v10593_v6  ;;  %v3858_v10 = vadd.f32 %v3857_v1, %v3805_v29  ;;  %v3871_v44 = vadd.f32 %v3870_v54, %v3818_v50  ;;  %v10600_v55 = vld [vmem:[#allocation133_spill] sm:$0xff]  ;;  %v10601_v6 = vld [vmem:[#allocation134_spill] sm:$0xff]  ;;  %v10608_v50 = vld [vmem:[#allocation139_spill] sm:$0xff] }
 0x56e   :  { %v10607_v29 = vld [vmem:[#allocation138_spill] sm:$0xff] }
 0x56f   :  { %4335 = vmatpush.bf16.msrb.mxu1 %v10594_v57  ;;  %v10602_v57 = vld [vmem:[#allocation135_spill] sm:$0xff] }
 0x570   :  { %4348 = vmatpush.bf16.msrb.mxu2 %v10595_v46  ;;  %v10603_v46 = vld [vmem:[#allocation52_spill] sm:$0xff] }
 0x571   :  { %4361 = vmatpush.bf16.msra.mxu3 %v10596_v32  ;;  %4323 = vmatpush.bf16.msra.mxu0 %v10597_v48  ;;  %v3900_v32 = vadd.f32 %v3858_v10, %v10603_v46  ;;  %v3901_v48 = vadd.f32 %v3871_v44, %v10604_v8  ;;  %v10609_v10 = vld [vmem:[#allocation140_spill] sm:$0xff]  ;;  %v10610_v44 = vld [vmem:[#allocation141_spill] sm:$0xff]  ;;  %v10612_v8 = vld [vmem:[#allocation142_spill] sm:$0xff] }
 0x572   :  { %v10613_v46 = vld [vmem:[#allocation143_spill] sm:$0xff] }
 0x573   :  { %4336 = vmatpush.bf16.msrb.mxu1 %v10598_v24  ;;  %v5930_v49 = vmul.f32 -1.442695, %v3900_v32  ;;  %v5931_v24 = vmul.f32 -1.442695, %v3901_v48  ;;  %v3883_v1 = vpop.f32.mrf.mxu2  ;;  %v3896_v54 = vpop.f32.mrf.mxu3  ;;  %v10611_v32 = vld [vmem:[#allocation59_spill] sm:$0xff] }
 0x574   :  { %4349 = vmatpush.bf16.msrb.mxu2 %v10599_v16 }
 0x575   :  { %4362 = vmatpush.bf16.msra.mxu3 %v10600_v55  ;;  %4324 = vmatpush.bf16.msra.mxu0 %v10601_v6  ;;  %6390 = vpow2.f32 %v5930_v49  ;;  %v3884_v6 = vadd.f32 %v3883_v1, %v3831_v52  ;;  %v3872_v55 = vpop.f32.mrf.mxu1  ;;  %v10615_v49 = vld [vmem:[#allocation145_spill] sm:$0xff] }
 0x576   :  { %6392 = vpow2.f32 %v5931_v24 }
 0x577   :  { %4337 = vmatpush.bf16.msrb.mxu1 %v10602_v57  ;;  %v3859_v57 = vpop.f32.mrf.mxu0  ;;  %v3902_v48 = vadd.f32 %v3884_v6, %v10611_v32 }
 0x578   :  { %4350 = vmatpush.bf16.msrb.mxu2 %v10605_v25 }
 0x579   :  { %4363 = vmatpush.bf16.msra.mxu3 %v10606_v56  ;;  %4325 = vmatpush.bf16.msra.mxu0 %v10607_v29  ;;  %v5932_v29 = vmul.f32 -1.442695, %v3902_v48 }
 0x57b   :  { %4338 = vmatpush.bf16.msrb.mxu1 %v10608_v50  ;;  %v6391_v56 = vpop.eup %6390  ;;  %v10614_v50 = vld [vmem:[#allocation144_spill] sm:$0xff]  ;;  %6394 = vpow2.f32 %v5932_v29  ;;  %v3885_v57 = vpop.f32.mrf.mxu2 }
 0x57c   :  { %4351 = vmatpush.bf16.msrb.mxu2 %v10609_v10  ;;  %v6393_v24 = vpop.eup %6392  ;;  %v3913_v52 = vadd.f32 1.0, %v6391_v56  ;;  %v3898_v1 = vpop.f32.mrf.mxu3  ;;  %v10616_v10 = vld [vmem:[#allocation54_spill] sm:$0xff] }
 0x57d   :  { %4364 = vmatpush.bf16.msra.mxu3 %v10610_v44  ;;  %4326 = vmatpush.bf16.msra.mxu0 %v10612_v8  ;;  %v3914_v55 = vadd.f32 1.0, %v6393_v24  ;;  %v3897_v44 = vadd.f32 %v3896_v54, %v3844_v43 }
 0x57e   :  { %6396 = vrcp.f32 %v3913_v52  ;;  %v3927_v59 = vand.u32 2147483648, %v3913_v52  ;;  %v3925_v24 = vand.u32 2147483647, %v3913_v52  ;;  %vm3921_vm3 = vweird.f32 %v3913_v52 }
 0x57f   :  { %4339 = vmatpush.bf16.msrb.mxu1 %v10613_v46  ;;  %6398 = vrcp.f32 %v3914_v55  ;;  %v3903_v46 = vadd.f32 %v3897_v44, %v10616_v10  ;;  %v3942_v56 = vand.u32 2147483648, %v3914_v55  ;;  %v3940_v43 = vand.u32 2147483647, %v3914_v55 }
 0x580   :  { %4352 = vmatpush.bf16.msrb.mxu2 %v10614_v50  ;;  %vm3936_vm4 = vweird.f32 %v3914_v55  ;;  %vm3926_vm7 = vcmp.eq.f32.partialorder %v3925_v24, 8.507059e+37 }
 0x581   :  { %4365 = vmatpush.bf16.msra.mxu3 %v10615_v49  ;;  %v6395_v6 = vpop.eup %6394  ;;  %vm3941_vm8 = vcmp.eq.f32.partialorder %v3940_v43, 8.507059e+37 }
 0x582   :  { %v3915_v32 = vadd.f32 1.0, %v6395_v6  ;;  %v3928_v6 = vor.u32 1.1754944e-38, %v3927_v59 }
 0x584   :  { %v6397_v8 = vpop.eup %6396  ;;  %6400 = vrcp.f32 %v3915_v32  ;;  %vm3951_vm10 = vweird.f32 %v3915_v32 }
 0x585   :  { %v6399_v48 = vpop.eup %6398  ;;  %v3917_v25 = vmul.f32 %v6397_v8, %v3913_v52  ;;  %6402 = vtanh.f32 %v3903_v46  ;;  %vm3922_vm1 = vweird.f32 %v6397_v8 }
 0x586   :  { %v3932_v50 = vmul.f32 %v6399_v48, %v3914_v55  ;;  %vm3937_vm2 = vweird.f32 %v6399_v48  ;;  %vm3923_vm5 = vmor %vm3921_vm3, %vm3922_vm1 }
 0x587   :  { %v3918_v16 = vsub.f32 1.0, %v3917_v25  ;;  %vm3938_vm6 = vmor %vm3936_vm4, %vm3937_vm2  ;;  %v3943_v25 = vor.u32 1.1754944e-38, %v3942_v56 }
 0x588   :  { %v3933_v49 = vsub.f32 1.0, %v3932_v50 }
 0x589   :  { %v3919_v29 = vmul.f32 %v6397_v8, %v3918_v16 }
 0x58a   :  { %v3934_v57 = vmul.f32 %v6399_v48, %v3933_v49  ;;  %v6401_v54 = vpop.eup %6400 }
 0x58b   :  { %v3920_v1 = vadd.f32 %v6397_v8, %v3919_v29  ;;  %v3947_v44 = vmul.f32 %v6401_v54, %v3915_v32  ;;  %v6403_v46 = vpop.eup %6402  ;;  %vm3952_vm9 = vweird.f32 %v6401_v54 }
 0x58c   :  { %v3935_v10 = vadd.f32 %v6399_v48, %v3934_v57  ;;  %v3957_v57 = vand.u32 2147483648, %v3915_v32  ;;  %vm3953_vm11 = vmor %vm3951_vm10, %vm3952_vm9 }
 0x58d   :  { %v3924_v50 = vsel %vm3923_vm5, %v6397_v8, %v3920_v1  ;;  %v3948_v35 = vsub.f32 1.0, %v3947_v44  ;;  %v3955_v8 = vand.u32 2147483647, %v3915_v32 }
 0x58e   :  { %v3929_v16 = vsel %vm3926_vm7, %v3928_v6, %v3924_v50  ;;  %v3939_v60 = vsel %vm3938_vm6, %v6399_v48, %v3935_v10  ;;  %v3989_v62 = vpop.f32.mrf.mxu1  ;;  %v3958_v43 = vor.u32 1.1754944e-38, %v3957_v57 }
 0x58f   :  { %v3944_v49 = vsel %vm3941_vm8, %v3943_v25, %v3939_v60  ;;  %v3963_v63 = vmul.f32 %v6403_v46, %v3929_v16  ;;  %v3976_v39 = vpop.f32.mrf.mxu0  ;;  %v3949_v29 = vmul.f32 %v6401_v54, %v3948_v35  ;;  %vm3956_vm12 = vcmp.eq.f32.partialorder %v3955_v8, 8.507059e+37 }
 0x590   :  { %v3962_v52 = vmul.f32 %v3944_v49, %v8600_v58 }
 0x591   :  { %v3950_v59 = vadd.f32 %v6401_v54, %v3949_v29 }
 0x592   :  { %v8855_v55 = vadd.f32 %v3963_v63, %v3962_v52 }
 0x593   :  { %v3954_v60 = vsel %vm3953_vm11, %v6401_v54, %v3950_v59 }
 0x594   :  { %6404 = vtanh.f32 %v8855_v55  ;;  %v3959_v58 = vsel %vm3956_vm12, %v3958_v43, %v3954_v60 }
 0x595   :  { %v4002_v56 = vpop.f32.mrf.mxu2 }
 0x596   :  { %v8858_v10 = vpop.f32.mrf.mxu3  ;;  %v3991_v24 = vpop.f32.mrf.mxu1 }
 0x597   :  { %v3978_v48 = vpop.f32.mrf.mxu0 }
 0x59a   :  { %v6405_v35 = vpop.eup %6404 }
 0x59b   :  { %v3966_v63 = vmul.f32 %v6405_v35, %v3959_v58 }
 0x59d   :  { %v8860_v1 = vpack.c.bf16 %v3966_v63, %v3966_v63  ;;  %v4004_v44 = vpop.f32.mrf.mxu2 }
 0x59e   :  { %v4017_v6 = vpop.f32.mrf.mxu3 }
 0x59f   :  { %4275 = vmatmul.bf16.vlgmr.msrb.gmra.mxu0 %v8860_v1  ;;  %4288 = vmatmul.bf16.vlgmr.msra.gmra.mxu1 %v8860_v1  ;;  %v4028_v32 = vpop.f32.mrf.mxu0  ;;  %v4041_v25 = vpop.f32.mrf.mxu1 }
 0x5a0   :  { %4301 = vmatmul.bf16.vlgmr.msra.gmra.mxu2 %v8860_v1  ;;  %4314 = vmatmul.bf16.vlgmr.msrb.gmra.mxu3 %v8860_v1  ;;  %v4029_v54 = vadd.f32 %v4028_v32, %v3976_v39  ;;  %v4042_v50 = vadd.f32 %v4041_v25, %v3989_v62 }
 0x5a1   :  { %4438 = vmatpush.bf16.msrb.mxu0 %v10048_v7  ;;  %4451 = vmatpush.bf16.msra.mxu1 %v10049_v22 }
 0x5a2   :  { %4464 = vmatpush.bf16.msra.mxu2 %v10050_v30  ;;  %4477 = vmatpush.bf16.msrb.mxu3 %v10051_v37  ;;  %v4071_v46 = vadd.f32 %v4029_v54, %v7883_v38  ;;  %v4072_v16 = vadd.f32 %v4042_v50, %v7885_v17  ;;  %v10618_v54 = vld [vmem:[#allocation168_spill] sm:$0xff]  ;;  %v10619_v50 = vld [vmem:[#allocation169_spill] sm:$0xff] }
 0x5a4   :  { %v5933_v49 = vmul.f32 -1.442695, %v4071_v46  ;;  %v5934_v29 = vmul.f32 -1.442695, %v4072_v16 }
 0x5a5   :  { %4439 = vmatpush.bf16.msrb.mxu0 %v10053_v33  ;;  %4452 = vmatpush.bf16.msra.mxu1 %v10054_v45 }
 0x5a6   :  { %4465 = vmatpush.bf16.msra.mxu2 %v10055_v15  ;;  %4478 = vmatpush.bf16.msrb.mxu3 %v10056_v2  ;;  %6406 = vpow2.f32 %v5933_v49  ;;  %v4054_v62 = vpop.f32.mrf.mxu2 }
 0x5a7   :  { %6408 = vpow2.f32 %v5934_v29  ;;  %v4055_v52 = vadd.f32 %v4054_v62, %v4002_v56  ;;  %v4030_v59 = vpop.f32.mrf.mxu0  ;;  %v4043_v57 = vpop.f32.mrf.mxu1  ;;  %v10620_v62 = vld [vmem:[#allocation170_spill] sm:$0xff] }
 0x5a8   :  { %v4067_v39 = vpop.f32.mrf.mxu3  ;;  %v10622_v57 = vld [vmem:[#allocation172_spill] sm:$0xff] }
 0x5a9   :  { %4440 = vmatpush.bf16.msrb.mxu0 %v10191_v47  ;;  %4453 = vmatpush.bf16.msra.mxu1 %v10192_v11  ;;  %v4073_v8 = vadd.f32 %v4055_v52, %v10190_v3  ;;  %v4068_v63 = vadd.f32 %v4067_v39, %v8858_v10  ;;  %v10621_v39 = vld [vmem:[#allocation171_spill] sm:$0xff] }
 0x5aa   :  { %4466 = vmatpush.bf16.msra.mxu2 %v10193_v53  ;;  %4479 = vmatpush.bf16.msrb.mxu3 %v10194_v51 }
 0x5ab   :  { %v5935_v60 = vmul.f32 -1.442695, %v4073_v8  ;;  %v10623_v8 = vld [vmem:[#allocation173_spill] sm:$0xff] }
 0x5ac   :  { %v6407_v48 = vpop.eup %6406 }
 0x5ad   :  { %4441 = vmatpush.bf16.msrb.mxu0 %v10195_v42  ;;  %4454 = vmatpush.bf16.msra.mxu1 %v10330_v28  ;;  %v6409_v24 = vpop.eup %6408  ;;  %v8883_v56 = vadd.f32 1.0, %v6407_v48  ;;  %6410 = vpow2.f32 %v5935_v60 }
 0x5ae   :  { %4467 = vmatpush.bf16.msra.mxu2 %v10331_v14  ;;  %4480 = vmatpush.bf16.msrb.mxu3 %v10332_v61  ;;  %v4085_v43 = vadd.f32 1.0, %v6409_v24  ;;  %v4056_v35 = vpop.f32.mrf.mxu2 }
 0x5af   :  { %4327 = vmatmul.bf16.vlgmr.msra.gmra.mxu0 %v8778_v18  ;;  %4340 = vmatmul.bf16.vlgmr.msrb.gmra.mxu1 %v8778_v18  ;;  %6412 = vrcp.f32 %v8883_v56  ;;  %v4098_v29 = vand.u32 2147483648, %v8883_v56  ;;  %v4096_v59 = vand.u32 2147483647, %v8883_v56  ;;  %v10624_v35 = vld [vmem:[#allocation57_spill] sm:$0xff]  ;;  %vm4092_vm0 = vweird.f32 %v8883_v56 }
 0x5b0   :  { %v4069_v58 = vpop.f32.mrf.mxu3  ;;  %4353 = vmatmul.bf16.vlgmr.msrb.gmra.mxu2 %v8778_v18  ;;  %4366 = vmatmul.bf16.vlgmr.msra.gmra.mxu3 %v8778_v18  ;;  %6414 = vrcp.f32 %v4085_v43  ;;  %v10617_v18 = vld [vmem:[#allocation58_spill] sm:$0xff]  ;;  %v4113_v60 = vand.u32 2147483648, %v4085_v43  ;;  %v4111_v24 = vand.u32 2147483647, %v4085_v43  ;;  %vm4107_vm15 = vweird.f32 %v4085_v43 }
 0x5b1   :  { %4442 = vmatpush.bf16.msrb.mxu0 %v10333_v4  ;;  %4455 = vmatpush.bf16.msra.mxu1 %v10334_v31  ;;  %v4074_v25 = vadd.f32 %v4068_v63, %v10617_v18  ;;  %v10625_v58 = vld [vmem:[#allocation51_spill] sm:$0xff]  ;;  %vm4097_vm3 = vcmp.eq.f32.partialorder %v4096_v59, 8.507059e+37 }
 0x5b2   :  { %4468 = vmatpush.bf16.msra.mxu2 %v10335_v9  ;;  %4481 = vmatpush.bf16.msrb.mxu3 %v10336_v19  ;;  %v264_v63 = vadd.f32 %v10625_v58, %v10624_v35  ;;  %v10626_v35 = vld [vmem:[#allocation53_spill] sm:$0xff]  ;;  %vm4112_vm4 = vcmp.eq.f32.partialorder %v4111_v24, 8.507059e+37 }
 0x5b3   :  { %v6411_v44 = vpop.eup %6410  ;;  %v10628_v24 = vld [vmem:[#allocation81_spill] sm:$0xff] }
 0x5b4   :  { %v8897_v6 = vadd.f32 1.0, %v6411_v44 }
 0x5b5   :  { %4443 = vmatpush.bf16.msrb.mxu0 %v10475_v23  ;;  %4456 = vmatpush.bf16.msra.mxu1 %v10476_v41  ;;  %v6413_v32 = vpop.eup %6412 }
 0x5b6   :  { %4469 = vmatpush.bf16.msra.mxu2 %v10618_v54  ;;  %4482 = vmatpush.bf16.msrb.mxu3 %v10619_v50  ;;  %v6415_v46 = vpop.eup %6414  ;;  %v4088_v10 = vmul.f32 %v6413_v32, %v8883_v56  ;;  %6416 = vrcp.f32 %v8897_v6  ;;  %vm4093_vm13 = vweird.f32 %v6413_v32  ;;  %v4114_v56 = vor.u32 1.1754944e-38, %v4113_v60  ;;  %v10627_v60 = vld [vmem:[#allocation56_spill] sm:$0xff] }
 0x5b7   :  { %v4103_v16 = vmul.f32 %v6415_v46, %v4085_v43  ;;  %6418 = vtanh.f32 %v4074_v25  ;;  %vm4108_vm14 = vweird.f32 %v6415_v46  ;;  %v4099_v25 = vor.u32 1.1754944e-38, %v4098_v29  ;;  %vm4094_vm1 = vmor %vm4092_vm0, %vm4093_vm13 }
 0x5b8   :  { %v4089_v49 = vsub.f32 1.0, %v4088_v10  ;;  %vm4109_vm2 = vmor %vm4107_vm15, %vm4108_vm14  ;;  %vm4122_vm6 = vweird.f32 %v8897_v6 }
 0x5b9   :  { %4444 = vmatpush.bf16.msrb.mxu0 %v10620_v62  ;;  %4457 = vmatpush.bf16.msra.mxu1 %v10621_v39  ;;  %v4104_v52 = vsub.f32 1.0, %v4103_v16 }
 0x5ba   :  { %4470 = vmatpush.bf16.msra.mxu2 %v10622_v57  ;;  %4483 = vmatpush.bf16.msrb.mxu3 %v10623_v8  ;;  %v4090_v48 = vmul.f32 %v6413_v32, %v4089_v49 }
 0x5bb   :  { %v4105_v44 = vmul.f32 %v6415_v46, %v4104_v52 }
 0x5bc   :  { %v8914_v10 = vpop.eup %6416  ;;  %v4091_v16 = vadd.f32 %v6413_v32, %v4090_v48 }
 0x5bd   :  { %4445 = vmatpush.bf16.msrb.mxu0 %v7621_v40  ;;  %4458 = vmatpush.bf16.msra.mxu1 %v7623_v34  ;;  %v4118_v49 = vmul.f32 %v8914_v10, %v8897_v6  ;;  %v4106_v52 = vadd.f32 %v6415_v46, %v4105_v44  ;;  %v6419_v29 = vpop.eup %6418  ;;  %vm4123_vm5 = vweird.f32 %v8914_v10 }
 0x5be   :  { %4471 = vmatpush.bf16.msra.mxu2 %v7627_v20  ;;  %v4095_v43 = vsel %vm4094_vm1, %v6413_v32, %v4091_v16  ;;  %4484 = vmatpush.bf16.msrb.mxu3 %v10076_v0  ;;  %v346_v16 = vadd.f32 %v10628_v24, %v10627_v60  ;;  %v10635_v60 = vld [vmem:[#allocation187_spill] sm:$0xff]  ;;  %vm8951_vm7 = vmor %vm4122_vm6, %vm4123_vm5 }
 0x5bf   :  { %v4157_v39 = vpop.f32.mrf.mxu0  ;;  %v4170_v57 = vpop.f32.mrf.mxu1  ;;  %v4119_v48 = vsub.f32 1.0, %v4118_v49  ;;  %v4100_v34 = vsel %vm4097_vm3, %v4099_v25, %v4095_v43  ;;  %v4110_v40 = vsel %vm4109_vm2, %v6415_v46, %v4106_v52  ;;  %v10629_v25 = vld [vmem:[#allocation62_spill] sm:$0xff]  ;;  %v10632_v43 = vld [vmem:[#allocation184_spill] sm:$0xff] }
 0x5c0   :  { %v4200_v58 = vadd.f32 %v4157_v39, %v10626_v35  ;;  %v4201_v8 = vadd.f32 %v4170_v57, %v264_v63  ;;  %v4115_v39 = vsel %vm4112_vm4, %v4114_v56, %v4110_v40  ;;  %v4134_v57 = vmul.f32 %v6419_v29, %v4100_v34  ;;  %v10630_v46 = vld [vmem:[#allocation94_spill] sm:$0xff] }
 0x5c1   :  { %4490 = vmatpush.bf16.msra.mxu0 %v10077_v5  ;;  %4503 = vmatpush.bf16.msrb.mxu1 %v10078_v13  ;;  %v4120_v32 = vmul.f32 %v8914_v10, %v4119_v48  ;;  %v4133_v59 = vmul.f32 %v4115_v39, %v8674_v26  ;;  %v305_v49 = vadd.f32 %v10630_v46, %v10629_v25  ;;  %v4128_v48 = vand.u32 2147483648, %v8897_v6  ;;  %v10633_v39 = vld [vmem:[#allocation185_spill] sm:$0xff]  ;;  %v10638_v25 = vld [vmem:[#allocation188_spill] sm:$0xff] }
 0x5c2   :  { %v5936_v44 = vmul.f32 -1.442695, %v4200_v58  ;;  %4516 = vmatpush.bf16.msrb.mxu2 %v10079_v12  ;;  %v5937_v63 = vmul.f32 -1.442695, %v4201_v8  ;;  %4529 = vmatpush.bf16.msra.mxu3 %v10211_v27  ;;  %v10631_v8 = vld [vmem:[#allocation183_spill] sm:$0xff] }
 0x5c3   :  { %v8937_v52 = vadd.f32 %v4134_v57, %v4133_v59  ;;  %v4121_v29 = vadd.f32 %v8914_v10, %v4120_v32  ;;  %v4126_v57 = vand.u32 2147483647, %v8897_v6  ;;  %v10634_v59 = vld [vmem:[#allocation186_spill] sm:$0xff]  ;;  %v10642_v32 = vld [vmem:[#allocation192_spill] sm:$0xff] }
 0x5c4   :  { %6420 = vpow2.f32 %v5936_v44 }
 0x5c5   :  { %6422 = vpow2.f32 %v5937_v63  ;;  %4491 = vmatpush.bf16.msra.mxu0 %v10212_v21  ;;  %4504 = vmatpush.bf16.msrb.mxu1 %v10213_v36  ;;  %v4125_v46 = vsel %vm8951_vm7, %v8914_v10, %v4121_v29  ;;  %vm4127_vm8 = vcmp.eq.f32.partialorder %v4126_v57, 8.507059e+37  ;;  %v10644_v57 = vld [vmem:[#allocation194_spill] sm:$0xff]  ;;  %v10657_v36 = vld [vmem:[#allocation207_spill] sm:$0xff] }
 0x5c6   :  { %v4183_v34 = vpop.f32.mrf.mxu2  ;;  %4517 = vmatpush.bf16.msrb.mxu2 %v10631_v8  ;;  %4530 = vmatpush.bf16.msra.mxu3 %v10632_v43  ;;  %6424 = vtanh.f32 %v8937_v52  ;;  %v10656_v8 = vld [vmem:[#allocation206_spill] sm:$0xff] }
 0x5c7   :  { %v4196_v40 = vpop.f32.mrf.mxu3  ;;  %v4202_v35 = vadd.f32 %v4183_v34, %v305_v49  ;;  %v4159_v58 = vpop.f32.mrf.mxu0  ;;  %v4129_v49 = vor.u32 1.1754944e-38, %v4128_v48  ;;  %v10639_v34 = vld [vmem:[#allocation189_spill] sm:$0xff] }
 0x5c8   :  { %v4203_v26 = vadd.f32 %v4196_v40, %v346_v16  ;;  %v4172_v56 = vpop.f32.mrf.mxu1 }
 0x5c9   :  { %v5938_v44 = vmul.f32 -1.442695, %v4202_v35  ;;  %4492 = vmatpush.bf16.msra.mxu0 %v10633_v39  ;;  %4505 = vmatpush.bf16.msrb.mxu1 %v10634_v59  ;;  %v10640_v56 = vld [vmem:[#allocation190_spill] sm:$0xff] }
 0x5ca   :  { %v6421_v63 = vpop.eup %6420  ;;  %4518 = vmatpush.bf16.msrb.mxu2 %v10635_v60  ;;  %4531 = vmatpush.bf16.msra.mxu3 %v10638_v25 }
 0x5cb   :  { %v6423_v24 = vpop.eup %6422  ;;  %v8955_v16 = vadd.f32 1.0, %v6421_v63  ;;  %6426 = vpow2.f32 %v5938_v44  ;;  %v10641_v44 = vld [vmem:[#allocation191_spill] sm:$0xff]  ;;  %v4130_v63 = vsel %vm4127_vm8, %v4129_v49, %v4125_v46  ;;  %v10646_v49 = vld [vmem:[#allocation196_spill] sm:$0xff] }
 0x5cc   :  { %v8961_v6 = vadd.f32 1.0, %v6423_v24  ;;  %v6425_v40 = vpop.eup %6424  ;;  %v10643_v24 = vld [vmem:[#allocation193_spill] sm:$0xff] }
 0x5cd   :  { %6428 = vrcp.f32 %v8955_v16  ;;  %4493 = vmatpush.bf16.msra.mxu0 %v10639_v34  ;;  %4506 = vmatpush.bf16.msrb.mxu1 %v10640_v56  ;;  %v4137_v10 = vmul.f32 %v6425_v40, %v4130_v63  ;;  %v10645_v34 = vld [vmem:[#allocation195_spill] sm:$0xff]  ;;  %v10647_v40 = vld [vmem:[#allocation197_spill] sm:$0xff]  ;;  %vm4221_vm11 = vweird.f32 %v8955_v16 }
 0x5ce   :  { %6430 = vrcp.f32 %v8961_v6  ;;  %v4185_v35 = vpop.f32.mrf.mxu2  ;;  %4519 = vmatpush.bf16.msrb.mxu2 %v10641_v44  ;;  %4532 = vmatpush.bf16.msra.mxu3 %v10642_v32  ;;  %vm4236_vm12 = vweird.f32 %v8961_v6 }
 0x5cf   :  { %v4198_v58 = vpop.f32.mrf.mxu3  ;;  %v4140_v48 = vpack.c.bf16 %v4137_v10, %v4137_v10  ;;  %v10648_v10 = vld [vmem:[#allocation198_spill] sm:$0xff] }
 0x5d1   :  { %v6427_v29 = vpop.eup %6426  ;;  %4494 = vmatpush.bf16.msra.mxu0 %v10643_v24  ;;  %4507 = vmatpush.bf16.msrb.mxu1 %v10644_v57  ;;  %v4227_v57 = vand.u32 2147483648, %v8955_v16  ;;  %v4242_v24 = vand.u32 2147483648, %v8961_v6 }
 0x5d2   :  { %v8970_v25 = vadd.f32 1.0, %v6427_v29  ;;  %4520 = vmatpush.bf16.msrb.mxu2 %v10645_v34  ;;  %4446 = vmatmul.bf16.vlgmr.msrb.gmra.mxu0 %v4140_v48  ;;  %v10649_v29 = vld [vmem:[#allocation199_spill] sm:$0xff] }
 0x5d3   :  { %v6429_v35 = vpop.eup %6428  ;;  %4459 = vmatmul.bf16.vlgmr.msra.gmra.mxu1 %v4140_v48  ;;  %4472 = vmatmul.bf16.vlgmr.msra.gmra.mxu2 %v4140_v48  ;;  %v4243_v59 = vor.u32 1.1754944e-38, %v4242_v24 }
 0x5d4   :  { %v6431_v58 = vpop.eup %6430  ;;  %v4217_v44 = vmul.f32 %v6429_v35, %v8955_v16  ;;  %6432 = vrcp.f32 %v8970_v25  ;;  %4485 = vmatmul.bf16.vlgmr.msrb.gmra.mxu3 %v4140_v48  ;;  %vm4222_vm9 = vweird.f32 %v6429_v35  ;;  %v4225_v48 = vand.u32 2147483647, %v8955_v16  ;;  %v10654_v16 = vld [vmem:[#allocation204_spill] sm:$0xff] }
 0x5d5   :  { %v4232_v46 = vmul.f32 %v6431_v58, %v8961_v6  ;;  %4533 = vmatpush.bf16.msra.mxu3 %v10646_v49  ;;  %4495 = vmatpush.bf16.msra.mxu0 %v10647_v40  ;;  %6434 = vtanh.f32 %v4203_v26  ;;  %vm4237_vm10 = vweird.f32 %v6431_v58  ;;  %v4240_v49 = vand.u32 2147483647, %v8961_v6  ;;  %v10650_v40 = vld [vmem:[#allocation200_spill] sm:$0xff]  ;;  %v10653_v26 = vld [vmem:[#allocation203_spill] sm:$0xff]  ;;  %vm4223_vm13 = vmor %vm4221_vm11, %vm4222_vm9 }
 0x5d6   :  { %v4218_v63 = vsub.f32 1.0, %v4217_v44  ;;  %4508 = vmatpush.bf16.msrb.mxu1 %v10648_v10  ;;  %4521 = vmatpush.bf16.msrb.mxu2 %v10649_v29  ;;  %v10651_v44 = vld [vmem:[#allocation201_spill] sm:$0xff]  ;;  %vm4238_vm14 = vmor %vm4236_vm12, %vm4237_vm10  ;;  %vm4226_vm15 = vcmp.eq.f32.partialorder %v4225_v48, 8.507059e+37  ;;  %vm4251_vm2 = vweird.f32 %v8970_v25  ;;  %v10664_v48 = vld [vmem:[#allocation82_spill] sm:$0xff] }
 0x5d7   :  { %v4233_v34 = vsub.f32 1.0, %v4232_v46  ;;  %v10652_v46 = vld [vmem:[#allocation202_spill] sm:$0xff]  ;;  %vm4241_vm0 = vcmp.eq.f32.partialorder %v4240_v49, 8.507059e+37  ;;  %v10663_v49 = vld [vmem:[#allocation80_spill] sm:$0xff] }
 0x5d8   :  { %v4219_v32 = vmul.f32 %v6429_v35, %v4218_v63 }
 0x5d9   :  { %v4234_v56 = vmul.f32 %v6431_v58, %v4233_v34  ;;  %4534 = vmatpush.bf16.msra.mxu3 %v10650_v40  ;;  %4496 = vmatpush.bf16.msra.mxu0 %v10651_v44  ;;  %v4228_v34 = vor.u32 1.1754944e-38, %v4227_v57  ;;  %v10658_v57 = vld [vmem:[#allocation147_spill] sm:$0xff] }
 0x5da   :  { %v6433_v10 = vpop.eup %6432  ;;  %v4220_v29 = vadd.f32 %v6429_v35, %v4219_v32  ;;  %4509 = vmatpush.bf16.msrb.mxu1 %v10652_v46  ;;  %4522 = vmatpush.bf16.msrb.mxu2 %v10653_v26  ;;  %v10655_v46 = vld [vmem:[#allocation205_spill] sm:$0xff] }
 0x5db   :  { %v4247_v63 = vmul.f32 %v6433_v10, %v8970_v25  ;;  %v4235_v60 = vadd.f32 %v6431_v58, %v4234_v56  ;;  %v6435_v44 = vpop.eup %6434  ;;  %vm4252_vm1 = vweird.f32 %v6433_v10 }
 0x5dc   :  { %v4224_v40 = vsel %vm4223_vm13, %v6429_v35, %v4220_v29  ;;  %v10659_v35 = vld [vmem:[#allocation77_spill] sm:$0xff]  ;;  %v10660_v29 = vld [vmem:[#allocation78_spill] sm:$0xff]  ;;  %vm4253_vm3 = vmor %vm4251_vm2, %vm4252_vm1 }
 0x5dd   :  { %v4248_v39 = vsub.f32 1.0, %v4247_v63  ;;  %v4229_v32 = vsel %vm4226_vm15, %v4228_v34, %v4224_v40  ;;  %v4239_v43 = vsel %vm4238_vm14, %v6431_v58, %v4235_v60  ;;  %4535 = vmatpush.bf16.msra.mxu3 %v10654_v16  ;;  %4497 = vmatpush.bf16.msra.mxu0 %v10655_v46  ;;  %v10661_v40 = vld [vmem:[#allocation79_spill] sm:$0xff]  ;;  %v10662_v58 = vld [vmem:[#allocation208_spill] sm:$0xff] }
 0x5de   :  { %v4244_v26 = vsel %vm4241_vm0, %v4243_v59, %v4239_v43  ;;  %v4263_v6 = vmul.f32 %v6435_v44, %v4229_v32  ;;  %4510 = vmatpush.bf16.msrb.mxu1 %v10656_v8  ;;  %4523 = vmatpush.bf16.msrb.mxu2 %v10657_v36  ;;  %v4257_v59 = vand.u32 2147483648, %v8970_v25  ;;  %v10665_v44 = vld [vmem:[#allocation83_spill] sm:$0xff] }
 0x5df   :  { %v4249_v56 = vmul.f32 %v6433_v10, %v4248_v39  ;;  %v4262_v24 = vmul.f32 %v4244_v26, %v10658_v57  ;;  %v4255_v39 = vand.u32 2147483647, %v8970_v25  ;;  %v10666_v26 = vld [vmem:[#allocation84_spill] sm:$0xff]  ;;  %v10667_v63 = vld [vmem:[#allocation87_spill] sm:$0xff]  ;;  %v10669_v25 = vld [vmem:[#allocation89_spill] sm:$0xff] }
 0x5e0   :  { %v4258_v32 = vor.u32 1.1754944e-38, %v4257_v59  ;;  %v10678_v59 = vld [vmem:[#allocation99_spill] sm:$0xff] }
 0x5e1   :  { %4612 = vmatpush.bf16.msrb.mxu0 %v10659_v35  ;;  %v4264_v60 = vadd.f32 %v4263_v6, %v4262_v24  ;;  %4536 = vmatpush.bf16.msra.mxu3 %v10662_v58  ;;  %v4250_v43 = vadd.f32 %v6433_v10, %v4249_v56  ;;  %vm4256_vm4 = vcmp.eq.f32.partialorder %v4255_v39, 8.507059e+37  ;;  %v10668_v56 = vld [vmem:[#allocation88_spill] sm:$0xff]  ;;  %v10670_v24 = vld [vmem:[#allocation90_spill] sm:$0xff] }
 0x5e2   :  { %4625 = vmatpush.bf16.msra.mxu1 %v10660_v29  ;;  %4638 = vmatpush.bf16.msra.mxu2 %v10661_v40  ;;  %v10672_v29 = vld [vmem:[#allocation92_spill] sm:$0xff]  ;;  %v10673_v40 = vld [vmem:[#allocation93_spill] sm:$0xff] }
 0x5e3   :  { %6436 = vtanh.f32 %v4264_v60  ;;  %4498 = vmatmul.bf16.vlgmr.msra.gmra.mxu0 %v8860_v1  ;;  %4511 = vmatmul.bf16.vlgmr.msrb.gmra.mxu1 %v8860_v1  ;;  %v4254_v34 = vsel %vm4253_vm3, %v6433_v10, %v4250_v43  ;;  %v10674_v60 = vld [vmem:[#allocation95_spill] sm:$0xff]  ;;  %v10675_v10 = vld [vmem:[#allocation96_spill] sm:$0xff]  ;;  %v10677_v43 = vld [vmem:[#allocation98_spill] sm:$0xff] }
 0x5e4   :  { %4524 = vmatmul.bf16.vlgmr.msrb.gmra.mxu2 %v8860_v1  ;;  %4537 = vmatmul.bf16.vlgmr.msra.gmra.mxu3 %v8860_v1  ;;  %v4259_v57 = vsel %vm4256_vm4, %v4258_v32, %v4254_v34  ;;  %v10671_v1 = vld [vmem:[#allocation91_spill] sm:$0xff]  ;;  %v10679_v39 = vld [vmem:[#allocation100_spill] sm:$0xff]  ;;  %v10684_v34 = vld [vmem:[#allocation105_spill] sm:$0xff] }
 0x5e5   :  { %4651 = vmatpush.bf16.msrb.mxu3 %v10663_v49  ;;  %4613 = vmatpush.bf16.msrb.mxu0 %v10664_v48  ;;  %v10676_v49 = vld [vmem:[#allocation97_spill] sm:$0xff]  ;;  %v10685_v32 = vld [vmem:[#allocation106_spill] sm:$0xff] }
 0x5e6   :  { %4626 = vmatpush.bf16.msra.mxu1 %v10665_v44  ;;  %4639 = vmatpush.bf16.msra.mxu2 %v10666_v26  ;;  %v10680_v48 = vld [vmem:[#allocation101_spill] sm:$0xff]  ;;  %v10681_v44 = vld [vmem:[#allocation102_spill] sm:$0xff]  ;;  %v10682_v26 = vld [vmem:[#allocation103_spill] sm:$0xff] }
 0x5e9   :  { %4652 = vmatpush.bf16.msrb.mxu3 %v10667_v63  ;;  %v6437_v6 = vpop.eup %6436  ;;  %4614 = vmatpush.bf16.msrb.mxu0 %v10668_v56  ;;  %v10683_v63 = vld [vmem:[#allocation104_spill] sm:$0xff] }
 0x5ea   :  { %4627 = vmatpush.bf16.msra.mxu1 %v10669_v25  ;;  %4640 = vmatpush.bf16.msra.mxu2 %v10670_v24  ;;  %v9017_v35 = vmul.f32 %v6437_v6, %v4259_v57  ;;  %v10686_v6 = vld [vmem:[#allocation107_spill] sm:$0xff]  ;;  %v10687_v56 = vld [vmem:[#allocation108_spill] sm:$0xff]  ;;  %v10688_v25 = vld [vmem:[#allocation109_spill] sm:$0xff] }
 0x5eb   :  { %v10689_v57 = vld [vmem:[#allocation110_spill] sm:$0xff]  ;;  %v10690_v24 = vld [vmem:[#allocation111_spill] sm:$0xff] }
 0x5ed   :  { %4653 = vmatpush.bf16.msrb.mxu3 %v10671_v1  ;;  %4615 = vmatpush.bf16.msrb.mxu0 %v10672_v29  ;;  %v10691_v1 = vld [vmem:[#allocation112_spill] sm:$0xff]  ;;  %v10692_v29 = vld [vmem:[#allocation114_spill] sm:$0xff] }
 0x5ee   :  { %4628 = vmatpush.bf16.msra.mxu1 %v10673_v40  ;;  %4641 = vmatpush.bf16.msra.mxu2 %v10674_v60  ;;  %v10693_v40 = vld [vmem:[#allocation115_spill] sm:$0xff]  ;;  %v10694_v60 = vld [vmem:[#allocation116_spill] sm:$0xff] }
 0x5f1   :  { %4654 = vmatpush.bf16.msrb.mxu3 %v10675_v10  ;;  %4616 = vmatpush.bf16.msrb.mxu0 %v10676_v49  ;;  %v10695_v10 = vld [vmem:[#allocation117_spill] sm:$0xff]  ;;  %v10696_v49 = vld [vmem:[#allocation118_spill] sm:$0xff] }
 0x5f2   :  { %4629 = vmatpush.bf16.msra.mxu1 %v10677_v43  ;;  %4642 = vmatpush.bf16.msra.mxu2 %v10678_v59  ;;  %v10697_v43 = vld [vmem:[#allocation119_spill] sm:$0xff]  ;;  %v10698_v59 = vld [vmem:[#allocation120_spill] sm:$0xff] }
 0x5f5   :  { %4655 = vmatpush.bf16.msrb.mxu3 %v10679_v39  ;;  %4617 = vmatpush.bf16.msrb.mxu0 %v10680_v48  ;;  %v10699_v39 = vld [vmem:[#allocation121_spill] sm:$0xff]  ;;  %v10700_v48 = vld [vmem:[#allocation122_spill] sm:$0xff] }
 0x5f6   :  { %4630 = vmatpush.bf16.msra.mxu1 %v10681_v44  ;;  %4643 = vmatpush.bf16.msra.mxu2 %v10682_v26  ;;  %v10701_v44 = vld [vmem:[#allocation123_spill] sm:$0xff]  ;;  %v10702_v26 = vld [vmem:[#allocation124_spill] sm:$0xff] }
 0x5f9   :  { %4656 = vmatpush.bf16.msrb.mxu3 %v10683_v63  ;;  %4618 = vmatpush.bf16.msrb.mxu0 %v10684_v34  ;;  %v10703_v63 = vld [vmem:[#allocation125_spill] sm:$0xff]  ;;  %v10704_v34 = vld [vmem:[#allocation126_spill] sm:$0xff] }
 0x5fa   :  { %4631 = vmatpush.bf16.msra.mxu1 %v10685_v32  ;;  %4644 = vmatpush.bf16.msra.mxu2 %v10686_v6  ;;  %v10705_v32 = vld [vmem:[#allocation127_spill] sm:$0xff]  ;;  %v10706_v6 = vld [vmem:[#allocation128_spill] sm:$0xff] }
 0x5fd   :  { %4657 = vmatpush.bf16.msrb.mxu3 %v10687_v56  ;;  %4619 = vmatpush.bf16.msrb.mxu0 %v10688_v25  ;;  %v10707_v56 = vld [vmem:[#allocation129_spill] sm:$0xff]  ;;  %v10708_v25 = vld [vmem:[#allocation130_spill] sm:$0xff] }
 0x5fe   :  { %4632 = vmatpush.bf16.msra.mxu1 %v10689_v57  ;;  %4645 = vmatpush.bf16.msra.mxu2 %v10690_v24  ;;  %v10709_v57 = vld [vmem:[#allocation131_spill] sm:$0xff]  ;;  %v10710_v24 = vld [vmem:[#allocation132_spill] sm:$0xff] }
 0x601   :  { %4658 = vmatpush.bf16.msrb.mxu3 %v10691_v1  ;;  %4664 = vmatpush.bf16.msra.mxu0 %v10692_v29  ;;  %v10711_v1 = vld [vmem:[#allocation133_spill] sm:$0xff]  ;;  %v10712_v29 = vld [vmem:[#allocation134_spill] sm:$0xff] }
 0x602   :  { %4677 = vmatpush.bf16.msrb.mxu1 %v10693_v40  ;;  %4690 = vmatpush.bf16.msrb.mxu2 %v10694_v60  ;;  %v10713_v40 = vld [vmem:[#allocation135_spill] sm:$0xff]  ;;  %v10714_v60 = vld [vmem:[#allocation136_spill] sm:$0xff] }
 0x605   :  { %4703 = vmatpush.bf16.msra.mxu3 %v10695_v10  ;;  %4665 = vmatpush.bf16.msra.mxu0 %v10696_v49  ;;  %v10715_v10 = vld [vmem:[#allocation137_spill] sm:$0xff]  ;;  %v10716_v49 = vld [vmem:[#allocation138_spill] sm:$0xff] }
 0x606   :  { %4678 = vmatpush.bf16.msrb.mxu1 %v10697_v43  ;;  %4691 = vmatpush.bf16.msrb.mxu2 %v10698_v59  ;;  %v10717_v43 = vld [vmem:[#allocation139_spill] sm:$0xff]  ;;  %v10718_v59 = vld [vmem:[#allocation140_spill] sm:$0xff] }
 0x609   :  { %4704 = vmatpush.bf16.msra.mxu3 %v10699_v39  ;;  %4666 = vmatpush.bf16.msra.mxu0 %v10700_v48  ;;  %v10719_v39 = vld [vmem:[#allocation141_spill] sm:$0xff]  ;;  %v10720_v48 = vld [vmem:[#allocation142_spill] sm:$0xff] }
 0x60a   :  { %4679 = vmatpush.bf16.msrb.mxu1 %v10701_v44  ;;  %4692 = vmatpush.bf16.msrb.mxu2 %v10702_v26  ;;  %v10721_v44 = vld [vmem:[#allocation143_spill] sm:$0xff]  ;;  %v10722_v26 = vld [vmem:[#allocation144_spill] sm:$0xff] }
 0x60d   :  { %4705 = vmatpush.bf16.msra.mxu3 %v10703_v63  ;;  %4667 = vmatpush.bf16.msra.mxu0 %v10704_v34  ;;  %v10723_v63 = vld [vmem:[#allocation145_spill] sm:$0xff] }
 0x60e   :  { %4680 = vmatpush.bf16.msrb.mxu1 %v10705_v32  ;;  %4693 = vmatpush.bf16.msrb.mxu2 %v10706_v6 }
 0x611   :  { %4706 = vmatpush.bf16.msra.mxu3 %v10707_v56  ;;  %4668 = vmatpush.bf16.msra.mxu0 %v10708_v25 }
 0x612   :  { %4681 = vmatpush.bf16.msrb.mxu1 %v10709_v57  ;;  %4694 = vmatpush.bf16.msrb.mxu2 %v10710_v24 }
 0x615   :  { %4707 = vmatpush.bf16.msra.mxu3 %v10711_v1  ;;  %4669 = vmatpush.bf16.msra.mxu0 %v10712_v29 }
 0x616   :  { %4682 = vmatpush.bf16.msrb.mxu1 %v10713_v40  ;;  %4695 = vmatpush.bf16.msrb.mxu2 %v10714_v60 }
 0x619   :  { %4708 = vmatpush.bf16.msra.mxu3 %v10715_v10  ;;  %4670 = vmatpush.bf16.msra.mxu0 %v10716_v49  ;;  %v10724_v49 = vld [vmem:[#allocation52_spill] sm:$0xff] }
 0x61a   :  { %4683 = vmatpush.bf16.msrb.mxu1 %v10717_v43  ;;  %4696 = vmatpush.bf16.msrb.mxu2 %v10718_v59  ;;  %v10725_v59 = vld [vmem:[#allocation61_spill] sm:$0xff] }
 0x61c   :  { %v4276_v34 = vpop.f32.mrf.mxu0  ;;  %v4289_v32 = vpop.f32.mrf.mxu1 }
 0x61d   :  { %4709 = vmatpush.bf16.msra.mxu3 %v10719_v39  ;;  %4671 = vmatpush.bf16.msra.mxu0 %v10720_v48 }
 0x61e   :  { %4684 = vmatpush.bf16.msrb.mxu1 %v10721_v44  ;;  %4697 = vmatpush.bf16.msrb.mxu2 %v10722_v26 }
 0x621   :  { %4710 = vmatpush.bf16.msra.mxu3 %v10723_v63 }
 0x623   :  { %v4302_v6 = vpop.f32.mrf.mxu2  ;;  %v4315_v56 = vpop.f32.mrf.mxu3 }
 0x624   :  { %v4278_v25 = vpop.f32.mrf.mxu0  ;;  %v4291_v57 = vpop.f32.mrf.mxu1 }
 0x625   :  { %v10726_v57 = vld [vmem:[#allocation59_spill] sm:$0xff] }
 0x62b   :  { %v4304_v24 = vpop.f32.mrf.mxu2  ;;  %v4317_v1 = vpop.f32.mrf.mxu3 }
 0x62c   :  { %v4328_v29 = vpop.f32.mrf.mxu0  ;;  %v4341_v40 = vpop.f32.mrf.mxu1 }
 0x62d   :  { %v4329_v60 = vadd.f32 %v4328_v29, %v4276_v34  ;;  %v4342_v10 = vadd.f32 %v4341_v40, %v4289_v32 }
 0x62f   :  { %v4371_v43 = vadd.f32 %v4329_v60, %v10724_v49  ;;  %v4372_v39 = vadd.f32 %v4342_v10, %v10725_v59 }
 0x631   :  { %v5939_v48 = vmul.f32 -1.442695, %v4371_v43  ;;  %v5940_v44 = vmul.f32 -1.442695, %v4372_v39 }
 0x633   :  { %6438 = vpow2.f32 %v5939_v48  ;;  %v4354_v26 = vpop.f32.mrf.mxu2  ;;  %v4367_v63 = vpop.f32.mrf.mxu3  ;;  %v10727_v48 = vld [vmem:[#allocation54_spill] sm:$0xff] }
 0x634   :  { %6440 = vpow2.f32 %v5940_v44  ;;  %v4355_v58 = vadd.f32 %v4354_v26, %v4302_v6  ;;  %v4330_v36 = vpop.f32.mrf.mxu0  ;;  %v4343_v25 = vpop.f32.mrf.mxu1  ;;  %v4368_v60 = vadd.f32 %v4367_v63, %v4315_v56 }
 0x636   :  { %v4373_v24 = vadd.f32 %v4355_v58, %v10726_v57  ;;  %v4374_v6 = vadd.f32 %v4368_v60, %v10727_v48 }
 0x638   :  { %v5941_v1 = vmul.f32 -1.442695, %v4373_v24 }
 0x639   :  { %v6439_v8 = vpop.eup %6438 }
 0x63a   :  { %v6441_v46 = vpop.eup %6440  ;;  %v4384_v34 = vadd.f32 1.0, %v6439_v8  ;;  %6442 = vpow2.f32 %v5941_v1 }
 0x63b   :  { %v4385_v32 = vadd.f32 1.0, %v6441_v46  ;;  %v4356_v29 = vpop.f32.mrf.mxu2  ;;  %v4369_v40 = vpop.f32.mrf.mxu3 }
 0x63c   :  { %6444 = vrcp.f32 %v4384_v34  ;;  %v4398_v24 = vand.u32 2147483648, %v4384_v34  ;;  %v4396_v1 = vand.u32 2147483647, %v4384_v34  ;;  %vm4392_vm7 = vweird.f32 %v4384_v34 }
 0x63d   :  { %6446 = vrcp.f32 %v4385_v32  ;;  %v4413_v8 = vand.u32 2147483648, %v4385_v32  ;;  %v4411_v56 = vand.u32 2147483647, %v4385_v32  ;;  %vm4407_vm8 = vweird.f32 %v4385_v32 }
 0x63e   :  { %vm4397_vm11 = vcmp.eq.f32.partialorder %v4396_v1, 8.507059e+37 }
 0x63f   :  { %vm4412_vm12 = vcmp.eq.f32.partialorder %v4411_v56, 8.507059e+37 }
 0x640   :  { %v6443_v10 = vpop.eup %6442 }
 0x641   :  { %v4386_v43 = vadd.f32 1.0, %v6443_v10  ;;  %v4399_v10 = vor.u32 1.1754944e-38, %v4398_v24 }
 0x642   :  { %v6445_v39 = vpop.eup %6444 }
 0x643   :  { %v6447_v36 = vpop.eup %6446  ;;  %v4388_v44 = vmul.f32 %v6445_v39, %v4384_v34  ;;  %6448 = vrcp.f32 %v4386_v43  ;;  %vm4393_vm5 = vweird.f32 %v6445_v39  ;;  %vm4422_vm14 = vweird.f32 %v4386_v43 }
 0x644   :  { %v4403_v58 = vmul.f32 %v6447_v36, %v4385_v32  ;;  %6450 = vtanh.f32 %v4374_v6  ;;  %vm4408_vm6 = vweird.f32 %v6447_v36  ;;  %vm4394_vm9 = vmor %vm4392_vm7, %vm4393_vm5 }
 0x645   :  { %v4389_v26 = vsub.f32 1.0, %v4388_v44  ;;  %vm4409_vm10 = vmor %vm4407_vm8, %vm4408_vm6  ;;  %v4414_v44 = vor.u32 1.1754944e-38, %v4413_v8 }
 0x646   :  { %v4404_v25 = vsub.f32 1.0, %v4403_v58 }
 0x647   :  { %v4390_v46 = vmul.f32 %v6445_v39, %v4389_v26 }
 0x648   :  { %v4405_v29 = vmul.f32 %v6447_v36, %v4404_v25 }
 0x649   :  { %v6449_v63 = vpop.eup %6448  ;;  %v4391_v40 = vadd.f32 %v6445_v39, %v4390_v46 }
 0x64a   :  { %v4418_v60 = vmul.f32 %v6449_v63, %v4386_v43  ;;  %v4406_v48 = vadd.f32 %v6447_v36, %v4405_v29  ;;  %v6451_v6 = vpop.eup %6450  ;;  %vm4423_vm13 = vweird.f32 %v6449_v63  ;;  %v4428_v29 = vand.u32 2147483648, %v4386_v43 }
 0x64b   :  { %v4395_v58 = vsel %vm4394_vm9, %v6445_v39, %v4391_v40  ;;  %v4426_v39 = vand.u32 2147483647, %v4386_v43  ;;  %vm4424_vm15 = vmor %vm4422_vm14, %vm4423_vm13 }
 0x64c   :  { %v4419_v57 = vsub.f32 1.0, %v4418_v60  ;;  %v4400_v26 = vsel %vm4397_vm11, %v4399_v10, %v4395_v58  ;;  %v4410_v59 = vsel %vm4409_vm10, %v6447_v36, %v4406_v48 }
 0x64d   :  { %v4415_v25 = vsel %vm4412_vm12, %v4414_v44, %v4410_v59  ;;  %v4434_v49 = vmul.f32 %v6451_v6, %v4400_v26  ;;  %v4429_v59 = vor.u32 1.1754944e-38, %v4428_v29  ;;  %vm4427_vm0 = vcmp.eq.f32.partialorder %v4426_v39, 8.507059e+37 }
 0x64e   :  { %v4420_v16 = vmul.f32 %v6449_v63, %v4419_v57  ;;  %v4433_v46 = vmul.f32 %v4415_v25, %v8855_v55 }
 0x64f   :  { %v4447_v34 = vpop.f32.mrf.mxu0 }
 0x650   :  { %v4460_v32 = vpop.f32.mrf.mxu1  ;;  %v9076_v21 = vadd.f32 %v4434_v49, %v4433_v46  ;;  %v4421_v24 = vadd.f32 %v6449_v63, %v4420_v16 }
 0x652   :  { %10728 = vst [vmem:[#allocation148_spill] sm:$0xff] %v9076_v21  ;;  %6452 = vtanh.f32 %v9076_v21  ;;  %v4425_v8 = vsel %vm4424_vm15, %v6449_v63, %v4421_v24  ;;  %v10760_v21 = vld [vmem:[#allocation206_spill] sm:$0xff] }
 0x653   :  { %v4430_v56 = vsel %vm4427_vm0, %v4429_v59, %v4425_v8 }
 0x656   :  { %v4473_v48 = vpop.f32.mrf.mxu2 }
 0x657   :  { %v9079_v36 = vpop.f32.mrf.mxu3  ;;  %v4449_v57 = vpop.f32.mrf.mxu0 }
 0x658   :  { %v4462_v1 = vpop.f32.mrf.mxu1  ;;  %v6453_v55 = vpop.eup %6452 }
 0x659   :  { %v4437_v49 = vmul.f32 %v6453_v55, %v4430_v56 }
 0x65b   :  { %v9081_v40 = vpack.c.bf16 %v4437_v49, %v4437_v49 }
 0x65d   :  { %4620 = vmatmul.bf16.vlgmr.msrb.gmra.mxu0 %v9081_v40  ;;  %4633 = vmatmul.bf16.vlgmr.msra.gmra.mxu1 %v9081_v40 }
 0x65e   :  { %v4475_v16 = vpop.f32.mrf.mxu2  ;;  %4646 = vmatmul.bf16.vlgmr.msra.gmra.mxu2 %v9081_v40  ;;  %4659 = vmatmul.bf16.vlgmr.msrb.gmra.mxu3 %v9081_v40 }
 0x65f   :  { %v4488_v60 = vpop.f32.mrf.mxu3  ;;  %4783 = vmatpush.bf16.msrb.mxu0 %v10048_v7  ;;  %4796 = vmatpush.bf16.msra.mxu1 %v10049_v22 }
 0x660   :  { %v4499_v43 = vpop.f32.mrf.mxu0  ;;  %v4512_v63 = vpop.f32.mrf.mxu1  ;;  %4809 = vmatpush.bf16.msra.mxu2 %v10050_v30  ;;  %4822 = vmatpush.bf16.msrb.mxu3 %v10051_v37 }
 0x661   :  { %v4500_v10 = vadd.f32 %v4499_v43, %v4447_v34  ;;  %v4513_v44 = vadd.f32 %v4512_v63, %v4460_v32 }
 0x663   :  { %v4542_v58 = vadd.f32 %v4500_v10, %v7883_v38  ;;  %v4543_v6 = vadd.f32 %v4513_v44, %v7885_v17  ;;  %4784 = vmatpush.bf16.msrb.mxu0 %v10053_v33  ;;  %4797 = vmatpush.bf16.msra.mxu1 %v10054_v45  ;;  %v10749_v17 = vld [vmem:[#allocation195_spill] sm:$0xff]  ;;  %v10759_v38 = vld [vmem:[#allocation205_spill] sm:$0xff] }
 0x664   :  { %4810 = vmatpush.bf16.msra.mxu2 %v10055_v15  ;;  %4823 = vmatpush.bf16.msrb.mxu3 %v10056_v2 }
 0x665   :  { %v5942_v26 = vmul.f32 -1.442695, %v4542_v58  ;;  %v5943_v25 = vmul.f32 -1.442695, %v4543_v6  ;;  %v10729_v6 = vld [vmem:[#allocation171_spill] sm:$0xff] }
 0x667   :  { %6454 = vpow2.f32 %v5942_v26  ;;  %v4525_v46 = vpop.f32.mrf.mxu2  ;;  %v4538_v34 = vpop.f32.mrf.mxu3  ;;  %4785 = vmatpush.bf16.msrb.mxu0 %v10191_v47  ;;  %4798 = vmatpush.bf16.msra.mxu1 %v10192_v11 }
 0x668   :  { %6456 = vpow2.f32 %v5943_v25  ;;  %v4526_v32 = vadd.f32 %v4525_v46, %v4473_v48  ;;  %v4501_v24 = vpop.f32.mrf.mxu0  ;;  %v4514_v29 = vpop.f32.mrf.mxu1  ;;  %4811 = vmatpush.bf16.msra.mxu2 %v10193_v53  ;;  %4824 = vmatpush.bf16.msrb.mxu3 %v10194_v51  ;;  %v4609_v48 = vpack.c.bf16 %v9017_v35, %v9017_v35  ;;  %v4539_v35 = vadd.f32 %v4538_v34, %v9079_v36  ;;  %v10730_v46 = vld [vmem:[#allocation172_spill] sm:$0xff]  ;;  %v10731_v34 = vld [vmem:[#allocation173_spill] sm:$0xff] }
 0x66a   :  { %v4544_v39 = vadd.f32 %v4526_v32, %v10190_v3  ;;  %v4545_v63 = vadd.f32 %v4539_v35, %v10617_v18  ;;  %v10747_v18 = vld [vmem:[#allocation193_spill] sm:$0xff]  ;;  %v10748_v3 = vld [vmem:[#allocation194_spill] sm:$0xff] }
 0x66b   :  { %4786 = vmatpush.bf16.msrb.mxu0 %v10195_v42  ;;  %4799 = vmatpush.bf16.msra.mxu1 %v10330_v28 }
 0x66c   :  { %v5944_v8 = vmul.f32 -1.442695, %v4544_v39  ;;  %4812 = vmatpush.bf16.msra.mxu2 %v10331_v14  ;;  %4825 = vmatpush.bf16.msrb.mxu3 %v10332_v61 }
 0x66d   :  { %v6455_v59 = vpop.eup %6454  ;;  %4672 = vmatmul.bf16.vlgmr.msra.gmra.mxu0 %v4609_v48  ;;  %4685 = vmatmul.bf16.vlgmr.msrb.gmra.mxu1 %v4609_v48 }
 0x66e   :  { %v6457_v57 = vpop.eup %6456  ;;  %v4555_v1 = vadd.f32 1.0, %v6455_v59  ;;  %6458 = vpow2.f32 %v5944_v8  ;;  %4698 = vmatmul.bf16.vlgmr.msrb.gmra.mxu2 %v4609_v48  ;;  %4711 = vmatmul.bf16.vlgmr.msra.gmra.mxu3 %v4609_v48 }
 0x66f   :  { %v9108_v55 = vadd.f32 1.0, %v6457_v57  ;;  %v4527_v56 = vpop.f32.mrf.mxu2  ;;  %v4540_v49 = vpop.f32.mrf.mxu3  ;;  %4787 = vmatpush.bf16.msrb.mxu0 %v10333_v4  ;;  %4800 = vmatpush.bf16.msra.mxu1 %v10334_v31  ;;  %v10732_v57 = vld [vmem:[#allocation174_spill] sm:$0xff] }
 0x670   :  { %6460 = vrcp.f32 %v4555_v1  ;;  %4813 = vmatpush.bf16.msra.mxu2 %v10335_v9  ;;  %4826 = vmatpush.bf16.msrb.mxu3 %v10336_v19  ;;  %v4569_v25 = vand.u32 2147483648, %v4555_v1  ;;  %v4567_v29 = vand.u32 2147483647, %v4555_v1  ;;  %vm4563_vm3 = vweird.f32 %v4555_v1  ;;  %v10733_v56 = vld [vmem:[#allocation175_spill] sm:$0xff] }
 0x671   :  { %6462 = vrcp.f32 %v9108_v55  ;;  %v4584_v32 = vand.u32 2147483648, %v9108_v55  ;;  %v4582_v8 = vand.u32 2147483647, %v9108_v55  ;;  %vm4578_vm4 = vweird.f32 %v9108_v55 }
 0x672   :  { %v4570_v35 = vor.u32 1.1754944e-38, %v4569_v25  ;;  %vm4568_vm7 = vcmp.eq.f32.partialorder %v4567_v29, 8.507059e+37  ;;  %v10735_v29 = vld [vmem:[#allocation182_spill] sm:$0xff] }
 0x673   :  { %4788 = vmatpush.bf16.msrb.mxu0 %v10475_v23  ;;  %4801 = vmatpush.bf16.msra.mxu1 %v10476_v41  ;;  %vm4583_vm8 = vcmp.eq.f32.partialorder %v4582_v8, 8.507059e+37 }
 0x674   :  { %v6459_v16 = vpop.eup %6458  ;;  %4814 = vmatpush.bf16.msra.mxu2 %v10618_v54  ;;  %4827 = vmatpush.bf16.msrb.mxu3 %v10619_v50 }
 0x675   :  { %v9116_v60 = vadd.f32 1.0, %v6459_v16 }
 0x676   :  { %v6461_v43 = vpop.eup %6460 }
 0x677   :  { %v6463_v10 = vpop.eup %6462  ;;  %v4559_v36 = vmul.f32 %v6461_v43, %v4555_v1  ;;  %6464 = vrcp.f32 %v9116_v60  ;;  %4789 = vmatpush.bf16.msrb.mxu0 %v10620_v62  ;;  %4802 = vmatpush.bf16.msra.mxu1 %v10729_v6  ;;  %vm4564_vm1 = vweird.f32 %v6461_v43  ;;  %v4599_v8 = vand.u32 2147483648, %v9116_v60 }
 0x678   :  { %v4574_v44 = vmul.f32 %v6463_v10, %v9108_v55  ;;  %6466 = vtanh.f32 %v4545_v63  ;;  %4815 = vmatpush.bf16.msra.mxu2 %v10730_v46  ;;  %4828 = vmatpush.bf16.msrb.mxu3 %v10731_v34  ;;  %vm4579_vm2 = vweird.f32 %v6463_v10  ;;  %vm4565_vm5 = vmor %vm4563_vm3, %vm4564_vm1  ;;  %v4585_v63 = vor.u32 1.1754944e-38, %v4584_v32 }
 0x679   :  { %v4560_v58 = vsub.f32 1.0, %v4559_v36  ;;  %vm4580_vm6 = vmor %vm4578_vm4, %vm4579_vm2  ;;  %vm4593_vm10 = vweird.f32 %v9116_v60 }
 0x67a   :  { %v4575_v26 = vsub.f32 1.0, %v4574_v44 }
 0x67b   :  { %v4561_v24 = vmul.f32 %v6461_v43, %v4560_v58  ;;  %4790 = vmatpush.bf16.msrb.mxu0 %v10732_v57  ;;  %4803 = vmatpush.bf16.msra.mxu1 %v10733_v56 }
 0x67c   :  { %v4576_v39 = vmul.f32 %v6463_v10, %v4575_v26  ;;  %4816 = vmatpush.bf16.msra.mxu2 %v7627_v20  ;;  %4829 = vmatpush.bf16.msrb.mxu3 %v10076_v0 }
 0x67d   :  { %v6465_v59 = vpop.eup %6464  ;;  %v4562_v48 = vadd.f32 %v6461_v43, %v4561_v24 }
 0x67e   :  { %v4589_v49 = vmul.f32 %v6465_v59, %v9116_v60  ;;  %v4577_v16 = vadd.f32 %v6463_v10, %v4576_v39  ;;  %v6467_v1 = vpop.eup %6466  ;;  %vm4594_vm9 = vweird.f32 %v6465_v59 }
 0x67f   :  { %v4566_v36 = vsel %vm4565_vm5, %v6461_v43, %v4562_v48  ;;  %4835 = vmatpush.bf16.msra.mxu0 %v10077_v5  ;;  %4848 = vmatpush.bf16.msrb.mxu1 %v10078_v13  ;;  %v10734_v43 = vld [vmem:[#allocation181_spill] sm:$0xff]  ;;  %v10737_v48 = vld [vmem:[#allocation183_spill] sm:$0xff]  ;;  %vm4595_vm11 = vmor %vm4593_vm10, %vm4594_vm9 }
 0x680   :  { %v4590_v44 = vsub.f32 1.0, %v4589_v49  ;;  %v4571_v55 = vsel %vm4568_vm7, %v4570_v35, %v4566_v36  ;;  %v4581_v58 = vsel %vm4580_vm6, %v6463_v10, %v4577_v16  ;;  %4861 = vmatpush.bf16.msrb.mxu2 %v10079_v12  ;;  %4874 = vmatpush.bf16.msra.mxu3 %v10211_v27  ;;  %v10738_v49 = vld [vmem:[#allocation184_spill] sm:$0xff]  ;;  %v10739_v35 = vld [vmem:[#allocation185_spill] sm:$0xff]  ;;  %v4597_v16 = vand.u32 2147483647, %v9116_v60 }
 0x681   :  { %v4586_v26 = vsel %vm4583_vm8, %v4585_v63, %v4581_v58  ;;  %v4605_v25 = vmul.f32 %v6467_v1, %v4571_v55  ;;  %v10741_v63 = vld [vmem:[#allocation187_spill] sm:$0xff]  ;;  %v10742_v36 = vld [vmem:[#allocation188_spill] sm:$0xff]  ;;  %v10743_v55 = vld [vmem:[#allocation189_spill] sm:$0xff] }
 0x682   :  { %v4591_v24 = vmul.f32 %v6465_v59, %v4590_v44  ;;  %v4604_v32 = vmul.f32 %v4586_v26, %v8937_v52  ;;  %v10740_v52 = vld [vmem:[#allocation186_spill] sm:$0xff]  ;;  %v4600_v44 = vor.u32 1.1754944e-38, %v4599_v8  ;;  %vm4598_vm12 = vcmp.eq.f32.partialorder %v4597_v16, 8.507059e+37  ;;  %v10753_v16 = vld [vmem:[#allocation199_spill] sm:$0xff] }
 0x683   :  { %4836 = vmatpush.bf16.msra.mxu0 %v10734_v43  ;;  %4849 = vmatpush.bf16.msrb.mxu1 %v10735_v29  ;;  %v10744_v58 = vld [vmem:[#allocation190_spill] sm:$0xff] }
 0x684   :  { %v9144_v39 = vadd.f32 %v4605_v25, %v4604_v32  ;;  %4862 = vmatpush.bf16.msrb.mxu2 %v10737_v48  ;;  %4875 = vmatpush.bf16.msra.mxu3 %v10738_v49  ;;  %v4592_v10 = vadd.f32 %v6465_v59, %v4591_v24  ;;  %v10745_v25 = vld [vmem:[#allocation191_spill] sm:$0xff]  ;;  %v10746_v24 = vld [vmem:[#allocation192_spill] sm:$0xff]  ;;  %v10752_v8 = vld [vmem:[#allocation198_spill] sm:$0xff] }
 0x686   :  { %10736 = vst [vmem:[#allocation149_spill] sm:$0xff] %v9144_v39  ;;  %6468 = vtanh.f32 %v9144_v39  ;;  %v4596_v1 = vsel %vm4595_vm11, %v6465_v59, %v4592_v10  ;;  %v10750_v59 = vld [vmem:[#allocation196_spill] sm:$0xff]  ;;  %v10751_v10 = vld [vmem:[#allocation197_spill] sm:$0xff] }
 0x687   :  { %4837 = vmatpush.bf16.msra.mxu0 %v10739_v35  ;;  %4850 = vmatpush.bf16.msrb.mxu1 %v10740_v52  ;;  %v4601_v32 = vsel %vm4598_vm12, %v4600_v44, %v4596_v1  ;;  %v10754_v1 = vld [vmem:[#allocation200_spill] sm:$0xff]  ;;  %v10756_v44 = vld [vmem:[#allocation202_spill] sm:$0xff] }
 0x688   :  { %4863 = vmatpush.bf16.msrb.mxu2 %v10741_v63  ;;  %4876 = vmatpush.bf16.msra.mxu3 %v10742_v36 }
 0x68b   :  { %4838 = vmatpush.bf16.msra.mxu0 %v10743_v55  ;;  %4851 = vmatpush.bf16.msrb.mxu1 %v10744_v58 }
 0x68c   :  { %v6469_v26 = vpop.eup %6468  ;;  %4864 = vmatpush.bf16.msrb.mxu2 %v10745_v25  ;;  %4877 = vmatpush.bf16.msra.mxu3 %v10746_v24 }
 0x68d   :  { %v4608_v39 = vmul.f32 %v6469_v26, %v4601_v32  ;;  %v10757_v26 = vld [vmem:[#allocation203_spill] sm:$0xff]  ;;  %v10758_v32 = vld [vmem:[#allocation204_spill] sm:$0xff] }
 0x68f   :  { %v4611_v60 = vpack.c.bf16 %v4608_v39, %v4608_v39  ;;  %4839 = vmatpush.bf16.msra.mxu0 %v10747_v18  ;;  %4852 = vmatpush.bf16.msrb.mxu1 %v10748_v3  ;;  %v10755_v39 = vld [vmem:[#allocation201_spill] sm:$0xff] }
 0x690   :  { %4865 = vmatpush.bf16.msrb.mxu2 %v10749_v17  ;;  %4878 = vmatpush.bf16.msra.mxu3 %v10750_v59 }
 0x691   :  { %4791 = vmatmul.bf16.vlgmr.msrb.gmra.mxu0 %v4611_v60  ;;  %4804 = vmatmul.bf16.vlgmr.msra.gmra.mxu1 %v4611_v60 }
 0x692   :  { %4817 = vmatmul.bf16.vlgmr.msra.gmra.mxu2 %v4611_v60  ;;  %4830 = vmatmul.bf16.vlgmr.msrb.gmra.mxu3 %v4611_v60  ;;  %v10761_v60 = vld [vmem:[#allocation207_spill] sm:$0xff] }
 0x693   :  { %4840 = vmatpush.bf16.msra.mxu0 %v10751_v10  ;;  %4853 = vmatpush.bf16.msrb.mxu1 %v10752_v8  ;;  %v10762_v10 = vld [vmem:[#allocation208_spill] sm:$0xff] }
 0x694   :  { %4866 = vmatpush.bf16.msrb.mxu2 %v10753_v16  ;;  %4879 = vmatpush.bf16.msra.mxu3 %v10754_v1 }
 0x697   :  { %4841 = vmatpush.bf16.msra.mxu0 %v10755_v39  ;;  %4854 = vmatpush.bf16.msrb.mxu1 %v10756_v44 }
 0x698   :  { %4867 = vmatpush.bf16.msrb.mxu2 %v10757_v26  ;;  %4880 = vmatpush.bf16.msra.mxu3 %v10758_v32 }
 0x69b   :  { %4842 = vmatpush.bf16.msra.mxu0 %v10759_v38  ;;  %4855 = vmatpush.bf16.msrb.mxu1 %v10760_v21 }
 0x69c   :  { %4868 = vmatpush.bf16.msrb.mxu2 %v10761_v60  ;;  %4881 = vmatpush.bf16.msra.mxu3 %v10762_v10 }
 0x69f   :  { %4956 = vmatpush.bf16.msrb.mxu0 %v10048_v7  ;;  %4969 = vmatpush.bf16.msra.mxu1 %v10049_v22 }
 0x6a0   :  { %4982 = vmatpush.bf16.msra.mxu2 %v10050_v30  ;;  %4995 = vmatpush.bf16.msrb.mxu3 %v10051_v37 }
 0x6a1   :  { %4843 = vmatmul.bf16.vlgmr.msra.gmra.mxu0 %v9081_v40  ;;  %4856 = vmatmul.bf16.vlgmr.msrb.gmra.mxu1 %v9081_v40 }
 0x6a2   :  { %4869 = vmatmul.bf16.vlgmr.msrb.gmra.mxu2 %v9081_v40  ;;  %4882 = vmatmul.bf16.vlgmr.msra.gmra.mxu3 %v9081_v40 }
 0x6a3   :  { %4957 = vmatpush.bf16.msrb.mxu0 %v10053_v33  ;;  %4970 = vmatpush.bf16.msra.mxu1 %v10054_v45 }
 0x6a4   :  { %4983 = vmatpush.bf16.msra.mxu2 %v10055_v15  ;;  %4996 = vmatpush.bf16.msrb.mxu3 %v10056_v2 }
 0x6a7   :  { %4958 = vmatpush.bf16.msrb.mxu0 %v10191_v47  ;;  %4971 = vmatpush.bf16.msra.mxu1 %v10192_v11 }
 0x6a8   :  { %4984 = vmatpush.bf16.msra.mxu2 %v10193_v53  ;;  %4997 = vmatpush.bf16.msrb.mxu3 %v10194_v51 }
 0x6ab   :  { %4959 = vmatpush.bf16.msrb.mxu0 %v10195_v42  ;;  %4972 = vmatpush.bf16.msra.mxu1 %v10330_v28 }
 0x6ac   :  { %4985 = vmatpush.bf16.msra.mxu2 %v10331_v14  ;;  %4998 = vmatpush.bf16.msrb.mxu3 %v10332_v61  ;;  %v10766_v61 = vld [vmem:[#allocation59_spill] sm:$0xff] }
 0x6af   :  { %4960 = vmatpush.bf16.msrb.mxu0 %v10333_v4  ;;  %4973 = vmatpush.bf16.msra.mxu1 %v10334_v31 }
 0x6b0   :  { %4986 = vmatpush.bf16.msra.mxu2 %v10335_v9  ;;  %4999 = vmatpush.bf16.msrb.mxu3 %v10336_v19 }
 0x6b3   :  { %4961 = vmatpush.bf16.msrb.mxu0 %v10475_v23  ;;  %4974 = vmatpush.bf16.msra.mxu1 %v10476_v41 }
 0x6b4   :  { %4987 = vmatpush.bf16.msra.mxu2 %v10618_v54  ;;  %5000 = vmatpush.bf16.msrb.mxu3 %v10619_v50 }
 0x6b7   :  { %4962 = vmatpush.bf16.msrb.mxu0 %v10620_v62  ;;  %4975 = vmatpush.bf16.msra.mxu1 %v10729_v6  ;;  %v10767_v6 = vld [vmem:[#allocation54_spill] sm:$0xff] }
 0x6b8   :  { %4988 = vmatpush.bf16.msra.mxu2 %v10730_v46  ;;  %5001 = vmatpush.bf16.msrb.mxu3 %v10731_v34 }
 0x6bb   :  { %4963 = vmatpush.bf16.msrb.mxu0 %v10732_v57  ;;  %4976 = vmatpush.bf16.msra.mxu1 %v10733_v56 }
 0x6bc   :  { %4989 = vmatpush.bf16.msra.mxu2 %v7627_v20  ;;  %5002 = vmatpush.bf16.msrb.mxu3 %v10076_v0  ;;  %v10763_v20 = vld [vmem:[#allocation197_spill] sm:$0xff] }
 0x6bf   :  { %5008 = vmatpush.bf16.msra.mxu0 %v10077_v5  ;;  %5021 = vmatpush.bf16.msrb.mxu1 %v10078_v13 }
 0x6c0   :  { %5034 = vmatpush.bf16.msrb.mxu2 %v10079_v12  ;;  %5047 = vmatpush.bf16.msra.mxu3 %v10211_v27  ;;  %v10764_v12 = vld [vmem:[#allocation52_spill] sm:$0xff] }
 0x6c3   :  { %5009 = vmatpush.bf16.msra.mxu0 %v10734_v43  ;;  %5022 = vmatpush.bf16.msrb.mxu1 %v10735_v29 }
 0x6c4   :  { %5035 = vmatpush.bf16.msrb.mxu2 %v10737_v48  ;;  %5048 = vmatpush.bf16.msra.mxu3 %v10738_v49 }
 0x6c7   :  { %5010 = vmatpush.bf16.msra.mxu0 %v10739_v35  ;;  %5023 = vmatpush.bf16.msrb.mxu1 %v10740_v52 }
 0x6c8   :  { %5036 = vmatpush.bf16.msrb.mxu2 %v10741_v63  ;;  %5049 = vmatpush.bf16.msra.mxu3 %v10742_v36 }
 0x6cb   :  { %5011 = vmatpush.bf16.msra.mxu0 %v10743_v55  ;;  %5024 = vmatpush.bf16.msrb.mxu1 %v10744_v58 }
 0x6cc   :  { %5037 = vmatpush.bf16.msrb.mxu2 %v10745_v25  ;;  %5050 = vmatpush.bf16.msra.mxu3 %v10746_v24 }
 0x6cf   :  { %5012 = vmatpush.bf16.msra.mxu0 %v10747_v18  ;;  %5025 = vmatpush.bf16.msrb.mxu1 %v10748_v3  ;;  %v10765_v3 = vld [vmem:[#allocation61_spill] sm:$0xff] }
 0x6d0   :  { %5038 = vmatpush.bf16.msrb.mxu2 %v10749_v17  ;;  %5051 = vmatpush.bf16.msra.mxu3 %v10750_v59 }
 0x6d3   :  { %5013 = vmatpush.bf16.msra.mxu0 %v10763_v20  ;;  %5026 = vmatpush.bf16.msrb.mxu1 %v10752_v8  ;;  %v10768_v20 = vld [vmem:[#allocation148_spill] sm:$0xff] }
 0x6d4   :  { %5039 = vmatpush.bf16.msrb.mxu2 %v10753_v16  ;;  %5052 = vmatpush.bf16.msra.mxu3 %v10754_v1 }
 0x6d7   :  { %5014 = vmatpush.bf16.msra.mxu0 %v10755_v39  ;;  %5027 = vmatpush.bf16.msrb.mxu1 %v10756_v44 }
 0x6d8   :  { %5040 = vmatpush.bf16.msrb.mxu2 %v10757_v26  ;;  %5053 = vmatpush.bf16.msra.mxu3 %v10758_v32 }
 0x6da   :  { %v4621_v17 = vpop.f32.mrf.mxu0  ;;  %v4634_v7 = vpop.f32.mrf.mxu1 }
 0x6db   :  { %5015 = vmatpush.bf16.msra.mxu0 %v10759_v38  ;;  %5028 = vmatpush.bf16.msrb.mxu1 %v10760_v21 }
 0x6dc   :  { %5041 = vmatpush.bf16.msrb.mxu2 %v10761_v60  ;;  %5054 = vmatpush.bf16.msra.mxu3 %v10762_v10 }
 0x6e1   :  { %v4647_v22 = vpop.f32.mrf.mxu2  ;;  %v4660_v30 = vpop.f32.mrf.mxu3 }
 0x6e2   :  { %v4623_v37 = vpop.f32.mrf.mxu0  ;;  %v4636_v33 = vpop.f32.mrf.mxu1 }
 0x6e9   :  { %v4649_v45 = vpop.f32.mrf.mxu2  ;;  %v4662_v15 = vpop.f32.mrf.mxu3 }
 0x6ea   :  { %v4673_v2 = vpop.f32.mrf.mxu0  ;;  %v4686_v0 = vpop.f32.mrf.mxu1 }
 0x6eb   :  { %v4674_v5 = vadd.f32 %v4673_v2, %v4621_v17  ;;  %v4687_v13 = vadd.f32 %v4686_v0, %v4634_v7 }
 0x6ed   :  { %v4716_v38 = vadd.f32 %v4674_v5, %v10764_v12  ;;  %v4717_v47 = vadd.f32 %v4687_v13, %v10765_v3 }
 0x6ef   :  { %v5945_v11 = vmul.f32 -1.442695, %v4716_v38  ;;  %v5946_v53 = vmul.f32 -1.442695, %v4717_v47 }
 0x6f1   :  { %6470 = vpow2.f32 %v5945_v11  ;;  %v4699_v51 = vpop.f32.mrf.mxu2  ;;  %v4712_v42 = vpop.f32.mrf.mxu3 }
 0x6f2   :  { %6472 = vpow2.f32 %v5946_v53  ;;  %v4700_v27 = vadd.f32 %v4699_v51, %v4647_v22  ;;  %v4713_v21 = vadd.f32 %v4712_v42, %v4660_v30  ;;  %v4675_v28 = vpop.f32.mrf.mxu0  ;;  %v4688_v14 = vpop.f32.mrf.mxu1 }
 0x6f3   :  { %v10769_v28 = vld [vmem:[#allocation66_spill] sm:$0xff] }
 0x6f4   :  { %v4718_v4 = vadd.f32 %v4700_v27, %v10766_v61  ;;  %v4719_v46 = vadd.f32 %v4713_v21, %v10767_v6  ;;  %v10770_v61 = vld [vmem:[#allocation55_spill] sm:$0xff] }
 0x6f6   :  { %v5947_v31 = vmul.f32 -1.442695, %v4718_v4 }
 0x6f7   :  { %v6471_v9 = vpop.eup %6470 }
 0x6f8   :  { %v6473_v19 = vpop.eup %6472  ;;  %v4729_v23 = vadd.f32 1.0, %v6471_v9  ;;  %6474 = vpow2.f32 %v5947_v31 }
 0x6f9   :  { %v4730_v41 = vadd.f32 1.0, %v6473_v19  ;;  %v4701_v18 = vpop.f32.mrf.mxu2  ;;  %v4714_v54 = vpop.f32.mrf.mxu3 }
 0x6fa   :  { %6476 = vrcp.f32 %v4729_v23  ;;  %v4743_v48 = vand.u32 2147483648, %v4729_v23  ;;  %v4741_v52 = vand.u32 2147483647, %v4729_v23  ;;  %vm4737_vm15 = vweird.f32 %v4729_v23 }
 0x6fb   :  { %6478 = vrcp.f32 %v4730_v41  ;;  %v4758_v49 = vand.u32 2147483648, %v4730_v41  ;;  %v4756_v36 = vand.u32 2147483647, %v4730_v41  ;;  %vm4752_vm0 = vweird.f32 %v4730_v41 }
 0x6fc   :  { %v4744_v24 = vor.u32 1.1754944e-38, %v4743_v48  ;;  %vm4742_vm3 = vcmp.eq.f32.partialorder %v4741_v52, 8.507059e+37  ;;  %v10772_v52 = vld [vmem:[#allocation58_spill] sm:$0xff] }
 0x6fd   :  { %v4759_v10 = vor.u32 1.1754944e-38, %v4758_v49  ;;  %vm4757_vm4 = vcmp.eq.f32.partialorder %v4756_v36, 8.507059e+37 }
 0x6fe   :  { %v6475_v50 = vpop.eup %6474 }
 0x6ff   :  { %v4731_v62 = vadd.f32 1.0, %v6475_v50  ;;  %v10771_v50 = vld [vmem:[#allocation64_spill] sm:$0xff] }
 0x700   :  { %v6477_v40 = vpop.eup %6476 }
 0x701   :  { %v6479_v34 = vpop.eup %6478  ;;  %v4733_v57 = vmul.f32 %v6477_v40, %v4729_v23  ;;  %6480 = vrcp.f32 %v4731_v62  ;;  %vm4738_vm13 = vweird.f32 %v6477_v40  ;;  %v4773_v33 = vand.u32 2147483648, %v4731_v62 }
 0x702   :  { %v4748_v56 = vmul.f32 %v6479_v34, %v4730_v41  ;;  %6482 = vtanh.f32 %v4719_v46  ;;  %vm4753_vm14 = vweird.f32 %v6479_v34  ;;  %vm4739_vm1 = vmor %vm4737_vm15, %vm4738_vm13  ;;  %vm4767_vm6 = vweird.f32 %v4731_v62 }
 0x703   :  { %v4734_v43 = vsub.f32 1.0, %v4733_v57  ;;  %vm4754_vm2 = vmor %vm4752_vm0, %vm4753_vm14  ;;  %v4771_v45 = vand.u32 2147483647, %v4731_v62  ;;  %v4774_v12 = vor.u32 1.1754944e-38, %v4773_v33 }
 0x704   :  { %v4749_v29 = vsub.f32 1.0, %v4748_v56 }
 0x705   :  { %v4735_v35 = vmul.f32 %v6477_v40, %v4734_v43  ;;  %vm4772_vm8 = vcmp.eq.f32.partialorder %v4771_v45, 8.507059e+37 }
 0x706   :  { %v4750_v63 = vmul.f32 %v6479_v34, %v4749_v29 }
 0x707   :  { %v6481_v55 = vpop.eup %6480  ;;  %v4736_v58 = vadd.f32 %v6477_v40, %v4735_v35 }
 0x708   :  { %v4763_v25 = vmul.f32 %v6481_v55, %v4731_v62  ;;  %v4751_v59 = vadd.f32 %v6479_v34, %v4750_v63  ;;  %v6483_v16 = vpop.eup %6482  ;;  %vm4768_vm5 = vweird.f32 %v6481_v55 }
 0x709   :  { %v4740_v8 = vsel %vm4739_vm1, %v6477_v40, %v4736_v58  ;;  %vm4769_vm7 = vmor %vm4767_vm6, %vm4768_vm5 }
 0x70a   :  { %v4764_v1 = vsub.f32 1.0, %v4763_v25  ;;  %v4745_v39 = vsel %vm4742_vm3, %v4744_v24, %v4740_v8  ;;  %v4755_v44 = vsel %vm4754_vm2, %v6479_v34, %v4751_v59 }
 0x70b   :  { %v4760_v26 = vsel %vm4757_vm4, %v4759_v10, %v4755_v44  ;;  %v4779_v32 = vmul.f32 %v6483_v16, %v4745_v39 }
 0x70c   :  { %v4765_v60 = vmul.f32 %v6481_v55, %v4764_v1  ;;  %v4778_v17 = vmul.f32 %v4760_v26, %v10768_v20 }
 0x70e   :  { %v4792_v7 = vpop.f32.mrf.mxu0  ;;  %v4805_v22 = vpop.f32.mrf.mxu1  ;;  %v4780_v30 = vadd.f32 %v4779_v32, %v4778_v17  ;;  %v4766_v37 = vadd.f32 %v6481_v55, %v4765_v60 }
 0x710   :  { %6484 = vtanh.f32 %v4780_v30  ;;  %v4770_v0 = vsel %vm4769_vm7, %v6481_v55, %v4766_v37 }
 0x711   :  { %v4775_v3 = vsel %vm4772_vm8, %v4774_v12, %v4770_v0  ;;  %v10773_v0 = vld [vmem:[#allocation149_spill] sm:$0xff] }
 0x715   :  { %v4818_v15 = vpop.f32.mrf.mxu2  ;;  %v4831_v2 = vpop.f32.mrf.mxu3 }
 0x716   :  { %v4794_v5 = vpop.f32.mrf.mxu0  ;;  %v4807_v13 = vpop.f32.mrf.mxu1 }
 0x717   :  { %v6485_v38 = vpop.eup %6484 }
 0x718   :  { %v9249_v47 = vmul.f32 %v6485_v38, %v4775_v3 }
 0x71d   :  { %v4820_v11 = vpop.f32.mrf.mxu2  ;;  %v4833_v53 = vpop.f32.mrf.mxu3 }
 0x71e   :  { %v4844_v51 = vpop.f32.mrf.mxu0  ;;  %v4857_v42 = vpop.f32.mrf.mxu1 }
 0x71f   :  { %v4845_v27 = vadd.f32 %v4844_v51, %v4792_v7  ;;  %v4858_v21 = vadd.f32 %v4857_v42, %v4805_v22 }
 0x721   :  { %v4887_v14 = vadd.f32 %v4845_v27, %v10769_v28  ;;  %v4888_v4 = vadd.f32 %v4858_v21, %v10770_v61 }
 0x723   :  { %v5948_v31 = vmul.f32 -1.442695, %v4887_v14  ;;  %v5949_v9 = vmul.f32 -1.442695, %v4888_v4  ;;  %v4954_v14 = vpack.c.bf16 %v9249_v47, %v9249_v47  ;;  %v5140_v47 = vld [vmem:[%s9332_s10 + $0x68] sm:$0xff] }
 0x725   :  { %6486 = vpow2.f32 %v5948_v31  ;;  %v4870_v19 = vpop.f32.mrf.mxu2  ;;  %v4883_v23 = vpop.f32.mrf.mxu3 }
 0x726   :  { %6488 = vpow2.f32 %v5949_v9  ;;  %v4871_v41 = vadd.f32 %v4870_v19, %v4818_v15  ;;  %v4846_v18 = vpop.f32.mrf.mxu0  ;;  %v4859_v54 = vpop.f32.mrf.mxu1  ;;  %v4884_v29 = vadd.f32 %v4883_v23, %v4831_v2  ;;  %v5142_v9 = vld [vmem:[%s9332_s10 + $0x78] sm:$0xff]  ;;  %v5141_v19 = vld [vmem:[%s9332_s10 + $0x70] sm:$0xff]  ;;  %v5139_v23 = vld [vmem:[%s9332_s10 + $0x60] sm:$0xff] }
 0x728   :  { %v4889_v62 = vadd.f32 %v4871_v41, %v10771_v50  ;;  %v4890_v63 = vadd.f32 %v4884_v29, %v10772_v52 }
 0x72a   :  { %v5950_v40 = vmul.f32 -1.442695, %v4889_v62 }
 0x72b   :  { %v6487_v6 = vpop.eup %6486 }
 0x72c   :  { %v6489_v46 = vpop.eup %6488  ;;  %v4900_v34 = vadd.f32 1.0, %v6487_v6  ;;  %6490 = vpow2.f32 %v5950_v40  ;;  %v5138_v40 = vld [vmem:[%s9332_s10 + $0x58] sm:$0xff]  ;;  %v5137_v6 = vld [vmem:[%s9332_s10 + $0x50] sm:$0xff] }
 0x72d   :  { %v4901_v57 = vadd.f32 1.0, %v6489_v46  ;;  %v4872_v56 = vpop.f32.mrf.mxu2  ;;  %v4885_v43 = vpop.f32.mrf.mxu3  ;;  %v5136_v46 = vld [vmem:[%s9332_s10 + $0x48] sm:$0xff] }
 0x72e   :  { %6492 = vrcp.f32 %v4900_v34  ;;  %v4914_v59 = vand.u32 2147483648, %v4900_v34  ;;  %v4912_v16 = vand.u32 2147483647, %v4900_v34  ;;  %vm4908_vm11 = vweird.f32 %v4900_v34 }
 0x72f   :  { %6494 = vrcp.f32 %v4901_v57  ;;  %v4929_v10 = vand.u32 2147483648, %v4901_v57  ;;  %v4927_v39 = vand.u32 2147483647, %v4901_v57  ;;  %vm4923_vm12 = vweird.f32 %v4901_v57 }
 0x730   :  { %v4915_v60 = vor.u32 1.1754944e-38, %v4914_v59  ;;  %vm4913_vm15 = vcmp.eq.f32.partialorder %v4912_v16, 8.507059e+37  ;;  %v5131_v59 = vld [vmem:[%s9332_s10 + $0x20] sm:$0xff] }
 0x731   :  { %v4930_v17 = vor.u32 1.1754944e-38, %v4929_v10  ;;  %vm4928_vm0 = vcmp.eq.f32.partialorder %v4927_v39, 8.507059e+37  ;;  %v5130_v10 = vld [vmem:[%s9332_s10 + $0x18] sm:$0xff]  ;;  %v5129_v39 = vld [vmem:[%s9332_s10 + $0x10] sm:$0xff] }
 0x732   :  { %v6491_v48 = vpop.eup %6490 }
 0x733   :  { %v4902_v49 = vadd.f32 1.0, %v6491_v48  ;;  %v5134_v48 = vld [vmem:[%s9332_s10 + $0x38] sm:$0xff] }
 0x734   :  { %v6493_v35 = vpop.eup %6492 }
 0x735   :  { %v6495_v36 = vpop.eup %6494  ;;  %v4904_v55 = vmul.f32 %v6493_v35, %v4900_v34  ;;  %6496 = vrcp.f32 %v4902_v49  ;;  %vm4909_vm9 = vweird.f32 %v6493_v35  ;;  %v4944_v38 = vand.u32 2147483648, %v4902_v49  ;;  %v5135_v34 = vld [vmem:[%s9332_s10 + $0x40] sm:$0xff] }
 0x736   :  { %v4919_v58 = vmul.f32 %v6495_v36, %v4901_v57  ;;  %6498 = vtanh.f32 %v4890_v63  ;;  %vm4924_vm10 = vweird.f32 %v6495_v36  ;;  %vm4910_vm13 = vmor %vm4908_vm11, %vm4909_vm9  ;;  %vm4938_vm2 = vweird.f32 %v4902_v49  ;;  %v5133_v63 = vld [vmem:[%s9332_s10 + $0x30] sm:$0xff] }
 0x737   :  { %v4905_v25 = vsub.f32 1.0, %v4904_v55  ;;  %vm4925_vm14 = vmor %vm4923_vm12, %vm4924_vm10  ;;  %v4942_v3 = vand.u32 2147483647, %v4902_v49  ;;  %v4945_v53 = vor.u32 1.1754944e-38, %v4944_v38 }
 0x738   :  { %v4920_v24 = vsub.f32 1.0, %v4919_v58  ;;  %v5132_v58 = vld [vmem:[%s9332_s10 + $0x28] sm:$0xff] }
 0x739   :  { %v4906_v8 = vmul.f32 %v6493_v35, %v4905_v25  ;;  %vm4943_vm4 = vcmp.eq.f32.partialorder %v4942_v3, 8.507059e+37 }
 0x73a   :  { %v4921_v1 = vmul.f32 %v6495_v36, %v4920_v24 }
 0x73b   :  { %v6497_v44 = vpop.eup %6496  ;;  %v4907_v26 = vadd.f32 %v6493_v35, %v4906_v8 }
 0x73c   :  { %v4934_v32 = vmul.f32 %v6497_v44, %v4902_v49  ;;  %v4922_v20 = vadd.f32 %v6495_v36, %v4921_v1  ;;  %v6499_v22 = vpop.eup %6498  ;;  %vm4939_vm1 = vweird.f32 %v6497_v44 }
 0x73d   :  { %v4911_v7 = vsel %vm4910_vm13, %v6493_v35, %v4907_v26  ;;  %vm4940_vm3 = vmor %vm4938_vm2, %vm4939_vm1  ;;  %v5128_v26 = vld [vmem:[%s9332_s10 + $0x8] sm:$0xff]  ;;  %vm5168_vm1 = vcmask 523264  }
 0x73e   :  { %v4935_v30 = vsub.f32 1.0, %v4934_v32  ;;  %v4916_v37 = vsel %vm4913_vm15, %v4915_v60, %v4911_v7  ;;  %v4926_v33 = vsel %vm4925_vm14, %v6495_v36, %v4922_v20  ;;  %v5127_v60 = vld [vmem:[%s9332_s10] sm:$0xff] }
 0x73f   :  { %v4931_v45 = vsel %vm4928_vm0, %v4930_v17, %v4926_v33  ;;  %v4950_v15 = vmul.f32 %v6499_v22, %v4916_v37 }
 0x740   :  { %v4936_v2 = vmul.f32 %v6497_v44, %v4935_v30  ;;  %v4949_v5 = vmul.f32 %v4931_v45, %v10773_v0 }
 0x742   :  { %v9256_v13 = vadd.f32 %v4950_v15, %v4949_v5  ;;  %v4937_v12 = vadd.f32 %v6497_v44, %v4936_v2 }
 0x744   :  { %6500 = vtanh.f32 %v9256_v13  ;;  %v4941_v11 = vsel %vm4940_vm3, %v6497_v44, %v4937_v12 }
 0x745   :  { %v4946_v42 = vsel %vm4943_vm4, %v4945_v53, %v4941_v11 }
 0x74a   :  { %v6501_v51 = vpop.eup %6500 }
 0x74b   :  { %v4953_v27 = vmul.f32 %v6501_v51, %v4946_v42 }
 0x74d   :  { %v4955_v21 = vpack.c.bf16 %v4953_v27, %v4953_v27 }
 0x74f   :  { %4964 = vmatmul.bf16.vlgmr.msrb.gmra.mxu0 %v4955_v21  ;;  %4977 = vmatmul.bf16.vlgmr.msra.gmra.mxu1 %v4955_v21 }
 0x750   :  { %4990 = vmatmul.bf16.vlgmr.msra.gmra.mxu2 %v4955_v21  ;;  %5003 = vmatmul.bf16.vlgmr.msrb.gmra.mxu3 %v4955_v21 }
 0x751   :  { %5147 = vmatpush.msrb.mxu0 %v5142_v9 }
 0x753   :  { %5148 = vmatpush.msrb.mxu0 %v5141_v19 }
 0x755   :  { %5149 = vmatpush.msrb.mxu0 %v5140_v47 }
 0x757   :  { %5150 = vmatpush.msrb.mxu0 %v5139_v23 }
 0x759   :  { %5151 = vmatpush.msrb.mxu0 %v5138_v40 }
 0x75b   :  { %5152 = vmatpush.msrb.mxu0 %v5137_v6 }
 0x75d   :  { %5153 = vmatpush.msrb.mxu0 %v5136_v46 }
 0x75f   :  { %5016 = vmatmul.bf16.vlgmr.msra.gmra.mxu0 %v4954_v14  ;;  %5029 = vmatmul.bf16.vlgmr.msrb.gmra.mxu1 %v4954_v14 }
 0x760   :  { %5042 = vmatmul.bf16.vlgmr.msrb.gmra.mxu2 %v4954_v14  ;;  %5055 = vmatmul.bf16.vlgmr.msra.gmra.mxu3 %v4954_v14 }
 0x761   :  { %5154 = vmatpush.msrb.mxu0 %v5135_v34 }
 0x763   :  { %5155 = vmatpush.msrb.mxu0 %v5134_v48 }
 0x765   :  { %5156 = vmatpush.msrb.mxu0 %v5133_v63 }
 0x767   :  { %5157 = vmatpush.msrb.mxu0 %v5132_v58 }
 0x769   :  { %5158 = vmatpush.msrb.mxu0 %v5131_v59 }
 0x76b   :  { %5159 = vmatpush.msrb.mxu0 %v5130_v10 }
 0x76d   :  { %5160 = vmatpush.msrb.mxu0 %v5129_v39 }
 0x76f   :  { %5161 = vmatpush.msrb.mxu0 %v5128_v26 }
 0x771   :  { %5162 = vmatpush.msrb.mxu0 %v5127_v60 }
 0x7cc   :  { %v4965_v4 = vpop.f32.mrf.mxu0  ;;  %v4978_v31 = vpop.f32.mrf.mxu1 }
 0x7d3   :  { %v4991_v41 = vpop.f32.mrf.mxu2  ;;  %v5004_v18 = vpop.f32.mrf.mxu3 }
 0x7d4   :  { %v4967_v54 = vpop.f32.mrf.mxu0  ;;  %v4980_v62 = vpop.f32.mrf.mxu1 }
 0x7db   :  { %v4993_v57 = vpop.f32.mrf.mxu2  ;;  %v5006_v56 = vpop.f32.mrf.mxu3 }
 0x7dc   :  { %v5017_v43 = vpop.f32.mrf.mxu0  ;;  %v5030_v29 = vpop.f32.mrf.mxu1 }
 0x7dd   :  { %v5018_v49 = vadd.f32 %v5017_v43, %v4965_v4  ;;  %v5031_v35 = vadd.f32 %v5030_v29, %v4978_v31 }
 0x7df   :  { %v5060_v36 = vadd.f32 %v5018_v49, %v10769_v28  ;;  %v5061_v55 = vadd.f32 %v5031_v35, %v10770_v61 }
 0x7e1   :  { %v5951_v25 = vmul.f32 -1.442695, %v5060_v36  ;;  %v5952_v24 = vmul.f32 -1.442695, %v5061_v55  ;;  %v6133_v36 = vld [vmem:[%s9333_s11] ss:$0 sm:$0xff] }
 0x7e3   :  { %6502 = vpow2.f32 %v5951_v25  ;;  %v5043_v28 = vpop.f32.mrf.mxu2  ;;  %v5056_v8 = vpop.f32.mrf.mxu3 }
 0x7e4   :  { %6504 = vpow2.f32 %v5952_v24  ;;  %v5044_v61 = vadd.f32 %v5043_v28, %v4991_v41  ;;  %v5019_v16 = vpop.f32.mrf.mxu0  ;;  %v5032_v1 = vpop.f32.mrf.mxu1 }
 0x7e6   :  { %v5062_v44 = vadd.f32 %v5044_v61, %v10771_v50  ;;  %v5057_v50 = vadd.f32 %v5056_v8, %v5004_v18 }
 0x7e8   :  { %v5953_v32 = vmul.f32 -1.442695, %v5062_v44  ;;  %v5063_v2 = vadd.f32 %v5057_v50, %v10772_v52 }
 0x7e9   :  { %v6503_v20 = vpop.eup %6502 }
 0x7ea   :  { %v6505_v17 = vpop.eup %6504  ;;  %v5073_v7 = vadd.f32 1.0, %v6503_v20  ;;  %6506 = vpow2.f32 %v5953_v32 }
 0x7eb   :  { %v5074_v22 = vadd.f32 1.0, %v6505_v17  ;;  %v5045_v30 = vpop.f32.mrf.mxu2  ;;  %v5058_v37 = vpop.f32.mrf.mxu3 }
 0x7ec   :  { %6508 = vrcp.f32 %v5073_v7  ;;  %v5087_v11 = vand.u32 2147483648, %v5073_v7  ;;  %v5085_v42 = vand.u32 2147483647, %v5073_v7  ;;  %vm5081_vm7 = vweird.f32 %v5073_v7 }
 0x7ed   :  { %6510 = vrcp.f32 %v5074_v22  ;;  %v5102_v53 = vand.u32 2147483648, %v5074_v22  ;;  %v5100_v21 = vand.u32 2147483647, %v5074_v22  ;;  %vm5096_vm8 = vweird.f32 %v5074_v22 }
 0x7ee   :  { %v5088_v31 = vor.u32 1.1754944e-38, %v5087_v11  ;;  %vm5086_vm11 = vcmp.eq.f32.partialorder %v5085_v42, 8.507059e+37 }
 0x7ef   :  { %v5103_v19 = vor.u32 1.1754944e-38, %v5102_v53  ;;  %vm5101_vm12 = vcmp.eq.f32.partialorder %v5100_v21, 8.507059e+37 }
 0x7f0   :  { %v6507_v33 = vpop.eup %6506 }
 0x7f1   :  { %v5075_v45 = vadd.f32 1.0, %v6507_v33 }
 0x7f2   :  { %v6509_v15 = vpop.eup %6508 }
 0x7f3   :  { %v6511_v0 = vpop.eup %6510  ;;  %v5077_v5 = vmul.f32 %v6509_v15, %v5073_v7  ;;  %6512 = vrcp.f32 %v5075_v45  ;;  %vm5082_vm5 = vweird.f32 %v6509_v15  ;;  %v5117_v56 = vand.u32 2147483648, %v5075_v45 }
 0x7f4   :  { %v5092_v12 = vmul.f32 %v6511_v0, %v5074_v22  ;;  %6514 = vtanh.f32 %v5063_v2  ;;  %vm5097_vm6 = vweird.f32 %v6511_v0  ;;  %vm5083_vm9 = vmor %vm5081_vm7, %vm5082_vm5  ;;  %vm5111_vm14 = vweird.f32 %v5075_v45 }
 0x7f5   :  { %v5078_v38 = vsub.f32 1.0, %v5077_v5  ;;  %vm5098_vm10 = vmor %vm5096_vm8, %vm5097_vm6  ;;  %v5115_v43 = vand.u32 2147483647, %v5075_v45  ;;  %v5118_v48 = vor.u32 1.1754944e-38, %v5117_v56 }
 0x7f6   :  { %v5093_v3 = vsub.f32 1.0, %v5092_v12 }
 0x7f7   :  { %v5079_v51 = vmul.f32 %v6509_v15, %v5078_v38  ;;  %vm5116_vm0 = vcmp.eq.f32.partialorder %v5115_v43, 8.507059e+37 }
 0x7f8   :  { %v5094_v27 = vmul.f32 %v6511_v0, %v5093_v3 }
 0x7f9   :  { %v6513_v14 = vpop.eup %6512  ;;  %v5080_v4 = vadd.f32 %v6509_v15, %v5079_v51 }
 0x7fa   :  { %v5107_v52 = vmul.f32 %v6513_v14, %v5075_v45  ;;  %v5095_v9 = vadd.f32 %v6511_v0, %v5094_v27  ;;  %v6515_v23 = vpop.eup %6514  ;;  %vm5112_vm13 = vweird.f32 %v6513_v14 }
 0x7fb   :  { %v5084_v47 = vsel %vm5083_vm9, %v6509_v15, %v5080_v4  ;;  %vm5113_vm15 = vmor %vm5111_vm14, %vm5112_vm13 }
 0x7fc   :  { %v5108_v41 = vsub.f32 1.0, %v5107_v52  ;;  %v5089_v18 = vsel %vm5086_vm11, %v5088_v31, %v5084_v47  ;;  %v5099_v54 = vsel %vm5098_vm10, %v6511_v0, %v5095_v9 }
 0x7fd   :  { %v5104_v62 = vsel %vm5101_vm12, %v5103_v19, %v5099_v54  ;;  %v5123_v40 = vmul.f32 %v6515_v23, %v5089_v18 }
 0x7fe   :  { %v5109_v6 = vmul.f32 %v6513_v14, %v5108_v41  ;;  %v5122_v46 = vmul.f32 %v5104_v62, %v9256_v13 }
 0x800   :  { %v5124_v34 = vadd.f32 %v5123_v40, %v5122_v46  ;;  %v5110_v57 = vadd.f32 %v6513_v14, %v5109_v6 }
 0x802   :  { %6516 = vtanh.f32 %v5124_v34  ;;  %v5114_v29 = vsel %vm5113_vm15, %v6513_v14, %v5110_v57 }
 0x803   :  { %v5119_v35 = vsel %vm5116_vm0, %v5118_v48, %v5114_v29 }
 0x808   :  { %v6517_v49 = vpop.eup %6516 }
 0x809   :  { %v5126_v63 = vmul.f32 %v6517_v49, %v5119_v35 }
 0x80b   :  { %5163 = vmatmul.f32.vlgmr.msrb.gmra.mxu0 %v5126_v63 }
 0x888   :  { %v5164_v13 = vpop.f32.mrf.mxu0 }
 0x889   :  { %v5165_v55 = vadd.f32 %v6133_v36, %v5164_v13 }
 0x88b   :  { %v5167_v58 = vmul.f32 %v5165_v55, %v5165_v55 }
 0x88d   :  { %v5169_v25 = vsel %vm5168_vm1, %v5167_v58, 0.0 }
 0x88e   :  { %5170 = vadd.xlane.f32.xlu0 %v5169_v25 }
 0x901   :  { %v5171_v24 = vpop.xlane.xlu0 %5170 }
 0x902   :  { %6518 = vrsqrt.f32 %v5171_v24  ;;  %vm5178_vm3 = vweird.f32 %v5171_v24 }
 0x908   :  { %v6519_v59 = vpop.eup %6518 }
 0x909   :  { %v5173_v10 = vmul.f32 %v6519_v59, %v5171_v24  ;;  %vm5179_vm2 = vweird.f32 %v6519_v59 }
 0x90a   :  { %vm5180_vm4 = vmor %vm5178_vm3, %vm5179_vm2 }
 0x90b   :  { %v5174_v28 = vmul.f32 %v6519_v59, %v5173_v10 }
 0x90d   :  { %v5175_v8 = vmul.f32 0.5, %v5174_v28 }
 0x90f   :  { %v5176_v61 = vsub.f32 1.5, %v5175_v8 }
 0x911   :  { %v5177_v16 = vmul.f32 %v6519_v59, %v5176_v61 }
 0x913   :  { %v5181_v1 = vsel %vm5180_vm4, %v6519_v59, %v5177_v16 }
 0x914   :  { %v5182_v39 = vmul.f32 %v5181_v1, %v5165_v55 }
 0x916   :  { %5183 = vst.msk [vmem:[#allocation12] sm:$0xff] %vm5168_vm1, %v5182_v39 }
 0x917   :  { %5194 = dma.vmem_to_hbm [thread:$0]  %s5190_s22, 128, %s5192_s24, [#allocation5]  }
 0x918   :  { %6670 = dma.done.wait [#allocation5], 128  }
 0x919   :  { %6671 = vsyncadd [#allocation5], 4294967168 }
 0x91a   :  { %5199 = vsyncpa [#allocation4], 1 }
 0x91b   :  { %5200 = vsyncpa [#allocation7], 1 }
 0x91c   :  { %5201 = vsyncpa [#allocation10], 1 }
 0x91d   :  { %5202 = vsyncpa [#allocation5], 1 }

</bundles_post_ra>
